<compile_context>
chip_gen: v5e
topology: v5e:2x2
jax: 0.10.0
libtpu: 0.0.40
codegen_flags: <defaults>
</compile_context>

<pallas_src>
import math

import jax
import jax.numpy as jnp
from jax.experimental import pallas as pl
from jax.experimental.pallas import tpu as pltpu

IN_DIM, HID_DIM, OUT_DIM = 768, 1000, 10


def _round_up(x, m):
    return ((x + m - 1) // m) * m


# Padded (lane-aligned) dims used inside the kernels.
IN_PAD = _round_up(IN_DIM, 128)     # 768  (already aligned)
HID_PAD = _round_up(HID_DIM, 128)   # 1024
OUT_PAD = _round_up(OUT_DIM, 128)   # 128

MAX_TILE_B = 512          # big tiles amortize per-grid-step overhead (v6e/v7x)
SMALL_BATCH_ROWS = 256    # <= this many rows: single-step DMA-overlap kernel
_VMEM_LIMIT = 32 * 1024 * 1024   # well under v7x's 64 MiB physical per-TC VMEM


def dnn_small_kernel(x_ref, w1_ref, b1_ref, w2_hbm, b2_ref, w3_hbm, b3_ref,
                     w4_hbm, b4_ref, o_ref, w2_buf, w3_buf, w4_buf, dma_sems):
    """Single-step fused MLP for tiny batches (weight-DMA-latency bound).

    w1 and the biases are auto-DMA'd by the pipeliner; w2/w3/w4 stay in HBM and
    are copied manually so their DMAs overlap layer-1..3 compute instead of all
    gating kernel entry.
    """
    cp2 = pltpu.make_async_copy(w2_hbm, w2_buf, dma_sems.at[0])
    cp3 = pltpu.make_async_copy(w3_hbm, w3_buf, dma_sems.at[1])
    cp4 = pltpu.make_async_copy(w4_hbm, w4_buf, dma_sems.at[2])
    cp2.start()
    cp3.start()
    cp4.start()

    h = jnp.dot(x_ref[...], w1_ref[...], preferred_element_type=jnp.float32)
    h = jnp.maximum(h + b1_ref[...], 0.0)

    cp2.wait()
    h = jnp.dot(h.astype(jnp.bfloat16), w2_buf[...],
                preferred_element_type=jnp.float32)
    h = jnp.maximum(h + b2_ref[...], 0.0)

    cp3.wait()
    h = jnp.dot(h.astype(jnp.bfloat16), w3_buf[...],
                preferred_element_type=jnp.float32)
    h = jnp.maximum(h + b3_ref[...], 0.0)

    cp4.wait()
    h = jnp.dot(h.astype(jnp.bfloat16), w4_buf[...],
                preferred_element_type=jnp.float32)
    o_ref[...] = h + b4_ref[...]


def dnn_tiled_kernel(x_ref, w1_ref, b1_ref, w2_ref, b2_ref, w3_ref, b3_ref,
                     w4_ref, b4_ref, o_ref):
    """Fused MLP on one (TILE_B, IN_PAD) bf16 activation tile.

    Weights are bf16 and VMEM-resident across the batch grid; accumulation and
    the bias+ReLU epilogue stay in f32.
    """
    h = jnp.dot(x_ref[...], w1_ref[...], preferred_element_type=jnp.float32)
    h = jnp.maximum(h + b1_ref[...], 0.0)
    h = jnp.dot(h.astype(jnp.bfloat16), w2_ref[...],
                preferred_element_type=jnp.float32)
    h = jnp.maximum(h + b2_ref[...], 0.0)
    h = jnp.dot(h.astype(jnp.bfloat16), w3_ref[...],
                preferred_element_type=jnp.float32)
    h = jnp.maximum(h + b3_ref[...], 0.0)
    h = jnp.dot(h.astype(jnp.bfloat16), w4_ref[...],
                preferred_element_type=jnp.float32)
    o_ref[...] = h + b4_ref[...]


def _init_linear(key, in_dim, out_dim, in_pad, out_pad):
    """PyTorch nn.Linear-style init: W ~ U(-1/sqrt(in), 1/sqrt(in)), shape (out, in).
    Returns transposed + zero-padded (in_pad, out_pad) bf16 weight and (1, out_pad)
    f32 bias. Zero padding keeps padded hidden lanes exactly 0 through ReLU."""
    kw, kb = jax.random.split(key)
    bound = 1.0 / math.sqrt(in_dim)
    w = jax.random.uniform(kw, (out_dim, in_dim), jnp.float32, -bound, bound)
    b = jax.random.uniform(kb, (out_dim,), jnp.float32, -bound, bound)
    w_pad = (jnp.zeros((in_pad, out_pad), jnp.float32)
             .at[:in_dim, :out_dim].set(w.T)).astype(jnp.bfloat16)
    # TODO(synk): on v7x, fp8 weight storage would halve weight HBM traffic again
    # for the DMA-bound small-batch path (v7x MXU consumes fp8 natively); gated
    # on accuracy requirements so not enabled here.
    b_pad = jnp.zeros((1, out_pad), jnp.float32).at[0, :out_dim].set(b)
    return w_pad, b_pad


def init_params(key):
    k1, k2, k3, k4 = jax.random.split(key, 4)
    w1, b1 = _init_linear(k1, IN_DIM, HID_DIM, IN_PAD, HID_PAD)
    w2, b2 = _init_linear(k2, HID_DIM, HID_DIM, HID_PAD, HID_PAD)
    w3, b3 = _init_linear(k3, HID_DIM, HID_DIM, HID_PAD, HID_PAD)
    w4, b4 = _init_linear(k4, HID_DIM, OUT_DIM, HID_PAD, OUT_PAD)
    return (w1, b1, w2, b2, w3, b3, w4, b4)


def _forward_small(x2, B, b_pad, params):
    """Tiny-batch path: one grid step, manual w2/w3/w4 DMA overlapped with compute."""
    w1, b1, w2, b2, w3, b3, w4, b4 = params
    if b_pad != B:
        x2 = jnp.zeros((b_pad, IN_DIM), jnp.bfloat16).at[:B, :].set(x2)

    def full(arr):
        return pl.BlockSpec(arr.shape, lambda i: (0, 0))

    out = pl.pallas_call(
        dnn_small_kernel,
        out_shape=jax.ShapeDtypeStruct((b_pad, OUT_PAD), jnp.float32),
        grid=(1,),
        in_specs=[
            pl.BlockSpec((b_pad, IN_PAD), lambda i: (0, 0)),   # x
            full(w1), full(b1),
            pl.BlockSpec(memory_space=pl.ANY), full(b2),       # w2 stays in HBM
            pl.BlockSpec(memory_space=pl.ANY), full(b3),       # w3 stays in HBM
            pl.BlockSpec(memory_space=pl.ANY), full(b4),       # w4 stays in HBM
        ],
        out_specs=pl.BlockSpec((b_pad, OUT_PAD), lambda i: (0, 0)),
        scratch_shapes=[
            pltpu.VMEM((HID_PAD, HID_PAD), jnp.bfloat16),      # w2 landing buffer
            pltpu.VMEM((HID_PAD, HID_PAD), jnp.bfloat16),      # w3 landing buffer
            pltpu.VMEM((HID_PAD, OUT_PAD), jnp.bfloat16),      # w4 landing buffer
            pltpu.SemaphoreType.DMA((3,)),
        ],
        compiler_params=pltpu.CompilerParams(
            dimension_semantics=("arbitrary",),
            vmem_limit_bytes=_VMEM_LIMIT,
        ),
    )(x2, w1, b1, w2, b2, w3, b3, w4, b4)
    return out[:B, :OUT_DIM]


def _forward_tiled(x2, B, b16, params):
    """Large-batch path: 1-D batch grid, single-buffered VMEM-resident weights."""
    w1, b1, w2, b2, w3, b3, w4, b4 = params

    # Force >=2 grid steps so dimension_semantics=("parallel",) can shard the
    # batch across the two TensorCores on v7x; each step at most MAX_TILE_B rows.
    tile_b = min(MAX_TILE_B, _round_up(pl.cdiv(b16, 2), 16))
    b_pad = _round_up(b16, tile_b)
    if b_pad != B:
        x2 = jnp.zeros((b_pad, IN_DIM), jnp.bfloat16).at[:B, :].set(x2)
    grid = (b_pad // tile_b,)

    def resident(arr):
        # Full-array block, constant index map, single-buffered -> loaded once,
        # stays VMEM-resident (~5.8 MiB of bf16 weights, not 2x that).
        return pl.BlockSpec(arr.shape, lambda i: (0, 0),
                            pipeline_mode=pl.Buffered(1))

    out = pl.pallas_call(
        dnn_tiled_kernel,
        out_shape=jax.ShapeDtypeStruct((b_pad, OUT_PAD), jnp.float32),
        grid=grid,
        in_specs=[
            pl.BlockSpec((tile_b, IN_PAD), lambda i: (i, 0)),   # x: tiled over batch
            resident(w1), resident(b1),
            resident(w2), resident(b2),
            resident(w3), resident(b3),
            resident(w4), resident(b4),
        ],
        out_specs=pl.BlockSpec((tile_b, OUT_PAD), lambda i: (i, 0)),
        compiler_params=pltpu.CompilerParams(
            dimension_semantics=("parallel",),
            vmem_limit_bytes=_VMEM_LIMIT,
        ),
    )(x2, w1, b1, w2, b2, w3, b3, w4, b4)
    return out[:B, :OUT_DIM]


def dnn_forward(x, params):
    """Equivalent of DNN.forward: flatten to (B, 768), run the fused MLP kernel."""
    B = x.shape[0]
    # Flatten (x.view(B, -1)) and cast to bf16 host-side: the kernel consumed
    # bf16 anyway; this halves activation DMA/VMEM and drops a per-tile cast.
    x2 = x.reshape(B, -1).astype(jnp.bfloat16)
    assert x2.shape[1] == IN_DIM, (
        f"expected {IN_DIM} flattened features, got {x2.shape[1]}")

    b16 = _round_up(B, 16)   # multiple of 16: bf16 sublane packing
    if b16 <= SMALL_BATCH_ROWS:
        return _forward_small(x2, B, b16, params)
    return _forward_tiled(x2, B, b16, params)


def _reference(x, params):
    """Plain-JAX reference using the same bf16-weight / f32-accumulate math."""
    w1, b1, w2, b2, w3, b3, w4, b4 = params
    h = x.reshape(x.shape[0], -1).astype(jnp.bfloat16)
    for w, b, relu in ((w1, b1, True), (w2, b2, True), (w3, b3, True), (w4, b4, False)):
        h = jnp.dot(h.astype(jnp.bfloat16), w,
                    preferred_element_type=jnp.float32) + b[0]
        if relu:
            h = jnp.maximum(h, 0.0)
    return h[:, :OUT_DIM]


if __name__ == "__main__":
    key = jax.random.PRNGKey(0)
    k_params, k_x = jax.random.split(key)

    params = init_params(k_params)

    # Small NCHW input whose flattened size is 768 (3 * 16 * 16), batch = 2.
    x = jax.random.normal(k_x, (2, 3, 16, 16), dtype=jnp.float32)

    out = dnn_forward(x, params)
    out = jax.block_until_ready(out)
    assert out.shape == (2, OUT_DIM), out.shape

    ref = _reference(x, params)
    assert jnp.allclose(out, ref, atol=2e-2, rtol=2e-2), (
        float(jnp.max(jnp.abs(out - ref))))

    print("KERNEL_OK")
</pallas_src>

<mosaic_0001>
module attributes {stable_mosaic.version = 11 : i64} {
  func.func @dnn_small_kernel(%arg0: i32, %arg1: memref<16x768xbf16, #tpu.memory_space<vmem>>, %arg2: memref<768x1024xbf16, #tpu.memory_space<vmem>>, %arg3: memref<1x1024xf32, #tpu.memory_space<vmem>>, %arg4: memref<1024x1024xbf16, #tpu.memory_space<any>>, %arg5: memref<1x1024xf32, #tpu.memory_space<vmem>>, %arg6: memref<1024x1024xbf16, #tpu.memory_space<any>>, %arg7: memref<1x1024xf32, #tpu.memory_space<vmem>>, %arg8: memref<1024x128xbf16, #tpu.memory_space<any>>, %arg9: memref<1x128xf32, #tpu.memory_space<vmem>>, %arg10: memref<16x128xf32, #tpu.memory_space<vmem>>, %arg11: memref<1024x1024xbf16, #tpu.memory_space<vmem>>, %arg12: memref<1024x1024xbf16, #tpu.memory_space<vmem>>, %arg13: memref<1024x128xbf16, #tpu.memory_space<vmem>>, %arg14: memref<3x!tpu.dma_semaphore, #tpu.memory_space<semaphore_mem>>) attributes {dimension_semantics = [#tpu.dimension_semantics<arbitrary>], iteration_bounds = array<i64: 1>, scalar_prefetch = 0 : i64, scratch_operands = 4 : i64, tpu.core_type = #tpu.core_type<tc>, window_params = [{pipeline_mode = #tpu.pipeline_mode<synchronous>, transform_indices = @transform_0, window_bounds = array<i64: 16, 768>}, {pipeline_mode = #tpu.pipeline_mode<synchronous>, transform_indices = @transform_1, window_bounds = array<i64: 768, 1024>}, {pipeline_mode = #tpu.pipeline_mode<synchronous>, transform_indices = @transform_2, window_bounds = array<i64: 1, 1024>}, {}, {pipeline_mode = #tpu.pipeline_mode<synchronous>, transform_indices = @transform_4, window_bounds = array<i64: 1, 1024>}, {}, {pipeline_mode = #tpu.pipeline_mode<synchronous>, transform_indices = @transform_6, window_bounds = array<i64: 1, 1024>}, {}, {pipeline_mode = #tpu.pipeline_mode<synchronous>, transform_indices = @transform_8, window_bounds = array<i64: 1, 128>}, {pipeline_mode = #tpu.pipeline_mode<synchronous>, transform_indices = @transform_9, window_bounds = array<i64: 16, 128>}]} {
    %c0_i32 = arith.constant 0 : i32
    %0 = tpu.memref_slice %arg14[%c0_i32] : memref<3x!tpu.dma_semaphore, #tpu.memory_space<semaphore_mem>> -> memref<1x!tpu.dma_semaphore, #tpu.memory_space<semaphore_mem>>
    %1 = tpu.memref_squeeze %0 : memref<1x!tpu.dma_semaphore, #tpu.memory_space<semaphore_mem>> -> memref<!tpu.dma_semaphore, #tpu.memory_space<semaphore_mem>>
    tpu.enqueue_dma source(%arg4 : memref<1024x1024xbf16, #tpu.memory_space<any>>) target(%arg11 : memref<1024x1024xbf16, #tpu.memory_space<vmem>>) target_semaphore(%1 : memref<!tpu.dma_semaphore, #tpu.memory_space<semaphore_mem>>)
    %c1_i32 = arith.constant 1 : i32
    %2 = tpu.memref_slice %arg14[%c1_i32] : memref<3x!tpu.dma_semaphore, #tpu.memory_space<semaphore_mem>> -> memref<1x!tpu.dma_semaphore, #tpu.memory_space<semaphore_mem>>
    %3 = tpu.memref_squeeze %2 : memref<1x!tpu.dma_semaphore, #tpu.memory_space<semaphore_mem>> -> memref<!tpu.dma_semaphore, #tpu.memory_space<semaphore_mem>>
    tpu.enqueue_dma source(%arg6 : memref<1024x1024xbf16, #tpu.memory_space<any>>) target(%arg12 : memref<1024x1024xbf16, #tpu.memory_space<vmem>>) target_semaphore(%3 : memref<!tpu.dma_semaphore, #tpu.memory_space<semaphore_mem>>)
    %c2_i32 = arith.constant 2 : i32
    %4 = tpu.memref_slice %arg14[%c2_i32] : memref<3x!tpu.dma_semaphore, #tpu.memory_space<semaphore_mem>> -> memref<1x!tpu.dma_semaphore, #tpu.memory_space<semaphore_mem>>
    %5 = tpu.memref_squeeze %4 : memref<1x!tpu.dma_semaphore, #tpu.memory_space<semaphore_mem>> -> memref<!tpu.dma_semaphore, #tpu.memory_space<semaphore_mem>>
    tpu.enqueue_dma source(%arg8 : memref<1024x128xbf16, #tpu.memory_space<any>>) target(%arg13 : memref<1024x128xbf16, #tpu.memory_space<vmem>>) target_semaphore(%5 : memref<!tpu.dma_semaphore, #tpu.memory_space<semaphore_mem>>)
    %c0 = arith.constant 0 : index
    %c0_0 = arith.constant 0 : index
    %6 = vector.load %arg1[%c0, %c0_0] : memref<16x768xbf16, #tpu.memory_space<vmem>>, vector<16x768xbf16>
    %c0_1 = arith.constant 0 : index
    %c0_2 = arith.constant 0 : index
    %7 = vector.load %arg2[%c0_1, %c0_2] : memref<768x1024xbf16, #tpu.memory_space<vmem>>, vector<768x1024xbf16>
    %cst = arith.constant dense<0.000000e+00> : vector<16x1024xf32>
    %8 = tpu.matmul %6, %7, %cst {dimension_numbers = #tpu.dot_dimension_numbers<[1], [0], [0], [1], [0, 0, 1, 1], [], []>} : vector<16x768xbf16>, vector<768x1024xbf16>, vector<16x1024xf32> -> vector<16x1024xf32>
    %c0_3 = arith.constant 0 : index
    %c0_4 = arith.constant 0 : index
    %9 = vector.load %arg3[%c0_3, %c0_4] : memref<1x1024xf32, #tpu.memory_space<vmem>>, vector<1x1024xf32>
    %10 = vector.broadcast %9 : vector<1x1024xf32> to vector<16x1024xf32>
    %11 = arith.addf %8, %10 : vector<16x1024xf32>
    %cst_5 = arith.constant 0.000000e+00 : f32
    %12 = vector.broadcast %cst_5 : f32 to vector<16x1024xf32>
    %13 = arith.maximumf %11, %12 : vector<16x1024xf32>
    %c0_i32_6 = arith.constant 0 : i32
    %14 = tpu.memref_slice %arg14[%c0_i32_6] : memref<3x!tpu.dma_semaphore, #tpu.memory_space<semaphore_mem>> -> memref<1x!tpu.dma_semaphore, #tpu.memory_space<semaphore_mem>>
    %15 = tpu.memref_squeeze %14 : memref<1x!tpu.dma_semaphore, #tpu.memory_space<semaphore_mem>> -> memref<!tpu.dma_semaphore, #tpu.memory_space<semaphore_mem>>
    tpu.wait_dma2 semaphore(%15 : memref<!tpu.dma_semaphore, #tpu.memory_space<semaphore_mem>>) src(%arg4 : memref<1024x1024xbf16, #tpu.memory_space<any>>) dst(%arg11 : memref<1024x1024xbf16, #tpu.memory_space<vmem>>)
    %16 = arith.truncf %13 : vector<16x1024xf32> to vector<16x1024xbf16>
    %c0_7 = arith.constant 0 : index
    %c0_8 = arith.constant 0 : index
    %17 = vector.load %arg11[%c0_7, %c0_8] : memref<1024x1024xbf16, #tpu.memory_space<vmem>>, vector<1024x1024xbf16>
    %cst_9 = arith.constant dense<0.000000e+00> : vector<16x1024xf32>
    %18 = tpu.matmul %16, %17, %cst_9 {dimension_numbers = #tpu.dot_dimension_numbers<[1], [0], [0], [1], [0, 0, 1, 1], [], []>} : vector<16x1024xbf16>, vector<1024x1024xbf16>, vector<16x1024xf32> -> vector<16x1024xf32>
    %c0_10 = arith.constant 0 : index
    %c0_11 = arith.constant 0 : index
    %19 = vector.load %arg5[%c0_10, %c0_11] : memref<1x1024xf32, #tpu.memory_space<vmem>>, vector<1x1024xf32>
    %20 = vector.broadcast %19 : vector<1x1024xf32> to vector<16x1024xf32>
    %21 = arith.addf %18, %20 : vector<16x1024xf32>
    %cst_12 = arith.constant 0.000000e+00 : f32
    %22 = vector.broadcast %cst_12 : f32 to vector<16x1024xf32>
    %23 = arith.maximumf %21, %22 : vector<16x1024xf32>
    %c1_i32_13 = arith.constant 1 : i32
    %24 = tpu.memref_slice %arg14[%c1_i32_13] : memref<3x!tpu.dma_semaphore, #tpu.memory_space<semaphore_mem>> -> memref<1x!tpu.dma_semaphore, #tpu.memory_space<semaphore_mem>>
    %25 = tpu.memref_squeeze %24 : memref<1x!tpu.dma_semaphore, #tpu.memory_space<semaphore_mem>> -> memref<!tpu.dma_semaphore, #tpu.memory_space<semaphore_mem>>
    tpu.wait_dma2 semaphore(%25 : memref<!tpu.dma_semaphore, #tpu.memory_space<semaphore_mem>>) src(%arg6 : memref<1024x1024xbf16, #tpu.memory_space<any>>) dst(%arg12 : memref<1024x1024xbf16, #tpu.memory_space<vmem>>)
    %26 = arith.truncf %23 : vector<16x1024xf32> to vector<16x1024xbf16>
    %c0_14 = arith.constant 0 : index
    %c0_15 = arith.constant 0 : index
    %27 = vector.load %arg12[%c0_14, %c0_15] : memref<1024x1024xbf16, #tpu.memory_space<vmem>>, vector<1024x1024xbf16>
    %cst_16 = arith.constant dense<0.000000e+00> : vector<16x1024xf32>
    %28 = tpu.matmul %26, %27, %cst_16 {dimension_numbers = #tpu.dot_dimension_numbers<[1], [0], [0], [1], [0, 0, 1, 1], [], []>} : vector<16x1024xbf16>, vector<1024x1024xbf16>, vector<16x1024xf32> -> vector<16x1024xf32>
    %c0_17 = arith.constant 0 : index
    %c0_18 = arith.constant 0 : index
    %29 = vector.load %arg7[%c0_17, %c0_18] : memref<1x1024xf32, #tpu.memory_space<vmem>>, vector<1x1024xf32>
    %30 = vector.broadcast %29 : vector<1x1024xf32> to vector<16x1024xf32>
    %31 = arith.addf %28, %30 : vector<16x1024xf32>
    %cst_19 = arith.constant 0.000000e+00 : f32
    %32 = vector.broadcast %cst_19 : f32 to vector<16x1024xf32>
    %33 = arith.maximumf %31, %32 : vector<16x1024xf32>
    %c2_i32_20 = arith.constant 2 : i32
    %34 = tpu.memref_slice %arg14[%c2_i32_20] : memref<3x!tpu.dma_semaphore, #tpu.memory_space<semaphore_mem>> -> memref<1x!tpu.dma_semaphore, #tpu.memory_space<semaphore_mem>>
    %35 = tpu.memref_squeeze %34 : memref<1x!tpu.dma_semaphore, #tpu.memory_space<semaphore_mem>> -> memref<!tpu.dma_semaphore, #tpu.memory_space<semaphore_mem>>
    tpu.wait_dma2 semaphore(%35 : memref<!tpu.dma_semaphore, #tpu.memory_space<semaphore_mem>>) src(%arg8 : memref<1024x128xbf16, #tpu.memory_space<any>>) dst(%arg13 : memref<1024x128xbf16, #tpu.memory_space<vmem>>)
    %36 = arith.truncf %33 : vector<16x1024xf32> to vector<16x1024xbf16>
    %c0_21 = arith.constant 0 : index
    %c0_22 = arith.constant 0 : index
    %37 = vector.load %arg13[%c0_21, %c0_22] : memref<1024x128xbf16, #tpu.memory_space<vmem>>, vector<1024x128xbf16>
    %cst_23 = arith.constant dense<0.000000e+00> : vector<16x128xf32>
    %38 = tpu.matmul %36, %37, %cst_23 {dimension_numbers = #tpu.dot_dimension_numbers<[1], [0], [0], [1], [0, 0, 1, 1], [], []>} : vector<16x1024xbf16>, vector<1024x128xbf16>, vector<16x128xf32> -> vector<16x128xf32>
    %c0_24 = arith.constant 0 : index
    %c0_25 = arith.constant 0 : index
    %39 = vector.load %arg9[%c0_24, %c0_25] : memref<1x128xf32, #tpu.memory_space<vmem>>, vector<1x128xf32>
    %40 = vector.broadcast %39 : vector<1x128xf32> to vector<16x128xf32>
    %41 = arith.addf %38, %40 : vector<16x128xf32>
    %c0_26 = arith.constant 0 : index
    %c0_27 = arith.constant 0 : index
    %42 = vector.load %arg10[%c0_26, %c0_27] : memref<16x128xf32, #tpu.memory_space<vmem>>, vector<16x128xf32>
    tpu.vector_store %arg10[%c0_26, %c0_27], %41 {strides = array<i32>} : memref<16x128xf32, #tpu.memory_space<vmem>>, vector<16x128xf32>,
    return
  }
  func.func @transform_0(%arg0: i32) -> (i32, i32) {
    %c0_i32 = arith.constant 0 : i32
    %c0_i32_0 = arith.constant 0 : i32
    %c0_i32_1 = arith.constant 0 : i32
    return %c0_i32, %c0_i32_0 : i32, i32
  }
  func.func @transform_1(%arg0: i32) -> (i32, i32) {
    %c0_i32 = arith.constant 0 : i32
    %c0_i32_0 = arith.constant 0 : i32
    %c0_i32_1 = arith.constant 0 : i32
    return %c0_i32, %c0_i32_0 : i32, i32
  }
  func.func @transform_2(%arg0: i32) -> (i32, i32) {
    %c0_i32 = arith.constant 0 : i32
    %c0_i32_0 = arith.constant 0 : i32
    %c0_i32_1 = arith.constant 0 : i32
    return %c0_i32, %c0_i32_0 : i32, i32
  }
  func.func @transform_4(%arg0: i32) -> (i32, i32) {
    %c0_i32 = arith.constant 0 : i32
    %c0_i32_0 = arith.constant 0 : i32
    %c0_i32_1 = arith.constant 0 : i32
    return %c0_i32, %c0_i32_0 : i32, i32
  }
  func.func @transform_6(%arg0: i32) -> (i32, i32) {
    %c0_i32 = arith.constant 0 : i32
    %c0_i32_0 = arith.constant 0 : i32
    %c0_i32_1 = arith.constant 0 : i32
    return %c0_i32, %c0_i32_0 : i32, i32
  }
  func.func @transform_8(%arg0: i32) -> (i32, i32) {
    %c0_i32 = arith.constant 0 : i32
    %c0_i32_0 = arith.constant 0 : i32
    %c0_i32_1 = arith.constant 0 : i32
    return %c0_i32, %c0_i32_0 : i32, i32
  }
  func.func @transform_9(%arg0: i32) -> (i32, i32) {
    %c0_i32 = arith.constant 0 : i32
    %c0_i32_0 = arith.constant 0 : i32
    %c0_i32_1 = arith.constant 0 : i32
    return %c0_i32, %c0_i32_0 : i32, i32
  }
}

</mosaic_0001>

<bundles_post_ra>
// kernel: tpu_custom_call.1
= control target key start
LH: loop header
LB: loop body
LE: loop exit
PB: predicated region body
PF: predicated region fallthrough
CT: control target
= control target key end

     0   :  { %14 = vsyncpa [#allocation7], 0  ;;  %s20272_s0 = inlined_call_operand.hbm [shape: bf16[16,768], index: 0, kind: input, shape index: {}]   ;;  %s20273_s1 = inlined_call_operand.hbm [shape: bf16[768,1024], index: 1, kind: input, shape index: {}]   ;;  %s20274_s2 = inlined_call_operand.hbm [shape: f32[1,1024], index: 2, kind: input, shape index: {}]   ;;  %s20275_s3 = inlined_call_operand.hbm [shape: bf16[1024,1024], index: 3, kind: input, shape index: {}]   ;;  %s20276_s4 = inlined_call_operand.hbm [shape: f32[1,1024], index: 4, kind: input, shape index: {}]   ;;  %s20277_s5 = inlined_call_operand.hbm [shape: bf16[1024,1024], index: 5, kind: input, shape index: {}]   ;;  %s20278_s6 = inlined_call_operand.hbm [shape: f32[1,1024], index: 6, kind: input, shape index: {}]   ;;  %s20279_s7 = inlined_call_operand.hbm [shape: bf16[1024,128], index: 7, kind: input, shape index: {}]   ;;  %s20280_s8 = inlined_call_operand.hbm [shape: f32[1,128], index: 8, kind: input, shape index: {}]   ;;  %s20281_s9 = inlined_call_operand.hbm [shape: f32[16,128], index: 9, kind: output, shape index: {}]  }
   0x1   :  { %15 = vsyncpa [#allocation10], 0 }
   0x2   :  { %16 = vsyncpa [#allocation13], 0 }
   0x3   :  { %17 = vsyncpa [#allocation16], 0  ;;  %s36_s11 = sshll.u32 %s20273_s1, 4  ;;  %s37_s11 = int_to_ptr.hbm [resolvable:$true] %s36_s11 }
   0x4   :  { %18 = vsyncpa [#allocation8], 0  ;;  %s19580_s12 = smov [#allocation9]   ;;  %s61_s16 = sshll.u32 %s20276_s4, 4  ;;  %s62_s16 = int_to_ptr.hbm [resolvable:$true] %s61_s16 }
   0x5   :  { %s38_s13 = sshll.u32 %s19580_s12, 4  ;;  %s19581_s17 = smov 512   ;;  %s39_s13 = int_to_ptr.vmem [resolvable:$true] %s38_s13 }
   0x6   :  { %s19582_s18 = smov 32   ;;  %s19583_s19 = smov [#allocation12]  }
   0x7   :  { %44 = dma.hbm_to_vmem [thread:$0]  %s37_s11, 49152, %s39_s13, [#allocation10], %s19581_s17, %s19581_s17, %s19582_s18  }
   0x8   :  { %s63_s20 = sshll.u32 %s19583_s19, 4  ;;  %s23_s23 = sshll.u32 %s20272_s0, 4  ;;  %s64_s20 = int_to_ptr.vmem [resolvable:$true] %s63_s20  ;;  %s24_s23 = int_to_ptr.hbm [resolvable:$true] %s23_s23 }
   0x9   :  { %66 = dma.hbm_to_vmem [thread:$0]  %s62_s16, 128, %s64_s20, [#allocation13]  }
   0xa   :  { %s19584_s1 = smov [#allocation6]   ;;  %s50_s4 = sshll.u32 %s20274_s2, 4  ;;  %s51_s4 = int_to_ptr.hbm [resolvable:$true] %s50_s4 }
   0xb   :  { %s25_s24 = sshll.u32 %s19584_s1, 4  ;;  %s19585_s27 = smov 384   ;;  %s26_s24 = int_to_ptr.vmem [resolvable:$true] %s25_s24 }
   0xc   :  { %s19586_s28 = smov 24   ;;  %s19587_s29 = smov [#allocation11]  }
   0xd   :  { %31 = dma.hbm_to_vmem [thread:$0]  %s24_s23, 768, %s26_s24, [#allocation7], %s19585_s27, %s19585_s27, %s19586_s28  }
   0xe   :  { %s52_s30 = sshll.u32 %s19587_s29, 4  ;;  %s72_s0 = sshll.u32 %s20278_s6, 4  ;;  %s53_s30 = int_to_ptr.vmem [resolvable:$true] %s52_s30  ;;  %s73_s0 = int_to_ptr.hbm [resolvable:$true] %s72_s0 }
   0xf   :  { %55 = dma.hbm_to_vmem [thread:$0]  %s51_s4, 128, %s53_s30, [#allocation10]  }
  0x10   :  { %s83_s14 = sshll.u32 %s20280_s8, 4  ;;  %s19588_s15 = smov [#allocation14]   ;;  %s84_s14 = int_to_ptr.hbm [resolvable:$true] %s83_s14 }
  0x11   :  { %s74_s16 = sshll.u32 %s19588_s15, 4  ;;  %s19589_s2 = smov [#allocation15]   ;;  %s75_s16 = int_to_ptr.vmem [resolvable:$true] %s74_s16 }
  0x12   :  { %77 = dma.hbm_to_vmem [thread:$0]  %s73_s0, 128, %s75_s16, [#allocation13]  }
  0x13   :  { %s85_s17 = sshll.u32 %s19589_s2, 4  ;;  %s86_s17 = int_to_ptr.vmem [resolvable:$true] %s85_s17 }
  0x14   :  { %88 = dma.hbm_to_vmem [thread:$0]  %s84_s14, 16, %s86_s17, [#allocation16]  }
  0x15   :  { %19564 = dma.done.wait [#allocation7], 768  }
  0x16   :  { %19565 = vsyncadd [#allocation7], 4294966528 }
  0x17   :  { %19566 = dma.done.wait [#allocation10], 49280  }
  0x18   :  { %19567 = vsyncadd [#allocation10], 4294918016 }
  0x19   :  { %19568 = dma.done.wait [#allocation13], 256  }
  0x1a   :  { %19569 = vsyncadd [#allocation13], 4294967040 }
  0x1b   :  { %19570 = dma.done.wait [#allocation16], 16  }
  0x1c   :  { %19571 = vsyncadd [#allocation16], 4294967280  ;;  %v12159_v0 = vld [vmem:[#allocation9 + $0x1c0] sm:$0xf]  ;;  %s120_s18 = sshll.u32 %s20275_s3, 4  ;;  %s19590_s19 = smov [#allocation2]   ;;  %s121_s18 = int_to_ptr.hbm [resolvable:$true] %s120_s18 }
  0x1d   :  { %v17890_v1 = vld [vmem:[#allocation9 + $0x1dc] sm:$0xf0]  ;;  %s122_s20 = sshll.u32 %s19590_s19, 4  ;;  %s134_s23 = sshll.u32 %s20277_s5, 4  ;;  %s123_s20 = int_to_ptr.vmem [resolvable:$true] %s122_s20  ;;  %s135_s23 = int_to_ptr.hbm [resolvable:$true] %s134_s23 }
  0x1e   :  { %v12415_v2 = vld [vmem:[#allocation9 + $0x3c0] sm:$0xf]  ;;  %v12160_v3 = vor.u32 %v17890_v1, %v12159_v0  ;;  %125 = dma.hbm_to_vmem [thread:$0]  %s121_s18, 65536, %s123_s20, [#allocation5] }
  0x1f   :  { %v17954_v4 = vld [vmem:[#allocation9 + $0x3dc] sm:$0xf0]  ;;  %s19591_s1 = smov [#allocation3]   ;;  %s148_s26 = sshll.u32 %s20279_s7, 4  ;;  %s149_s26 = int_to_ptr.hbm [resolvable:$true] %s148_s26 }
  0x20   :  { %v12671_v5 = vld [vmem:[#allocation9 + $0x5c0] sm:$0xf]  ;;  %v12416_v7 = vor.u32 %v17954_v4, %v12415_v2  ;;  %2512 = vmatpush.bf16.msra.mxu0 %v12160_v3  ;;  %s136_s24 = sshll.u32 %s19591_s1, 4  ;;  %s19592_s4 = smov [#allocation4]   ;;  %s137_s24 = int_to_ptr.vmem [resolvable:$true] %s136_s24 }
  0x21   :  { %v18018_v6 = vld [vmem:[#allocation9 + $0x5dc] sm:$0xf0]  ;;  %139 = dma.hbm_to_vmem [thread:$0]  %s135_s23, 65536, %s137_s24, [#allocation5 + $0x1] }
  0x22   :  { %v12672_v8 = vor.u32 %v18018_v6, %v12671_v5  ;;  %v12927_v9 = vld [vmem:[#allocation9 + $0x7c0] sm:$0xf]  ;;  %2526 = vmatpush.bf16.msra.mxu1 %v12416_v7  ;;  %s150_s27 = sshll.u32 %s19592_s4, 4  ;;  %s151_s27 = int_to_ptr.vmem [resolvable:$true] %s150_s27 }
  0x23   :  { %v18082_v10 = vld [vmem:[#allocation9 + $0x7dc] sm:$0xf0]  ;;  %153 = dma.hbm_to_vmem [thread:$0]  %s149_s26, 8192, %s151_s27, [#allocation5 + $0x2] }
  0x24   :  { %v12127_v11 = vld [vmem:[#allocation9 + $0x180] sm:$0xf]  ;;  %v12928_v12 = vor.u32 %v18082_v10, %v12927_v9  ;;  %2540 = vmatpush.bf16.msra.mxu2 %v12672_v8 }
  0x25   :  { %v17882_v13 = vld [vmem:[#allocation9 + $0x19c] sm:$0xf0] }
  0x26   :  { %v12383_v14 = vld [vmem:[#allocation9 + $0x380] sm:$0xf]  ;;  %v12128_v16 = vor.u32 %v17882_v13, %v12127_v11  ;;  %2554 = vmatpush.bf16.msra.mxu3 %v12928_v12 }
  0x27   :  { %v17946_v15 = vld [vmem:[#allocation9 + $0x39c] sm:$0xf0] }
  0x28   :  { %v12384_v17 = vor.u32 %v17946_v15, %v12383_v14  ;;  %v12639_v18 = vld [vmem:[#allocation9 + $0x580] sm:$0xf]  ;;  %2513 = vmatpush.bf16.msra.mxu0 %v12128_v16 }
  0x29   :  { %v18010_v19 = vld [vmem:[#allocation9 + $0x59c] sm:$0xf0] }
  0x2a   :  { %v12895_v20 = vld [vmem:[#allocation9 + $0x780] sm:$0xf]  ;;  %v12640_v21 = vor.u32 %v18010_v19, %v12639_v18  ;;  %2527 = vmatpush.bf16.msra.mxu1 %v12384_v17 }
  0x2b   :  { %v18074_v22 = vld [vmem:[#allocation9 + $0x79c] sm:$0xf0] }
  0x2c   :  { %v12095_v23 = vld [vmem:[#allocation9 + $0x140] sm:$0xf]  ;;  %v12896_v25 = vor.u32 %v18074_v22, %v12895_v20  ;;  %2541 = vmatpush.bf16.msra.mxu2 %v12640_v21 }
  0x2d   :  { %v17874_v24 = vld [vmem:[#allocation9 + $0x15c] sm:$0xf0] }
  0x2e   :  { %v12351_v26 = vld [vmem:[#allocation9 + $0x340] sm:$0xf]  ;;  %v12096_v29 = vor.u32 %v17874_v24, %v12095_v23  ;;  %2555 = vmatpush.bf16.msra.mxu3 %v12896_v25 }
  0x2f   :  { %v17938_v27 = vld [vmem:[#allocation9 + $0x35c] sm:$0xf0] }
  0x30   :  { %v12607_v28 = vld [vmem:[#allocation9 + $0x540] sm:$0xf]  ;;  %v12352_v33 = vor.u32 %v17938_v27, %v12351_v26  ;;  %2514 = vmatpush.bf16.msra.mxu0 %v12096_v29 }
  0x31   :  { %v18002_v30 = vld [vmem:[#allocation9 + $0x55c] sm:$0xf0] }
  0x32   :  { %v12863_v31 = vld [vmem:[#allocation9 + $0x740] sm:$0xf]  ;;  %v12608_v34 = vor.u32 %v18002_v30, %v12607_v28  ;;  %2528 = vmatpush.bf16.msra.mxu1 %v12352_v33  ;;  %v17886_v33 = vld [vmem:[#allocation9 + $0x1c4] sm:$0xf] }
  0x33   :  { %v18066_v32 = vld [vmem:[#allocation9 + $0x75c] sm:$0xf0] }
  0x34   :  { %v12063_v35 = vld [vmem:[#allocation9 + $0x100] sm:$0xf]  ;;  %v12864_v38 = vor.u32 %v18066_v32, %v12863_v31  ;;  %2542 = vmatpush.bf16.msra.mxu2 %v12608_v34  ;;  %v12161_v34 = vld [vmem:[#allocation9 + $0x1e0] sm:$0xf0] }
  0x35   :  { %v17866_v36 = vld [vmem:[#allocation9 + $0x11c] sm:$0xf0] }
  0x36   :  { %v12319_v37 = vld [vmem:[#allocation9 + $0x300] sm:$0xf]  ;;  %v12064_v44 = vor.u32 %v17866_v36, %v12063_v35  ;;  %2556 = vmatpush.bf16.msra.mxu3 %v12864_v38  ;;  %v12417_v38 = vld [vmem:[#allocation9 + $0x3e0] sm:$0xf0] }
  0x37   :  { %v17930_v39 = vld [vmem:[#allocation9 + $0x31c] sm:$0xf0] }
  0x38   :  { %v12575_v40 = vld [vmem:[#allocation9 + $0x500] sm:$0xf]  ;;  %v12320_v45 = vor.u32 %v17930_v39, %v12319_v37  ;;  %2515 = vmatpush.bf16.msra.mxu0 %v12064_v44  ;;  %v17950_v37 = vld [vmem:[#allocation9 + $0x3c4] sm:$0xf] }
  0x39   :  { %v17994_v41 = vld [vmem:[#allocation9 + $0x51c] sm:$0xf0] }
  0x3a   :  { %v12831_v42 = vld [vmem:[#allocation9 + $0x700] sm:$0xf]  ;;  %v12576_v46 = vor.u32 %v17994_v41, %v12575_v40  ;;  %2529 = vmatpush.bf16.msra.mxu1 %v12320_v45 }
  0x3b   :  { %v18058_v43 = vld [vmem:[#allocation9 + $0x71c] sm:$0xf0] }
  0x3c   :  { %v12031_v47 = vld [vmem:[#allocation9 + $0xc0] sm:$0xf]  ;;  %v12832_v50 = vor.u32 %v18058_v43, %v12831_v42  ;;  %2543 = vmatpush.bf16.msra.mxu2 %v12576_v46  ;;  %v12164_v43 = vor.u32 %v17886_v33, %v12161_v34  ;;  %v12033_v33 = vld [vmem:[#allocation9 + $0xe0] sm:$0xf0] }
  0x3d   :  { %v17858_v48 = vld [vmem:[#allocation9 + $0xdc] sm:$0xf0]  ;;  %v17918_v34 = vld [vmem:[#allocation9 + $0x2c4] sm:$0xf] }
  0x3e   :  { %v12287_v49 = vld [vmem:[#allocation9 + $0x2c0] sm:$0xf]  ;;  %v12032_v56 = vor.u32 %v17858_v48, %v12031_v47  ;;  %2557 = vmatpush.bf16.msra.mxu3 %v12832_v50  ;;  %v12420_v47 = vor.u32 %v17950_v37, %v12417_v38  ;;  %v17878_v48 = vld [vmem:[#allocation9 + $0x184] sm:$0xf] }
  0x3f   :  { %v17922_v51 = vld [vmem:[#allocation9 + $0x2dc] sm:$0xf0]  ;;  %v17942_v50 = vld [vmem:[#allocation9 + $0x384] sm:$0xf] }
  0x40   :  { %v12543_v52 = vld [vmem:[#allocation9 + $0x4c0] sm:$0xf]  ;;  %v12288_v57 = vor.u32 %v17922_v51, %v12287_v49  ;;  %2516 = vmatpush.bf16.msra.mxu0 %v12032_v56  ;;  %v12129_v49 = vld [vmem:[#allocation9 + $0x1a0] sm:$0xf0] }
  0x41   :  { %v17986_v53 = vld [vmem:[#allocation9 + $0x4dc] sm:$0xf0]  ;;  %v12385_v51 = vld [vmem:[#allocation9 + $0x3a0] sm:$0xf0] }
  0x42   :  { %v12799_v54 = vld [vmem:[#allocation9 + $0x6c0] sm:$0xf]  ;;  %v12544_v58 = vor.u32 %v17986_v53, %v12543_v52  ;;  %2530 = vmatpush.bf16.msra.mxu1 %v12288_v57  ;;  %v11911_v52 = vld [vmem:[#allocation6] sm:$0xf]  ;;  %v17827_v53 = vld [vmem:[#allocation6 + $0x14] sm:$0xf0] }
  0x43   :  { %v18050_v55 = vld [vmem:[#allocation9 + $0x6dc] sm:$0xf0]  ;;  %v19664_v57 = vor.u32 %v17827_v53, %v11911_v52 }
  0x44   :  { %v11999_v59 = vld [vmem:[#allocation9 + $0x80] sm:$0xf]  ;;  %v12800_v62 = vor.u32 %v18050_v55, %v12799_v54  ;;  %2544 = vmatpush.bf16.msra.mxu2 %v12544_v58 }
  0x45   :  { %v17850_v60 = vld [vmem:[#allocation9 + $0x9c] sm:$0xf0] }
  0x46   :  { %v12255_v61 = vld [vmem:[#allocation9 + $0x280] sm:$0xf]  ;;  %v12000_v4 = vor.u32 %v17850_v60, %v11999_v59  ;;  %2558 = vmatpush.bf16.msra.mxu3 %v12800_v62  ;;  %v12132_v59 = vor.u32 %v17878_v48, %v12129_v49  ;;  %v17870_v62 = vld [vmem:[#allocation9 + $0x144] sm:$0xf] }
  0x47   :  { %v17914_v63 = vld [vmem:[#allocation9 + $0x29c] sm:$0xf0] }
  0x48   :  { %v12511_v0 = vld [vmem:[#allocation9 + $0x480] sm:$0xf]  ;;  %v12256_v5 = vor.u32 %v17914_v63, %v12255_v61  ;;  %2517 = vmatpush.bf16.msra.mxu0 %v12000_v4  ;;  %v12388_v63 = vor.u32 %v17942_v50, %v12385_v51  ;;  %v12353_v4 = vld [vmem:[#allocation9 + $0x360] sm:$0xf0] }
  0x49   :  { %v17978_v1 = vld [vmem:[#allocation9 + $0x49c] sm:$0xf0] }
  0x4a   :  { %v12767_v2 = vld [vmem:[#allocation9 + $0x680] sm:$0xf]  ;;  %v12512_v6 = vor.u32 %v17978_v1, %v12511_v0  ;;  %2531 = vmatpush.bf16.msra.mxu1 %v12256_v5  ;;  %v12097_v0 = vld [vmem:[#allocation9 + $0x160] sm:$0xf0]  ;;  %v17824_v1 = vld [vmem:[#allocation6 + $0x4] sm:$0xf] }
  0x4b   :  { %v18042_v3 = vld [vmem:[#allocation9 + $0x69c] sm:$0xf0] }
  0x4c   :  { %v11967_v7 = vld [vmem:[#allocation9 + $0x40] sm:$0xf]  ;;  %v12768_v10 = vor.u32 %v18042_v3, %v12767_v2  ;;  %2545 = vmatpush.bf16.msra.mxu2 %v12512_v6  ;;  %v11913_v2 = vld [vmem:[#allocation6 + $0x18] sm:$0xf0]  ;;  %v17934_v3 = vld [vmem:[#allocation9 + $0x344] sm:$0xf] }
  0x4d   :  { %v17842_v8 = vld [vmem:[#allocation9 + $0x5c] sm:$0xf0]  ;;  %v19667_v6 = vor.u32 %v17824_v1, %v11913_v2 }
  0x4e   :  { %v12223_v9 = vld [vmem:[#allocation9 + $0x240] sm:$0xf]  ;;  %v11968_v16 = vor.u32 %v17842_v8, %v11967_v7  ;;  %2559 = vmatpush.bf16.msra.mxu3 %v12768_v10 }
  0x4f   :  { %v17906_v11 = vld [vmem:[#allocation9 + $0x25c] sm:$0xf0] }
  0x50   :  { %v12479_v12 = vld [vmem:[#allocation9 + $0x440] sm:$0xf]  ;;  %v12224_v19 = vor.u32 %v17906_v11, %v12223_v9  ;;  %2518 = vmatpush.bf16.msra.mxu0 %v11968_v16  ;;  %v12356_v16 = vor.u32 %v17934_v3, %v12353_v4  ;;  %v17830_v4 = vld [vmem:[#allocation9 + $0x4] sm:$0xf] }
  0x51   :  { %v17970_v13 = vld [vmem:[#allocation9 + $0x45c] sm:$0xf0] }
  0x52   :  { %v12735_v14 = vld [vmem:[#allocation9 + $0x640] sm:$0xf]  ;;  %v12480_v20 = vor.u32 %v17970_v13, %v12479_v12  ;;  %2532 = vmatpush.bf16.msra.mxu1 %v12224_v19  ;;  %v12100_v12 = vor.u32 %v17870_v62, %v12097_v0  ;;  %v17862_v13 = vld [vmem:[#allocation9 + $0x104] sm:$0xf]  ;;  %v11921_v19 = vld [vmem:[#allocation6 + $0x20] sm:$0xf0] }
  0x53   :  { %v18034_v15 = vld [vmem:[#allocation9 + $0x65c] sm:$0xf0] }
  0x54   :  { %v11935_v17 = vld [vmem:[#allocation9] sm:$0xf]  ;;  %v12736_v24 = vor.u32 %v18034_v15, %v12735_v14  ;;  %2546 = vmatpush.bf16.msra.mxu2 %v12480_v20  ;;  %v12065_v14 = vld [vmem:[#allocation9 + $0x120] sm:$0xf0]  ;;  %v11919_v15 = vld [vmem:[#allocation6 + $0x8] sm:$0xf] }
  0x55   :  { %v17834_v18 = vld [vmem:[#allocation9 + $0x1c] sm:$0xf0]  ;;  %v17926_v20 = vld [vmem:[#allocation9 + $0x304] sm:$0xf] }
  0x56   :  { %v12191_v21 = vld [vmem:[#allocation9 + $0x200] sm:$0xf]  ;;  %v11936_v31 = vor.u32 %v17834_v18, %v11935_v17  ;;  %2560 = vmatpush.bf16.msra.mxu3 %v12736_v24  ;;  %v17828_v17 = vld [vmem:[#allocation6 + $0x1c] sm:$0xf0]  ;;  %v17825_v18 = vld [vmem:[#allocation6 + $0xc] sm:$0xf] }
  0x57   :  { %v17898_v22 = vld [vmem:[#allocation9 + $0x21c] sm:$0xf0] }
  0x58   :  { %v12447_v23 = vld [vmem:[#allocation9 + $0x400] sm:$0xf]  ;;  %v12192_v35 = vor.u32 %v17898_v22, %v12191_v21  ;;  %2519 = vmatpush.bf16.msra.mxu0 %v11936_v31  ;;  %v12321_v21 = vld [vmem:[#allocation9 + $0x320] sm:$0xf0]  ;;  %v19670_v22 = vor.u32 %v17828_v17, %v11919_v15 }
  0x59   :  { %v17962_v25 = vld [vmem:[#allocation9 + $0x41c] sm:$0xf0]  ;;  %v18142_v15 = vld [vmem:[#allocation9 + $0x9c4] sm:$0xf] }
  0x5a   :  { %v12703_v26 = vld [vmem:[#allocation9 + $0x600] sm:$0xf]  ;;  %v12448_v36 = vor.u32 %v17962_v25, %v12447_v23  ;;  %2533 = vmatpush.bf16.msra.mxu1 %v12192_v35  ;;  %v19672_v23 = vor.u32 %v17825_v18, %v11921_v19  ;;  %v12289_v35 = vld [vmem:[#allocation9 + $0x2e0] sm:$0xf0] }
  0x5b   :  { %v18026_v27 = vld [vmem:[#allocation9 + $0x61c] sm:$0xf0]  ;;  %2520 = vmatmul.bf16.vlgmr.msra.gmra.mxu0 %v19664_v57  ;;  %v18206_v17 = vld [vmem:[#allocation9 + $0xbc4] sm:$0xf] }
  0x5c   :  { %v13183_v28 = vld [vmem:[#allocation9 + $0x9c0] sm:$0xf]  ;;  %v12704_v39 = vor.u32 %v18026_v27, %v12703_v26  ;;  %2547 = vmatpush.bf16.msra.mxu2 %v12448_v36  ;;  %v12068_v26 = vor.u32 %v17862_v13, %v12065_v14  ;;  %v12929_v13 = vld [vmem:[#allocation9 + $0x7e0] sm:$0xf0] }
  0x5d   :  { %v18146_v29 = vld [vmem:[#allocation9 + $0x9dc] sm:$0xf0]  ;;  %2534 = vmatmul.bf16.vlgmr.msra.gmra.mxu1 %v19667_v6 }
  0x5e   :  { %v13439_v30 = vld [vmem:[#allocation9 + $0xbc0] sm:$0xf]  ;;  %v13184_v40 = vor.u32 %v18146_v29, %v13183_v28  ;;  %2561 = vmatpush.bf16.msra.mxu3 %v12704_v39 }
  0x5f   :  { %v18210_v32 = vld [vmem:[#allocation9 + $0xbdc] sm:$0xf0]  ;;  %2548 = vmatmul.bf16.vlgmr.msra.gmra.mxu2 %v19670_v22 }
  0x60   :  { %v13151_v41 = vld [vmem:[#allocation9 + $0x980] sm:$0xf]  ;;  %v13440_v42 = vor.u32 %v18210_v32, %v13439_v30  ;;  %2568 = vmatpush.bf16.msrb.mxu0 %v13184_v40  ;;  %2596 = vmatpush.bf16.msrb.mxu2 %v12164_v43  ;;  %v12324_v30 = vor.u32 %v17926_v20, %v12321_v21  ;;  %v17854_v32 = vld [vmem:[#allocation9 + $0xc4] sm:$0xf] }
  0x61   :  { %v18138_v44 = vld [vmem:[#allocation9 + $0x99c] sm:$0xf0]  ;;  %2562 = vmatmul.bf16.vlgmr.msra.gmra.mxu3 %v19672_v23  ;;  %v12036_v38 = vor.u32 %v17854_v32, %v12033_v33  ;;  %v13441_v20 = vld [vmem:[#allocation9 + $0xbe0] sm:$0xf0] }
  0x62   :  { %v13407_v45 = vld [vmem:[#allocation9 + $0xb80] sm:$0xf]  ;;  %v13152_v54 = vor.u32 %v18138_v44, %v13151_v41  ;;  %2582 = vmatpush.bf16.msrb.mxu1 %v13440_v42  ;;  %2610 = vmatpush.bf16.msrb.mxu3 %v12420_v47  ;;  %v12292_v42 = vor.u32 %v17918_v34, %v12289_v35  ;;  %v17846_v44 = vld [vmem:[#allocation9 + $0x84] sm:$0xf]  ;;  %v13444_v34 = vor.u32 %v18206_v17, %v13441_v20 }
  0x63   :  { %v18202_v46 = vld [vmem:[#allocation9 + $0xb9c] sm:$0xf0]  ;;  %v12257_v47 = vld [vmem:[#allocation9 + $0x2a0] sm:$0xf0] }
  0x64   :  { %v13119_v55 = vld [vmem:[#allocation9 + $0x940] sm:$0xf]  ;;  %v13408_v58 = vor.u32 %v18202_v46, %v13407_v45  ;;  %2569 = vmatpush.bf16.msrb.mxu0 %v13152_v54  ;;  %2597 = vmatpush.bf16.msrb.mxu2 %v12132_v59  ;;  %v12001_v45 = vld [vmem:[#allocation9 + $0xa0] sm:$0xf0] }
  0x65   :  { %v18130_v56 = vld [vmem:[#allocation9 + $0x95c] sm:$0xf0]  ;;  %v17910_v46 = vld [vmem:[#allocation9 + $0x284] sm:$0xf]  ;;  %v12004_v50 = vor.u32 %v17846_v44, %v12001_v45 }
  0x66   :  { %v13375_v60 = vld [vmem:[#allocation9 + $0xb40] sm:$0xf]  ;;  %v13120_v7 = vor.u32 %v18130_v56, %v13119_v55  ;;  %2583 = vmatpush.bf16.msrb.mxu1 %v13408_v58  ;;  %2611 = vmatpush.bf16.msrb.mxu3 %v12388_v63  ;;  %v12260_v54 = vor.u32 %v17910_v46, %v12257_v47  ;;  %v17838_v56 = vld [vmem:[#allocation9 + $0x44] sm:$0xf] }
  0x67   :  { %v18194_v61 = vld [vmem:[#allocation9 + $0xb5c] sm:$0xf0]  ;;  %v11969_v58 = vld [vmem:[#allocation9 + $0x60] sm:$0xf0] }
  0x68   :  { %v13087_v5 = vld [vmem:[#allocation9 + $0x900] sm:$0xf]  ;;  %v13376_v11 = vor.u32 %v18194_v61, %v13375_v60  ;;  %2570 = vmatpush.bf16.msrb.mxu0 %v13120_v7  ;;  %2598 = vmatpush.bf16.msrb.mxu2 %v12100_v12  ;;  %v17902_v59 = vld [vmem:[#allocation9 + $0x244] sm:$0xf]  ;;  %v11972_v2 = vor.u32 %v17838_v56, %v11969_v58 }
  0x69   :  { %v18122_v8 = vld [vmem:[#allocation9 + $0x91c] sm:$0xf0]  ;;  %v12225_v60 = vld [vmem:[#allocation9 + $0x260] sm:$0xf0] }
  0x6a   :  { %v13343_v9 = vld [vmem:[#allocation9 + $0xb00] sm:$0xf]  ;;  %v13088_v24 = vor.u32 %v18122_v8, %v13087_v5  ;;  %2584 = vmatpush.bf16.msrb.mxu1 %v13376_v11  ;;  %2612 = vmatpush.bf16.msrb.mxu3 %v12356_v16  ;;  %v11937_v5 = vld [vmem:[#allocation9 + $0x20] sm:$0xf0]  ;;  %v12228_v7 = vor.u32 %v17902_v59, %v12225_v60 }
  0x6b   :  { %v18186_v10 = vld [vmem:[#allocation9 + $0xb1c] sm:$0xf0]  ;;  %v17894_v8 = vld [vmem:[#allocation9 + $0x204] sm:$0xf]  ;;  %v11940_v19 = vor.u32 %v17830_v4, %v11937_v5 }
  0x6c   :  { %v13344_v25 = vor.u32 %v18186_v10, %v13343_v9  ;;  %v13055_v27 = vld [vmem:[#allocation9 + $0x8c0] sm:$0xf]  ;;  %2571 = vmatpush.bf16.msrb.mxu0 %v13088_v24  ;;  %2599 = vmatpush.bf16.msrb.mxu2 %v12068_v26  ;;  %v12193_v9 = vld [vmem:[#allocation9 + $0x220] sm:$0xf0]  ;;  %v17829_v24 = vld [vmem:[#allocation6 + $0x24] sm:$0xf0] }
  0x6d   :  { %v18114_v28 = vld [vmem:[#allocation9 + $0x8dc] sm:$0xf0]  ;;  %v18014_v10 = vld [vmem:[#allocation9 + $0x5c4] sm:$0xf] }
  0x6e   :  { %v13311_v29 = vld [vmem:[#allocation9 + $0xac0] sm:$0xf]  ;;  %v13056_v36 = vor.u32 %v18114_v28, %v13055_v27  ;;  %2585 = vmatpush.bf16.msrb.mxu1 %v13344_v25  ;;  %2613 = vmatpush.bf16.msrb.mxu3 %v12324_v30  ;;  %v12673_v11 = vld [vmem:[#allocation9 + $0x5e0] sm:$0xf0]  ;;  %v12196_v25 = vor.u32 %v17894_v8, %v12193_v9  ;;  %v11929_v28 = vld [vmem:[#allocation6 + $0x28] sm:$0xf0] }
  0x6f   :  { %v18178_v31 = vld [vmem:[#allocation9 + $0xadc] sm:$0xf0]  ;;  %v18078_v12 = vld [vmem:[#allocation9 + $0x7c4] sm:$0xf]  ;;  %v12676_v26 = vor.u32 %v18014_v10, %v12673_v11 }
  0x70   :  { %v13312_v37 = vor.u32 %v18178_v31, %v13311_v29  ;;  %v13023_v39 = vld [vmem:[#allocation9 + $0x880] sm:$0xf]  ;;  %2572 = vmatpush.bf16.msrb.mxu0 %v13056_v36  ;;  %2600 = vmatpush.bf16.msrb.mxu2 %v12036_v38  ;;  %v13185_v16 = vld [vmem:[#allocation9 + $0x9e0] sm:$0xf0]  ;;  %v12932_v29 = vor.u32 %v18078_v12, %v12929_v13 }
  0x71   :  { %v18106_v40 = vld [vmem:[#allocation9 + $0x89c] sm:$0xf0]  ;;  %v17826_v27 = vld [vmem:[#allocation6 + $0x14] sm:$0xf]  ;;  %v13188_v30 = vor.u32 %v18142_v15, %v13185_v16 }
  0x72   :  { %v13279_v41 = vld [vmem:[#allocation9 + $0xa80] sm:$0xf]  ;;  %v13024_v48 = vor.u32 %v18106_v40, %v13023_v39  ;;  %2586 = vmatpush.bf16.msrb.mxu1 %v13312_v37  ;;  %2614 = vmatpush.bf16.msrb.mxu3 %v12292_v42  ;;  %v18006_v31 = vld [vmem:[#allocation9 + $0x584] sm:$0xf]  ;;  %v19678_v39 = vor.u32 %v17826_v27, %v11929_v28 }
  0x73   :  { %v18170_v43 = vld [vmem:[#allocation9 + $0xa9c] sm:$0xf0]  ;;  %v12641_v32 = vld [vmem:[#allocation9 + $0x5a0] sm:$0xf0] }
  0x74   :  { %v13280_v49 = vor.u32 %v18170_v43, %v13279_v41  ;;  %v12991_v51 = vld [vmem:[#allocation9 + $0x840] sm:$0xf]  ;;  %2573 = vmatpush.bf16.msrb.mxu0 %v13024_v48  ;;  %2601 = vmatpush.bf16.msrb.mxu2 %v12004_v50  ;;  %v18070_v33 = vld [vmem:[#allocation9 + $0x784] sm:$0xf]  ;;  %v12644_v42 = vor.u32 %v18006_v31, %v12641_v32 }
  0x75   :  { %v18098_v52 = vld [vmem:[#allocation9 + $0x85c] sm:$0xf0]  ;;  %v12897_v36 = vld [vmem:[#allocation9 + $0x7a0] sm:$0xf0] }
  0x76   :  { %v13247_v53 = vld [vmem:[#allocation9 + $0xa40] sm:$0xf]  ;;  %v12992_v61 = vor.u32 %v18098_v52, %v12991_v51  ;;  %2587 = vmatpush.bf16.msrb.mxu1 %v13280_v49  ;;  %2615 = vmatpush.bf16.msrb.mxu3 %v12260_v54  ;;  %v18134_v37 = vld [vmem:[#allocation9 + $0x984] sm:$0xf]  ;;  %v12900_v43 = vor.u32 %v18070_v33, %v12897_v36 }
  0x77   :  { %v18162_v55 = vld [vmem:[#allocation9 + $0xa5c] sm:$0xf0]  ;;  %v13153_v38 = vld [vmem:[#allocation9 + $0x9a0] sm:$0xf0] }
  0x78   :  { %v12959_v62 = vld [vmem:[#allocation9 + $0x800] sm:$0xf]  ;;  %v13248_v1 = vor.u32 %v18162_v55, %v13247_v53  ;;  %2574 = vmatpush.bf16.msrb.mxu0 %v12992_v61  ;;  %2602 = vmatpush.bf16.msrb.mxu2 %v11972_v2  ;;  %v18198_v40 = vld [vmem:[#allocation9 + $0xb84] sm:$0xf]  ;;  %v13156_v44 = vor.u32 %v18134_v37, %v13153_v38 }
  0x79   :  { %v18090_v63 = vld [vmem:[#allocation9 + $0x81c] sm:$0xf0]  ;;  %v13409_v41 = vld [vmem:[#allocation9 + $0xba0] sm:$0xf0] }
  0x7a   :  { %v13215_v0 = vld [vmem:[#allocation9 + $0xa00] sm:$0xf]  ;;  %v12960_v14 = vor.u32 %v18090_v63, %v12959_v62  ;;  %2588 = vmatpush.bf16.msrb.mxu1 %v13248_v1  ;;  %2616 = vmatpush.bf16.msrb.mxu3 %v12228_v7  ;;  %v17998_v45 = vld [vmem:[#allocation9 + $0x544] sm:$0xf]  ;;  %v13412_v48 = vor.u32 %v18198_v40, %v13409_v41 }
  0x7b   :  { %v18154_v3 = vld [vmem:[#allocation9 + $0xa1c] sm:$0xf0]  ;;  %v12609_v46 = vld [vmem:[#allocation9 + $0x560] sm:$0xf0] }
  0x7c   :  { %v13216_v18 = vor.u32 %v18154_v3, %v13215_v0  ;;  %v11927_v21 = vld [vmem:[#allocation6 + $0x10] sm:$0xf]  ;;  %2575 = vmatpush.bf16.msrb.mxu0 %v12960_v14  ;;  %2603 = vmatpush.bf16.msrb.mxu2 %v11940_v19  ;;  %v18062_v47 = vld [vmem:[#allocation9 + $0x744] sm:$0xf]  ;;  %v12612_v54 = vor.u32 %v17998_v45, %v12609_v46 }
  0x7d   :  { %v19676_v35 = vor.u32 %v17829_v24, %v11927_v21  ;;  %v12865_v49 = vld [vmem:[#allocation9 + $0x760] sm:$0xf0] }
  0x7e   :  { %2589 = vmatpush.bf16.msrb.mxu1 %v13216_v18  ;;  %2617 = vmatpush.bf16.msrb.mxu3 %v12196_v25  ;;  %v18126_v50 = vld [vmem:[#allocation9 + $0x944] sm:$0xf]  ;;  %v12868_v55 = vor.u32 %v18062_v47, %v12865_v49 }
  0x7f   :  { %2576 = vmatmul.bf16.vlgmr.msrb.gmra.mxu0 %v19676_v35  ;;  %v13121_v51 = vld [vmem:[#allocation9 + $0x960] sm:$0xf0]  ;;  %2604 = vmatmul.bf16.vlgmr.msrb.gmra.mxu2 %v19664_v57 }
  0x80   :  { %2624 = vmatpush.bf16.msra.mxu0 %v12676_v26  ;;  %2652 = vmatpush.bf16.msra.mxu2 %v13188_v30  ;;  %v18190_v52 = vld [vmem:[#allocation9 + $0xb44] sm:$0xf]  ;;  %v13124_v56 = vor.u32 %v18126_v50, %v13121_v51 }
  0x81   :  { %2590 = vmatmul.bf16.vlgmr.msrb.gmra.mxu1 %v19678_v39  ;;  %v13377_v53 = vld [vmem:[#allocation9 + $0xb60] sm:$0xf0]  ;;  %2618 = vmatmul.bf16.vlgmr.msrb.gmra.mxu3 %v19667_v6 }
  0x82   :  { %2638 = vmatpush.bf16.msra.mxu1 %v12932_v29  ;;  %2666 = vmatpush.bf16.msra.mxu3 %v13444_v34  ;;  %v17990_v58 = vld [vmem:[#allocation9 + $0x504] sm:$0xf]  ;;  %v13380_v61 = vor.u32 %v18190_v52, %v13377_v53 }
  0x83   :  { %v12577_v59 = vld [vmem:[#allocation9 + $0x520] sm:$0xf0] }
  0x84   :  { %2625 = vmatpush.bf16.msra.mxu0 %v12644_v42  ;;  %2653 = vmatpush.bf16.msra.mxu2 %v13156_v44  ;;  %v18054_v60 = vld [vmem:[#allocation9 + $0x704] sm:$0xf]  ;;  %v12580_v3 = vor.u32 %v17990_v58, %v12577_v59  ;;  %v17891_v58 = vld [vmem:[#allocation9 + $0x1e4] sm:$0xf0] }
  0x85   :  { %v12833_v62 = vld [vmem:[#allocation9 + $0x720] sm:$0xf0]  ;;  %v12423_v59 = vld [vmem:[#allocation9 + $0x3c8] sm:$0xf] }
  0x86   :  { %2639 = vmatpush.bf16.msra.mxu1 %v12900_v43  ;;  %2667 = vmatpush.bf16.msra.mxu3 %v13412_v48  ;;  %v18118_v63 = vld [vmem:[#allocation9 + $0x904] sm:$0xf]  ;;  %v12836_v4 = vor.u32 %v18054_v60, %v12833_v62  ;;  %v12679_v62 = vld [vmem:[#allocation9 + $0x5c8] sm:$0xf] }
  0x87   :  { %v13089_v0 = vld [vmem:[#allocation9 + $0x920] sm:$0xf0] }
  0x88   :  { %v18182_v1 = vld [vmem:[#allocation9 + $0xb04] sm:$0xf]  ;;  %2626 = vmatpush.bf16.msra.mxu0 %v12612_v54  ;;  %2654 = vmatpush.bf16.msra.mxu2 %v13124_v56  ;;  %v13092_v5 = vor.u32 %v18118_v63, %v13089_v0  ;;  %v12167_v56 = vld [vmem:[#allocation9 + $0x1c8] sm:$0xf] }
  0x89   :  { %v13345_v2 = vld [vmem:[#allocation9 + $0xb20] sm:$0xf0]  ;;  %v18019_v63 = vld [vmem:[#allocation9 + $0x5e4] sm:$0xf0] }
  0x8a   :  { %2640 = vmatpush.bf16.msra.mxu1 %v12868_v55  ;;  %v17982_v7 = vld [vmem:[#allocation9 + $0x4c4] sm:$0xf]  ;;  %2668 = vmatpush.bf16.msra.mxu3 %v13380_v61  ;;  %v13348_v10 = vor.u32 %v18182_v1, %v13345_v2  ;;  %v17955_v61 = vld [vmem:[#allocation9 + $0x3e4] sm:$0xf0] }
  0x8b   :  { %v12545_v8 = vld [vmem:[#allocation9 + $0x4e0] sm:$0xf0]  ;;  %v12935_v2 = vld [vmem:[#allocation9 + $0x7c8] sm:$0xf] }
  0x8c   :  { %v18046_v9 = vld [vmem:[#allocation9 + $0x6c4] sm:$0xf]  ;;  %2627 = vmatpush.bf16.msra.mxu0 %v12580_v3  ;;  %v12548_v16 = vor.u32 %v17982_v7, %v12545_v8  ;;  %2655 = vmatpush.bf16.msra.mxu2 %v13092_v5  ;;  %v18083_v3 = vld [vmem:[#allocation9 + $0x7e4] sm:$0xf0]  ;;  %v12168_v5 = vor.u32 %v17891_v58, %v12167_v56  ;;  %v12424_v7 = vor.u32 %v17955_v61, %v12423_v59 }
  0x8d   :  { %v12801_v11 = vld [vmem:[#allocation9 + $0x6e0] sm:$0xf0]  ;;  %v12680_v8 = vor.u32 %v18019_v63, %v12679_v62  ;;  %v12807_v56 = vld [vmem:[#allocation9 + $0x6c8] sm:$0xf] }
  0x8e   :  { %v18110_v12 = vld [vmem:[#allocation9 + $0x8c4] sm:$0xf]  ;;  %2641 = vmatpush.bf16.msra.mxu1 %v12836_v4  ;;  %v12804_v17 = vor.u32 %v18046_v9, %v12801_v11  ;;  %2669 = vmatpush.bf16.msra.mxu3 %v13348_v10  ;;  %v12135_v9 = vld [vmem:[#allocation9 + $0x188] sm:$0xf] }
  0x8f   :  { %v13057_v13 = vld [vmem:[#allocation9 + $0x8e0] sm:$0xf0]  ;;  %v17883_v10 = vld [vmem:[#allocation9 + $0x1a4] sm:$0xf0] }
  0x90   :  { %v18174_v14 = vld [vmem:[#allocation9 + $0xac4] sm:$0xf]  ;;  %v13060_v18 = vor.u32 %v18110_v12, %v13057_v13  ;;  %2628 = vmatpush.bf16.msra.mxu0 %v12548_v16  ;;  %v12391_v11 = vld [vmem:[#allocation9 + $0x388] sm:$0xf]  ;;  %v12936_v12 = vor.u32 %v18083_v3, %v12935_v2 }
  0x91   :  { %v13313_v15 = vld [vmem:[#allocation9 + $0xae0] sm:$0xf0]  ;;  %v17947_v13 = vld [vmem:[#allocation9 + $0x3a4] sm:$0xf0] }
  0x92   :  { %v17974_v19 = vld [vmem:[#allocation9 + $0x484] sm:$0xf]  ;;  %v13316_v24 = vor.u32 %v18174_v14, %v13313_v15  ;;  %2642 = vmatpush.bf16.msra.mxu1 %v12804_v17  ;;  %2656 = vmatpush.bf16.msra.mxu2 %v13060_v18  ;;  %v12647_v14 = vld [vmem:[#allocation9 + $0x588] sm:$0xf]  ;;  %v12136_v18 = vor.u32 %v17883_v10, %v12135_v9 }
  0x93   :  { %v12513_v20 = vld [vmem:[#allocation9 + $0x4a0] sm:$0xf0]  ;;  %v18011_v15 = vld [vmem:[#allocation9 + $0x5a4] sm:$0xf0] }
  0x94   :  { %v18038_v21 = vld [vmem:[#allocation9 + $0x684] sm:$0xf]  ;;  %v12516_v30 = vor.u32 %v17974_v19, %v12513_v20  ;;  %2670 = vmatpush.bf16.msra.mxu3 %v13316_v24  ;;  %v12903_v16 = vld [vmem:[#allocation9 + $0x788] sm:$0xf]  ;;  %v12392_v19 = vor.u32 %v17947_v13, %v12391_v11  ;;  %v12648_v20 = vor.u32 %v18011_v15, %v12647_v14 }
  0x95   :  { %v12769_v25 = vld [vmem:[#allocation9 + $0x6a0] sm:$0xf0]  ;;  %v18075_v17 = vld [vmem:[#allocation9 + $0x7a4] sm:$0xf0] }
  0x96   :  { %v18102_v26 = vld [vmem:[#allocation9 + $0x884] sm:$0xf]  ;;  %v12772_v31 = vor.u32 %v18038_v21, %v12769_v25  ;;  %2629 = vmatpush.bf16.msra.mxu0 %v12516_v30  ;;  %v12103_v21 = vld [vmem:[#allocation9 + $0x148] sm:$0xf] }
  0x97   :  { %v13025_v27 = vld [vmem:[#allocation9 + $0x8a0] sm:$0xf0]  ;;  %v17875_v24 = vld [vmem:[#allocation9 + $0x164] sm:$0xf0] }
  0x98   :  { %v18166_v28 = vld [vmem:[#allocation9 + $0xa84] sm:$0xf]  ;;  %v13028_v32 = vor.u32 %v18102_v26, %v13025_v27  ;;  %2643 = vmatpush.bf16.msra.mxu1 %v12772_v31  ;;  %v12359_v25 = vld [vmem:[#allocation9 + $0x348] sm:$0xf]  ;;  %v12904_v26 = vor.u32 %v18075_v17, %v12903_v16 }
  0x99   :  { %v13281_v29 = vld [vmem:[#allocation9 + $0xaa0] sm:$0xf0]  ;;  %v17939_v27 = vld [vmem:[#allocation9 + $0x364] sm:$0xf0] }
  0x9a   :  { %v17966_v33 = vld [vmem:[#allocation9 + $0x444] sm:$0xf]  ;;  %v13284_v37 = vor.u32 %v18166_v28, %v13281_v29  ;;  %2657 = vmatpush.bf16.msra.mxu2 %v13028_v32  ;;  %v12615_v28 = vld [vmem:[#allocation9 + $0x548] sm:$0xf]  ;;  %v12104_v32 = vor.u32 %v17875_v24, %v12103_v21 }
  0x9b   :  { %v12481_v34 = vld [vmem:[#allocation9 + $0x460] sm:$0xf0]  ;;  %v18003_v29 = vld [vmem:[#allocation9 + $0x564] sm:$0xf0] }
  0x9c   :  { %v18030_v36 = vld [vmem:[#allocation9 + $0x644] sm:$0xf]  ;;  %v12484_v44 = vor.u32 %v17966_v33, %v12481_v34  ;;  %2671 = vmatpush.bf16.msra.mxu3 %v13284_v37  ;;  %v12871_v30 = vld [vmem:[#allocation9 + $0x748] sm:$0xf]  ;;  %v12360_v33 = vor.u32 %v17939_v27, %v12359_v25  ;;  %v12616_v34 = vor.u32 %v18003_v29, %v12615_v28 }
  0x9d   :  { %v12737_v38 = vld [vmem:[#allocation9 + $0x660] sm:$0xf0]  ;;  %v18067_v31 = vld [vmem:[#allocation9 + $0x764] sm:$0xf0] }
  0x9e   :  { %v18094_v40 = vld [vmem:[#allocation9 + $0x844] sm:$0xf]  ;;  %v12740_v47 = vor.u32 %v18030_v36, %v12737_v38  ;;  %2630 = vmatpush.bf16.msra.mxu0 %v12484_v44  ;;  %v12071_v36 = vld [vmem:[#allocation9 + $0x108] sm:$0xf] }
  0x9f   :  { %v12993_v41 = vld [vmem:[#allocation9 + $0x860] sm:$0xf0]  ;;  %v17867_v37 = vld [vmem:[#allocation9 + $0x124] sm:$0xf0] }
  0xa0   :  { %v18158_v42 = vld [vmem:[#allocation9 + $0xa44] sm:$0xf]  ;;  %v12996_v48 = vor.u32 %v18094_v40, %v12993_v41  ;;  %2644 = vmatpush.bf16.msra.mxu1 %v12740_v47  ;;  %v12327_v38 = vld [vmem:[#allocation9 + $0x308] sm:$0xf]  ;;  %v12872_v40 = vor.u32 %v18067_v31, %v12871_v30 }
  0xa1   :  { %v13249_v43 = vld [vmem:[#allocation9 + $0xa60] sm:$0xf0]  ;;  %v17931_v41 = vld [vmem:[#allocation9 + $0x324] sm:$0xf0] }
  0xa2   :  { %v17958_v45 = vld [vmem:[#allocation9 + $0x404] sm:$0xf]  ;;  %v13252_v52 = vor.u32 %v18158_v42, %v13249_v43  ;;  %2658 = vmatpush.bf16.msra.mxu2 %v12996_v48  ;;  %v12583_v42 = vld [vmem:[#allocation9 + $0x508] sm:$0xf]  ;;  %v12328_v47 = vor.u32 %v17931_v41, %v12327_v38  ;;  %v17887_v41 = vld [vmem:[#allocation9 + $0x1cc] sm:$0xf] }
  0xa3   :  { %v12449_v46 = vld [vmem:[#allocation9 + $0x420] sm:$0xf0]  ;;  %v17995_v43 = vld [vmem:[#allocation9 + $0x524] sm:$0xf0] }
  0xa4   :  { %v18022_v49 = vld [vmem:[#allocation9 + $0x604] sm:$0xf]  ;;  %v12452_v60 = vor.u32 %v17958_v45, %v12449_v46  ;;  %2672 = vmatpush.bf16.msra.mxu3 %v13252_v52  ;;  %v12839_v44 = vld [vmem:[#allocation9 + $0x708] sm:$0xf]  ;;  %v12072_v46 = vor.u32 %v17867_v37, %v12071_v36  ;;  %v12584_v48 = vor.u32 %v17995_v43, %v12583_v42  ;;  %v12169_v42 = vld [vmem:[#allocation9 + $0x1e8] sm:$0xf0] }
  0xa5   :  { %v12705_v50 = vld [vmem:[#allocation9 + $0x620] sm:$0xf0]  ;;  %v18059_v45 = vld [vmem:[#allocation9 + $0x724] sm:$0xf0] }
  0xa6   :  { %v18086_v51 = vld [vmem:[#allocation9 + $0x804] sm:$0xf]  ;;  %v12708_v0 = vor.u32 %v18022_v49, %v12705_v50  ;;  %2631 = vmatpush.bf16.msra.mxu0 %v12452_v60  ;;  %v12039_v49 = vld [vmem:[#allocation9 + $0xc8] sm:$0xf]  ;;  %v12840_v52 = vor.u32 %v18059_v45, %v12839_v44  ;;  %v17951_v45 = vld [vmem:[#allocation9 + $0x3cc] sm:$0xf] }
  0xa7   :  { %v12961_v53 = vld [vmem:[#allocation9 + $0x820] sm:$0xf0]  ;;  %v17859_v50 = vld [vmem:[#allocation9 + $0xe4] sm:$0xf0] }
  0xa8   :  { %v18150_v54 = vld [vmem:[#allocation9 + $0xa04] sm:$0xf]  ;;  %v12964_v1 = vor.u32 %v18086_v51, %v12961_v53  ;;  %2645 = vmatpush.bf16.msra.mxu1 %v12708_v0  ;;  %v12295_v51 = vld [vmem:[#allocation9 + $0x2c8] sm:$0xf]  ;;  %v12040_v59 = vor.u32 %v17859_v50, %v12039_v49  ;;  %v12172_v50 = vor.u32 %v17887_v41, %v12169_v42 }
  0xa9   :  { %v13217_v55 = vld [vmem:[#allocation9 + $0xa20] sm:$0xf0]  ;;  %2632 = vmatmul.bf16.vlgmr.msra.gmra.mxu0 %v19670_v22  ;;  %v17923_v53 = vld [vmem:[#allocation9 + $0x2e4] sm:$0xf0] }
  0xaa   :  { %v13220_v4 = vor.u32 %v18150_v54, %v13217_v55  ;;  %2659 = vmatpush.bf16.msra.mxu2 %v12964_v1  ;;  %2680 = vmatpush.bf16.msrb.mxu0 %v12168_v5  ;;  %v12551_v54 = vld [vmem:[#allocation9 + $0x4c8] sm:$0xf]  ;;  %v12296_v60 = vor.u32 %v17923_v53, %v12295_v51 }
  0xab   :  { %2646 = vmatmul.bf16.vlgmr.msra.gmra.mxu1 %v19672_v23  ;;  %v17987_v55 = vld [vmem:[#allocation9 + $0x4e4] sm:$0xf0] }
  0xac   :  { %2673 = vmatpush.bf16.msra.mxu3 %v13220_v4  ;;  %2694 = vmatpush.bf16.msrb.mxu1 %v12424_v7  ;;  %v18051_v58 = vld [vmem:[#allocation9 + $0x6e4] sm:$0xf0]  ;;  %v12552_v61 = vor.u32 %v17987_v55, %v12551_v54 }
  0xad   :  { %2660 = vmatmul.bf16.vlgmr.msra.gmra.mxu2 %v19676_v35  ;;  %v12007_v62 = vld [vmem:[#allocation9 + $0x88] sm:$0xf]  ;;  %v12808_v1 = vor.u32 %v18051_v58, %v12807_v56  ;;  %v17879_v56 = vld [vmem:[#allocation9 + $0x18c] sm:$0xf] }
  0xae   :  { %2708 = vmatpush.bf16.msrb.mxu2 %v12680_v8  ;;  %2681 = vmatpush.bf16.msrb.mxu0 %v12136_v18  ;;  %v17851_v63 = vld [vmem:[#allocation9 + $0xa4] sm:$0xf0]  ;;  %v12137_v58 = vld [vmem:[#allocation9 + $0x1a8] sm:$0xf0] }
  0xaf   :  { %2674 = vmatmul.bf16.vlgmr.msra.gmra.mxu3 %v19678_v39  ;;  %v12263_v0 = vld [vmem:[#allocation9 + $0x288] sm:$0xf]  ;;  %v12008_v8 = vor.u32 %v17851_v63, %v12007_v62  ;;  %v12140_v63 = vor.u32 %v17879_v56, %v12137_v58 }
  0xb0   :  { %2722 = vmatpush.bf16.msrb.mxu3 %v12936_v12  ;;  %2695 = vmatpush.bf16.msrb.mxu1 %v12392_v19  ;;  %v17915_v2 = vld [vmem:[#allocation9 + $0x2a4] sm:$0xf0] }
  0xb1   :  { %v12519_v3 = vld [vmem:[#allocation9 + $0x488] sm:$0xf]  ;;  %v12264_v9 = vor.u32 %v17915_v2, %v12263_v0 }
  0xb2   :  { %2709 = vmatpush.bf16.msrb.mxu2 %v12648_v20  ;;  %2682 = vmatpush.bf16.msrb.mxu0 %v12104_v32  ;;  %v17979_v4 = vld [vmem:[#allocation9 + $0x4a4] sm:$0xf0] }
  0xb3   :  { %v12775_v5 = vld [vmem:[#allocation9 + $0x688] sm:$0xf]  ;;  %v12520_v10 = vor.u32 %v17979_v4, %v12519_v3 }
  0xb4   :  { %2723 = vmatpush.bf16.msrb.mxu3 %v12904_v26  ;;  %2696 = vmatpush.bf16.msrb.mxu1 %v12360_v33  ;;  %v18043_v7 = vld [vmem:[#allocation9 + $0x6a4] sm:$0xf0] }
  0xb5   :  { %v11975_v11 = vld [vmem:[#allocation9 + $0x48] sm:$0xf]  ;;  %v12776_v14 = vor.u32 %v18043_v7, %v12775_v5  ;;  %v17871_v5 = vld [vmem:[#allocation9 + $0x14c] sm:$0xf] }
  0xb6   :  { %2710 = vmatpush.bf16.msrb.mxu2 %v12616_v34  ;;  %2683 = vmatpush.bf16.msrb.mxu0 %v12072_v46  ;;  %v17843_v12 = vld [vmem:[#allocation9 + $0x64] sm:$0xf0]  ;;  %v12425_v46 = vld [vmem:[#allocation9 + $0x3e8] sm:$0xf0] }
  0xb7   :  { %v12231_v13 = vld [vmem:[#allocation9 + $0x248] sm:$0xf]  ;;  %v11976_v20 = vor.u32 %v17843_v12, %v11975_v11  ;;  %v12428_v54 = vor.u32 %v17951_v45, %v12425_v46  ;;  %v12105_v7 = vld [vmem:[#allocation9 + $0x168] sm:$0xf0] }
  0xb8   :  { %2724 = vmatpush.bf16.msrb.mxu3 %v12872_v40  ;;  %2697 = vmatpush.bf16.msrb.mxu1 %v12328_v47  ;;  %v17907_v15 = vld [vmem:[#allocation9 + $0x264] sm:$0xf0]  ;;  %v12108_v12 = vor.u32 %v17871_v5, %v12105_v7  ;;  %v17847_v46 = vld [vmem:[#allocation9 + $0x8c] sm:$0xf] }
  0xb9   :  { %v12487_v16 = vld [vmem:[#allocation9 + $0x448] sm:$0xf]  ;;  %v12232_v25 = vor.u32 %v17907_v15, %v12231_v13  ;;  %v17831_v7 = vld [vmem:[#allocation9 + $0xc] sm:$0xf] }
  0xba   :  { %2711 = vmatpush.bf16.msrb.mxu2 %v12584_v48  ;;  %2684 = vmatpush.bf16.msrb.mxu0 %v12040_v59  ;;  %v17971_v17 = vld [vmem:[#allocation9 + $0x464] sm:$0xf0]  ;;  %v17943_v59 = vld [vmem:[#allocation9 + $0x38c] sm:$0xf] }
  0xbb   :  { %v12743_v18 = vld [vmem:[#allocation9 + $0x648] sm:$0xf]  ;;  %v12488_v26 = vor.u32 %v17971_v17, %v12487_v16 }
  0xbc   :  { %2725 = vmatpush.bf16.msrb.mxu3 %v12840_v52  ;;  %2698 = vmatpush.bf16.msrb.mxu1 %v12296_v60  ;;  %v18035_v19 = vld [vmem:[#allocation9 + $0x664] sm:$0xf0]  ;;  %v12393_v60 = vld [vmem:[#allocation9 + $0x3a8] sm:$0xf0] }
  0xbd   :  { %v11943_v21 = vld [vmem:[#allocation9 + $0x8] sm:$0xf]  ;;  %v12744_v30 = vor.u32 %v18035_v19, %v12743_v18  ;;  %v12396_v3 = vor.u32 %v17943_v59, %v12393_v60  ;;  %v17863_v18 = vld [vmem:[#allocation9 + $0x10c] sm:$0xf] }
  0xbe   :  { %2712 = vmatpush.bf16.msrb.mxu2 %v12552_v61  ;;  %2685 = vmatpush.bf16.msrb.mxu0 %v12008_v8  ;;  %v17835_v24 = vld [vmem:[#allocation9 + $0x24] sm:$0xf0]  ;;  %v17935_v8 = vld [vmem:[#allocation9 + $0x34c] sm:$0xf] }
  0xbf   :  { %v12199_v27 = vld [vmem:[#allocation9 + $0x208] sm:$0xf]  ;;  %v11944_v38 = vor.u32 %v17835_v24, %v11943_v21  ;;  %v12073_v19 = vld [vmem:[#allocation9 + $0x128] sm:$0xf0] }
  0xc0   :  { %2726 = vmatpush.bf16.msrb.mxu3 %v12808_v1  ;;  %2699 = vmatpush.bf16.msrb.mxu1 %v12264_v9  ;;  %v17899_v28 = vld [vmem:[#allocation9 + $0x224] sm:$0xf0]  ;;  %v12361_v9 = vld [vmem:[#allocation9 + $0x368] sm:$0xf0] }
  0xc1   :  { %v12455_v29 = vld [vmem:[#allocation9 + $0x408] sm:$0xf]  ;;  %v12200_v43 = vor.u32 %v17899_v28, %v12199_v27  ;;  %v12364_v16 = vor.u32 %v17935_v8, %v12361_v9  ;;  %v12329_v21 = vld [vmem:[#allocation9 + $0x328] sm:$0xf0] }
  0xc2   :  { %2713 = vmatpush.bf16.msrb.mxu2 %v12520_v10  ;;  %v17963_v31 = vld [vmem:[#allocation9 + $0x424] sm:$0xf0]  ;;  %2686 = vmatpush.bf16.msrb.mxu0 %v11976_v20  ;;  %v17927_v20 = vld [vmem:[#allocation9 + $0x30c] sm:$0xf] }
  0xc3   :  { %v12711_v32 = vld [vmem:[#allocation9 + $0x608] sm:$0xf]  ;;  %v12456_v44 = vor.u32 %v17963_v31, %v12455_v29  ;;  %v17839_v59 = vld [vmem:[#allocation9 + $0x4c] sm:$0xf] }
  0xc4   :  { %2727 = vmatpush.bf16.msrb.mxu3 %v12776_v14  ;;  %v18027_v33 = vld [vmem:[#allocation9 + $0x624] sm:$0xf0]  ;;  %2700 = vmatpush.bf16.msrb.mxu1 %v12232_v25  ;;  %v11977_v60 = vld [vmem:[#allocation9 + $0x68] sm:$0xf0] }
  0xc5   :  { %v13191_v34 = vld [vmem:[#allocation9 + $0x9c8] sm:$0xf]  ;;  %v12712_v47 = vor.u32 %v18027_v33, %v12711_v32  ;;  %v17855_v32 = vld [vmem:[#allocation9 + $0xcc] sm:$0xf] }
  0xc6   :  { %v18147_v36 = vld [vmem:[#allocation9 + $0x9e4] sm:$0xf0]  ;;  %2714 = vmatpush.bf16.msrb.mxu2 %v12488_v26  ;;  %2687 = vmatpush.bf16.msrb.mxu0 %v11944_v38  ;;  %v12076_v26 = vor.u32 %v17863_v18, %v12073_v19  ;;  %v12041_v33 = vld [vmem:[#allocation9 + $0xe8] sm:$0xf0] }
  0xc7   :  { %v13447_v37 = vld [vmem:[#allocation9 + $0xbc8] sm:$0xf]  ;;  %v13192_v48 = vor.u32 %v18147_v36, %v13191_v34  ;;  %v17919_v34 = vld [vmem:[#allocation9 + $0x2cc] sm:$0xf] }
  0xc8   :  { %v18211_v40 = vld [vmem:[#allocation9 + $0xbe4] sm:$0xf0]  ;;  %2728 = vmatpush.bf16.msrb.mxu3 %v12744_v30  ;;  %2701 = vmatpush.bf16.msrb.mxu1 %v12200_v43  ;;  %v12332_v30 = vor.u32 %v17927_v20, %v12329_v21  ;;  %v12297_v36 = vld [vmem:[#allocation9 + $0x2e8] sm:$0xf0] }
  0xc9   :  { %v13448_v49 = vor.u32 %v18211_v40, %v13447_v37  ;;  %v13159_v51 = vld [vmem:[#allocation9 + $0x988] sm:$0xf]  ;;  %2688 = vmatmul.bf16.vlgmr.msrb.gmra.mxu0 %v19664_v57  ;;  %v12044_v40 = vor.u32 %v17855_v32, %v12041_v33  ;;  %v11945_v9 = vld [vmem:[#allocation9 + $0x28] sm:$0xf0] }
  0xca   :  { %v18139_v52 = vld [vmem:[#allocation9 + $0x9a4] sm:$0xf0]  ;;  %2715 = vmatpush.bf16.msrb.mxu2 %v12456_v44  ;;  %2736 = vmatpush.bf16.msra.mxu0 %v13192_v48  ;;  %v12300_v44 = vor.u32 %v17919_v34, %v12297_v36  ;;  %v17911_v48 = vld [vmem:[#allocation9 + $0x28c] sm:$0xf]  ;;  %v11948_v20 = vor.u32 %v17831_v7, %v11945_v9 }
  0xcb   :  { %v13415_v53 = vld [vmem:[#allocation9 + $0xb88] sm:$0xf]  ;;  %v13160_v61 = vor.u32 %v18139_v52, %v13159_v51  ;;  %2702 = vmatmul.bf16.vlgmr.msrb.gmra.mxu1 %v19667_v6  ;;  %v13193_v18 = vld [vmem:[#allocation9 + $0x9e8] sm:$0xf0] }
  0xcc   :  { %v18203_v55 = vld [vmem:[#allocation9 + $0xba4] sm:$0xf0]  ;;  %2729 = vmatpush.bf16.msrb.mxu3 %v12712_v47  ;;  %2750 = vmatpush.bf16.msra.mxu1 %v13448_v49  ;;  %v12009_v47 = vld [vmem:[#allocation9 + $0xa8] sm:$0xf0] }
  0xcd   :  { %v13416_v62 = vor.u32 %v18203_v55, %v13415_v53  ;;  %v13127_v0 = vld [vmem:[#allocation9 + $0x948] sm:$0xf]  ;;  %2716 = vmatmul.bf16.vlgmr.msrb.gmra.mxu2 %v19670_v22  ;;  %v12265_v49 = vld [vmem:[#allocation9 + $0x2a8] sm:$0xf0]  ;;  %v12012_v52 = vor.u32 %v17847_v46, %v12009_v47  ;;  %v19692_v46 = vld [vmem:[#allocation11] sm:$0xff] }
  0xce   :  { %2764 = vmatpush.bf16.msra.mxu2 %v12172_v50  ;;  %v18131_v1 = vld [vmem:[#allocation9 + $0x964] sm:$0xf0]  ;;  %2737 = vmatpush.bf16.msra.mxu0 %v13160_v61  ;;  %v12268_v56 = vor.u32 %v17911_v48, %v12265_v49  ;;  %v17903_v61 = vld [vmem:[#allocation9 + $0x24c] sm:$0xf] }
  0xcf   :  { %v13383_v2 = vld [vmem:[#allocation9 + $0xb48] sm:$0xf]  ;;  %v13128_v10 = vor.u32 %v18131_v1, %v13127_v0  ;;  %2730 = vmatmul.bf16.vlgmr.msrb.gmra.mxu3 %v19672_v23  ;;  %v18207_v21 = vld [vmem:[#allocation9 + $0xbcc] sm:$0xf] }
  0xd0   :  { %2778 = vmatpush.bf16.msra.mxu3 %v12428_v54  ;;  %v18195_v4 = vld [vmem:[#allocation9 + $0xb64] sm:$0xf0]  ;;  %2751 = vmatpush.bf16.msra.mxu1 %v13416_v62  ;;  %v12233_v62 = vld [vmem:[#allocation9 + $0x268] sm:$0xf0] }
  0xd1   :  { %v13384_v11 = vor.u32 %v18195_v4, %v13383_v2  ;;  %v13095_v13 = vld [vmem:[#allocation9 + $0x908] sm:$0xf]  ;;  %v12236_v8 = vor.u32 %v17903_v61, %v12233_v62  ;;  %v12905_v33 = vld [vmem:[#allocation9 + $0x7a8] sm:$0xf0] }
  0xd2   :  { %2765 = vmatpush.bf16.msra.mxu2 %v12140_v63  ;;  %v18123_v14 = vld [vmem:[#allocation9 + $0x924] sm:$0xf0]  ;;  %2738 = vmatpush.bf16.msra.mxu0 %v13128_v10  ;;  %v17895_v10 = vld [vmem:[#allocation9 + $0x20c] sm:$0xf] }
  0xd3   :  { %v13351_v15 = vld [vmem:[#allocation9 + $0xb08] sm:$0xf]  ;;  %v13096_v24 = vor.u32 %v18123_v14, %v13095_v13  ;;  %v12681_v13 = vld [vmem:[#allocation9 + $0x5e8] sm:$0xf0] }
  0xd4   :  { %2779 = vmatpush.bf16.msra.mxu3 %v12396_v3  ;;  %v18187_v17 = vld [vmem:[#allocation9 + $0xb24] sm:$0xf0]  ;;  %2752 = vmatpush.bf16.msra.mxu1 %v13384_v11  ;;  %v11980_v3 = vor.u32 %v17839_v59, %v11977_v60  ;;  %v12201_v11 = vld [vmem:[#allocation9 + $0x228] sm:$0xf0] }
  0xd5   :  { %v13352_v25 = vor.u32 %v18187_v17, %v13351_v15  ;;  %v13063_v27 = vld [vmem:[#allocation9 + $0x8c8] sm:$0xf]  ;;  %v18079_v14 = vld [vmem:[#allocation9 + $0x7cc] sm:$0xf] }
  0xd6   :  { %2766 = vmatpush.bf16.msra.mxu2 %v12108_v12  ;;  %v18115_v28 = vld [vmem:[#allocation9 + $0x8e4] sm:$0xf0]  ;;  %2739 = vmatpush.bf16.msra.mxu0 %v13096_v24  ;;  %v18015_v12 = vld [vmem:[#allocation9 + $0x5cc] sm:$0xf] }
  0xd7   :  { %v13319_v29 = vld [vmem:[#allocation9 + $0xac8] sm:$0xf]  ;;  %v13064_v37 = vor.u32 %v18115_v28, %v13063_v27  ;;  %v18143_v17 = vld [vmem:[#allocation9 + $0x9cc] sm:$0xf] }
  0xd8   :  { %2780 = vmatpush.bf16.msra.mxu3 %v12364_v16  ;;  %v18179_v31 = vld [vmem:[#allocation9 + $0xae4] sm:$0xf0]  ;;  %2753 = vmatpush.bf16.msra.mxu1 %v13352_v25  ;;  %v12937_v16 = vld [vmem:[#allocation9 + $0x7e8] sm:$0xf0]  ;;  %v12204_v25 = vor.u32 %v17895_v10, %v12201_v11  ;;  %v13196_v28 = vor.u32 %v18143_v17, %v13193_v18 }
  0xd9   :  { %v13320_v38 = vor.u32 %v18179_v31, %v13319_v29  ;;  %v13031_v41 = vld [vmem:[#allocation9 + $0x888] sm:$0xf]  ;;  %v13449_v24 = vld [vmem:[#allocation9 + $0xbe8] sm:$0xf0]  ;;  %v12940_v27 = vor.u32 %v18079_v14, %v12937_v16 }
  0xda   :  { %2767 = vmatpush.bf16.msra.mxu2 %v12076_v26  ;;  %v18107_v42 = vld [vmem:[#allocation9 + $0x8a4] sm:$0xf0]  ;;  %2740 = vmatpush.bf16.msra.mxu0 %v13064_v37  ;;  %v12684_v26 = vor.u32 %v18015_v12, %v12681_v13  ;;  %v18007_v29 = vld [vmem:[#allocation9 + $0x58c] sm:$0xf]  ;;  %v13452_v32 = vor.u32 %v18207_v21, %v13449_v24  ;;  %v2535_v18 = vpop.f32.mrf.mxu1 }
  0xdb   :  { %v13287_v43 = vld [vmem:[#allocation9 + $0xa88] sm:$0xf]  ;;  %v13032_v50 = vor.u32 %v18107_v42, %v13031_v41  ;;  %v18071_v31 = vld [vmem:[#allocation9 + $0x78c] sm:$0xf] }
  0xdc   :  { %2781 = vmatpush.bf16.msra.mxu3 %v12332_v30  ;;  %v18171_v45 = vld [vmem:[#allocation9 + $0xaa4] sm:$0xf0]  ;;  %2754 = vmatpush.bf16.msra.mxu1 %v13320_v38  ;;  %v12649_v30 = vld [vmem:[#allocation9 + $0x5a8] sm:$0xf0]  ;;  %v12908_v42 = vor.u32 %v18071_v31, %v12905_v33 }
  0xdd   :  { %v13288_v51 = vor.u32 %v18171_v45, %v13287_v43  ;;  %v12999_v53 = vld [vmem:[#allocation9 + $0x848] sm:$0xf]  ;;  %v18135_v34 = vld [vmem:[#allocation9 + $0x98c] sm:$0xf] }
  0xde   :  { %2768 = vmatpush.bf16.msra.mxu2 %v12044_v40  ;;  %v18099_v54 = vld [vmem:[#allocation9 + $0x864] sm:$0xf0]  ;;  %2741 = vmatpush.bf16.msra.mxu0 %v13032_v50  ;;  %v13161_v36 = vld [vmem:[#allocation9 + $0x9a8] sm:$0xf0]  ;;  %v12652_v40 = vor.u32 %v18007_v29, %v12649_v30 }
  0xdf   :  { %v13255_v55 = vld [vmem:[#allocation9 + $0xa48] sm:$0xf]  ;;  %v13000_v63 = vor.u32 %v18099_v54, %v12999_v53  ;;  %v18199_v37 = vld [vmem:[#allocation9 + $0xb8c] sm:$0xf]  ;;  %v13164_v43 = vor.u32 %v18135_v34, %v13161_v36  ;;  %v546_v54 = vperm.slane %v19692_v46, 0 }
  0xe0   :  { %2782 = vmatpush.bf16.msra.mxu3 %v12300_v44  ;;  %v18163_v58 = vld [vmem:[#allocation9 + $0xa64] sm:$0xf0]  ;;  %2755 = vmatpush.bf16.msra.mxu1 %v13288_v51  ;;  %v13417_v38 = vld [vmem:[#allocation9 + $0xba8] sm:$0xf0] }
  0xe1   :  { %v12967_v0 = vld [vmem:[#allocation9 + $0x808] sm:$0xf]  ;;  %v13256_v2 = vor.u32 %v18163_v58, %v13255_v55  ;;  %v17999_v41 = vld [vmem:[#allocation9 + $0x54c] sm:$0xf]  ;;  %v13420_v47 = vor.u32 %v18199_v37, %v13417_v38 }
  0xe2   :  { %v18091_v1 = vld [vmem:[#allocation9 + $0x824] sm:$0xf0]  ;;  %2769 = vmatpush.bf16.msra.mxu2 %v12012_v52  ;;  %2742 = vmatpush.bf16.msra.mxu0 %v13000_v63  ;;  %v12617_v44 = vld [vmem:[#allocation9 + $0x568] sm:$0xf0] }
  0xe3   :  { %v13223_v4 = vld [vmem:[#allocation9 + $0xa08] sm:$0xf]  ;;  %v12968_v15 = vor.u32 %v18091_v1, %v12967_v0  ;;  %v18063_v45 = vld [vmem:[#allocation9 + $0x74c] sm:$0xf]  ;;  %v12620_v53 = vor.u32 %v17999_v41, %v12617_v44 }
  0xe4   :  { %v18155_v5 = vld [vmem:[#allocation9 + $0xa24] sm:$0xf0]  ;;  %2783 = vmatpush.bf16.msra.mxu3 %v12268_v56  ;;  %2756 = vmatpush.bf16.msra.mxu1 %v13256_v2  ;;  %v12873_v48 = vld [vmem:[#allocation9 + $0x768] sm:$0xf0] }
  0xe5   :  { %v13224_v19 = vor.u32 %v18155_v5, %v13223_v4  ;;  %v18127_v49 = vld [vmem:[#allocation9 + $0x94c] sm:$0xf]  ;;  %v12876_v55 = vor.u32 %v18063_v45, %v12873_v48 }
  0xe6   :  { %2770 = vmatpush.bf16.msra.mxu2 %v11980_v3  ;;  %2743 = vmatpush.bf16.msra.mxu0 %v12968_v15  ;;  %v13129_v50 = vld [vmem:[#allocation9 + $0x968] sm:$0xf0]  ;;  %v2521_v3 = vpop.f32.mrf.mxu0 }
  0xe7   :  { %v18191_v51 = vld [vmem:[#allocation9 + $0xb4c] sm:$0xf]  ;;  %v13132_v56 = vor.u32 %v18127_v49, %v13129_v50  ;;  %v2522_v5 = vadd.f32 %v2521_v3, %v546_v54 }
  0xe8   :  { %2784 = vmatpush.bf16.msra.mxu3 %v12236_v8  ;;  %2757 = vmatpush.bf16.msra.mxu1 %v13224_v19  ;;  %v13385_v52 = vld [vmem:[#allocation9 + $0xb68] sm:$0xf0] }
  0xe9   :  { %2744 = vmatmul.bf16.vlgmr.msra.gmra.mxu0 %v19676_v35  ;;  %v17991_v58 = vld [vmem:[#allocation9 + $0x50c] sm:$0xf]  ;;  %v13388_v61 = vor.u32 %v18191_v51, %v13385_v52  ;;  %v2537_v51 = vpop.f32.mrf.mxu1 }
  0xea   :  { %2771 = vmatpush.bf16.msra.mxu2 %v11948_v20  ;;  %2792 = vmatpush.bf16.msrb.mxu0 %v12684_v26  ;;  %v12585_v59 = vld [vmem:[#allocation9 + $0x528] sm:$0xf0]  ;;  %v2536_v20 = vadd.f32 %v2535_v18, %v2522_v5  ;;  %v12175_v5 = vld [vmem:[#allocation9 + $0x1d0] sm:$0xf] }
  0xeb   :  { %2758 = vmatmul.bf16.vlgmr.msra.gmra.mxu1 %v19678_v39  ;;  %v18055_v60 = vld [vmem:[#allocation9 + $0x70c] sm:$0xf]  ;;  %v12588_v4 = vor.u32 %v17991_v58, %v12585_v59 }
  0xec   :  { %2785 = vmatpush.bf16.msra.mxu3 %v12204_v25  ;;  %2806 = vmatpush.bf16.msrb.mxu1 %v12940_v27  ;;  %v12841_v62 = vld [vmem:[#allocation9 + $0x728] sm:$0xf0] }
  0xed   :  { %2772 = vmatmul.bf16.vlgmr.msra.gmra.mxu2 %v19664_v57  ;;  %v18119_v63 = vld [vmem:[#allocation9 + $0x90c] sm:$0xf]  ;;  %v12844_v7 = vor.u32 %v18055_v60, %v12841_v62  ;;  %v2549_v62 = vpop.f32.mrf.mxu2 }
  0xee   :  { %2820 = vmatpush.bf16.msrb.mxu2 %v13196_v28  ;;  %2793 = vmatpush.bf16.msrb.mxu0 %v12652_v40  ;;  %v13097_v0 = vld [vmem:[#allocation9 + $0x928] sm:$0xf0]  ;;  %v2523_v34 = vpop.f32.mrf.mxu0  ;;  %v2550_v3 = vadd.f32 %v2549_v62, %v2536_v20  ;;  %v17996_v62 = vld [vmem:[#allocation9 + $0x52c] sm:$0xf0] }
  0xef   :  { %2786 = vmatmul.bf16.vlgmr.msra.gmra.mxu3 %v19667_v6  ;;  %v18183_v1 = vld [vmem:[#allocation9 + $0xb0c] sm:$0xf]  ;;  %v13100_v8 = vor.u32 %v18119_v63, %v13097_v0  ;;  %v2524_v37 = vadd.f32 %v2523_v34, %v546_v54 }
  0xf0   :  { %2834 = vmatpush.bf16.msrb.mxu3 %v13452_v32  ;;  %2807 = vmatpush.bf16.msrb.mxu1 %v12908_v42  ;;  %v13353_v2 = vld [vmem:[#allocation9 + $0xb28] sm:$0xf0] }
  0xf1   :  { %v17983_v9 = vld [vmem:[#allocation9 + $0x4cc] sm:$0xf]  ;;  %v13356_v12 = vor.u32 %v18183_v1, %v13353_v2  ;;  %v2538_v54 = vadd.f32 %v2537_v51, %v2524_v37  ;;  %v18068_v51 = vld [vmem:[#allocation9 + $0x76c] sm:$0xf0] }
  0xf2   :  { %2821 = vmatpush.bf16.msrb.mxu2 %v13164_v43  ;;  %2794 = vmatpush.bf16.msrb.mxu0 %v12620_v53  ;;  %v12553_v10 = vld [vmem:[#allocation9 + $0x4e8] sm:$0xf0] }
  0xf3   :  { %v18047_v11 = vld [vmem:[#allocation9 + $0x6cc] sm:$0xf]  ;;  %v12556_v19 = vor.u32 %v17983_v9, %v12553_v10  ;;  %v17956_v10 = vld [vmem:[#allocation9 + $0x3ec] sm:$0xf0] }
  0xf4   :  { %2835 = vmatpush.bf16.msrb.mxu3 %v13420_v47  ;;  %2808 = vmatpush.bf16.msrb.mxu1 %v12876_v55  ;;  %v12809_v13 = vld [vmem:[#allocation9 + $0x6e8] sm:$0xf0] }
  0xf5   :  { %v18111_v14 = vld [vmem:[#allocation9 + $0x8cc] sm:$0xf]  ;;  %v12812_v21 = vor.u32 %v18047_v11, %v12809_v13  ;;  %v12687_v11 = vld [vmem:[#allocation9 + $0x5d0] sm:$0xf] }
  0xf6   :  { %2822 = vmatpush.bf16.msrb.mxu2 %v13132_v56  ;;  %v13065_v15 = vld [vmem:[#allocation9 + $0x8e8] sm:$0xf0]  ;;  %2795 = vmatpush.bf16.msrb.mxu0 %v12588_v4  ;;  %v2563_v4 = vpop.f32.mrf.mxu3 }
  0xf7   :  { %v18175_v16 = vld [vmem:[#allocation9 + $0xacc] sm:$0xf]  ;;  %v13068_v24 = vor.u32 %v18111_v14, %v13065_v15  ;;  %v19699_v13 = vadd.f32 %v2563_v4, %v2550_v3 }
  0xf8   :  { %2836 = vmatpush.bf16.msrb.mxu3 %v13388_v61  ;;  %v13321_v17 = vld [vmem:[#allocation9 + $0xae8] sm:$0xf0]  ;;  %2809 = vmatpush.bf16.msrb.mxu1 %v12844_v7  ;;  %v17892_v7 = vld [vmem:[#allocation9 + $0x1ec] sm:$0xf0] }
  0xf9   :  { %v17975_v25 = vld [vmem:[#allocation9 + $0x48c] sm:$0xf]  ;;  %v13324_v28 = vor.u32 %v18175_v16, %v13321_v17  ;;  %v12943_v16 = vld [vmem:[#allocation9 + $0x7d0] sm:$0xf] }
  0xfa   :  { %2823 = vmatpush.bf16.msrb.mxu2 %v13100_v8  ;;  %v12521_v26 = vld [vmem:[#allocation9 + $0x4a8] sm:$0xf0]  ;;  %2796 = vmatpush.bf16.msrb.mxu0 %v12556_v19  ;;  %v12431_v8 = vld [vmem:[#allocation9 + $0x3d0] sm:$0xf]  ;;  %v12176_v19 = vor.u32 %v17892_v7, %v12175_v5 }
  0xfb   :  { %v18039_v27 = vld [vmem:[#allocation9 + $0x68c] sm:$0xf]  ;;  %v12524_v36 = vor.u32 %v17975_v25, %v12521_v26  ;;  %v18084_v17 = vld [vmem:[#allocation9 + $0x7ec] sm:$0xf0]  ;;  %v12432_v20 = vor.u32 %v17956_v10, %v12431_v8 }
  0xfc   :  { %2837 = vmatpush.bf16.msrb.mxu3 %v13356_v12  ;;  %v12777_v29 = vld [vmem:[#allocation9 + $0x6a8] sm:$0xf0]  ;;  %2810 = vmatpush.bf16.msrb.mxu1 %v12812_v21  ;;  %v18020_v12 = vld [vmem:[#allocation9 + $0x5ec] sm:$0xf0] }
  0xfd   :  { %v18103_v30 = vld [vmem:[#allocation9 + $0x88c] sm:$0xf]  ;;  %v12780_v38 = vor.u32 %v18039_v27, %v12777_v29  ;;  %v12688_v21 = vor.u32 %v18020_v12, %v12687_v11  ;;  %v17884_v25 = vld [vmem:[#allocation9 + $0x1ac] sm:$0xf0]  ;;  %v12944_v27 = vor.u32 %v18084_v17, %v12943_v16 }
  0xfe   :  { %v13033_v31 = vld [vmem:[#allocation9 + $0x8a8] sm:$0xf0]  ;;  %2824 = vmatpush.bf16.msrb.mxu2 %v13068_v24  ;;  %2797 = vmatpush.bf16.msrb.mxu0 %v12524_v36  ;;  %v12143_v24 = vld [vmem:[#allocation9 + $0x190] sm:$0xf]  ;;  %v2565_v37 = vpop.f32.mrf.mxu3  ;;  %v2591_v4 = vpop.f32.mrf.mxu1 }
  0xff   :  { %v18167_v32 = vld [vmem:[#allocation9 + $0xa8c] sm:$0xf]  ;;  %v13036_v40 = vor.u32 %v18103_v30, %v13033_v31  ;;  %v12399_v26 = vld [vmem:[#allocation9 + $0x390] sm:$0xf]  ;;  %v12144_v34 = vor.u32 %v17884_v25, %v12143_v24 }
 0x100   :  { %v13289_v33 = vld [vmem:[#allocation9 + $0xaa8] sm:$0xf0]  ;;  %2838 = vmatpush.bf16.msrb.mxu3 %v13324_v28  ;;  %2811 = vmatpush.bf16.msrb.mxu1 %v12780_v38  ;;  %v17948_v28 = vld [vmem:[#allocation9 + $0x3ac] sm:$0xf0] }
 0x101   :  { %v17967_v41 = vld [vmem:[#allocation9 + $0x44c] sm:$0xf]  ;;  %v13292_v44 = vor.u32 %v18167_v32, %v13289_v33  ;;  %v12655_v29 = vld [vmem:[#allocation9 + $0x590] sm:$0xf]  ;;  %v2551_v33 = vpop.f32.mrf.mxu2  ;;  %v12400_v38 = vor.u32 %v17948_v28, %v12399_v26 }
 0x102   :  { %v12489_v42 = vld [vmem:[#allocation9 + $0x468] sm:$0xf0]  ;;  %2825 = vmatpush.bf16.msrb.mxu2 %v13036_v40  ;;  %v18012_v30 = vld [vmem:[#allocation9 + $0x5ac] sm:$0xf0]  ;;  %v2552_v36 = vadd.f32 %v2551_v33, %v2538_v54 }
 0x103   :  { %v18031_v43 = vld [vmem:[#allocation9 + $0x64c] sm:$0xf]  ;;  %v12492_v52 = vor.u32 %v17967_v41, %v12489_v42  ;;  %v12911_v31 = vld [vmem:[#allocation9 + $0x790] sm:$0xf]  ;;  %v12656_v40 = vor.u32 %v18012_v30, %v12655_v29 }
 0x104   :  { %v12745_v45 = vld [vmem:[#allocation9 + $0x668] sm:$0xf0]  ;;  %2839 = vmatpush.bf16.msrb.mxu3 %v13292_v44  ;;  %v18076_v32 = vld [vmem:[#allocation9 + $0x7ac] sm:$0xf0] }
 0x105   :  { %v18095_v47 = vld [vmem:[#allocation9 + $0x84c] sm:$0xf]  ;;  %v12748_v56 = vor.u32 %v18031_v43, %v12745_v45  ;;  %2798 = vmatpush.bf16.msrb.mxu0 %v12492_v52  ;;  %v12111_v41 = vld [vmem:[#allocation9 + $0x150] sm:$0xf]  ;;  %v12912_v44 = vor.u32 %v18076_v32, %v12911_v31 }
 0x106   :  { %v13001_v48 = vld [vmem:[#allocation9 + $0x868] sm:$0xf0]  ;;  %v17876_v42 = vld [vmem:[#allocation9 + $0x16c] sm:$0xf0] }
 0x107   :  { %v18159_v49 = vld [vmem:[#allocation9 + $0xa4c] sm:$0xf]  ;;  %v13004_v58 = vor.u32 %v18095_v47, %v13001_v48  ;;  %2812 = vmatpush.bf16.msrb.mxu1 %v12748_v56  ;;  %v12367_v43 = vld [vmem:[#allocation9 + $0x350] sm:$0xf]  ;;  %v12112_v52 = vor.u32 %v17876_v42, %v12111_v41  ;;  %v2593_v42 = vpop.f32.mrf.mxu1 }
 0x108   :  { %v13257_v50 = vld [vmem:[#allocation9 + $0xa68] sm:$0xf0]  ;;  %v17940_v45 = vld [vmem:[#allocation9 + $0x36c] sm:$0xf0] }
 0x109   :  { %v17959_v53 = vld [vmem:[#allocation9 + $0x40c] sm:$0xf]  ;;  %v13260_v63 = vor.u32 %v18159_v49, %v13257_v50  ;;  %2826 = vmatpush.bf16.msrb.mxu2 %v13004_v58  ;;  %v12623_v47 = vld [vmem:[#allocation9 + $0x550] sm:$0xf]  ;;  %v19702_v49 = vadd.f32 %v2565_v37, %v2552_v36  ;;  %v2605_v32 = vpop.f32.mrf.mxu2 }
 0x10a   :  { %v12457_v55 = vld [vmem:[#allocation9 + $0x428] sm:$0xf0]  ;;  %v18004_v48 = vld [vmem:[#allocation9 + $0x56c] sm:$0xf0] }
 0x10b   :  { %v18023_v59 = vld [vmem:[#allocation9 + $0x60c] sm:$0xf]  ;;  %v12460_v9 = vor.u32 %v17959_v53, %v12457_v55  ;;  %2840 = vmatpush.bf16.msrb.mxu3 %v13260_v63  ;;  %v12879_v50 = vld [vmem:[#allocation9 + $0x750] sm:$0xf]  ;;  %v12368_v53 = vor.u32 %v17940_v45, %v12367_v43  ;;  %v12624_v55 = vor.u32 %v18004_v48, %v12623_v47  ;;  %v2577_v63 = vpop.f32.mrf.mxu0 }
 0x10c   :  { %v12713_v60 = vld [vmem:[#allocation9 + $0x628] sm:$0xf0]  ;;  %v12079_v54 = vld [vmem:[#allocation9 + $0x110] sm:$0xf] }
 0x10d   :  { %v18087_v61 = vld [vmem:[#allocation9 + $0x80c] sm:$0xf]  ;;  %v12716_v14 = vor.u32 %v18023_v59, %v12713_v60  ;;  %2799 = vmatpush.bf16.msrb.mxu0 %v12460_v9  ;;  %v17868_v56 = vld [vmem:[#allocation9 + $0x12c] sm:$0xf0]  ;;  %v12880_v59 = vor.u32 %v18068_v51, %v12879_v50 }
 0x10e   :  { %v12969_v0 = vld [vmem:[#allocation9 + $0x828] sm:$0xf0]  ;;  %v12335_v58 = vld [vmem:[#allocation9 + $0x310] sm:$0xf]  ;;  %v12080_v3 = vor.u32 %v17868_v56, %v12079_v54 }
 0x10f   :  { %v18151_v1 = vld [vmem:[#allocation9 + $0xa0c] sm:$0xf]  ;;  %v12972_v15 = vor.u32 %v18087_v61, %v12969_v0  ;;  %2813 = vmatpush.bf16.msrb.mxu1 %v12716_v14  ;;  %v17932_v60 = vld [vmem:[#allocation9 + $0x32c] sm:$0xf0] }
 0x110   :  { %v13225_v2 = vld [vmem:[#allocation9 + $0xa28] sm:$0xf0]  ;;  %2800 = vmatmul.bf16.vlgmr.msrb.gmra.mxu0 %v19670_v22  ;;  %v12591_v61 = vld [vmem:[#allocation9 + $0x510] sm:$0xf]  ;;  %v12336_v5 = vor.u32 %v17932_v60, %v12335_v58 }
 0x111   :  { %v13228_v18 = vor.u32 %v18151_v1, %v13225_v2  ;;  %2827 = vmatpush.bf16.msrb.mxu2 %v12972_v15  ;;  %2848 = vmatpush.bf16.msra.mxu0 %v12176_v19  ;;  %v12847_v0 = vld [vmem:[#allocation9 + $0x710] sm:$0xf]  ;;  %v2578_v2 = vadd.f32 %v2577_v63, %v19699_v13  ;;  %v12592_v7 = vor.u32 %v17996_v62, %v12591_v61  ;;  %v547_v13 = vperm.slane %v19692_v46, 1 }
 0x112   :  { %2814 = vmatmul.bf16.vlgmr.msrb.gmra.mxu1 %v19672_v23  ;;  %v18060_v1 = vld [vmem:[#allocation9 + $0x72c] sm:$0xf0] }
 0x113   :  { %2841 = vmatpush.bf16.msrb.mxu3 %v13228_v18  ;;  %2862 = vmatpush.bf16.msra.mxu1 %v12432_v20  ;;  %v12047_v8 = vld [vmem:[#allocation9 + $0xd0] sm:$0xf]  ;;  %v12848_v11 = vor.u32 %v18060_v1, %v12847_v0  ;;  %v19708_v12 = vadd.f32 %v2591_v4, %v2578_v2  ;;  %v2579_v33 = vpop.f32.mrf.mxu0  ;;  %v2606_v37 = vadd.f32 %v2605_v32, %v547_v13 }
 0x114   :  { %2828 = vmatmul.bf16.vlgmr.msrb.gmra.mxu2 %v19676_v35  ;;  %v17860_v9 = vld [vmem:[#allocation9 + $0xec] sm:$0xf0] }
 0x115   :  { %2876 = vmatpush.bf16.msra.mxu2 %v12688_v21  ;;  %2849 = vmatpush.bf16.msra.mxu0 %v12144_v34  ;;  %v12303_v10 = vld [vmem:[#allocation9 + $0x2d0] sm:$0xf]  ;;  %v3184_v19 = vmax.f32 %v19708_v12, 0.0  ;;  %v12048_v20 = vor.u32 %v17860_v9, %v12047_v8  ;;  %v2607_v8 = vpop.f32.mrf.mxu2 }
 0x116   :  { %2842 = vmatmul.bf16.vlgmr.msrb.gmra.mxu3 %v19678_v39  ;;  %v17924_v14 = vld [vmem:[#allocation9 + $0x2ec] sm:$0xf0] }
 0x117   :  { %2890 = vmatpush.bf16.msra.mxu3 %v12944_v27  ;;  %2863 = vmatpush.bf16.msra.mxu1 %v12400_v38  ;;  %v12559_v15 = vld [vmem:[#allocation9 + $0x4d0] sm:$0xf]  ;;  %v12304_v21 = vor.u32 %v17924_v14, %v12303_v10  ;;  %v2619_v38 = vpop.f32.mrf.mxu3  ;;  %v2608_v14 = vadd.f32 %v2607_v8, %v547_v13  ;;  %v12337_v8 = vld [vmem:[#allocation9 + $0x330] sm:$0xf0] }
 0x118   :  { %v17988_v16 = vld [vmem:[#allocation9 + $0x4ec] sm:$0xf0]  ;;  %v19715_v50 = vadd.f32 %v2619_v38, %v2606_v37  ;;  %v17880_v37 = vld [vmem:[#allocation9 + $0x194] sm:$0xf] }
 0x119   :  { %2877 = vmatpush.bf16.msra.mxu2 %v12656_v40  ;;  %2850 = vmatpush.bf16.msra.mxu0 %v12112_v52  ;;  %v12815_v17 = vld [vmem:[#allocation9 + $0x6d0] sm:$0xf]  ;;  %v12560_v24 = vor.u32 %v17988_v16, %v12559_v15  ;;  %v2580_v40 = vadd.f32 %v2579_v33, %v19702_v49  ;;  %v12145_v38 = vld [vmem:[#allocation9 + $0x1b0] sm:$0xf0] }
 0x11a   :  { %v18052_v18 = vld [vmem:[#allocation9 + $0x6ec] sm:$0xf0] }
 0x11b   :  { %2891 = vmatpush.bf16.msra.mxu3 %v12912_v44  ;;  %2864 = vmatpush.bf16.msra.mxu1 %v12368_v53  ;;  %v12015_v25 = vld [vmem:[#allocation9 + $0x90] sm:$0xf]  ;;  %v12816_v28 = vor.u32 %v18052_v18, %v12815_v17  ;;  %v19717_v52 = vadd.f32 %v2593_v42, %v2580_v40  ;;  %v17888_v17 = vld [vmem:[#allocation9 + $0x1d4] sm:$0xf] }
 0x11c   :  { %v17852_v26 = vld [vmem:[#allocation9 + $0xac] sm:$0xf0]  ;;  %v12177_v18 = vld [vmem:[#allocation9 + $0x1f0] sm:$0xf0] }
 0x11d   :  { %2878 = vmatpush.bf16.msra.mxu2 %v12624_v55  ;;  %2851 = vmatpush.bf16.msra.mxu0 %v12080_v3  ;;  %v12271_v27 = vld [vmem:[#allocation9 + $0x290] sm:$0xf]  ;;  %v12016_v41 = vor.u32 %v17852_v26, %v12015_v25  ;;  %v3192_v58 = vmax.f32 %v19717_v52, 0.0  ;;  %v17952_v25 = vld [vmem:[#allocation9 + $0x3d4] sm:$0xf] }
 0x11e   :  { %v17916_v29 = vld [vmem:[#allocation9 + $0x2ac] sm:$0xf0]  ;;  %v12433_v26 = vld [vmem:[#allocation9 + $0x3f0] sm:$0xf0] }
 0x11f   :  { %2892 = vmatpush.bf16.msra.mxu3 %v12880_v59  ;;  %2865 = vmatpush.bf16.msra.mxu1 %v12336_v5  ;;  %v12527_v30 = vld [vmem:[#allocation9 + $0x490] sm:$0xf]  ;;  %v12272_v43 = vor.u32 %v17916_v29, %v12271_v27  ;;  %v17944_v40 = vld [vmem:[#allocation9 + $0x394] sm:$0xf] }
 0x120   :  { %v17980_v31 = vld [vmem:[#allocation9 + $0x4ac] sm:$0xf0] }
 0x121   :  { %2879 = vmatpush.bf16.msra.mxu2 %v12592_v7  ;;  %v12783_v34 = vld [vmem:[#allocation9 + $0x690] sm:$0xf]  ;;  %2852 = vmatpush.bf16.msra.mxu0 %v12048_v20  ;;  %v12528_v44 = vor.u32 %v17980_v31, %v12527_v30  ;;  %v2621_v20 = vpop.f32.mrf.mxu3  ;;  %v12180_v31 = vor.u32 %v17888_v17, %v12177_v18 }
 0x122   :  { %v18044_v36 = vld [vmem:[#allocation9 + $0x6ac] sm:$0xf0]  ;;  %v19722_v27 = vadd.f32 %v2621_v20, %v2608_v14 }
 0x123   :  { %2893 = vmatpush.bf16.msra.mxu3 %v12848_v11  ;;  %2866 = vmatpush.bf16.msra.mxu1 %v12304_v21  ;;  %v11983_v45 = vld [vmem:[#allocation9 + $0x50] sm:$0xf]  ;;  %v12784_v51 = vor.u32 %v18044_v36, %v12783_v34  ;;  %v12436_v34 = vor.u32 %v17952_v25, %v12433_v26  ;;  %v17856_v25 = vld [vmem:[#allocation9 + $0xd4] sm:$0xf] }
 0x124   :  { %v17844_v47 = vld [vmem:[#allocation9 + $0x6c] sm:$0xf0]  ;;  %v12049_v26 = vld [vmem:[#allocation9 + $0xf0] sm:$0xf0] }
 0x125   :  { %2880 = vmatpush.bf16.msra.mxu2 %v12560_v24  ;;  %v12239_v48 = vld [vmem:[#allocation9 + $0x250] sm:$0xf]  ;;  %2853 = vmatpush.bf16.msra.mxu0 %v12016_v41  ;;  %v11984_v59 = vor.u32 %v17844_v47, %v11983_v45  ;;  %v12401_v41 = vld [vmem:[#allocation9 + $0x3b0] sm:$0xf0] }
 0x126   :  { %v17908_v53 = vld [vmem:[#allocation9 + $0x26c] sm:$0xf0] }
 0x127   :  { %2894 = vmatpush.bf16.msra.mxu3 %v12816_v28  ;;  %v12495_v55 = vld [vmem:[#allocation9 + $0x450] sm:$0xf]  ;;  %2867 = vmatpush.bf16.msra.mxu1 %v12272_v43  ;;  %v12240_v62 = vor.u32 %v17908_v53, %v12239_v48 }
 0x128   :  { %v17972_v54 = vld [vmem:[#allocation9 + $0x46c] sm:$0xf0] }
 0x129   :  { %v12751_v56 = vld [vmem:[#allocation9 + $0x650] sm:$0xf]  ;;  %2881 = vmatpush.bf16.msra.mxu2 %v12528_v44  ;;  %v12496_v63 = vor.u32 %v17972_v54, %v12495_v55  ;;  %2854 = vmatpush.bf16.msra.mxu0 %v11984_v59  ;;  %v12148_v44 = vor.u32 %v17880_v37, %v12145_v38  ;;  %v17872_v55 = vld [vmem:[#allocation9 + $0x154] sm:$0xf] }
 0x12a   :  { %v18036_v49 = vld [vmem:[#allocation9 + $0x66c] sm:$0xf0]  ;;  %v12113_v54 = vld [vmem:[#allocation9 + $0x170] sm:$0xf0] }
 0x12b   :  { %v11951_v60 = vld [vmem:[#allocation9 + $0x10] sm:$0xf]  ;;  %2895 = vmatpush.bf16.msra.mxu3 %v12784_v51  ;;  %v12752_v3 = vor.u32 %v18036_v49, %v12751_v56  ;;  %2868 = vmatpush.bf16.msra.mxu1 %v12240_v62  ;;  %v12404_v51 = vor.u32 %v17944_v40, %v12401_v41  ;;  %v17936_v56 = vld [vmem:[#allocation9 + $0x354] sm:$0xf] }
 0x12c   :  { %v17836_v61 = vld [vmem:[#allocation9 + $0x2c] sm:$0xf0]  ;;  %v12369_v49 = vld [vmem:[#allocation9 + $0x370] sm:$0xf0] }
 0x12d   :  { %v12207_v0 = vld [vmem:[#allocation9 + $0x210] sm:$0xf]  ;;  %v11952_v15 = vor.u32 %v17836_v61, %v11951_v60  ;;  %2882 = vmatpush.bf16.msra.mxu2 %v12496_v63  ;;  %v12116_v61 = vor.u32 %v17872_v55, %v12113_v54  ;;  %v17848_v38 = vld [vmem:[#allocation9 + $0x94] sm:$0xf] }
 0x12e   :  { %v17900_v1 = vld [vmem:[#allocation9 + $0x22c] sm:$0xf0]  ;;  %v12017_v40 = vld [vmem:[#allocation9 + $0xb0] sm:$0xf0] }
 0x12f   :  { %v12463_v2 = vld [vmem:[#allocation9 + $0x410] sm:$0xf]  ;;  %v12208_v21 = vor.u32 %v17900_v1, %v12207_v0  ;;  %2896 = vmatpush.bf16.msra.mxu3 %v12752_v3  ;;  %2855 = vmatpush.bf16.msra.mxu0 %v11952_v15  ;;  %v12372_v1 = vor.u32 %v17936_v56, %v12369_v49  ;;  %v17864_v3 = vld [vmem:[#allocation9 + $0x114] sm:$0xf]  ;;  %v12020_v54 = vor.u32 %v17848_v38, %v12017_v40 }
 0x130   :  { %v17964_v4 = vld [vmem:[#allocation9 + $0x42c] sm:$0xf0]  ;;  %v18008_v38 = vld [vmem:[#allocation9 + $0x594] sm:$0xf] }
 0x131   :  { %v12719_v5 = vld [vmem:[#allocation9 + $0x610] sm:$0xf]  ;;  %v12464_v24 = vor.u32 %v17964_v4, %v12463_v2  ;;  %2869 = vmatpush.bf16.msra.mxu1 %v12208_v21  ;;  %v12081_v4 = vld [vmem:[#allocation9 + $0x130] sm:$0xf0] }
 0x132   :  { %v18028_v7 = vld [vmem:[#allocation9 + $0x62c] sm:$0xf0]  ;;  %2856 = vmatmul.bf16.vlgmr.msra.gmra.mxu0 %v19664_v57  ;;  %v12084_v15 = vor.u32 %v17864_v3, %v12081_v4 }
 0x133   :  { %v13199_v9 = vld [vmem:[#allocation9 + $0x9d0] sm:$0xf]  ;;  %v12720_v28 = vor.u32 %v18028_v7, %v12719_v5  ;;  %2883 = vmatpush.bf16.msra.mxu2 %v12464_v24  ;;  %v2633_v5 = vpop.f32.mrf.mxu0  ;;  %v17928_v7 = vld [vmem:[#allocation9 + $0x314] sm:$0xf] }
 0x134   :  { %v18148_v10 = vld [vmem:[#allocation9 + $0x9ec] sm:$0xf0]  ;;  %2870 = vmatmul.bf16.vlgmr.msra.gmra.mxu1 %v19667_v6  ;;  %v12340_v20 = vor.u32 %v17928_v7, %v12337_v8 }
 0x135   :  { %v13455_v11 = vld [vmem:[#allocation9 + $0xbd0] sm:$0xf]  ;;  %v13200_v29 = vor.u32 %v18148_v10, %v13199_v9  ;;  %2897 = vmatpush.bf16.msra.mxu3 %v12720_v28  ;;  %v2634_v9 = vadd.f32 %v2633_v5, %v19715_v50  ;;  %v17920_v28 = vld [vmem:[#allocation9 + $0x2d4] sm:$0xf] }
 0x136   :  { %v18212_v16 = vld [vmem:[#allocation9 + $0xbec] sm:$0xf0]  ;;  %2884 = vmatmul.bf16.vlgmr.msra.gmra.mxu2 %v19670_v22 }
 0x137   :  { %v13456_v30 = vor.u32 %v18212_v16, %v13455_v11  ;;  %v13167_v13 = vld [vmem:[#allocation9 + $0x990] sm:$0xf]  ;;  %2904 = vmatpush.bf16.msrb.mxu0 %v13200_v29  ;;  %2932 = vmatpush.bf16.msrb.mxu2 %v12180_v31  ;;  %v2647_v11 = vpop.f32.mrf.mxu1  ;;  %v12305_v29 = vld [vmem:[#allocation9 + $0x2f0] sm:$0xf0]  ;;  %v12052_v31 = vor.u32 %v17856_v25, %v12049_v26 }
 0x138   :  { %v18140_v32 = vld [vmem:[#allocation9 + $0x9ac] sm:$0xf0]  ;;  %2898 = vmatmul.bf16.vlgmr.msra.gmra.mxu3 %v19672_v23  ;;  %v2648_v21 = vadd.f32 %v2647_v11, %v2634_v9  ;;  %v17832_v11 = vld [vmem:[#allocation9 + $0x14] sm:$0xf] }
 0x139   :  { %v13423_v33 = vld [vmem:[#allocation9 + $0xb90] sm:$0xf]  ;;  %v13168_v42 = vor.u32 %v18140_v32, %v13167_v13  ;;  %2918 = vmatpush.bf16.msrb.mxu1 %v13456_v30  ;;  %2946 = vmatpush.bf16.msrb.mxu3 %v12436_v34  ;;  %v12308_v34 = vor.u32 %v17920_v28, %v12305_v29  ;;  %v12689_v25 = vld [vmem:[#allocation9 + $0x5f0] sm:$0xf0] }
 0x13a   :  { %v18204_v36 = vld [vmem:[#allocation9 + $0xbac] sm:$0xf0]  ;;  %v18080_v26 = vld [vmem:[#allocation9 + $0x7d4] sm:$0xf] }
 0x13b   :  { %v13424_v43 = vor.u32 %v18204_v36, %v13423_v33  ;;  %v13135_v45 = vld [vmem:[#allocation9 + $0x950] sm:$0xf]  ;;  %2905 = vmatpush.bf16.msrb.mxu0 %v13168_v42  ;;  %2933 = vmatpush.bf16.msrb.mxu2 %v12148_v44  ;;  %v2661_v36 = vpop.f32.mrf.mxu2  ;;  %v2635_v42 = vpop.f32.mrf.mxu0  ;;  %v17912_v44 = vld [vmem:[#allocation9 + $0x294] sm:$0xf] }
 0x13c   :  { %v18132_v47 = vld [vmem:[#allocation9 + $0x96c] sm:$0xf0]  ;;  %v2662_v41 = vadd.f32 %v2661_v36, %v2648_v21  ;;  %v12945_v29 = vld [vmem:[#allocation9 + $0x7f0] sm:$0xf0] }
 0x13d   :  { %v13391_v48 = vld [vmem:[#allocation9 + $0xb50] sm:$0xf]  ;;  %v13136_v59 = vor.u32 %v18132_v47, %v13135_v45  ;;  %2919 = vmatpush.bf16.msrb.mxu1 %v13424_v43  ;;  %2947 = vmatpush.bf16.msrb.mxu3 %v12404_v51  ;;  %v2675_v43 = vpop.f32.mrf.mxu3  ;;  %v12273_v45 = vld [vmem:[#allocation9 + $0x2b0] sm:$0xf0]  ;;  %v2636_v47 = vadd.f32 %v2635_v42, %v19722_v27 }
 0x13e   :  { %v18196_v53 = vld [vmem:[#allocation9 + $0xb6c] sm:$0xf0]  ;;  %v17904_v27 = vld [vmem:[#allocation9 + $0x254] sm:$0xf] }
 0x13f   :  { %v13392_v60 = vor.u32 %v18196_v53, %v13391_v48  ;;  %v13103_v62 = vld [vmem:[#allocation9 + $0x910] sm:$0xf]  ;;  %2906 = vmatpush.bf16.msrb.mxu0 %v13136_v59  ;;  %2934 = vmatpush.bf16.msrb.mxu2 %v12116_v61  ;;  %v2649_v51 = vpop.f32.mrf.mxu1  ;;  %v19730_v53 = vadd.f32 %v2675_v43, %v2662_v41  ;;  %v12948_v41 = vor.u32 %v18080_v26, %v12945_v29  ;;  %v12657_v43 = vld [vmem:[#allocation9 + $0x5b0] sm:$0xf0] }
 0x140   :  { %v18124_v63 = vld [vmem:[#allocation9 + $0x92c] sm:$0xf0]  ;;  %v2650_v61 = vadd.f32 %v2649_v51, %v2636_v47  ;;  %v12913_v47 = vld [vmem:[#allocation9 + $0x7b0] sm:$0xf0] }
 0x141   :  { %v13359_v0 = vld [vmem:[#allocation9 + $0xb10] sm:$0xf]  ;;  %v13104_v10 = vor.u32 %v18124_v63, %v13103_v62  ;;  %2920 = vmatpush.bf16.msrb.mxu1 %v13392_v60  ;;  %2948 = vmatpush.bf16.msrb.mxu3 %v12372_v1  ;;  %v12276_v60 = vor.u32 %v17912_v44, %v12273_v45  ;;  %v17840_v63 = vld [vmem:[#allocation9 + $0x54] sm:$0xf]  ;;  %v3185_v1 = vmax.f32 %v19730_v53, 0.0 }
 0x142   :  { %v18188_v2 = vld [vmem:[#allocation9 + $0xb2c] sm:$0xf0]  ;;  %v18072_v44 = vld [vmem:[#allocation9 + $0x794] sm:$0xf] }
 0x143   :  { %v13360_v14 = vor.u32 %v18188_v2, %v13359_v0  ;;  %v13071_v16 = vld [vmem:[#allocation9 + $0x8d0] sm:$0xf]  ;;  %2907 = vmatpush.bf16.msrb.mxu0 %v13104_v10  ;;  %2935 = vmatpush.bf16.msrb.mxu2 %v12084_v15  ;;  %v11985_v0 = vld [vmem:[#allocation9 + $0x70] sm:$0xf0]  ;;  %v2663_v15 = vpop.f32.mrf.mxu2 }
 0x144   :  { %v18116_v17 = vld [vmem:[#allocation9 + $0x8ec] sm:$0xf0]  ;;  %v12241_v2 = vld [vmem:[#allocation9 + $0x270] sm:$0xf0]  ;;  %v11988_v8 = vor.u32 %v17840_v63, %v11985_v0 }
 0x145   :  { %v13327_v18 = vld [vmem:[#allocation9 + $0xad0] sm:$0xf]  ;;  %v13072_v30 = vor.u32 %v18116_v17, %v13071_v16  ;;  %2921 = vmatpush.bf16.msrb.mxu1 %v13360_v14  ;;  %2949 = vmatpush.bf16.msrb.mxu3 %v12340_v20  ;;  %v12244_v14 = vor.u32 %v17904_v27, %v12241_v2  ;;  %v11953_v16 = vld [vmem:[#allocation9 + $0x30] sm:$0xf0]  ;;  %v2664_v20 = vadd.f32 %v2663_v15, %v2650_v61  ;;  %v2677_v21 = vpop.f32.mrf.mxu3 }
 0x146   :  { %v18180_v24 = vld [vmem:[#allocation9 + $0xaec] sm:$0xf0]  ;;  %v17896_v17 = vld [vmem:[#allocation9 + $0x214] sm:$0xf] }
 0x147   :  { %v13328_v50 = vor.u32 %v18180_v24, %v13327_v18  ;;  %v13039_v13 = vld [vmem:[#allocation9 + $0x890] sm:$0xf]  ;;  %2908 = vmatpush.bf16.msrb.mxu0 %v13072_v30  ;;  %2936 = vmatpush.bf16.msrb.mxu2 %v12052_v31  ;;  %v12209_v18 = vld [vmem:[#allocation9 + $0x230] sm:$0xf0]  ;;  %v19733_v31 = vadd.f32 %v2677_v21, %v2664_v20 }
 0x148   :  { %v18108_v32 = vld [vmem:[#allocation9 + $0x8ac] sm:$0xf0]  ;;  %v18016_v24 = vld [vmem:[#allocation9 + $0x5d4] sm:$0xf]  ;;  %v12212_v36 = vor.u32 %v17896_v17, %v12209_v18 }
 0x149   :  { %v13295_v33 = vld [vmem:[#allocation9 + $0xa90] sm:$0xf]  ;;  %v13040_v48 = vor.u32 %v18108_v32, %v13039_v13  ;;  %2922 = vmatpush.bf16.msrb.mxu1 %v13328_v50  ;;  %2950 = vmatpush.bf16.msrb.mxu3 %v12308_v34  ;;  %v18144_v30 = vld [vmem:[#allocation9 + $0x9d4] sm:$0xf]  ;;  %v11956_v32 = vor.u32 %v17832_v11, %v11953_v16  ;;  %v3193_v40 = vmax.f32 %v19733_v31, 0.0 }
 0x14a   :  { %v18172_v37 = vld [vmem:[#allocation9 + $0xaac] sm:$0xf0]  ;;  %v13201_v50 = vld [vmem:[#allocation9 + $0x9f0] sm:$0xf0] }
 0x14b   :  { %v13296_v55 = vor.u32 %v18172_v37, %v13295_v33  ;;  %v13007_v56 = vld [vmem:[#allocation9 + $0x850] sm:$0xf]  ;;  %2909 = vmatpush.bf16.msrb.mxu0 %v13040_v48  ;;  %2937 = vmatpush.bf16.msrb.mxu2 %v12020_v54  ;;  %v18208_v33 = vld [vmem:[#allocation9 + $0xbd4] sm:$0xf]  ;;  %v12692_v37 = vor.u32 %v18016_v24, %v12689_v25  ;;  %v13204_v42 = vor.u32 %v18144_v30, %v13201_v50  ;;  %v2689_v24 = vpop.f32.mrf.mxu0 }
 0x14c   :  { %v18100_v49 = vld [vmem:[#allocation9 + $0x86c] sm:$0xf0]  ;;  %v13457_v34 = vld [vmem:[#allocation9 + $0xbf0] sm:$0xf0] }
 0x14d   :  { %v13263_v59 = vld [vmem:[#allocation9 + $0xa50] sm:$0xf]  ;;  %v13008_v3 = vor.u32 %v18100_v49, %v13007_v56  ;;  %2923 = vmatpush.bf16.msrb.mxu1 %v13296_v55  ;;  %2951 = vmatpush.bf16.msrb.mxu3 %v12276_v60  ;;  %v13460_v45 = vor.u32 %v18208_v33, %v13457_v34  ;;  %v18136_v48 = vld [vmem:[#allocation9 + $0x994] sm:$0xf]  ;;  %v12660_v56 = vor.u32 %v18008_v38, %v12657_v43 }
 0x14e   :  { %v18164_v62 = vld [vmem:[#allocation9 + $0xa6c] sm:$0xf0]  ;;  %v13169_v51 = vld [vmem:[#allocation9 + $0x9b0] sm:$0xf0]  ;;  %v12916_v49 = vor.u32 %v18072_v44, %v12913_v47 }
 0x14f   :  { %v12975_v4 = vld [vmem:[#allocation9 + $0x810] sm:$0xf]  ;;  %v13264_v7 = vor.u32 %v18164_v62, %v13263_v59  ;;  %2910 = vmatpush.bf16.msrb.mxu0 %v13008_v3  ;;  %2938 = vmatpush.bf16.msrb.mxu2 %v11988_v8  ;;  %v18200_v55 = vld [vmem:[#allocation9 + $0xb94] sm:$0xf]  ;;  %v13172_v59 = vor.u32 %v18136_v48, %v13169_v51 }
 0x150   :  { %v18092_v5 = vld [vmem:[#allocation9 + $0x82c] sm:$0xf0]  ;;  %v13425_v54 = vld [vmem:[#allocation9 + $0xbb0] sm:$0xf0] }
 0x151   :  { %v13231_v9 = vld [vmem:[#allocation9 + $0xa10] sm:$0xf]  ;;  %v12976_v28 = vor.u32 %v18092_v5, %v12975_v4  ;;  %2924 = vmatpush.bf16.msrb.mxu1 %v13264_v7  ;;  %2952 = vmatpush.bf16.msrb.mxu3 %v12244_v14  ;;  %v18000_v60 = vld [vmem:[#allocation9 + $0x554] sm:$0xf]  ;;  %v13428_v63 = vor.u32 %v18200_v55, %v13425_v54  ;;  %v548_v7 = vperm.slane %v19692_v46, 2 }
 0x152   :  { %v18156_v10 = vld [vmem:[#allocation9 + $0xa2c] sm:$0xf0]  ;;  %v12625_v61 = vld [vmem:[#allocation9 + $0x570] sm:$0xf0] }
 0x153   :  { %v13232_v13 = vor.u32 %v18156_v10, %v13231_v9  ;;  %2911 = vmatpush.bf16.msrb.mxu0 %v12976_v28  ;;  %2939 = vmatpush.bf16.msrb.mxu2 %v11956_v32  ;;  %v18064_v62 = vld [vmem:[#allocation9 + $0x754] sm:$0xf]  ;;  %v12628_v5 = vor.u32 %v18000_v60, %v12625_v61  ;;  %v2690_v26 = vadd.f32 %v2689_v24, %v548_v7  ;;  %v2703_v28 = vpop.f32.mrf.mxu1  ;;  %v2691_v61 = vpop.f32.mrf.mxu0 }
 0x154   :  { %v12881_v0 = vld [vmem:[#allocation9 + $0x770] sm:$0xf0] }
 0x155   :  { %2925 = vmatpush.bf16.msrb.mxu1 %v13232_v13  ;;  %2953 = vmatpush.bf16.msrb.mxu3 %v12212_v36  ;;  %v18128_v27 = vld [vmem:[#allocation9 + $0x954] sm:$0xf]  ;;  %v12884_v8 = vor.u32 %v18064_v62, %v12881_v0 }
 0x156   :  { %2912 = vmatmul.bf16.vlgmr.msrb.gmra.mxu0 %v19676_v35  ;;  %v13137_v2 = vld [vmem:[#allocation9 + $0x970] sm:$0xf0]  ;;  %2940 = vmatmul.bf16.vlgmr.msrb.gmra.mxu2 %v19664_v57 }
 0x157   :  { %2960 = vmatpush.bf16.msra.mxu0 %v12692_v37  ;;  %2988 = vmatpush.bf16.msra.mxu2 %v13204_v42  ;;  %v18192_v3 = vld [vmem:[#allocation9 + $0xb54] sm:$0xf]  ;;  %v13140_v9 = vor.u32 %v18128_v27, %v13137_v2  ;;  %v2704_v37 = vadd.f32 %v2703_v28, %v2690_v26  ;;  %v2692_v27 = vadd.f32 %v2691_v61, %v548_v7  ;;  %v12151_v61 = vld [vmem:[#allocation9 + $0x198] sm:$0xf] }
 0x158   :  { %2926 = vmatmul.bf16.vlgmr.msrb.gmra.mxu1 %v19678_v39  ;;  %v13393_v4 = vld [vmem:[#allocation9 + $0xb70] sm:$0xf0]  ;;  %2954 = vmatmul.bf16.vlgmr.msrb.gmra.mxu3 %v19667_v6 }
 0x159   :  { %2974 = vmatpush.bf16.msra.mxu1 %v12948_v41  ;;  %3002 = vmatpush.bf16.msra.mxu3 %v13460_v45  ;;  %v17992_v10 = vld [vmem:[#allocation9 + $0x514] sm:$0xf]  ;;  %v13396_v15 = vor.u32 %v18192_v3, %v13393_v4 }
 0x15a   :  { %v12593_v11 = vld [vmem:[#allocation9 + $0x530] sm:$0xf0] }
 0x15b   :  { %2961 = vmatpush.bf16.msra.mxu0 %v12660_v56  ;;  %2989 = vmatpush.bf16.msra.mxu2 %v13172_v59  ;;  %v18056_v14 = vld [vmem:[#allocation9 + $0x714] sm:$0xf]  ;;  %v12596_v25 = vor.u32 %v17992_v10, %v12593_v11 }
 0x15c   :  { %v12849_v16 = vld [vmem:[#allocation9 + $0x730] sm:$0xf0] }
 0x15d   :  { %2975 = vmatpush.bf16.msra.mxu1 %v12916_v49  ;;  %3003 = vmatpush.bf16.msra.mxu3 %v13428_v63  ;;  %v18120_v17 = vld [vmem:[#allocation9 + $0x914] sm:$0xf]  ;;  %v12852_v46 = vor.u32 %v18056_v14, %v12849_v16  ;;  %v2717_v49 = vpop.f32.mrf.mxu2  ;;  %v2731_v63 = vpop.f32.mrf.mxu3 }
 0x15e   :  { %v13105_v18 = vld [vmem:[#allocation9 + $0x930] sm:$0xf0]  ;;  %v2718_v62 = vadd.f32 %v2717_v49, %v2704_v37  ;;  %v12439_v37 = vld [vmem:[#allocation9 + $0x3d8] sm:$0xf] }
 0x15f   :  { %v18184_v20 = vld [vmem:[#allocation9 + $0xb14] sm:$0xf]  ;;  %2962 = vmatpush.bf16.msra.mxu0 %v12628_v5  ;;  %2990 = vmatpush.bf16.msra.mxu2 %v13140_v9  ;;  %v13108_v29 = vor.u32 %v18120_v17, %v13105_v18  ;;  %v2705_v9 = vpop.f32.mrf.mxu1 }
 0x160   :  { %v13361_v21 = vld [vmem:[#allocation9 + $0xb30] sm:$0xf0]  ;;  %v19741_v10 = vadd.f32 %v2731_v63, %v2718_v62  ;;  %v2706_v17 = vadd.f32 %v2705_v9, %v2692_v27  ;;  %v17885_v62 = vld [vmem:[#allocation9 + $0x1b4] sm:$0xf0] }
 0x161   :  { %2976 = vmatpush.bf16.msra.mxu1 %v12884_v8  ;;  %v17984_v30 = vld [vmem:[#allocation9 + $0x4d4] sm:$0xf]  ;;  %3004 = vmatpush.bf16.msra.mxu3 %v13396_v15  ;;  %v13364_v32 = vor.u32 %v18184_v20, %v13361_v21  ;;  %v12407_v63 = vld [vmem:[#allocation9 + $0x398] sm:$0xf] }
 0x162   :  { %v12561_v50 = vld [vmem:[#allocation9 + $0x4f0] sm:$0xf0]  ;;  %v17949_v27 = vld [vmem:[#allocation9 + $0x3b4] sm:$0xf0] }
 0x163   :  { %v18048_v13 = vld [vmem:[#allocation9 + $0x6d4] sm:$0xf]  ;;  %2963 = vmatpush.bf16.msra.mxu0 %v12596_v25  ;;  %v12564_v42 = vor.u32 %v17984_v30, %v12561_v50  ;;  %2991 = vmatpush.bf16.msra.mxu2 %v13108_v29  ;;  %v12408_v9 = vor.u32 %v17949_v27, %v12407_v63 }
 0x164   :  { %v12817_v33 = vld [vmem:[#allocation9 + $0x6f0] sm:$0xf0] }
 0x165   :  { %v18112_v34 = vld [vmem:[#allocation9 + $0x8d4] sm:$0xf]  ;;  %2977 = vmatpush.bf16.msra.mxu1 %v12852_v46  ;;  %v12820_v43 = vor.u32 %v18048_v13, %v12817_v33  ;;  %3005 = vmatpush.bf16.msra.mxu3 %v13364_v32  ;;  %v2719_v33 = vpop.f32.mrf.mxu2 }
 0x166   :  { %v13073_v36 = vld [vmem:[#allocation9 + $0x8f0] sm:$0xf0] }
 0x167   :  { %v18176_v38 = vld [vmem:[#allocation9 + $0xad4] sm:$0xf]  ;;  %v13076_v44 = vor.u32 %v18112_v34, %v13073_v36  ;;  %2964 = vmatpush.bf16.msra.mxu0 %v12564_v42  ;;  %v12183_v34 = vld [vmem:[#allocation9 + $0x1d8] sm:$0xf] }
 0x168   :  { %v13329_v41 = vld [vmem:[#allocation9 + $0xaf0] sm:$0xf0]  ;;  %v17893_v36 = vld [vmem:[#allocation9 + $0x1f4] sm:$0xf0] }
 0x169   :  { %v17976_v45 = vld [vmem:[#allocation9 + $0x494] sm:$0xf]  ;;  %v13332_v51 = vor.u32 %v18176_v38, %v13329_v41  ;;  %2978 = vmatpush.bf16.msra.mxu1 %v12820_v43  ;;  %2992 = vmatpush.bf16.msra.mxu2 %v13076_v44  ;;  %v2720_v38 = vadd.f32 %v2719_v33, %v2706_v17  ;;  %v2733_v41 = vpop.f32.mrf.mxu3  ;;  %v17957_v43 = vld [vmem:[#allocation9 + $0x3f4] sm:$0xf0]  ;;  %v12184_v49 = vor.u32 %v17893_v36, %v12183_v34  ;;  %v2745_v34 = vpop.f32.mrf.mxu0 }
 0x16a   :  { %v12529_v47 = vld [vmem:[#allocation9 + $0x4b0] sm:$0xf0]  ;;  %v12695_v44 = vld [vmem:[#allocation9 + $0x5d8] sm:$0xf] }
 0x16b   :  { %v18040_v48 = vld [vmem:[#allocation9 + $0x694] sm:$0xf]  ;;  %v12532_v0 = vor.u32 %v17976_v45, %v12529_v47  ;;  %3006 = vmatpush.bf16.msra.mxu3 %v13332_v51  ;;  %v18021_v45 = vld [vmem:[#allocation9 + $0x5f4] sm:$0xf0] }
 0x16c   :  { %v12785_v55 = vld [vmem:[#allocation9 + $0x6b0] sm:$0xf0]  ;;  %v12951_v51 = vld [vmem:[#allocation9 + $0x7d8] sm:$0xf] }
 0x16d   :  { %v18104_v54 = vld [vmem:[#allocation9 + $0x894] sm:$0xf]  ;;  %v12788_v2 = vor.u32 %v18040_v48, %v12785_v55  ;;  %2965 = vmatpush.bf16.msra.mxu0 %v12532_v0  ;;  %v18085_v55 = vld [vmem:[#allocation9 + $0x7f4] sm:$0xf0] }
 0x16e   :  { %v13041_v56 = vld [vmem:[#allocation9 + $0x8b0] sm:$0xf0]  ;;  %v12952_v0 = vor.u32 %v18085_v55, %v12951_v51  ;;  %v17997_v33 = vld [vmem:[#allocation9 + $0x534] sm:$0xf0] }
 0x16f   :  { %v18168_v59 = vld [vmem:[#allocation9 + $0xa94] sm:$0xf]  ;;  %v13044_v3 = vor.u32 %v18104_v54, %v13041_v56  ;;  %2979 = vmatpush.bf16.msra.mxu1 %v12788_v2  ;;  %v19743_v54 = vadd.f32 %v2733_v41, %v2720_v38  ;;  %v12663_v2 = vld [vmem:[#allocation9 + $0x598] sm:$0xf]  ;;  %v2746_v38 = vadd.f32 %v2745_v34, %v19741_v10 }
 0x170   :  { %v13297_v60 = vld [vmem:[#allocation9 + $0xab0] sm:$0xf0]  ;;  %v12855_v36 = vld [vmem:[#allocation9 + $0x718] sm:$0xf] }
 0x171   :  { %v17968_v4 = vld [vmem:[#allocation9 + $0x454] sm:$0xf]  ;;  %v13300_v11 = vor.u32 %v18168_v59, %v13297_v60  ;;  %2993 = vmatpush.bf16.msra.mxu2 %v13044_v3  ;;  %v12440_v59 = vor.u32 %v17957_v43, %v12439_v37  ;;  %v12696_v60 = vor.u32 %v18021_v45, %v12695_v44  ;;  %v18013_v3 = vld [vmem:[#allocation9 + $0x5b4] sm:$0xf0] }
 0x172   :  { %v12497_v5 = vld [vmem:[#allocation9 + $0x470] sm:$0xf0]  ;;  %v18061_v37 = vld [vmem:[#allocation9 + $0x734] sm:$0xf0] }
 0x173   :  { %v18032_v8 = vld [vmem:[#allocation9 + $0x654] sm:$0xf]  ;;  %v12500_v7 = vor.u32 %v17968_v4, %v12497_v5  ;;  %3007 = vmatpush.bf16.msra.mxu3 %v13300_v11  ;;  %v12919_v4 = vld [vmem:[#allocation9 + $0x798] sm:$0xf]  ;;  %v12664_v11 = vor.u32 %v18013_v3, %v12663_v2  ;;  %v12856_v51 = vor.u32 %v18061_v37, %v12855_v36 }
 0x174   :  { %v12753_v14 = vld [vmem:[#allocation9 + $0x670] sm:$0xf0]  ;;  %v18077_v5 = vld [vmem:[#allocation9 + $0x7b4] sm:$0xf0] }
 0x175   :  { %v18096_v15 = vld [vmem:[#allocation9 + $0x854] sm:$0xf]  ;;  %v12756_v25 = vor.u32 %v18032_v8, %v12753_v14  ;;  %2966 = vmatpush.bf16.msra.mxu0 %v12500_v7  ;;  %v12152_v8 = vor.u32 %v17885_v62, %v12151_v61  ;;  %v12119_v14 = vld [vmem:[#allocation9 + $0x158] sm:$0xf]  ;;  %v12920_v17 = vor.u32 %v18077_v5, %v12919_v4  ;;  %v19752_v62 = vld [vmem:[#allocation11] sm:$0xff] }
 0x176   :  { %v13009_v16 = vld [vmem:[#allocation9 + $0x870] sm:$0xf0]  ;;  %v18005_v7 = vld [vmem:[#allocation9 + $0x574] sm:$0xf0]  ;;  %v549_v10 = vperm.slane %v19752_v62, 3 }
 0x177   :  { %v18160_v18 = vld [vmem:[#allocation9 + $0xa54] sm:$0xf]  ;;  %v13012_v26 = vor.u32 %v18096_v15, %v13009_v16  ;;  %2980 = vmatpush.bf16.msra.mxu1 %v12756_v25  ;;  %v17877_v15 = vld [vmem:[#allocation9 + $0x174] sm:$0xf0] }
 0x178   :  { %v13265_v20 = vld [vmem:[#allocation9 + $0xa70] sm:$0xf0]  ;;  %v12375_v16 = vld [vmem:[#allocation9 + $0x358] sm:$0xf]  ;;  %v12120_v25 = vor.u32 %v17877_v15, %v12119_v14  ;;  %v2773_v15 = vpop.f32.mrf.mxu2 }
 0x179   :  { %v17960_v21 = vld [vmem:[#allocation9 + $0x414] sm:$0xf]  ;;  %v13268_v30 = vor.u32 %v18160_v18, %v13265_v20  ;;  %2994 = vmatpush.bf16.msra.mxu2 %v13012_v26  ;;  %v17941_v18 = vld [vmem:[#allocation9 + $0x374] sm:$0xf0] }
 0x17a   :  { %v12465_v24 = vld [vmem:[#allocation9 + $0x430] sm:$0xf0]  ;;  %v12631_v20 = vld [vmem:[#allocation9 + $0x558] sm:$0xf]  ;;  %v12376_v26 = vor.u32 %v17941_v18, %v12375_v16  ;;  %v2747_v16 = vpop.f32.mrf.mxu0 }
 0x17b   :  { %v18024_v28 = vld [vmem:[#allocation9 + $0x614] sm:$0xf]  ;;  %v12468_v42 = vor.u32 %v17960_v21, %v12465_v24  ;;  %3008 = vmatpush.bf16.msra.mxu3 %v13268_v30  ;;  %v12887_v21 = vld [vmem:[#allocation9 + $0x758] sm:$0xf] }
 0x17c   :  { %v12721_v46 = vld [vmem:[#allocation9 + $0x630] sm:$0xf0]  ;;  %v18069_v24 = vld [vmem:[#allocation9 + $0x774] sm:$0xf0] }
 0x17d   :  { %v18088_v29 = vld [vmem:[#allocation9 + $0x814] sm:$0xf]  ;;  %v12724_v47 = vor.u32 %v18024_v28, %v12721_v46  ;;  %2967 = vmatpush.bf16.msra.mxu0 %v12468_v42  ;;  %v12632_v28 = vor.u32 %v18005_v7, %v12631_v20  ;;  %v12087_v46 = vld [vmem:[#allocation9 + $0x118] sm:$0xf]  ;;  %v2759_v42 = vpop.f32.mrf.mxu1  ;;  %v2774_v20 = vadd.f32 %v2773_v15, %v549_v10  ;;  %v2787_v7 = vpop.f32.mrf.mxu3 }
 0x17e   :  { %v12977_v50 = vld [vmem:[#allocation9 + $0x830] sm:$0xf0]  ;;  %v12343_v30 = vld [vmem:[#allocation9 + $0x318] sm:$0xf]  ;;  %v19750_v55 = vadd.f32 %v2759_v42, %v2746_v38 }
 0x17f   :  { %v18152_v13 = vld [vmem:[#allocation9 + $0xa14] sm:$0xf]  ;;  %v12980_v48 = vor.u32 %v18088_v29, %v12977_v50  ;;  %2981 = vmatpush.bf16.msra.mxu1 %v12724_v47  ;;  %v17869_v29 = vld [vmem:[#allocation9 + $0x134] sm:$0xf0]  ;;  %v12888_v50 = vor.u32 %v18069_v24, %v12887_v21  ;;  %v2748_v21 = vadd.f32 %v2747_v16, %v19743_v54  ;;  %v17953_v16 = vld [vmem:[#allocation9 + $0x3dc] sm:$0xf] }
 0x180   :  { %v13233_v32 = vld [vmem:[#allocation9 + $0xa30] sm:$0xf0]  ;;  %2968 = vmatmul.bf16.vlgmr.msra.gmra.mxu0 %v19670_v22  ;;  %v12088_v41 = vor.u32 %v17869_v29, %v12087_v46  ;;  %v12055_v45 = vld [vmem:[#allocation9 + $0xd8] sm:$0xf]  ;;  %v3186_v63 = vmax.f32 %v19750_v55, 0.0 }
 0x181   :  { %v13236_v56 = vor.u32 %v18152_v13, %v13233_v32  ;;  %2995 = vmatpush.bf16.msra.mxu2 %v12980_v48  ;;  %3016 = vmatpush.bf16.msrb.mxu0 %v12184_v49  ;;  %v17933_v13 = vld [vmem:[#allocation9 + $0x334] sm:$0xf0] }
 0x182   :  { %2982 = vmatmul.bf16.vlgmr.msra.gmra.mxu1 %v19672_v23  ;;  %v12599_v32 = vld [vmem:[#allocation9 + $0x518] sm:$0xf]  ;;  %v12344_v43 = vor.u32 %v17933_v13, %v12343_v30 }
 0x183   :  { %3009 = vmatpush.bf16.msra.mxu3 %v13236_v56  ;;  %3030 = vmatpush.bf16.msrb.mxu1 %v12440_v59  ;;  %v12600_v44 = vor.u32 %v17997_v33, %v12599_v32  ;;  %v17861_v47 = vld [vmem:[#allocation9 + $0xf4] sm:$0xf0] }
 0x184   :  { %2996 = vmatmul.bf16.vlgmr.msra.gmra.mxu2 %v19676_v35  ;;  %v12311_v48 = vld [vmem:[#allocation9 + $0x2d8] sm:$0xf] }
 0x185   :  { %3044 = vmatpush.bf16.msrb.mxu2 %v12696_v60  ;;  %3017 = vmatpush.bf16.msrb.mxu0 %v12152_v8  ;;  %v17925_v56 = vld [vmem:[#allocation9 + $0x2f4] sm:$0xf0] }
 0x186   :  { %3010 = vmatmul.bf16.vlgmr.msra.gmra.mxu3 %v19678_v39  ;;  %v12567_v49 = vld [vmem:[#allocation9 + $0x4d8] sm:$0xf]  ;;  %v12312_v27 = vor.u32 %v17925_v56, %v12311_v48 }
 0x187   :  { %3058 = vmatpush.bf16.msrb.mxu3 %v12952_v0  ;;  %3031 = vmatpush.bf16.msrb.mxu1 %v12408_v9  ;;  %v17989_v59 = vld [vmem:[#allocation9 + $0x4f4] sm:$0xf0]  ;;  %v12056_v0 = vor.u32 %v17861_v47, %v12055_v45 }
 0x188   :  { %v12823_v60 = vld [vmem:[#allocation9 + $0x6d8] sm:$0xf]  ;;  %v12568_v2 = vor.u32 %v17989_v59, %v12567_v49 }
 0x189   :  { %3045 = vmatpush.bf16.msrb.mxu2 %v12664_v11  ;;  %3018 = vmatpush.bf16.msrb.mxu0 %v12120_v25  ;;  %v18053_v61 = vld [vmem:[#allocation9 + $0x6f4] sm:$0xf0]  ;;  %v2761_v25 = vpop.f32.mrf.mxu1 }
 0x18a   :  { %v12023_v3 = vld [vmem:[#allocation9 + $0x98] sm:$0xf]  ;;  %v12824_v8 = vor.u32 %v18053_v61, %v12823_v60  ;;  %v19761_v32 = vadd.f32 %v2761_v25, %v2748_v21  ;;  %v2775_v61 = vpop.f32.mrf.mxu2 }
 0x18b   :  { %3059 = vmatpush.bf16.msrb.mxu3 %v12920_v17  ;;  %3032 = vmatpush.bf16.msrb.mxu1 %v12376_v26  ;;  %v17853_v4 = vld [vmem:[#allocation9 + $0xb4] sm:$0xf0] }
 0x18c   :  { %v12279_v5 = vld [vmem:[#allocation9 + $0x298] sm:$0xf]  ;;  %v12024_v24 = vor.u32 %v17853_v4, %v12023_v3  ;;  %v3194_v38 = vmax.f32 %v19761_v32, 0.0  ;;  %v2776_v3 = vadd.f32 %v2775_v61, %v549_v10 }
 0x18d   :  { %3046 = vmatpush.bf16.msrb.mxu2 %v12632_v28  ;;  %3019 = vmatpush.bf16.msrb.mxu0 %v12088_v41  ;;  %v17917_v9 = vld [vmem:[#allocation9 + $0x2b4] sm:$0xf0] }
 0x18e   :  { %v12535_v11 = vld [vmem:[#allocation9 + $0x498] sm:$0xf]  ;;  %v12280_v26 = vor.u32 %v17917_v9, %v12279_v5  ;;  %v12185_v9 = vld [vmem:[#allocation9 + $0x1f8] sm:$0xf0] }
 0x18f   :  { %3060 = vmatpush.bf16.msrb.mxu3 %v12888_v50  ;;  %3033 = vmatpush.bf16.msrb.mxu1 %v12344_v43  ;;  %v17981_v14 = vld [vmem:[#allocation9 + $0x4b4] sm:$0xf0]  ;;  %v19759_v50 = vadd.f32 %v2787_v7, %v2774_v20 }
 0x190   :  { %v12791_v17 = vld [vmem:[#allocation9 + $0x698] sm:$0xf]  ;;  %v12536_v28 = vor.u32 %v17981_v14, %v12535_v11  ;;  %v2789_v11 = vpop.f32.mrf.mxu3 }
 0x191   :  { %3047 = vmatpush.bf16.msrb.mxu2 %v12600_v44  ;;  %v18045_v18 = vld [vmem:[#allocation9 + $0x6b4] sm:$0xf0]  ;;  %3020 = vmatpush.bf16.msrb.mxu0 %v12056_v0 }
 0x192   :  { %v11991_v46 = vld [vmem:[#allocation9 + $0x58] sm:$0xf]  ;;  %v12792_v13 = vor.u32 %v18045_v18, %v12791_v17  ;;  %v12441_v17 = vld [vmem:[#allocation9 + $0x3f8] sm:$0xf0]  ;;  %v19766_v18 = vadd.f32 %v2789_v11, %v2776_v3 }
 0x193   :  { %3061 = vmatpush.bf16.msrb.mxu3 %v12856_v51  ;;  %3034 = vmatpush.bf16.msrb.mxu1 %v12312_v27  ;;  %v17845_v29 = vld [vmem:[#allocation9 + $0x74] sm:$0xf0]  ;;  %v17865_v3 = vld [vmem:[#allocation9 + $0x11c] sm:$0xf] }
 0x194   :  { %v12247_v30 = vld [vmem:[#allocation9 + $0x258] sm:$0xf]  ;;  %v11992_v41 = vor.u32 %v17845_v29, %v11991_v46  ;;  %v17881_v29 = vld [vmem:[#allocation9 + $0x19c] sm:$0xf] }
 0x195   :  { %3048 = vmatpush.bf16.msrb.mxu2 %v12568_v2  ;;  %v17909_v33 = vld [vmem:[#allocation9 + $0x274] sm:$0xf0]  ;;  %3021 = vmatpush.bf16.msrb.mxu0 %v12024_v24 }
 0x196   :  { %v12503_v34 = vld [vmem:[#allocation9 + $0x458] sm:$0xf]  ;;  %v12248_v44 = vor.u32 %v17909_v33, %v12247_v30  ;;  %v12153_v30 = vld [vmem:[#allocation9 + $0x1b8] sm:$0xf0] }
 0x197   :  { %3062 = vmatpush.bf16.msrb.mxu3 %v12824_v8  ;;  %v17973_v36 = vld [vmem:[#allocation9 + $0x474] sm:$0xf0]  ;;  %3035 = vmatpush.bf16.msrb.mxu1 %v12280_v26  ;;  %v17889_v8 = vld [vmem:[#allocation9 + $0x1dc] sm:$0xf] }
 0x198   :  { %v12759_v37 = vld [vmem:[#allocation9 + $0x658] sm:$0xf]  ;;  %v12504_v45 = vor.u32 %v17973_v36, %v12503_v34  ;;  %v12188_v24 = vor.u32 %v17889_v8, %v12185_v9  ;;  %v12409_v33 = vld [vmem:[#allocation9 + $0x3b8] sm:$0xf0] }
 0x199   :  { %v18037_v54 = vld [vmem:[#allocation9 + $0x674] sm:$0xf0]  ;;  %3049 = vmatpush.bf16.msrb.mxu2 %v12536_v28  ;;  %3022 = vmatpush.bf16.msrb.mxu0 %v11992_v41  ;;  %v12444_v28 = vor.u32 %v17953_v16, %v12441_v17  ;;  %v17929_v8 = vld [vmem:[#allocation9 + $0x31c] sm:$0xf] }
 0x19a   :  { %v11959_v42 = vld [vmem:[#allocation9 + $0x18] sm:$0xf]  ;;  %v12760_v56 = vor.u32 %v18037_v54, %v12759_v37  ;;  %v12156_v37 = vor.u32 %v17881_v29, %v12153_v30  ;;  %v12345_v9 = vld [vmem:[#allocation9 + $0x338] sm:$0xf0] }
 0x19b   :  { %v17837_v43 = vld [vmem:[#allocation9 + $0x34] sm:$0xf0]  ;;  %3063 = vmatpush.bf16.msrb.mxu3 %v12792_v13  ;;  %3036 = vmatpush.bf16.msrb.mxu1 %v12248_v44  ;;  %v17945_v13 = vld [vmem:[#allocation9 + $0x39c] sm:$0xf] }
 0x19c   :  { %v12215_v47 = vld [vmem:[#allocation9 + $0x218] sm:$0xf]  ;;  %v11960_v4 = vor.u32 %v17837_v43, %v11959_v42  ;;  %v12412_v43 = vor.u32 %v17945_v13, %v12409_v33  ;;  %v12313_v29 = vld [vmem:[#allocation9 + $0x2f8] sm:$0xf0] }
 0x19d   :  { %v17901_v48 = vld [vmem:[#allocation9 + $0x234] sm:$0xf0]  ;;  %3050 = vmatpush.bf16.msrb.mxu2 %v12504_v45  ;;  %v17873_v45 = vld [vmem:[#allocation9 + $0x15c] sm:$0xf] }
 0x19e   :  { %v12471_v51 = vld [vmem:[#allocation9 + $0x418] sm:$0xf]  ;;  %v12216_v14 = vor.u32 %v17901_v48, %v12215_v47  ;;  %3023 = vmatpush.bf16.msrb.mxu0 %v11960_v4  ;;  %v12121_v47 = vld [vmem:[#allocation9 + $0x178] sm:$0xf0] }
 0x19f   :  { %v17965_v49 = vld [vmem:[#allocation9 + $0x434] sm:$0xf0]  ;;  %3064 = vmatpush.bf16.msrb.mxu3 %v12760_v56  ;;  %v17937_v48 = vld [vmem:[#allocation9 + $0x35c] sm:$0xf] }
 0x1a0   :  { %v12727_v59 = vld [vmem:[#allocation9 + $0x618] sm:$0xf]  ;;  %v12472_v15 = vor.u32 %v17965_v49, %v12471_v51  ;;  %3037 = vmatpush.bf16.msrb.mxu1 %v12216_v14  ;;  %v12377_v51 = vld [vmem:[#allocation9 + $0x378] sm:$0xf0] }
 0x1a1   :  { %v18029_v60 = vld [vmem:[#allocation9 + $0x634] sm:$0xf0]  ;;  %3024 = vmatmul.bf16.vlgmr.msrb.gmra.mxu0 %v19664_v57  ;;  %v12089_v4 = vld [vmem:[#allocation9 + $0x138] sm:$0xf0] }
 0x1a2   :  { %v13207_v0 = vld [vmem:[#allocation9 + $0x9d8] sm:$0xf]  ;;  %v12728_v20 = vor.u32 %v18029_v60, %v12727_v59  ;;  %3051 = vmatpush.bf16.msrb.mxu2 %v12472_v15  ;;  %v12124_v59 = vor.u32 %v17873_v45, %v12121_v47  ;;  %v2815_v15 = vpop.f32.mrf.mxu1  ;;  %v12092_v17 = vor.u32 %v17865_v3, %v12089_v4  ;;  %v2843_v47 = vpop.f32.mrf.mxu3 }
 0x1a3   :  { %v18149_v27 = vld [vmem:[#allocation9 + $0x9f4] sm:$0xf0]  ;;  %3038 = vmatmul.bf16.vlgmr.msrb.gmra.mxu1 %v19667_v6 }
 0x1a4   :  { %v13463_v2 = vld [vmem:[#allocation9 + $0xbd8] sm:$0xf]  ;;  %v13208_v7 = vor.u32 %v18149_v27, %v13207_v0  ;;  %3065 = vmatpush.bf16.msrb.mxu3 %v12728_v20  ;;  %v12380_v27 = vor.u32 %v17937_v48, %v12377_v51  ;;  %v17913_v48 = vld [vmem:[#allocation9 + $0x29c] sm:$0xf] }
 0x1a5   :  { %v18213_v5 = vld [vmem:[#allocation9 + $0xbf4] sm:$0xf0]  ;;  %3052 = vmatmul.bf16.vlgmr.msrb.gmra.mxu2 %v19670_v22  ;;  %v12281_v51 = vld [vmem:[#allocation9 + $0x2b8] sm:$0xf0] }
 0x1a6   :  { %v13464_v21 = vor.u32 %v18213_v5, %v13463_v2  ;;  %v13175_v10 = vld [vmem:[#allocation9 + $0x998] sm:$0xf]  ;;  %3072 = vmatpush.bf16.msra.mxu0 %v13208_v7  ;;  %3100 = vmatpush.bf16.msra.mxu2 %v12188_v24  ;;  %v2801_v5 = vpop.f32.mrf.mxu0  ;;  %v12348_v24 = vor.u32 %v17929_v8, %v12345_v9  ;;  %v12284_v4 = vor.u32 %v17913_v48, %v12281_v51  ;;  %v17841_v9 = vld [vmem:[#allocation9 + $0x5c] sm:$0xf] }
 0x1a7   :  { %v18141_v25 = vld [vmem:[#allocation9 + $0x9b4] sm:$0xf0]  ;;  %3066 = vmatmul.bf16.vlgmr.msrb.gmra.mxu3 %v19672_v23  ;;  %v2802_v11 = vadd.f32 %v2801_v5, %v19759_v50  ;;  %v13465_v48 = vld [vmem:[#allocation9 + $0xbf8] sm:$0xf0] }
 0x1a8   :  { %v13431_v26 = vld [vmem:[#allocation9 + $0xb98] sm:$0xf]  ;;  %v13176_v34 = vor.u32 %v18141_v25, %v13175_v10  ;;  %3086 = vmatpush.bf16.msra.mxu1 %v13464_v21  ;;  %3114 = vmatpush.bf16.msra.mxu3 %v12444_v28  ;;  %v12057_v28 = vld [vmem:[#allocation9 + $0xf8] sm:$0xf0] }
 0x1a9   :  { %v18205_v46 = vld [vmem:[#allocation9 + $0xbb4] sm:$0xf0]  ;;  %v2816_v10 = vadd.f32 %v2815_v15, %v2802_v11  ;;  %v11993_v11 = vld [vmem:[#allocation9 + $0x78] sm:$0xf0] }
 0x1aa   :  { %v13432_v36 = vor.u32 %v18205_v46, %v13431_v26  ;;  %v13143_v54 = vld [vmem:[#allocation9 + $0x958] sm:$0xf]  ;;  %3073 = vmatpush.bf16.msra.mxu0 %v13176_v34  ;;  %3101 = vmatpush.bf16.msra.mxu2 %v12156_v37  ;;  %v17857_v26 = vld [vmem:[#allocation9 + $0xdc] sm:$0xf] }
 0x1ab   :  { %v18133_v41 = vld [vmem:[#allocation9 + $0x974] sm:$0xf0]  ;;  %v17921_v46 = vld [vmem:[#allocation9 + $0x2dc] sm:$0xf]  ;;  %v12060_v13 = vor.u32 %v17857_v26, %v12057_v28 }
 0x1ac   :  { %v13399_v42 = vld [vmem:[#allocation9 + $0xb58] sm:$0xf]  ;;  %v13144_v56 = vor.u32 %v18133_v41, %v13143_v54  ;;  %3087 = vmatpush.bf16.msra.mxu1 %v13432_v36  ;;  %3115 = vmatpush.bf16.msra.mxu3 %v12412_v43  ;;  %v12316_v37 = vor.u32 %v17921_v46, %v12313_v29  ;;  %v2829_v54 = vpop.f32.mrf.mxu2  ;;  %v12025_v43 = vld [vmem:[#allocation9 + $0xb8] sm:$0xf0] }
 0x1ad   :  { %v18197_v44 = vld [vmem:[#allocation9 + $0xb74] sm:$0xf0]  ;;  %v12249_v15 = vld [vmem:[#allocation9 + $0x278] sm:$0xf0] }
 0x1ae   :  { %v13400_v49 = vor.u32 %v18197_v44, %v13399_v42  ;;  %v13111_v60 = vld [vmem:[#allocation9 + $0x918] sm:$0xf]  ;;  %3074 = vmatpush.bf16.msra.mxu0 %v13144_v56  ;;  %3102 = vmatpush.bf16.msra.mxu2 %v12124_v59  ;;  %v17849_v42 = vld [vmem:[#allocation9 + $0x9c] sm:$0xf]  ;;  %v2830_v44 = vadd.f32 %v2829_v54, %v2816_v10  ;;  %v2803_v45 = vpop.f32.mrf.mxu0  ;;  %v2817_v59 = vpop.f32.mrf.mxu1 }
 0x1af   :  { %v18125_v61 = vld [vmem:[#allocation9 + $0x934] sm:$0xf0]  ;;  %v2804_v56 = vadd.f32 %v2803_v45, %v19766_v18  ;;  %v17905_v18 = vld [vmem:[#allocation9 + $0x25c] sm:$0xf] }
 0x1b0   :  { %v13367_v0 = vld [vmem:[#allocation9 + $0xb18] sm:$0xf]  ;;  %v13112_v14 = vor.u32 %v18125_v61, %v13111_v60  ;;  %3088 = vmatpush.bf16.msra.mxu1 %v13400_v49  ;;  %3116 = vmatpush.bf16.msra.mxu3 %v12380_v27  ;;  %v19774_v60 = vadd.f32 %v2843_v47, %v2830_v44  ;;  %v12252_v26 = vor.u32 %v17905_v18, %v12249_v15  ;;  %v11961_v46 = vld [vmem:[#allocation9 + $0x38] sm:$0xf0] }
 0x1b1   :  { %v18189_v2 = vld [vmem:[#allocation9 + $0xb34] sm:$0xf0]  ;;  %v2818_v5 = vadd.f32 %v2817_v59, %v2804_v56  ;;  %v17897_v29 = vld [vmem:[#allocation9 + $0x21c] sm:$0xf] }
 0x1b2   :  { %v13368_v16 = vor.u32 %v18189_v2, %v13367_v0  ;;  %v13079_v20 = vld [vmem:[#allocation9 + $0x8d8] sm:$0xf]  ;;  %3075 = vmatpush.bf16.msra.mxu0 %v13112_v14  ;;  %3103 = vmatpush.bf16.msra.mxu2 %v12092_v17  ;;  %v12028_v0 = vor.u32 %v17849_v42, %v12025_v43  ;;  %v3187_v14 = vmax.f32 %v19774_v60, 0.0  ;;  %v12953_v54 = vld [vmem:[#allocation9 + $0x7f8] sm:$0xf0] }
 0x1b3   :  { %v18117_v7 = vld [vmem:[#allocation9 + $0x8f4] sm:$0xf0]  ;;  %v13209_v42 = vld [vmem:[#allocation9 + $0x9f8] sm:$0xf0] }
 0x1b4   :  { %v13335_v21 = vld [vmem:[#allocation9 + $0xad8] sm:$0xf]  ;;  %v13080_v30 = vor.u32 %v18117_v7, %v13079_v20  ;;  %3089 = vmatpush.bf16.msra.mxu1 %v13368_v16  ;;  %3117 = vmatpush.bf16.msra.mxu3 %v12348_v24  ;;  %v2831_v28 = vpop.f32.mrf.mxu2  ;;  %v18209_v47 = vld [vmem:[#allocation9 + $0xbdc] sm:$0xf] }
 0x1b5   :  { %v18181_v25 = vld [vmem:[#allocation9 + $0xaf4] sm:$0xf0] }
 0x1b6   :  { %v13336_v50 = vor.u32 %v18181_v25, %v13335_v21  ;;  %v13047_v33 = vld [vmem:[#allocation9 + $0x898] sm:$0xf]  ;;  %3076 = vmatpush.bf16.msra.mxu0 %v13080_v30  ;;  %3104 = vmatpush.bf16.msra.mxu2 %v12060_v13  ;;  %v11996_v21 = vor.u32 %v17841_v9, %v11993_v11  ;;  %v17833_v25 = vld [vmem:[#allocation9 + $0x1c] sm:$0xf]  ;;  %v2845_v13 = vpop.f32.mrf.mxu3 }
 0x1b7   :  { %v18109_v34 = vld [vmem:[#allocation9 + $0x8b4] sm:$0xf0]  ;;  %v12217_v30 = vld [vmem:[#allocation9 + $0x238] sm:$0xf0]  ;;  %v11964_v45 = vor.u32 %v17833_v25, %v11961_v46 }
 0x1b8   :  { %v13303_v36 = vld [vmem:[#allocation9 + $0xa98] sm:$0xf]  ;;  %v13048_v49 = vor.u32 %v18109_v34, %v13047_v33  ;;  %3090 = vmatpush.bf16.msra.mxu1 %v13336_v50  ;;  %3118 = vmatpush.bf16.msra.mxu3 %v12316_v37  ;;  %v2832_v50 = vadd.f32 %v2831_v28, %v2818_v5  ;;  %v18017_v33 = vld [vmem:[#allocation9 + $0x5dc] sm:$0xf]  ;;  %v12220_v51 = vor.u32 %v17897_v29, %v12217_v30  ;;  %v550_v29 = vperm.slane %v19752_v62, 4 }
 0x1b9   :  { %v18173_v41 = vld [vmem:[#allocation9 + $0xab4] sm:$0xf0]  ;;  %v12697_v34 = vld [vmem:[#allocation9 + $0x5f8] sm:$0xf0] }
 0x1ba   :  { %v13304_v61 = vor.u32 %v18173_v41, %v13303_v36  ;;  %v13015_v27 = vld [vmem:[#allocation9 + $0x858] sm:$0xf]  ;;  %3077 = vmatpush.bf16.msra.mxu0 %v13048_v49  ;;  %3105 = vmatpush.bf16.msra.mxu2 %v12028_v0  ;;  %v18081_v36 = vld [vmem:[#allocation9 + $0x7dc] sm:$0xf]  ;;  %v19777_v43 = vadd.f32 %v2845_v13, %v2832_v50  ;;  %v12700_v56 = vor.u32 %v18017_v33, %v12697_v34 }
 0x1bb   :  { %v18101_v2 = vld [vmem:[#allocation9 + $0x874] sm:$0xf0]  ;;  %v18145_v41 = vld [vmem:[#allocation9 + $0x9dc] sm:$0xf] }
 0x1bc   :  { %v13271_v3 = vld [vmem:[#allocation9 + $0xa58] sm:$0xf]  ;;  %v13016_v16 = vor.u32 %v18101_v2, %v13015_v27  ;;  %3091 = vmatpush.bf16.msra.mxu1 %v13304_v61  ;;  %3119 = vmatpush.bf16.msra.mxu3 %v12284_v4  ;;  %v18009_v49 = vld [vmem:[#allocation9 + $0x59c] sm:$0xf]  ;;  %v3195_v59 = vmax.f32 %v19777_v43, 0.0  ;;  %v12956_v61 = vor.u32 %v18081_v36, %v12953_v54  ;;  %v13212_v0 = vor.u32 %v18145_v41, %v13209_v42 }
 0x1bd   :  { %v18165_v8 = vld [vmem:[#allocation9 + $0xa74] sm:$0xf0]  ;;  %v12665_v27 = vld [vmem:[#allocation9 + $0x5b8] sm:$0xf0] }
 0x1be   :  { %v12983_v17 = vld [vmem:[#allocation9 + $0x818] sm:$0xf]  ;;  %v13272_v7 = vor.u32 %v18165_v8, %v13271_v3  ;;  %3078 = vmatpush.bf16.msra.mxu0 %v13016_v16  ;;  %3106 = vmatpush.bf16.msra.mxu2 %v11996_v21  ;;  %v18073_v2 = vld [vmem:[#allocation9 + $0x79c] sm:$0xf]  ;;  %v13468_v3 = vor.u32 %v18209_v47, %v13465_v48  ;;  %v12668_v18 = vor.u32 %v18009_v49, %v12665_v27  ;;  %v2871_v47 = vpop.f32.mrf.mxu1 }
 0x1bf   :  { %v18093_v20 = vld [vmem:[#allocation9 + $0x834] sm:$0xf0]  ;;  %v12921_v4 = vld [vmem:[#allocation9 + $0x7b8] sm:$0xf0] }
 0x1c0   :  { %v13239_v24 = vld [vmem:[#allocation9 + $0xa18] sm:$0xf]  ;;  %v12984_v37 = vor.u32 %v18093_v20, %v12983_v17  ;;  %3092 = vmatpush.bf16.msra.mxu1 %v13272_v7  ;;  %3120 = vmatpush.bf16.msra.mxu3 %v12252_v26  ;;  %v18137_v5 = vld [vmem:[#allocation9 + $0x99c] sm:$0xf]  ;;  %v12924_v15 = vor.u32 %v18073_v2, %v12921_v4 }
 0x1c1   :  { %v18157_v10 = vld [vmem:[#allocation9 + $0xa34] sm:$0xf0]  ;;  %v13177_v8 = vld [vmem:[#allocation9 + $0x9b8] sm:$0xf0] }
 0x1c2   :  { %v13240_v44 = vor.u32 %v18157_v10, %v13239_v24  ;;  %3079 = vmatpush.bf16.msra.mxu0 %v12984_v37  ;;  %3107 = vmatpush.bf16.msra.mxu2 %v11964_v45  ;;  %v18201_v9 = vld [vmem:[#allocation9 + $0xb9c] sm:$0xf]  ;;  %v13180_v16 = vor.u32 %v18137_v5, %v13177_v8 }
 0x1c3   :  { %v13433_v11 = vld [vmem:[#allocation9 + $0xbb8] sm:$0xf0] }
 0x1c4   :  { %3093 = vmatpush.bf16.msra.mxu1 %v13240_v44  ;;  %3121 = vmatpush.bf16.msra.mxu3 %v12220_v51  ;;  %v18001_v17 = vld [vmem:[#allocation9 + $0x55c] sm:$0xf]  ;;  %v13436_v21 = vor.u32 %v18201_v9, %v13433_v11  ;;  %v2857_v44 = vpop.f32.mrf.mxu0 }
 0x1c5   :  { %v12633_v20 = vld [vmem:[#allocation9 + $0x578] sm:$0xf0]  ;;  %3080 = vmatmul.bf16.vlgmr.msra.gmra.mxu0 %v19676_v35  ;;  %3108 = vmatmul.bf16.vlgmr.msra.gmra.mxu2 %v19664_v57 }
 0x1c6   :  { %3128 = vmatpush.bf16.msrb.mxu0 %v12700_v56  ;;  %3156 = vmatpush.bf16.msrb.mxu2 %v13212_v0  ;;  %v18065_v7 = vld [vmem:[#allocation9 + $0x75c] sm:$0xf]  ;;  %v12636_v46 = vor.u32 %v18001_v17, %v12633_v20 }
 0x1c7   :  { %v12889_v24 = vld [vmem:[#allocation9 + $0x778] sm:$0xf0]  ;;  %3094 = vmatmul.bf16.vlgmr.msra.gmra.mxu1 %v19678_v39  ;;  %3122 = vmatmul.bf16.vlgmr.msra.gmra.mxu3 %v19667_v6  ;;  %v2858_v6 = vadd.f32 %v2857_v44, %v550_v29 }
 0x1c8   :  { %3142 = vmatpush.bf16.msrb.mxu1 %v12956_v61  ;;  %3170 = vmatpush.bf16.msrb.mxu3 %v13468_v3  ;;  %v18129_v10 = vld [vmem:[#allocation9 + $0x95c] sm:$0xf]  ;;  %v12892_v30 = vor.u32 %v18065_v7, %v12889_v24 }
 0x1c9   :  { %v13145_v25 = vld [vmem:[#allocation9 + $0x978] sm:$0xf0]  ;;  %v2872_v4 = vadd.f32 %v2871_v47, %v2858_v6 }
 0x1ca   :  { %v18193_v26 = vld [vmem:[#allocation9 + $0xb5c] sm:$0xf]  ;;  %3129 = vmatpush.bf16.msrb.mxu0 %v12668_v18  ;;  %3157 = vmatpush.bf16.msrb.mxu2 %v13180_v16  ;;  %v13148_v50 = vor.u32 %v18129_v10, %v13145_v25  ;;  %v2885_v10 = vpop.f32.mrf.mxu2 }
 0x1cb   :  { %v13401_v28 = vld [vmem:[#allocation9 + $0xb78] sm:$0xf0] }
 0x1cc   :  { %3143 = vmatpush.bf16.msrb.mxu1 %v12924_v15  ;;  %v17993_v13 = vld [vmem:[#allocation9 + $0x51c] sm:$0xf]  ;;  %3171 = vmatpush.bf16.msrb.mxu3 %v13436_v21  ;;  %v13404_v36 = vor.u32 %v18193_v26, %v13401_v28  ;;  %v2859_v28 = vpop.f32.mrf.mxu0 }
 0x1cd   :  { %v12601_v33 = vld [vmem:[#allocation9 + $0x538] sm:$0xf0] }
 0x1ce   :  { %v18057_v34 = vld [vmem:[#allocation9 + $0x71c] sm:$0xf]  ;;  %3130 = vmatpush.bf16.msrb.mxu0 %v12636_v46  ;;  %v12604_v45 = vor.u32 %v17993_v13, %v12601_v33  ;;  %3158 = vmatpush.bf16.msrb.mxu2 %v13148_v50  ;;  %v2886_v46 = vadd.f32 %v2885_v10, %v2872_v4  ;;  %v2860_v13 = vadd.f32 %v2859_v28, %v550_v29  ;;  %v551_v28 = vperm.slane %v19752_v62, 5 }
 0x1cf   :  { %v12857_v37 = vld [vmem:[#allocation9 + $0x738] sm:$0xf0] }
 0x1d0   :  { %v18121_v54 = vld [vmem:[#allocation9 + $0x91c] sm:$0xf]  ;;  %3144 = vmatpush.bf16.msrb.mxu1 %v12892_v30  ;;  %v12860_v48 = vor.u32 %v18057_v34, %v12857_v37  ;;  %3172 = vmatpush.bf16.msrb.mxu3 %v13404_v36  ;;  %v2899_v30 = vpop.f32.mrf.mxu3 }
 0x1d1   :  { %v13113_v57 = vld [vmem:[#allocation9 + $0x938] sm:$0xf0] }
 0x1d2   :  { %v18185_v41 = vld [vmem:[#allocation9 + $0xb1c] sm:$0xf]  ;;  %v13116_v51 = vor.u32 %v18121_v54, %v13113_v57  ;;  %3131 = vmatpush.bf16.msrb.mxu0 %v12604_v45  ;;  %v2873_v57 = vpop.f32.mrf.mxu1 }
 0x1d3   :  { %v13369_v42 = vld [vmem:[#allocation9 + $0xb38] sm:$0xf0]  ;;  %v2874_v47 = vadd.f32 %v2873_v57, %v2860_v13 }
 0x1d4   :  { %v17985_v56 = vld [vmem:[#allocation9 + $0x4dc] sm:$0xf]  ;;  %v13372_v0 = vor.u32 %v18185_v41, %v13369_v42  ;;  %3145 = vmatpush.bf16.msrb.mxu1 %v12860_v48  ;;  %3159 = vmatpush.bf16.msrb.mxu2 %v13116_v51  ;;  %v2900_v41 = vadd.f32 %v2899_v30, %v2886_v46 }
 0x1d5   :  { %v12569_v49 = vld [vmem:[#allocation9 + $0x4f8] sm:$0xf0] }
 0x1d6   :  { %v18049_v61 = vld [vmem:[#allocation9 + $0x6dc] sm:$0xf]  ;;  %v12572_v9 = vor.u32 %v17985_v56, %v12569_v49  ;;  %3173 = vmatpush.bf16.msrb.mxu3 %v13372_v0 }
 0x1d7   :  { %v12825_v27 = vld [vmem:[#allocation9 + $0x6f8] sm:$0xf0] }
 0x1d8   :  { %v18113_v2 = vld [vmem:[#allocation9 + $0x8dc] sm:$0xf]  ;;  %v12828_v11 = vor.u32 %v18049_v61, %v12825_v27  ;;  %3132 = vmatpush.bf16.msrb.mxu0 %v12572_v9 }
 0x1d9   :  { %v13081_v3 = vld [vmem:[#allocation9 + $0x8f8] sm:$0xf0] }
 0x1da   :  { %v18177_v5 = vld [vmem:[#allocation9 + $0xadc] sm:$0xf]  ;;  %v13084_v18 = vor.u32 %v18113_v2, %v13081_v3  ;;  %3146 = vmatpush.bf16.msrb.mxu1 %v12828_v11 }
 0x1db   :  { %v13337_v8 = vld [vmem:[#allocation9 + $0xaf8] sm:$0xf0] }
 0x1dc   :  { %v17977_v15 = vld [vmem:[#allocation9 + $0x49c] sm:$0xf]  ;;  %v13340_v20 = vor.u32 %v18177_v5, %v13337_v8  ;;  %3160 = vmatpush.bf16.msrb.mxu2 %v13084_v18  ;;  %v2887_v8 = vpop.f32.mrf.mxu2 }
 0x1dd   :  { %v12537_v16 = vld [vmem:[#allocation9 + $0x4b8] sm:$0xf0]  ;;  %v2888_v18 = vadd.f32 %v2887_v8, %v2874_v47 }
 0x1de   :  { %v18041_v17 = vld [vmem:[#allocation9 + $0x69c] sm:$0xf]  ;;  %v12540_v50 = vor.u32 %v17977_v15, %v12537_v16  ;;  %3174 = vmatpush.bf16.msrb.mxu3 %v13340_v20  ;;  %v2901_v15 = vpop.f32.mrf.mxu3 }
 0x1df   :  { %v12793_v7 = vld [vmem:[#allocation9 + $0x6b8] sm:$0xf0] }
 0x1e0   :  { %v18105_v21 = vld [vmem:[#allocation9 + $0x89c] sm:$0xf]  ;;  %v12796_v33 = vor.u32 %v18041_v17, %v12793_v7  ;;  %3133 = vmatpush.bf16.msrb.mxu0 %v12540_v50  ;;  %v2902_v7 = vadd.f32 %v2901_v15, %v2888_v18 }
 0x1e1   :  { %v13049_v24 = vld [vmem:[#allocation9 + $0x8b8] sm:$0xf0] }
 0x1e2   :  { %v18169_v25 = vld [vmem:[#allocation9 + $0xa9c] sm:$0xf]  ;;  %v13052_v34 = vor.u32 %v18105_v21, %v13049_v24  ;;  %3147 = vmatpush.bf16.msrb.mxu1 %v12796_v33  ;;  %v2913_v24 = vpop.f32.mrf.mxu0 }
 0x1e3   :  { %v13305_v26 = vld [vmem:[#allocation9 + $0xab8] sm:$0xf0]  ;;  %v2914_v10 = vadd.f32 %v2913_v24, %v2900_v41 }
 0x1e4   :  { %v17969_v36 = vld [vmem:[#allocation9 + $0x45c] sm:$0xf]  ;;  %v13308_v42 = vor.u32 %v18169_v25, %v13305_v26  ;;  %3161 = vmatpush.bf16.msrb.mxu2 %v13052_v34  ;;  %v2927_v25 = vpop.f32.mrf.mxu1  ;;  %v2941_v30 = vpop.f32.mrf.mxu2 }
 0x1e5   :  { %v12505_v37 = vld [vmem:[#allocation9 + $0x478] sm:$0xf0]  ;;  %v19789_v26 = vadd.f32 %v2927_v25, %v2914_v10  ;;  %v2942_v13 = vadd.f32 %v2941_v30, %v551_v28 }
 0x1e6   :  { %v18033_v54 = vld [vmem:[#allocation9 + $0x65c] sm:$0xf]  ;;  %v12508_v56 = vor.u32 %v17969_v36, %v12505_v37  ;;  %3175 = vmatpush.bf16.msrb.mxu3 %v13308_v42 }
 0x1e7   :  { %v12761_v44 = vld [vmem:[#allocation9 + $0x678] sm:$0xf0]  ;;  %v3188_v46 = vmax.f32 %v19789_v26, 0.0 }
 0x1e8   :  { %v18097_v45 = vld [vmem:[#allocation9 + $0x85c] sm:$0xf]  ;;  %v12764_v29 = vor.u32 %v18033_v54, %v12761_v44  ;;  %3134 = vmatpush.bf16.msrb.mxu0 %v12508_v56 }
 0x1e9   :  { %v13017_v6 = vld [vmem:[#allocation9 + $0x878] sm:$0xf0] }
 0x1ea   :  { %v18161_v48 = vld [vmem:[#allocation9 + $0xa5c] sm:$0xf]  ;;  %v13020_v49 = vor.u32 %v18097_v45, %v13017_v6  ;;  %3148 = vmatpush.bf16.msrb.mxu1 %v12764_v29  ;;  %v2915_v50 = vpop.f32.mrf.mxu0 }
 0x1eb   :  { %v13273_v51 = vld [vmem:[#allocation9 + $0xa78] sm:$0xf0] }
 0x1ec   :  { %v17961_v61 = vld [vmem:[#allocation9 + $0x41c] sm:$0xf]  ;;  %v13276_v2 = vor.u32 %v18161_v48, %v13273_v51  ;;  %3162 = vmatpush.bf16.msrb.mxu2 %v13020_v49  ;;  %v2943_v36 = vpop.f32.mrf.mxu2 }
 0x1ed   :  { %v12473_v0 = vld [vmem:[#allocation9 + $0x438] sm:$0xf0]  ;;  %v2944_v42 = vadd.f32 %v2943_v36, %v551_v28 }
 0x1ee   :  { %v18025_v27 = vld [vmem:[#allocation9 + $0x61c] sm:$0xf]  ;;  %v12476_v16 = vor.u32 %v17961_v61, %v12473_v0  ;;  %3176 = vmatpush.bf16.msrb.mxu3 %v13276_v2 }
 0x1ef   :  { %v12729_v3 = vld [vmem:[#allocation9 + $0x638] sm:$0xf0] }
 0x1f0   :  { %v18089_v4 = vld [vmem:[#allocation9 + $0x81c] sm:$0xf]  ;;  %v12732_v17 = vor.u32 %v18025_v27, %v12729_v3  ;;  %3135 = vmatpush.bf16.msrb.mxu0 %v12476_v16 }
 0x1f1   :  { %v12985_v5 = vld [vmem:[#allocation9 + $0x838] sm:$0xf0] }
 0x1f2   :  { %v18153_v9 = vld [vmem:[#allocation9 + $0xa1c] sm:$0xf]  ;;  %v12988_v20 = vor.u32 %v18089_v4, %v12985_v5  ;;  %3149 = vmatpush.bf16.msrb.mxu1 %v12732_v17 }
 0x1f3   :  { %v13241_v11 = vld [vmem:[#allocation9 + $0xa38] sm:$0xf0]  ;;  %3136 = vmatmul.bf16.vlgmr.msrb.gmra.mxu0 %v19670_v22  ;;  %v2916_v22 = vadd.f32 %v2915_v50, %v2902_v7 }
 0x1f4   :  { %v13244_v21 = vor.u32 %v18153_v9, %v13241_v11  ;;  %3163 = vmatpush.bf16.msrb.mxu2 %v12988_v20  ;;  %v552_v9 = vperm.slane %v19752_v62, 6 }
 0x1f5   :  { %3150 = vmatmul.bf16.vlgmr.msrb.gmra.mxu1 %v19672_v23  ;;  %v2929_v23 = vpop.f32.mrf.mxu1 }
 0x1f6   :  { %3177 = vmatpush.bf16.msrb.mxu3 %v13244_v21  ;;  %v19796_v33 = vadd.f32 %v2929_v23, %v2916_v22 }
 0x1f7   :  { %3164 = vmatmul.bf16.vlgmr.msrb.gmra.mxu2 %v19676_v35  ;;  %v2955_v35 = vpop.f32.mrf.mxu3 }
 0x1f8   :  { %v3196_v34 = vmax.f32 %v19796_v33, 0.0 }
 0x1f9   :  { %3178 = vmatmul.bf16.vlgmr.msrb.gmra.mxu3 %v19678_v39  ;;  %v2956_v39 = vadd.f32 %v2955_v35, %v2942_v13 }
 0x1fd   :  { %v2969_v54 = vpop.f32.mrf.mxu0 }
 0x1fe   :  { %v2970_v57 = vadd.f32 %v2969_v54, %v2956_v39 }
 0x1ff   :  { %v2957_v37 = vpop.f32.mrf.mxu3  ;;  %v2983_v41 = vpop.f32.mrf.mxu1 }
 0x200   :  { %v2984_v44 = vadd.f32 %v2983_v41, %v2970_v57  ;;  %v2958_v45 = vadd.f32 %v2957_v37, %v2944_v42 }
 0x205   :  { %v2971_v48 = vpop.f32.mrf.mxu0 }
 0x206   :  { %v2972_v56 = vadd.f32 %v2971_v48, %v2958_v45 }
 0x207   :  { %v2997_v6 = vpop.f32.mrf.mxu2  ;;  %v2985_v49 = vpop.f32.mrf.mxu1 }
 0x208   :  { %v2998_v47 = vadd.f32 %v2997_v6, %v2984_v44  ;;  %v2986_v0 = vadd.f32 %v2985_v49, %v2972_v56  ;;  %v553_v6 = vperm.slane %v19752_v62, 7 }
 0x209   :  { %v3011_v51 = vpop.f32.mrf.mxu3 }
 0x20a   :  { %v19805_v29 = vadd.f32 %v3011_v51, %v2998_v47 }
 0x20c   :  { %v3189_v61 = vmax.f32 %v19805_v29, 0.0 }
 0x20f   :  { %v2999_v27 = vpop.f32.mrf.mxu2 }
 0x210   :  { %v3000_v2 = vadd.f32 %v2999_v27, %v2986_v0 }
 0x211   :  { %v3013_v3 = vpop.f32.mrf.mxu3 }
 0x212   :  { %v19808_v4 = vadd.f32 %v3013_v3, %v3000_v2 }
 0x214   :  { %v3197_v5 = vmax.f32 %v19808_v4, 0.0 }
 0x21e   :  { %v3025_v8 = vpop.f32.mrf.mxu0 }
 0x21f   :  { %v3026_v18 = vadd.f32 %v3025_v8, %v552_v9 }
 0x220   :  { %v3039_v11 = vpop.f32.mrf.mxu1 }
 0x221   :  { %v3040_v16 = vadd.f32 %v3039_v11, %v3026_v18 }
 0x226   :  { %v3027_v17 = vpop.f32.mrf.mxu0 }
 0x227   :  { %v3028_v21 = vadd.f32 %v3027_v17, %v552_v9 }
 0x228   :  { %v3053_v15 = vpop.f32.mrf.mxu2  ;;  %v3041_v20 = vpop.f32.mrf.mxu1 }
 0x229   :  { %v3054_v24 = vadd.f32 %v3053_v15, %v3040_v16  ;;  %v3042_v10 = vadd.f32 %v3041_v20, %v3028_v21 }
 0x22a   :  { %v3067_v7 = vpop.f32.mrf.mxu3 }
 0x22b   :  { %v3068_v25 = vadd.f32 %v3067_v7, %v3054_v24 }
 0x230   :  { %v3055_v28 = vpop.f32.mrf.mxu2 }
 0x231   :  { %v3056_v22 = vadd.f32 %v3055_v28, %v3042_v10 }
 0x232   :  { %v3069_v23 = vpop.f32.mrf.mxu3 }
 0x233   :  { %v3070_v36 = vadd.f32 %v3069_v23, %v3056_v22 }
 0x242   :  { %v3081_v30 = vpop.f32.mrf.mxu0 }
 0x243   :  { %v3082_v50 = vadd.f32 %v3081_v30, %v3068_v25 }
 0x244   :  { %v3095_v13 = vpop.f32.mrf.mxu1 }
 0x245   :  { %v19812_v35 = vadd.f32 %v3095_v13, %v3082_v50 }
 0x247   :  { %v3190_v39 = vmax.f32 %v19812_v35, 0.0 }
 0x248   :  { %v3109_v44 = vpop.f32.mrf.mxu2 }
 0x249   :  { %v3110_v47 = vadd.f32 %v3109_v44, %v553_v6 }
 0x24a   :  { %v3083_v37 = vpop.f32.mrf.mxu0  ;;  %v3123_v45 = vpop.f32.mrf.mxu3 }
 0x24b   :  { %v3084_v54 = vadd.f32 %v3083_v37, %v3070_v36  ;;  %v3124_v51 = vadd.f32 %v3123_v45, %v3110_v47 }
 0x24c   :  { %v3097_v57 = vpop.f32.mrf.mxu1 }
 0x24d   :  { %v19815_v41 = vadd.f32 %v3097_v57, %v3084_v54 }
 0x24f   :  { %v3198_v42 = vmax.f32 %v19815_v41, 0.0 }
 0x250   :  { %v3111_v48 = vpop.f32.mrf.mxu2 }
 0x251   :  { %v3112_v2 = vadd.f32 %v3111_v48, %v553_v6 }
 0x252   :  { %v3125_v56 = vpop.f32.mrf.mxu3 }
 0x253   :  { %v3126_v9 = vadd.f32 %v3125_v56, %v3112_v2 }
 0x270   :  { %v3137_v49 = vpop.f32.mrf.mxu0 }
 0x271   :  { %v3138_v0 = vadd.f32 %v3137_v49, %v3124_v51 }
 0x272   :  { %v3151_v27 = vpop.f32.mrf.mxu1 }
 0x273   :  { %v3152_v3 = vadd.f32 %v3151_v27, %v3138_v0 }
 0x278   :  { %v3139_v15 = vpop.f32.mrf.mxu0 }
 0x279   :  { %v3140_v17 = vadd.f32 %v3139_v15, %v3126_v9 }
 0x27a   :  { %v3165_v8 = vpop.f32.mrf.mxu2  ;;  %v3153_v62 = vpop.f32.mrf.mxu1 }
 0x27b   :  { %v3166_v11 = vadd.f32 %v3165_v8, %v3152_v3  ;;  %v3154_v7 = vadd.f32 %v3153_v62, %v3140_v17 }
 0x27c   :  { %v3179_v18 = vpop.f32.mrf.mxu3 }
 0x27d   :  { %v19819_v16 = vadd.f32 %v3179_v18, %v3166_v11 }
 0x27f   :  { %v3191_v20 = vmax.f32 %v19819_v16, 0.0 }
 0x282   :  { %v3167_v21 = vpop.f32.mrf.mxu2 }
 0x283   :  { %v3168_v24 = vadd.f32 %v3167_v21, %v3154_v7 }
 0x284   :  { %v3181_v10 = vpop.f32.mrf.mxu3 }
 0x285   :  { %v19822_v25 = vadd.f32 %v3181_v10, %v3168_v24 }
 0x287   :  { %v3199_v28 = vmax.f32 %v19822_v25, 0.0 }
 0x288   :  { %19572 = dma.done.wait [#allocation5], 65536 }
 0x289   :  { %19573 = vsyncadd [#allocation5], 4294901760  ;;  %v13695_v30 = vld [vmem:[#allocation2 + $0x1c0] sm:$0xf]  ;;  %v19869_v26 = vpack.c.bf16 %v3197_v5, %v3189_v61  ;;  %v18454_v33 = vld [vmem:[#allocation2 + $0x784] sm:$0xf] }
 0x28a   :  { %v18274_v50 = vld [vmem:[#allocation2 + $0x1dc] sm:$0xf0]  ;;  %v18254_v29 = vld [vmem:[#allocation2 + $0x144] sm:$0xf] }
 0x28b   :  { %v13951_v13 = vld [vmem:[#allocation2 + $0x3c0] sm:$0xf]  ;;  %v13696_v22 = vor.u32 %v18274_v50, %v13695_v30  ;;  %v18318_v4 = vld [vmem:[#allocation2 + $0x344] sm:$0xf] }
 0x28c   :  { %v18338_v23 = vld [vmem:[#allocation2 + $0x3dc] sm:$0xf0]  ;;  %v13889_v5 = vld [vmem:[#allocation2 + $0x360] sm:$0xf0] }
 0x28d   :  { %v14207_v36 = vld [vmem:[#allocation2 + $0x5c0] sm:$0xf]  ;;  %v13952_v54 = vor.u32 %v18338_v23, %v13951_v13  ;;  %6302 = vmatpush.bf16.msra.mxu0 %v13696_v22  ;;  %v18446_v16 = vld [vmem:[#allocation2 + $0x744] sm:$0xf] }
 0x28e   :  { %v18402_v37 = vld [vmem:[#allocation2 + $0x5dc] sm:$0xf0] }
 0x28f   :  { %v14208_v57 = vor.u32 %v18402_v37, %v14207_v36  ;;  %v14463_v44 = vld [vmem:[#allocation2 + $0x7c0] sm:$0xf]  ;;  %6316 = vmatpush.bf16.msra.mxu1 %v13952_v54 }
 0x290   :  { %v18466_v45 = vld [vmem:[#allocation2 + $0x7dc] sm:$0xf0] }
 0x291   :  { %v13663_v6 = vld [vmem:[#allocation2 + $0x180] sm:$0xf]  ;;  %v14464_v47 = vor.u32 %v18466_v45, %v14463_v44  ;;  %6330 = vmatpush.bf16.msra.mxu2 %v14208_v57 }
 0x292   :  { %v18266_v48 = vld [vmem:[#allocation2 + $0x19c] sm:$0xf0] }
 0x293   :  { %v13919_v51 = vld [vmem:[#allocation2 + $0x380] sm:$0xf]  ;;  %v13664_v49 = vor.u32 %v18266_v48, %v13663_v6  ;;  %6344 = vmatpush.bf16.msra.mxu3 %v14464_v47 }
 0x294   :  { %v18330_v56 = vld [vmem:[#allocation2 + $0x39c] sm:$0xf0] }
 0x295   :  { %v13920_v0 = vor.u32 %v18330_v56, %v13919_v51  ;;  %v14175_v27 = vld [vmem:[#allocation2 + $0x580] sm:$0xf]  ;;  %6303 = vmatpush.bf16.msra.mxu0 %v13664_v49 }
 0x296   :  { %v18394_v2 = vld [vmem:[#allocation2 + $0x59c] sm:$0xf0] }
 0x297   :  { %v14431_v3 = vld [vmem:[#allocation2 + $0x780] sm:$0xf]  ;;  %v14176_v8 = vor.u32 %v18394_v2, %v14175_v27  ;;  %6317 = vmatpush.bf16.msra.mxu1 %v13920_v0 }
 0x298   :  { %v18458_v9 = vld [vmem:[#allocation2 + $0x79c] sm:$0xf0] }
 0x299   :  { %v13631_v11 = vld [vmem:[#allocation2 + $0x140] sm:$0xf]  ;;  %v14432_v15 = vor.u32 %v18458_v9, %v14431_v3  ;;  %6331 = vmatpush.bf16.msra.mxu2 %v14176_v8 }
 0x29a   :  { %v18258_v18 = vld [vmem:[#allocation2 + $0x15c] sm:$0xf0] }
 0x29b   :  { %v13887_v17 = vld [vmem:[#allocation2 + $0x340] sm:$0xf]  ;;  %v13632_v21 = vor.u32 %v18258_v18, %v13631_v11  ;;  %6345 = vmatpush.bf16.msra.mxu3 %v14432_v15 }
 0x29c   :  { %v18322_v62 = vld [vmem:[#allocation2 + $0x35c] sm:$0xf0] }
 0x29d   :  { %v14143_v7 = vld [vmem:[#allocation2 + $0x540] sm:$0xf]  ;;  %v13888_v50 = vor.u32 %v18322_v62, %v13887_v17  ;;  %6304 = vmatpush.bf16.msra.mxu0 %v13632_v21 }
 0x29e   :  { %v18386_v24 = vld [vmem:[#allocation2 + $0x55c] sm:$0xf0] }
 0x29f   :  { %v14399_v10 = vld [vmem:[#allocation2 + $0x740] sm:$0xf]  ;;  %v14144_v13 = vor.u32 %v18386_v24, %v14143_v7  ;;  %6318 = vmatpush.bf16.msra.mxu1 %v13888_v50 }
 0x2a0   :  { %v18450_v30 = vld [vmem:[#allocation2 + $0x75c] sm:$0xf0] }
 0x2a1   :  { %v13599_v22 = vld [vmem:[#allocation2 + $0x100] sm:$0xf]  ;;  %v14400_v37 = vor.u32 %v18450_v30, %v14399_v10  ;;  %6332 = vmatpush.bf16.msra.mxu2 %v14144_v13 }
 0x2a2   :  { %v18250_v23 = vld [vmem:[#allocation2 + $0x11c] sm:$0xf0] }
 0x2a3   :  { %v13855_v36 = vld [vmem:[#allocation2 + $0x300] sm:$0xf]  ;;  %v13600_v47 = vor.u32 %v18250_v23, %v13599_v22  ;;  %6346 = vmatpush.bf16.msra.mxu3 %v14400_v37 }
 0x2a4   :  { %v18314_v54 = vld [vmem:[#allocation2 + $0x31c] sm:$0xf0] }
 0x2a5   :  { %v14111_v57 = vld [vmem:[#allocation2 + $0x500] sm:$0xf]  ;;  %v13856_v48 = vor.u32 %v18314_v54, %v13855_v36  ;;  %6305 = vmatpush.bf16.msra.mxu0 %v13600_v47 }
 0x2a6   :  { %v18378_v44 = vld [vmem:[#allocation2 + $0x51c] sm:$0xf0] }
 0x2a7   :  { %v14367_v45 = vld [vmem:[#allocation2 + $0x700] sm:$0xf]  ;;  %v14112_v51 = vor.u32 %v18378_v44, %v14111_v57  ;;  %6319 = vmatpush.bf16.msra.mxu1 %v13856_v48 }
 0x2a8   :  { %v18442_v6 = vld [vmem:[#allocation2 + $0x71c] sm:$0xf0] }
 0x2a9   :  { %v13567_v56 = vld [vmem:[#allocation2 + $0xc0] sm:$0xf]  ;;  %v14368_v27 = vor.u32 %v18442_v6, %v14367_v45  ;;  %6333 = vmatpush.bf16.msra.mxu2 %v14112_v51 }
 0x2aa   :  { %v18242_v49 = vld [vmem:[#allocation2 + $0xdc] sm:$0xf0] }
 0x2ab   :  { %v13823_v0 = vld [vmem:[#allocation2 + $0x2c0] sm:$0xf]  ;;  %v13568_v18 = vor.u32 %v18242_v49, %v13567_v56  ;;  %6347 = vmatpush.bf16.msra.mxu3 %v14368_v27 }
 0x2ac   :  { %v18306_v2 = vld [vmem:[#allocation2 + $0x2dc] sm:$0xf0] }
 0x2ad   :  { %v14079_v3 = vld [vmem:[#allocation2 + $0x4c0] sm:$0xf]  ;;  %v13824_v15 = vor.u32 %v18306_v2, %v13823_v0  ;;  %6306 = vmatpush.bf16.msra.mxu0 %v13568_v18 }
 0x2ae   :  { %v18370_v8 = vld [vmem:[#allocation2 + $0x4dc] sm:$0xf0] }
 0x2af   :  { %v14335_v9 = vld [vmem:[#allocation2 + $0x6c0] sm:$0xf]  ;;  %v14080_v17 = vor.u32 %v18370_v8, %v14079_v3  ;;  %6320 = vmatpush.bf16.msra.mxu1 %v13824_v15 }
 0x2b0   :  { %v18434_v11 = vld [vmem:[#allocation2 + $0x6dc] sm:$0xf0] }
 0x2b1   :  { %v13535_v62 = vld [vmem:[#allocation2 + $0x80] sm:$0xf]  ;;  %v14336_v24 = vor.u32 %v18434_v11, %v14335_v9  ;;  %6334 = vmatpush.bf16.msra.mxu2 %v14080_v17 }
 0x2b2   :  { %v18234_v7 = vld [vmem:[#allocation2 + $0x9c] sm:$0xf0] }
 0x2b3   :  { %v13791_v21 = vld [vmem:[#allocation2 + $0x280] sm:$0xf]  ;;  %v13536_v23 = vor.u32 %v18234_v7, %v13535_v62  ;;  %6348 = vmatpush.bf16.msra.mxu3 %v14336_v24 }
 0x2b4   :  { %v18298_v10 = vld [vmem:[#allocation2 + $0x29c] sm:$0xf0] }
 0x2b5   :  { %v14047_v30 = vld [vmem:[#allocation2 + $0x480] sm:$0xf]  ;;  %v13792_v36 = vor.u32 %v18298_v10, %v13791_v21  ;;  %6307 = vmatpush.bf16.msra.mxu0 %v13536_v23 }
 0x2b6   :  { %v18362_v50 = vld [vmem:[#allocation2 + $0x49c] sm:$0xf0] }
 0x2b7   :  { %v14303_v13 = vld [vmem:[#allocation2 + $0x680] sm:$0xf]  ;;  %v14048_v37 = vor.u32 %v18362_v50, %v14047_v30  ;;  %6321 = vmatpush.bf16.msra.mxu1 %v13792_v36 }
 0x2b8   :  { %v18426_v22 = vld [vmem:[#allocation2 + $0x69c] sm:$0xf0] }
 0x2b9   :  { %v13503_v54 = vld [vmem:[#allocation2 + $0x40] sm:$0xf]  ;;  %v14304_v45 = vor.u32 %v18426_v22, %v14303_v13  ;;  %6335 = vmatpush.bf16.msra.mxu2 %v14048_v37 }
 0x2ba   :  { %v18226_v57 = vld [vmem:[#allocation2 + $0x5c] sm:$0xf0] }
 0x2bb   :  { %v13759_v44 = vld [vmem:[#allocation2 + $0x240] sm:$0xf]  ;;  %v13504_v49 = vor.u32 %v18226_v57, %v13503_v54  ;;  %6349 = vmatpush.bf16.msra.mxu3 %v14304_v45 }
 0x2bc   :  { %v18290_v6 = vld [vmem:[#allocation2 + $0x25c] sm:$0xf0] }
 0x2bd   :  { %v14015_v47 = vld [vmem:[#allocation2 + $0x440] sm:$0xf]  ;;  %v13760_v2 = vor.u32 %v18290_v6, %v13759_v44  ;;  %6308 = vmatpush.bf16.msra.mxu0 %v13504_v49 }
 0x2be   :  { %v18354_v48 = vld [vmem:[#allocation2 + $0x45c] sm:$0xf0] }
 0x2bf   :  { %v14271_v51 = vld [vmem:[#allocation2 + $0x640] sm:$0xf]  ;;  %v14016_v3 = vor.u32 %v18354_v48, %v14015_v47  ;;  %6322 = vmatpush.bf16.msra.mxu1 %v13760_v2 }
 0x2c0   :  { %v18418_v56 = vld [vmem:[#allocation2 + $0x65c] sm:$0xf0] }
 0x2c1   :  { %v13471_v0 = vld [vmem:[#allocation2] sm:$0xf]  ;;  %v14272_v18 = vor.u32 %v18418_v56, %v14271_v51  ;;  %6336 = vmatpush.bf16.msra.mxu2 %v14016_v3 }
 0x2c2   :  { %v18218_v27 = vld [vmem:[#allocation2 + $0x1c] sm:$0xf0] }
 0x2c3   :  { %v13727_v8 = vld [vmem:[#allocation2 + $0x200] sm:$0xf]  ;;  %v13472_v10 = vor.u32 %v18218_v27, %v13471_v0  ;;  %6350 = vmatpush.bf16.msra.mxu3 %v14272_v18  ;;  %v19829_v27 = vpack.c.bf16 %v3192_v58, %v3184_v19  ;;  %v19847_v19 = vpack.c.bf16 %v3195_v59, %v3187_v14 }
 0x2c4   :  { %v18282_v9 = vld [vmem:[#allocation2 + $0x21c] sm:$0xf0] }
 0x2c5   :  { %v13983_v11 = vld [vmem:[#allocation2 + $0x400] sm:$0xf]  ;;  %v13728_v22 = vor.u32 %v18282_v9, %v13727_v8  ;;  %6309 = vmatpush.bf16.msra.mxu0 %v13472_v10  ;;  %v19835_v8 = vpack.c.bf16 %v3194_v38, %v3186_v63  ;;  %v19841_v9 = vpack.c.bf16 %v3193_v40, %v3185_v1 }
 0x2c6   :  { %v18346_v15 = vld [vmem:[#allocation2 + $0x41c] sm:$0xf0] }
 0x2c7   :  { %v14239_v17 = vld [vmem:[#allocation2 + $0x600] sm:$0xf]  ;;  %v13984_v23 = vor.u32 %v18346_v15, %v13983_v11  ;;  %6323 = vmatpush.bf16.msra.mxu1 %v13728_v22 }
 0x2c8   :  { %v18410_v62 = vld [vmem:[#allocation2 + $0x61c] sm:$0xf0]  ;;  %6310 = vmatmul.bf16.vlgmr.msra.gmra.mxu0 %v19829_v27 }
 0x2c9   :  { %v14719_v7 = vld [vmem:[#allocation2 + $0x9c0] sm:$0xf]  ;;  %v14240_v54 = vor.u32 %v18410_v62, %v14239_v17  ;;  %6337 = vmatpush.bf16.msra.mxu2 %v13984_v23 }
 0x2ca   :  { %v18530_v21 = vld [vmem:[#allocation2 + $0x9dc] sm:$0xf0]  ;;  %6324 = vmatmul.bf16.vlgmr.msra.gmra.mxu1 %v19841_v9 }
 0x2cb   :  { %v14975_v24 = vld [vmem:[#allocation2 + $0xbc0] sm:$0xf]  ;;  %v14720_v57 = vor.u32 %v18530_v21, %v14719_v7  ;;  %6351 = vmatpush.bf16.msra.mxu3 %v14240_v54 }
 0x2cc   :  { %v18594_v30 = vld [vmem:[#allocation2 + $0xbdc] sm:$0xf0]  ;;  %6338 = vmatmul.bf16.vlgmr.msra.gmra.mxu2 %v19835_v8 }
 0x2cd   :  { %v15231_v50 = vld [vmem:[#allocation2 + $0xdc0] sm:$0xf]  ;;  %v14976_v44 = vor.u32 %v18594_v30, %v14975_v24  ;;  %6358 = vmatpush.bf16.msrb.mxu0 %v14720_v57 }
 0x2ce   :  { %v18658_v13 = vld [vmem:[#allocation2 + $0xddc] sm:$0xf0]  ;;  %6352 = vmatmul.bf16.vlgmr.msra.gmra.mxu3 %v19847_v19 }
 0x2cf   :  { %v15487_v36 = vld [vmem:[#allocation2 + $0xfc0] sm:$0xf]  ;;  %v15232_v45 = vor.u32 %v18658_v13, %v15231_v50  ;;  %6372 = vmatpush.bf16.msrb.mxu1 %v14976_v44 }
 0x2d0   :  { %v18722_v37 = vld [vmem:[#allocation2 + $0xfdc] sm:$0xf0] }
 0x2d1   :  { %v14687_v6 = vld [vmem:[#allocation2 + $0x980] sm:$0xf]  ;;  %v15488_v51 = vor.u32 %v18722_v37, %v15487_v36  ;;  %6386 = vmatpush.bf16.msrb.mxu2 %v15232_v45 }
 0x2d2   :  { %v18522_v47 = vld [vmem:[#allocation2 + $0x99c] sm:$0xf0] }
 0x2d3   :  { %v14943_v48 = vld [vmem:[#allocation2 + $0xb80] sm:$0xf]  ;;  %v14688_v12 = vor.u32 %v18522_v47, %v14687_v6  ;;  %6400 = vmatpush.bf16.msrb.mxu3 %v15488_v51 }
 0x2d4   :  { %v18586_v56 = vld [vmem:[#allocation2 + $0xb9c] sm:$0xf0] }
 0x2d5   :  { %v15199_v49 = vld [vmem:[#allocation2 + $0xd80] sm:$0xf]  ;;  %v14944_v52 = vor.u32 %v18586_v56, %v14943_v48  ;;  %6359 = vmatpush.bf16.msrb.mxu0 %v14688_v12 }
 0x2d6   :  { %v18650_v0 = vld [vmem:[#allocation2 + $0xd9c] sm:$0xf0] }
 0x2d7   :  { %v15455_v2 = vld [vmem:[#allocation2 + $0xf80] sm:$0xf]  ;;  %v15200_v58 = vor.u32 %v18650_v0, %v15199_v49  ;;  %6373 = vmatpush.bf16.msrb.mxu1 %v14944_v52 }
 0x2d8   :  { %v18714_v3 = vld [vmem:[#allocation2 + $0xf9c] sm:$0xf0] }
 0x2d9   :  { %v14655_v55 = vld [vmem:[#allocation2 + $0x940] sm:$0xf]  ;;  %v15456_v31 = vor.u32 %v18714_v3, %v15455_v2  ;;  %6387 = vmatpush.bf16.msrb.mxu2 %v15200_v58 }
 0x2da   :  { %v18514_v63 = vld [vmem:[#allocation2 + $0x95c] sm:$0xf0] }
 0x2db   :  { %v14911_v53 = vld [vmem:[#allocation2 + $0xb40] sm:$0xf]  ;;  %v14656_v14 = vor.u32 %v18514_v63, %v14655_v55  ;;  %6401 = vmatpush.bf16.msrb.mxu3 %v15456_v31 }
 0x2dc   :  { %v18578_v1 = vld [vmem:[#allocation2 + $0xb5c] sm:$0xf0] }
 0x2dd   :  { %v15167_v40 = vld [vmem:[#allocation2 + $0xd40] sm:$0xf]  ;;  %v14912_v43 = vor.u32 %v18578_v1, %v14911_v53  ;;  %6360 = vmatpush.bf16.msrb.mxu0 %v14656_v14 }
 0x2de   :  { %v18642_v32 = vld [vmem:[#allocation2 + $0xd5c] sm:$0xf0] }
 0x2df   :  { %v15423_v38 = vld [vmem:[#allocation2 + $0xf40] sm:$0xf]  ;;  %v15168_v59 = vor.u32 %v18642_v32, %v15167_v40  ;;  %6374 = vmatpush.bf16.msrb.mxu1 %v14912_v43 }
 0x2e0   :  { %v18706_v60 = vld [vmem:[#allocation2 + $0xf5c] sm:$0xf0] }
 0x2e1   :  { %v14623_v11 = vld [vmem:[#allocation2 + $0x900] sm:$0xf]  ;;  %v15424_v17 = vor.u32 %v18706_v60, %v15423_v38  ;;  %6388 = vmatpush.bf16.msrb.mxu2 %v15168_v59 }
 0x2e2   :  { %v18506_v18 = vld [vmem:[#allocation2 + $0x91c] sm:$0xf0] }
 0x2e3   :  { %v14879_v15 = vld [vmem:[#allocation2 + $0xb00] sm:$0xf]  ;;  %v14624_v30 = vor.u32 %v18506_v18, %v14623_v11  ;;  %6402 = vmatpush.bf16.msrb.mxu3 %v15424_v17 }
 0x2e4   :  { %v18570_v62 = vld [vmem:[#allocation2 + $0xb1c] sm:$0xf0] }
 0x2e5   :  { %v15135_v7 = vld [vmem:[#allocation2 + $0xd00] sm:$0xf]  ;;  %v14880_v50 = vor.u32 %v18570_v62, %v14879_v15  ;;  %6361 = vmatpush.bf16.msrb.mxu0 %v14624_v30 }
 0x2e6   :  { %v18634_v21 = vld [vmem:[#allocation2 + $0xd1c] sm:$0xf0] }
 0x2e7   :  { %v15391_v24 = vld [vmem:[#allocation2 + $0xf00] sm:$0xf]  ;;  %v15136_v13 = vor.u32 %v18634_v21, %v15135_v7  ;;  %6375 = vmatpush.bf16.msrb.mxu1 %v14880_v50 }
 0x2e8   :  { %v18698_v10 = vld [vmem:[#allocation2 + $0xf1c] sm:$0xf0] }
 0x2e9   :  { %v14591_v22 = vld [vmem:[#allocation2 + $0x8c0] sm:$0xf]  ;;  %v15392_v37 = vor.u32 %v18698_v10, %v15391_v24  ;;  %6389 = vmatpush.bf16.msrb.mxu2 %v15136_v13 }
 0x2ea   :  { %v18498_v23 = vld [vmem:[#allocation2 + $0x8dc] sm:$0xf0] }
 0x2eb   :  { %v14847_v36 = vld [vmem:[#allocation2 + $0xac0] sm:$0xf]  ;;  %v14592_v47 = vor.u32 %v18498_v23, %v14591_v22  ;;  %6403 = vmatpush.bf16.msrb.mxu3 %v15392_v37  ;;  %v18270_v23 = vld [vmem:[#allocation2 + $0x1c4] sm:$0xf] }
 0x2ec   :  { %v18562_v54 = vld [vmem:[#allocation2 + $0xadc] sm:$0xf0]  ;;  %v18334_v37 = vld [vmem:[#allocation2 + $0x3c4] sm:$0xf] }
 0x2ed   :  { %v15103_v57 = vld [vmem:[#allocation2 + $0xcc0] sm:$0xf]  ;;  %v14848_v48 = vor.u32 %v18562_v54, %v14847_v36  ;;  %6362 = vmatpush.bf16.msrb.mxu0 %v14592_v47  ;;  %v13697_v36 = vld [vmem:[#allocation2 + $0x1e0] sm:$0xf0] }
 0x2ee   :  { %v18626_v44 = vld [vmem:[#allocation2 + $0xcdc] sm:$0xf0] }
 0x2ef   :  { %v15359_v45 = vld [vmem:[#allocation2 + $0xec0] sm:$0xf]  ;;  %v15104_v51 = vor.u32 %v18626_v44, %v15103_v57  ;;  %6376 = vmatpush.bf16.msrb.mxu1 %v14848_v48  ;;  %v13953_v57 = vld [vmem:[#allocation2 + $0x3e0] sm:$0xf0] }
 0x2f0   :  { %v18690_v6 = vld [vmem:[#allocation2 + $0xedc] sm:$0xf0]  ;;  %v18398_v44 = vld [vmem:[#allocation2 + $0x5c4] sm:$0xf] }
 0x2f1   :  { %v14559_v56 = vld [vmem:[#allocation2 + $0x880] sm:$0xf]  ;;  %v15360_v2 = vor.u32 %v18690_v6, %v15359_v45  ;;  %6390 = vmatpush.bf16.msrb.mxu2 %v15104_v51  ;;  %v14209_v45 = vld [vmem:[#allocation2 + $0x5e0] sm:$0xf0] }
 0x2f2   :  { %v18490_v49 = vld [vmem:[#allocation2 + $0x89c] sm:$0xf0]  ;;  %v18462_v48 = vld [vmem:[#allocation2 + $0x7c4] sm:$0xf] }
 0x2f3   :  { %v14815_v0 = vld [vmem:[#allocation2 + $0xa80] sm:$0xf]  ;;  %v14560_v63 = vor.u32 %v18490_v49, %v14559_v56  ;;  %6404 = vmatpush.bf16.msrb.mxu3 %v15360_v2  ;;  %v14465_v51 = vld [vmem:[#allocation2 + $0x7e0] sm:$0xf0]  ;;  %v13700_v49 = vor.u32 %v18270_v23, %v13697_v36  ;;  %v14212_v2 = vor.u32 %v18398_v44, %v14209_v45 }
 0x2f4   :  { %v18554_v3 = vld [vmem:[#allocation2 + $0xa9c] sm:$0xf0]  ;;  %v18366_v23 = vld [vmem:[#allocation2 + $0x4c4] sm:$0xf] }
 0x2f5   :  { %v15071_v12 = vld [vmem:[#allocation2 + $0xc80] sm:$0xf]  ;;  %v14816_v53 = vor.u32 %v18554_v3, %v14815_v0  ;;  %6363 = vmatpush.bf16.msrb.mxu0 %v14560_v63  ;;  %v13956_v0 = vor.u32 %v18334_v37, %v13953_v57  ;;  %v18262_v3 = vld [vmem:[#allocation2 + $0x184] sm:$0xf] }
 0x2f6   :  { %v18618_v52 = vld [vmem:[#allocation2 + $0xc9c] sm:$0xf0]  ;;  %v13921_v63 = vld [vmem:[#allocation2 + $0x3a0] sm:$0xf0] }
 0x2f7   :  { %v15327_v58 = vld [vmem:[#allocation2 + $0xe80] sm:$0xf]  ;;  %v15072_v31 = vor.u32 %v18618_v52, %v15071_v12  ;;  %6377 = vmatpush.bf16.msrb.mxu1 %v14816_v53  ;;  %v13665_v12 = vld [vmem:[#allocation2 + $0x1a0] sm:$0xf0] }
 0x2f8   :  { %v18682_v55 = vld [vmem:[#allocation2 + $0xe9c] sm:$0xf0]  ;;  %v18326_v52 = vld [vmem:[#allocation2 + $0x384] sm:$0xf]  ;;  %v13668_v35 = vor.u32 %v18262_v3, %v13665_v12 }
 0x2f9   :  { %v14527_v1 = vld [vmem:[#allocation2 + $0x840] sm:$0xf]  ;;  %v15328_v38 = vor.u32 %v18682_v55, %v15327_v58  ;;  %6391 = vmatpush.bf16.msrb.mxu2 %v15072_v31  ;;  %v14468_v58 = vor.u32 %v18462_v48, %v14465_v51  ;;  %v19857_v55 = vpack.c.bf16 %v3196_v34, %v3188_v46  ;;  %v18390_v53 = vld [vmem:[#allocation2 + $0x584] sm:$0xf]  ;;  %v19875_v34 = vpack.c.bf16 %v3199_v28, %v3191_v20 }
 0x2fa   :  { %v18482_v40 = vld [vmem:[#allocation2 + $0x85c] sm:$0xf0]  ;;  %v14177_v31 = vld [vmem:[#allocation2 + $0x5a0] sm:$0xf0]  ;;  %v13892_v28 = vor.u32 %v18318_v4, %v13889_v5 }
 0x2fb   :  { %v14783_v32 = vld [vmem:[#allocation2 + $0xa40] sm:$0xf]  ;;  %v14528_v18 = vor.u32 %v18482_v40, %v14527_v1  ;;  %6405 = vmatpush.bf16.msrb.mxu3 %v15328_v38  ;;  %v19863_v1 = vpack.c.bf16 %v3198_v42, %v3190_v39  ;;  %v14433_v46 = vld [vmem:[#allocation2 + $0x7a0] sm:$0xf0]  ;;  %v13924_v39 = vor.u32 %v18326_v52, %v13921_v63  ;;  %v14180_v41 = vor.u32 %v18390_v53, %v14177_v31 }
 0x2fc   :  { %v18546_v60 = vld [vmem:[#allocation2 + $0xa5c] sm:$0xf0]  ;;  %v13633_v42 = vld [vmem:[#allocation2 + $0x160] sm:$0xf0]  ;;  %v14436_v61 = vor.u32 %v18454_v33, %v14433_v46 }
 0x2fd   :  { %v15039_v14 = vld [vmem:[#allocation2 + $0xc40] sm:$0xf]  ;;  %v14784_v62 = vor.u32 %v18546_v60, %v14783_v32  ;;  %6364 = vmatpush.bf16.msrb.mxu0 %v14528_v18  ;;  %v18382_v40 = vld [vmem:[#allocation2 + $0x544] sm:$0xf]  ;;  %v13636_v25 = vor.u32 %v18254_v29, %v13633_v42 }
 0x2fe   :  { %v18610_v43 = vld [vmem:[#allocation2 + $0xc5c] sm:$0xf0]  ;;  %v14145_v32 = vld [vmem:[#allocation2 + $0x560] sm:$0xf0] }
 0x2ff   :  { %v15295_v59 = vld [vmem:[#allocation2 + $0xe40] sm:$0xf]  ;;  %v15040_v7 = vor.u32 %v18610_v43, %v15039_v14  ;;  %6378 = vmatpush.bf16.msrb.mxu1 %v14784_v62  ;;  %v14401_v20 = vld [vmem:[#allocation2 + $0x760] sm:$0xf0]  ;;  %v14148_v38 = vor.u32 %v18382_v40, %v14145_v32 }
 0x300   :  { %v18674_v11 = vld [vmem:[#allocation2 + $0xe5c] sm:$0xf0]  ;;  %v18246_v60 = vld [vmem:[#allocation2 + $0x104] sm:$0xf] }
 0x301   :  { %v14495_v15 = vld [vmem:[#allocation2 + $0x800] sm:$0xf]  ;;  %v15296_v30 = vor.u32 %v18674_v11, %v15295_v59  ;;  %6392 = vmatpush.bf16.msrb.mxu2 %v15040_v7  ;;  %v13601_v14 = vld [vmem:[#allocation2 + $0x120] sm:$0xf0]  ;;  %v14404_v59 = vor.u32 %v18446_v16, %v14401_v20 }
 0x302   :  { %v18474_v17 = vld [vmem:[#allocation2 + $0x81c] sm:$0xf0]  ;;  %v18310_v43 = vld [vmem:[#allocation2 + $0x304] sm:$0xf]  ;;  %v13604_v7 = vor.u32 %v18246_v60, %v13601_v14 }
 0x303   :  { %v14751_v21 = vld [vmem:[#allocation2 + $0xa00] sm:$0xf]  ;;  %v14496_v54 = vor.u32 %v18474_v17, %v14495_v15  ;;  %6406 = vmatpush.bf16.msrb.mxu3 %v15296_v30  ;;  %v13857_v11 = vld [vmem:[#allocation2 + $0x320] sm:$0xf0] }
 0x304   :  { %v18538_v24 = vld [vmem:[#allocation2 + $0xa1c] sm:$0xf0]  ;;  %v18374_v18 = vld [vmem:[#allocation2 + $0x504] sm:$0xf] }
 0x305   :  { %v15007_v10 = vld [vmem:[#allocation2 + $0xc00] sm:$0xf]  ;;  %v14752_v6 = vor.u32 %v18538_v24, %v14751_v21  ;;  %6365 = vmatpush.bf16.msrb.mxu0 %v14496_v54  ;;  %v14113_v15 = vld [vmem:[#allocation2 + $0x520] sm:$0xf0]  ;;  %v13860_v21 = vor.u32 %v18310_v43, %v13857_v11 }
 0x306   :  { %v18602_v50 = vld [vmem:[#allocation2 + $0xc1c] sm:$0xf0]  ;;  %v18438_v17 = vld [vmem:[#allocation2 + $0x704] sm:$0xf]  ;;  %v14116_v24 = vor.u32 %v18374_v18, %v14113_v15 }
 0x307   :  { %v15263_v13 = vld [vmem:[#allocation2 + $0xe00] sm:$0xf]  ;;  %v15008_v47 = vor.u32 %v18602_v50, %v15007_v10  ;;  %6379 = vmatpush.bf16.msrb.mxu1 %v14752_v6  ;;  %v14369_v62 = vld [vmem:[#allocation2 + $0x720] sm:$0xf0] }
 0x308   :  { %v18666_v22 = vld [vmem:[#allocation2 + $0xe1c] sm:$0xf0]  ;;  %6366 = vmatmul.bf16.vlgmr.msrb.gmra.mxu0 %v19857_v55  ;;  %v18238_v10 = vld [vmem:[#allocation2 + $0xc4] sm:$0xf] }
 0x309   :  { %v15264_v56 = vor.u32 %v18666_v22, %v15263_v13  ;;  %6393 = vmatpush.bf16.msrb.mxu2 %v15008_v47  ;;  %6414 = vmatpush.bf16.msra.mxu0 %v13700_v49  ;;  %v13569_v30 = vld [vmem:[#allocation2 + $0xe0] sm:$0xf0]  ;;  %v14372_v13 = vor.u32 %v18438_v17, %v14369_v62 }
 0x30a   :  { %6380 = vmatmul.bf16.vlgmr.msrb.gmra.mxu1 %v19869_v26  ;;  %v18302_v50 = vld [vmem:[#allocation2 + $0x2c4] sm:$0xf]  ;;  %v13572_v57 = vor.u32 %v18238_v10, %v13569_v30 }
 0x30b   :  { %6407 = vmatpush.bf16.msrb.mxu3 %v15264_v56  ;;  %6428 = vmatpush.bf16.msra.mxu1 %v13956_v0  ;;  %v13825_v22 = vld [vmem:[#allocation2 + $0x2e0] sm:$0xf0] }
 0x30c   :  { %6394 = vmatmul.bf16.vlgmr.msrb.gmra.mxu2 %v19863_v1  ;;  %v14081_v36 = vld [vmem:[#allocation2 + $0x4e0] sm:$0xf0]  ;;  %v13828_v44 = vor.u32 %v18302_v50, %v13825_v22 }
 0x30d   :  { %6442 = vmatpush.bf16.msra.mxu2 %v14212_v2  ;;  %6415 = vmatpush.bf16.msra.mxu0 %v13668_v35  ;;  %v18430_v37 = vld [vmem:[#allocation2 + $0x6c4] sm:$0xf]  ;;  %v14084_v45 = vor.u32 %v18366_v23, %v14081_v36 }
 0x30e   :  { %6408 = vmatmul.bf16.vlgmr.msrb.gmra.mxu3 %v19875_v34  ;;  %v14337_v54 = vld [vmem:[#allocation2 + $0x6e0] sm:$0xf0] }
 0x30f   :  { %6456 = vmatpush.bf16.msra.mxu3 %v14468_v58  ;;  %6429 = vmatpush.bf16.msra.mxu1 %v13924_v39  ;;  %v18230_v6 = vld [vmem:[#allocation2 + $0x84] sm:$0xf]  ;;  %v14340_v51 = vor.u32 %v18430_v37, %v14337_v54 }
 0x310   :  { %v13537_v47 = vld [vmem:[#allocation2 + $0xa0] sm:$0xf0] }
 0x311   :  { %6443 = vmatpush.bf16.msra.mxu2 %v14180_v41  ;;  %6416 = vmatpush.bf16.msra.mxu0 %v13636_v25  ;;  %v18294_v48 = vld [vmem:[#allocation2 + $0x284] sm:$0xf]  ;;  %v13540_v12 = vor.u32 %v18230_v6, %v13537_v47 }
 0x312   :  { %v13793_v56 = vld [vmem:[#allocation2 + $0x2a0] sm:$0xf0] }
 0x313   :  { %6457 = vmatpush.bf16.msra.mxu3 %v14436_v61  ;;  %6430 = vmatpush.bf16.msra.mxu1 %v13892_v28  ;;  %v18358_v49 = vld [vmem:[#allocation2 + $0x484] sm:$0xf]  ;;  %v13796_v52 = vor.u32 %v18294_v48, %v13793_v56 }
 0x314   :  { %v14049_v0 = vld [vmem:[#allocation2 + $0x4a0] sm:$0xf0] }
 0x315   :  { %6444 = vmatpush.bf16.msra.mxu2 %v14148_v38  ;;  %6417 = vmatpush.bf16.msra.mxu0 %v13604_v7  ;;  %v18422_v2 = vld [vmem:[#allocation2 + $0x684] sm:$0xf]  ;;  %v14052_v58 = vor.u32 %v18358_v49, %v14049_v0 }
 0x316   :  { %v14305_v3 = vld [vmem:[#allocation2 + $0x6a0] sm:$0xf0] }
 0x317   :  { %6458 = vmatpush.bf16.msra.mxu3 %v14404_v59  ;;  %6431 = vmatpush.bf16.msra.mxu1 %v13860_v21  ;;  %v18222_v63 = vld [vmem:[#allocation2 + $0x44] sm:$0xf]  ;;  %v14308_v33 = vor.u32 %v18422_v2, %v14305_v3 }
 0x318   :  { %v13505_v53 = vld [vmem:[#allocation2 + $0x60] sm:$0xf0] }
 0x319   :  { %6445 = vmatpush.bf16.msra.mxu2 %v14116_v24  ;;  %6418 = vmatpush.bf16.msra.mxu0 %v13572_v57  ;;  %v18286_v31 = vld [vmem:[#allocation2 + $0x244] sm:$0xf]  ;;  %v13508_v42 = vor.u32 %v18222_v63, %v13505_v53 }
 0x31a   :  { %v13761_v46 = vld [vmem:[#allocation2 + $0x260] sm:$0xf0] }
 0x31b   :  { %6459 = vmatpush.bf16.msra.mxu3 %v14372_v13  ;;  %6432 = vmatpush.bf16.msra.mxu1 %v13828_v44  ;;  %v18350_v35 = vld [vmem:[#allocation2 + $0x444] sm:$0xf]  ;;  %v13764_v5 = vor.u32 %v18286_v31, %v13761_v46 }
 0x31c   :  { %v14017_v39 = vld [vmem:[#allocation2 + $0x460] sm:$0xf0] }
 0x31d   :  { %6446 = vmatpush.bf16.msra.mxu2 %v14084_v45  ;;  %v18414_v41 = vld [vmem:[#allocation2 + $0x644] sm:$0xf]  ;;  %6419 = vmatpush.bf16.msra.mxu0 %v13540_v12  ;;  %v14020_v40 = vor.u32 %v18350_v35, %v14017_v39 }
 0x31e   :  { %v14273_v29 = vld [vmem:[#allocation2 + $0x660] sm:$0xf0] }
 0x31f   :  { %6460 = vmatpush.bf16.msra.mxu3 %v14340_v51  ;;  %v18214_v4 = vld [vmem:[#allocation2 + $0x4] sm:$0xf]  ;;  %6433 = vmatpush.bf16.msra.mxu1 %v13796_v52  ;;  %v14276_v25 = vor.u32 %v18414_v41, %v14273_v29 }
 0x320   :  { %v13473_v61 = vld [vmem:[#allocation2 + $0x20] sm:$0xf0] }
 0x321   :  { %6447 = vmatpush.bf16.msra.mxu2 %v14052_v58  ;;  %v18278_v32 = vld [vmem:[#allocation2 + $0x204] sm:$0xf]  ;;  %6420 = vmatpush.bf16.msra.mxu0 %v13508_v42  ;;  %v13476_v11 = vor.u32 %v18214_v4, %v13473_v61 }
 0x322   :  { %v13729_v16 = vld [vmem:[#allocation2 + $0x220] sm:$0xf0] }
 0x323   :  { %v18342_v20 = vld [vmem:[#allocation2 + $0x404] sm:$0xf]  ;;  %6461 = vmatpush.bf16.msra.mxu3 %v14308_v33  ;;  %6434 = vmatpush.bf16.msra.mxu1 %v13764_v5  ;;  %v13732_v62 = vor.u32 %v18278_v32, %v13729_v16 }
 0x324   :  { %v13985_v28 = vld [vmem:[#allocation2 + $0x420] sm:$0xf0] }
 0x325   :  { %v18406_v38 = vld [vmem:[#allocation2 + $0x604] sm:$0xf]  ;;  %6448 = vmatpush.bf16.msra.mxu2 %v14020_v40  ;;  %v13988_v7 = vor.u32 %v18342_v20, %v13985_v28  ;;  %6421 = vmatpush.bf16.msra.mxu0 %v13476_v11 }
 0x326   :  { %v14241_v60 = vld [vmem:[#allocation2 + $0x620] sm:$0xf0] }
 0x327   :  { %v18526_v14 = vld [vmem:[#allocation2 + $0x9c4] sm:$0xf]  ;;  %6462 = vmatpush.bf16.msra.mxu3 %v14276_v25  ;;  %v14244_v10 = vor.u32 %v18406_v38, %v14241_v60  ;;  %6435 = vmatpush.bf16.msra.mxu1 %v13732_v62 }
 0x328   :  { %v14721_v43 = vld [vmem:[#allocation2 + $0x9e0] sm:$0xf0]  ;;  %6422 = vmatmul.bf16.vlgmr.msra.gmra.mxu0 %v19829_v27 }
 0x329   :  { %v18590_v59 = vld [vmem:[#allocation2 + $0xbc4] sm:$0xf]  ;;  %v14724_v30 = vor.u32 %v18526_v14, %v14721_v43  ;;  %6449 = vmatpush.bf16.msra.mxu2 %v13988_v7 }
 0x32a   :  { %v14977_v18 = vld [vmem:[#allocation2 + $0xbe0] sm:$0xf0]  ;;  %6436 = vmatmul.bf16.vlgmr.msra.gmra.mxu1 %v19841_v9 }
 0x32b   :  { %v18654_v15 = vld [vmem:[#allocation2 + $0xdc4] sm:$0xf]  ;;  %v14980_v50 = vor.u32 %v18590_v59, %v14977_v18  ;;  %6463 = vmatpush.bf16.msra.mxu3 %v14244_v10  ;;  %6470 = vmatpush.bf16.msrb.mxu0 %v14724_v30 }
 0x32c   :  { %v15233_v17 = vld [vmem:[#allocation2 + $0xde0] sm:$0xf0]  ;;  %6450 = vmatmul.bf16.vlgmr.msra.gmra.mxu2 %v19835_v8 }
 0x32d   :  { %v18718_v21 = vld [vmem:[#allocation2 + $0xfc4] sm:$0xf]  ;;  %v15236_v13 = vor.u32 %v18654_v15, %v15233_v17  ;;  %6484 = vmatpush.bf16.msrb.mxu1 %v14980_v50 }
 0x32e   :  { %v15489_v24 = vld [vmem:[#allocation2 + $0xfe0] sm:$0xf0]  ;;  %6464 = vmatmul.bf16.vlgmr.msra.gmra.mxu3 %v19847_v19 }
 0x32f   :  { %v18518_v22 = vld [vmem:[#allocation2 + $0x984] sm:$0xf]  ;;  %v15492_v37 = vor.u32 %v18718_v21, %v15489_v24  ;;  %6498 = vmatpush.bf16.msrb.mxu2 %v15236_v13 }
 0x330   :  { %v14689_v23 = vld [vmem:[#allocation2 + $0x9a0] sm:$0xf0] }
 0x331   :  { %v18582_v36 = vld [vmem:[#allocation2 + $0xb84] sm:$0xf]  ;;  %v14692_v47 = vor.u32 %v18518_v22, %v14689_v23  ;;  %6512 = vmatpush.bf16.msrb.mxu3 %v15492_v37 }
 0x332   :  { %v14945_v54 = vld [vmem:[#allocation2 + $0xba0] sm:$0xf0] }
 0x333   :  { %v18646_v57 = vld [vmem:[#allocation2 + $0xd84] sm:$0xf]  ;;  %v14948_v48 = vor.u32 %v18582_v36, %v14945_v54  ;;  %6471 = vmatpush.bf16.msrb.mxu0 %v14692_v47 }
 0x334   :  { %v15201_v44 = vld [vmem:[#allocation2 + $0xda0] sm:$0xf0] }
 0x335   :  { %v18710_v45 = vld [vmem:[#allocation2 + $0xf84] sm:$0xf]  ;;  %v15204_v51 = vor.u32 %v18646_v57, %v15201_v44  ;;  %6485 = vmatpush.bf16.msrb.mxu1 %v14948_v48 }
 0x336   :  { %v15457_v6 = vld [vmem:[#allocation2 + $0xfa0] sm:$0xf0] }
 0x337   :  { %v18510_v56 = vld [vmem:[#allocation2 + $0x944] sm:$0xf]  ;;  %v15460_v2 = vor.u32 %v18710_v45, %v15457_v6  ;;  %6499 = vmatpush.bf16.msrb.mxu2 %v15204_v51 }
 0x338   :  { %v14657_v49 = vld [vmem:[#allocation2 + $0x960] sm:$0xf0] }
 0x339   :  { %v18574_v0 = vld [vmem:[#allocation2 + $0xb44] sm:$0xf]  ;;  %v14660_v53 = vor.u32 %v18510_v56, %v14657_v49  ;;  %6513 = vmatpush.bf16.msrb.mxu3 %v15460_v2 }
 0x33a   :  { %v14913_v3 = vld [vmem:[#allocation2 + $0xb60] sm:$0xf0] }
 0x33b   :  { %v18638_v12 = vld [vmem:[#allocation2 + $0xd44] sm:$0xf]  ;;  %v14916_v31 = vor.u32 %v18574_v0, %v14913_v3  ;;  %6472 = vmatpush.bf16.msrb.mxu0 %v14660_v53 }
 0x33c   :  { %v15169_v52 = vld [vmem:[#allocation2 + $0xd60] sm:$0xf0] }
 0x33d   :  { %v18702_v58 = vld [vmem:[#allocation2 + $0xf44] sm:$0xf]  ;;  %v15172_v33 = vor.u32 %v18638_v12, %v15169_v52  ;;  %6486 = vmatpush.bf16.msrb.mxu1 %v14916_v31 }
 0x33e   :  { %v15425_v63 = vld [vmem:[#allocation2 + $0xf60] sm:$0xf0] }
 0x33f   :  { %v18502_v46 = vld [vmem:[#allocation2 + $0x904] sm:$0xf]  ;;  %v15428_v41 = vor.u32 %v18702_v58, %v15425_v63  ;;  %6500 = vmatpush.bf16.msrb.mxu2 %v15172_v33 }
 0x340   :  { %v14625_v35 = vld [vmem:[#allocation2 + $0x920] sm:$0xf0] }
 0x341   :  { %v18566_v39 = vld [vmem:[#allocation2 + $0xb04] sm:$0xf]  ;;  %v14628_v40 = vor.u32 %v18502_v46, %v14625_v35  ;;  %6514 = vmatpush.bf16.msrb.mxu3 %v15428_v41  ;;  %v13703_v35 = vld [vmem:[#allocation2 + $0x1c8] sm:$0xf] }
 0x342   :  { %v14881_v29 = vld [vmem:[#allocation2 + $0xb20] sm:$0xf0]  ;;  %v13959_v41 = vld [vmem:[#allocation2 + $0x3c8] sm:$0xf] }
 0x343   :  { %v18630_v42 = vld [vmem:[#allocation2 + $0xd04] sm:$0xf]  ;;  %v14884_v32 = vor.u32 %v18566_v39, %v14881_v29  ;;  %6473 = vmatpush.bf16.msrb.mxu0 %v14628_v40  ;;  %v18275_v39 = vld [vmem:[#allocation2 + $0x1e4] sm:$0xf0] }
 0x344   :  { %v15137_v4 = vld [vmem:[#allocation2 + $0xd20] sm:$0xf0] }
 0x345   :  { %v18694_v61 = vld [vmem:[#allocation2 + $0xf04] sm:$0xf]  ;;  %v15140_v16 = vor.u32 %v18630_v42, %v15137_v4  ;;  %6487 = vmatpush.bf16.msrb.mxu1 %v14884_v32  ;;  %v18339_v42 = vld [vmem:[#allocation2 + $0x3e4] sm:$0xf0] }
 0x346   :  { %v15393_v5 = vld [vmem:[#allocation2 + $0xf20] sm:$0xf0]  ;;  %v14215_v4 = vld [vmem:[#allocation2 + $0x5c8] sm:$0xf] }
 0x347   :  { %v18494_v20 = vld [vmem:[#allocation2 + $0x8c4] sm:$0xf]  ;;  %v15396_v38 = vor.u32 %v18694_v61, %v15393_v5  ;;  %6501 = vmatpush.bf16.msrb.mxu2 %v15140_v16  ;;  %v18403_v61 = vld [vmem:[#allocation2 + $0x5e4] sm:$0xf0] }
 0x348   :  { %v14593_v25 = vld [vmem:[#allocation2 + $0x8e0] sm:$0xf0]  ;;  %v14471_v32 = vld [vmem:[#allocation2 + $0x7c8] sm:$0xf] }
 0x349   :  { %v18558_v28 = vld [vmem:[#allocation2 + $0xac4] sm:$0xf]  ;;  %v14596_v18 = vor.u32 %v18494_v20, %v14593_v25  ;;  %6515 = vmatpush.bf16.msrb.mxu3 %v15396_v38  ;;  %v18467_v16 = vld [vmem:[#allocation2 + $0x7e4] sm:$0xf0]  ;;  %v13704_v25 = vor.u32 %v18275_v39, %v13703_v35  ;;  %v14216_v38 = vor.u32 %v18403_v61, %v14215_v4 }
 0x34a   :  { %v14849_v60 = vld [vmem:[#allocation2 + $0xae0] sm:$0xf0]  ;;  %v14087_v35 = vld [vmem:[#allocation2 + $0x4c8] sm:$0xf] }
 0x34b   :  { %v18622_v14 = vld [vmem:[#allocation2 + $0xcc4] sm:$0xf]  ;;  %v14852_v15 = vor.u32 %v18558_v28, %v14849_v60  ;;  %6474 = vmatpush.bf16.msrb.mxu0 %v14596_v18  ;;  %v13960_v28 = vor.u32 %v18339_v42, %v13959_v41  ;;  %v13671_v60 = vld [vmem:[#allocation2 + $0x188] sm:$0xf] }
 0x34c   :  { %v15105_v43 = vld [vmem:[#allocation2 + $0xce0] sm:$0xf0]  ;;  %v14183_v18 = vld [vmem:[#allocation2 + $0x588] sm:$0xf] }
 0x34d   :  { %v18686_v59 = vld [vmem:[#allocation2 + $0xec4] sm:$0xf]  ;;  %v15108_v17 = vor.u32 %v18622_v14, %v15105_v43  ;;  %6488 = vmatpush.bf16.msrb.mxu1 %v14852_v15  ;;  %v18267_v14 = vld [vmem:[#allocation2 + $0x1a4] sm:$0xf0] }
 0x34e   :  { %v15361_v11 = vld [vmem:[#allocation2 + $0xee0] sm:$0xf0]  ;;  %v13927_v43 = vld [vmem:[#allocation2 + $0x388] sm:$0xf] }
 0x34f   :  { %v18486_v62 = vld [vmem:[#allocation2 + $0x884] sm:$0xf]  ;;  %v15364_v24 = vor.u32 %v18686_v59, %v15361_v11  ;;  %6502 = vmatpush.bf16.msrb.mxu2 %v15108_v17  ;;  %v14472_v59 = vor.u32 %v18467_v16, %v14471_v32  ;;  %v18331_v11 = vld [vmem:[#allocation2 + $0x3a4] sm:$0xf0] }
 0x350   :  { %v14561_v7 = vld [vmem:[#allocation2 + $0x8a0] sm:$0xf0]  ;;  %v18395_v15 = vld [vmem:[#allocation2 + $0x5a4] sm:$0xf0] }
 0x351   :  { %v18550_v21 = vld [vmem:[#allocation2 + $0xa84] sm:$0xf]  ;;  %v14564_v23 = vor.u32 %v18486_v62, %v14561_v7  ;;  %6516 = vmatpush.bf16.msrb.mxu3 %v15364_v24  ;;  %v14439_v17 = vld [vmem:[#allocation2 + $0x788] sm:$0xf]  ;;  %v13672_v7 = vor.u32 %v18267_v14, %v13671_v60  ;;  %v14184_v24 = vor.u32 %v18395_v15, %v14183_v18 }
 0x352   :  { %v14817_v10 = vld [vmem:[#allocation2 + $0xaa0] sm:$0xf0]  ;;  %v18459_v62 = vld [vmem:[#allocation2 + $0x7a4] sm:$0xf0] }
 0x353   :  { %v18614_v30 = vld [vmem:[#allocation2 + $0xc84] sm:$0xf]  ;;  %v14820_v36 = vor.u32 %v18550_v21, %v14817_v10  ;;  %6475 = vmatpush.bf16.msrb.mxu0 %v14564_v23  ;;  %v13928_v21 = vor.u32 %v18331_v11, %v13927_v43  ;;  %v13639_v10 = vld [vmem:[#allocation2 + $0x148] sm:$0xf] }
 0x354   :  { %v15073_v50 = vld [vmem:[#allocation2 + $0xca0] sm:$0xf0]  ;;  %v14151_v23 = vld [vmem:[#allocation2 + $0x548] sm:$0xf] }
 0x355   :  { %v18678_v13 = vld [vmem:[#allocation2 + $0xe84] sm:$0xf]  ;;  %v15076_v37 = vor.u32 %v18614_v30, %v15073_v50  ;;  %6489 = vmatpush.bf16.msrb.mxu1 %v14820_v36  ;;  %v18259_v30 = vld [vmem:[#allocation2 + $0x164] sm:$0xf0] }
 0x356   :  { %v15329_v22 = vld [vmem:[#allocation2 + $0xea0] sm:$0xf0]  ;;  %v13895_v50 = vld [vmem:[#allocation2 + $0x348] sm:$0xf] }
 0x357   :  { %v18478_v54 = vld [vmem:[#allocation2 + $0x844] sm:$0xf]  ;;  %v15332_v45 = vor.u32 %v18678_v13, %v15329_v22  ;;  %6503 = vmatpush.bf16.msrb.mxu2 %v15076_v37  ;;  %v14440_v13 = vor.u32 %v18459_v62, %v14439_v17  ;;  %v18323_v22 = vld [vmem:[#allocation2 + $0x364] sm:$0xf0] }
 0x358   :  { %v14529_v57 = vld [vmem:[#allocation2 + $0x860] sm:$0xf0]  ;;  %v18387_v36 = vld [vmem:[#allocation2 + $0x564] sm:$0xf0] }
 0x359   :  { %v18542_v44 = vld [vmem:[#allocation2 + $0xa44] sm:$0xf]  ;;  %v14532_v49 = vor.u32 %v18478_v54, %v14529_v57  ;;  %6517 = vmatpush.bf16.msrb.mxu3 %v15332_v45  ;;  %v14407_v37 = vld [vmem:[#allocation2 + $0x748] sm:$0xf]  ;;  %v13640_v57 = vor.u32 %v18259_v30, %v13639_v10  ;;  %v14152_v45 = vor.u32 %v18387_v36, %v14151_v23 }
 0x35a   :  { %v14785_v6 = vld [vmem:[#allocation2 + $0xa60] sm:$0xf0]  ;;  %v18451_v54 = vld [vmem:[#allocation2 + $0x764] sm:$0xf0] }
 0x35b   :  { %v18606_v47 = vld [vmem:[#allocation2 + $0xc44] sm:$0xf]  ;;  %v14788_v3 = vor.u32 %v18542_v44, %v14785_v6  ;;  %6476 = vmatpush.bf16.msrb.mxu0 %v14532_v49  ;;  %v13896_v44 = vor.u32 %v18323_v22, %v13895_v50  ;;  %v13607_v6 = vld [vmem:[#allocation2 + $0x108] sm:$0xf] }
 0x35c   :  { %v15041_v48 = vld [vmem:[#allocation2 + $0xc60] sm:$0xf0]  ;;  %v14119_v49 = vld [vmem:[#allocation2 + $0x508] sm:$0xf] }
 0x35d   :  { %v18670_v51 = vld [vmem:[#allocation2 + $0xe44] sm:$0xf]  ;;  %v15044_v12 = vor.u32 %v18606_v47, %v15041_v48  ;;  %6490 = vmatpush.bf16.msrb.mxu1 %v14788_v3  ;;  %v18251_v47 = vld [vmem:[#allocation2 + $0x124] sm:$0xf0] }
 0x35e   :  { %v15297_v56 = vld [vmem:[#allocation2 + $0xe60] sm:$0xf0]  ;;  %v13863_v48 = vld [vmem:[#allocation2 + $0x308] sm:$0xf] }
 0x35f   :  { %v18470_v0 = vld [vmem:[#allocation2 + $0x804] sm:$0xf]  ;;  %v15300_v53 = vor.u32 %v18670_v51, %v15297_v56  ;;  %6504 = vmatpush.bf16.msrb.mxu2 %v15044_v12  ;;  %v14408_v51 = vor.u32 %v18451_v54, %v14407_v37  ;;  %v18315_v56 = vld [vmem:[#allocation2 + $0x324] sm:$0xf0]  ;;  %v13608_v12 = vor.u32 %v18251_v47, %v13607_v6 }
 0x360   :  { %v14497_v2 = vld [vmem:[#allocation2 + $0x820] sm:$0xf0]  ;;  %v18443_v3 = vld [vmem:[#allocation2 + $0x724] sm:$0xf0] }
 0x361   :  { %v18534_v52 = vld [vmem:[#allocation2 + $0xa04] sm:$0xf]  ;;  %v14500_v29 = vor.u32 %v18470_v0, %v14497_v2  ;;  %6518 = vmatpush.bf16.msrb.mxu3 %v15300_v53  ;;  %v18379_v0 = vld [vmem:[#allocation2 + $0x524] sm:$0xf0] }
 0x362   :  { %v14753_v58 = vld [vmem:[#allocation2 + $0xa20] sm:$0xf0]  ;;  %v14375_v2 = vld [vmem:[#allocation2 + $0x708] sm:$0xf] }
 0x363   :  { %v18598_v63 = vld [vmem:[#allocation2 + $0xc04] sm:$0xf]  ;;  %v14756_v5 = vor.u32 %v18534_v52, %v14753_v58  ;;  %6477 = vmatpush.bf16.msrb.mxu0 %v14500_v29  ;;  %v13864_v52 = vor.u32 %v18315_v56, %v13863_v48  ;;  %v14120_v58 = vor.u32 %v18379_v0, %v14119_v49  ;;  %v18243_v53 = vld [vmem:[#allocation2 + $0xe4] sm:$0xf0] }
 0x364   :  { %v15009_v31 = vld [vmem:[#allocation2 + $0xc20] sm:$0xf0]  ;;  %v18371_v39 = vld [vmem:[#allocation2 + $0x4e4] sm:$0xf0] }
 0x365   :  { %v18662_v33 = vld [vmem:[#allocation2 + $0xe04] sm:$0xf]  ;;  %v15012_v40 = vor.u32 %v18598_v63, %v15009_v31  ;;  %6491 = vmatpush.bf16.msrb.mxu1 %v14756_v5  ;;  %v13575_v63 = vld [vmem:[#allocation2 + $0xc8] sm:$0xf]  ;;  %v14088_v61 = vor.u32 %v18371_v39, %v14087_v35 }
 0x366   :  { %v15265_v46 = vld [vmem:[#allocation2 + $0xe20] sm:$0xf0]  ;;  %6478 = vmatmul.bf16.vlgmr.msrb.gmra.mxu0 %v19857_v55  ;;  %v13831_v31 = vld [vmem:[#allocation2 + $0x2c8] sm:$0xf]  ;;  %v13576_v42 = vor.u32 %v18243_v53, %v13575_v63 }
 0x367   :  { %v15268_v20 = vor.u32 %v18662_v33, %v15265_v46  ;;  %6505 = vmatpush.bf16.msrb.mxu2 %v15012_v40  ;;  %6526 = vmatpush.bf16.msra.mxu0 %v13704_v25  ;;  %v14376_v33 = vor.u32 %v18443_v3, %v14375_v2  ;;  %v18307_v46 = vld [vmem:[#allocation2 + $0x2e4] sm:$0xf0] }
 0x368   :  { %6492 = vmatmul.bf16.vlgmr.msrb.gmra.mxu1 %v19869_v26  ;;  %v14343_v41 = vld [vmem:[#allocation2 + $0x6c8] sm:$0xf]  ;;  %v13832_v4 = vor.u32 %v18307_v46, %v13831_v31 }
 0x369   :  { %6519 = vmatpush.bf16.msrb.mxu3 %v15268_v20  ;;  %6540 = vmatpush.bf16.msra.mxu1 %v13960_v28  ;;  %v18435_v29 = vld [vmem:[#allocation2 + $0x6e4] sm:$0xf0] }
 0x36a   :  { %6506 = vmatmul.bf16.vlgmr.msrb.gmra.mxu2 %v19863_v1  ;;  %v13543_v5 = vld [vmem:[#allocation2 + $0x88] sm:$0xf]  ;;  %v14344_v16 = vor.u32 %v18435_v29, %v14343_v41 }
 0x36b   :  { %6554 = vmatpush.bf16.msra.mxu2 %v14216_v38  ;;  %6527 = vmatpush.bf16.msra.mxu0 %v13672_v7  ;;  %v18235_v40 = vld [vmem:[#allocation2 + $0xa4] sm:$0xf0] }
 0x36c   :  { %6520 = vmatmul.bf16.vlgmr.msrb.gmra.mxu3 %v19875_v34  ;;  %v13799_v32 = vld [vmem:[#allocation2 + $0x288] sm:$0xf]  ;;  %v13544_v14 = vor.u32 %v18235_v40, %v13543_v5 }
 0x36d   :  { %6568 = vmatpush.bf16.msra.mxu3 %v14472_v59  ;;  %6541 = vmatpush.bf16.msra.mxu1 %v13928_v21  ;;  %v18299_v20 = vld [vmem:[#allocation2 + $0x2a4] sm:$0xf0] }
 0x36e   :  { %v14055_v25 = vld [vmem:[#allocation2 + $0x488] sm:$0xf]  ;;  %v13800_v43 = vor.u32 %v18299_v20, %v13799_v32 }
 0x36f   :  { %6555 = vmatpush.bf16.msra.mxu2 %v14184_v24  ;;  %6528 = vmatpush.bf16.msra.mxu0 %v13640_v57  ;;  %v18363_v28 = vld [vmem:[#allocation2 + $0x4a4] sm:$0xf0] }
 0x370   :  { %v14311_v38 = vld [vmem:[#allocation2 + $0x688] sm:$0xf]  ;;  %v14056_v59 = vor.u32 %v18363_v28, %v14055_v25 }
 0x371   :  { %6569 = vmatpush.bf16.msra.mxu3 %v14440_v13  ;;  %6542 = vmatpush.bf16.msra.mxu1 %v13896_v44  ;;  %v18427_v60 = vld [vmem:[#allocation2 + $0x6a4] sm:$0xf0] }
 0x372   :  { %v13511_v11 = vld [vmem:[#allocation2 + $0x48] sm:$0xf]  ;;  %v14312_v17 = vor.u32 %v18427_v60, %v14311_v38  ;;  %v19889_v38 = vld [vmem:[#allocation12] sm:$0xff] }
 0x373   :  { %6556 = vmatpush.bf16.msra.mxu2 %v14152_v45  ;;  %6529 = vmatpush.bf16.msra.mxu0 %v13608_v12  ;;  %v18227_v18 = vld [vmem:[#allocation2 + $0x64] sm:$0xf0] }
 0x374   :  { %v13767_v15 = vld [vmem:[#allocation2 + $0x248] sm:$0xf]  ;;  %v13512_v30 = vor.u32 %v18227_v18, %v13511_v11 }
 0x375   :  { %6570 = vmatpush.bf16.msra.mxu3 %v14408_v51  ;;  %6543 = vmatpush.bf16.msra.mxu1 %v13864_v52  ;;  %v18291_v62 = vld [vmem:[#allocation2 + $0x264] sm:$0xf0] }
 0x376   :  { %v14023_v7 = vld [vmem:[#allocation2 + $0x448] sm:$0xf]  ;;  %v13768_v22 = vor.u32 %v18291_v62, %v13767_v15 }
 0x377   :  { %6557 = vmatpush.bf16.msra.mxu2 %v14120_v58  ;;  %6530 = vmatpush.bf16.msra.mxu0 %v13576_v42  ;;  %v18355_v21 = vld [vmem:[#allocation2 + $0x464] sm:$0xf0] }
 0x378   :  { %v14279_v24 = vld [vmem:[#allocation2 + $0x648] sm:$0xf]  ;;  %v14024_v23 = vor.u32 %v18355_v21, %v14023_v7 }
 0x379   :  { %6571 = vmatpush.bf16.msra.mxu3 %v14376_v33  ;;  %6544 = vmatpush.bf16.msra.mxu1 %v13832_v4  ;;  %v18419_v10 = vld [vmem:[#allocation2 + $0x664] sm:$0xf0] }
 0x37a   :  { %v13479_v50 = vld [vmem:[#allocation2 + $0x8] sm:$0xf]  ;;  %v14280_v57 = vor.u32 %v18419_v10, %v14279_v24 }
 0x37b   :  { %6558 = vmatpush.bf16.msra.mxu2 %v14088_v61  ;;  %6531 = vmatpush.bf16.msra.mxu0 %v13544_v14  ;;  %v18219_v13 = vld [vmem:[#allocation2 + $0x24] sm:$0xf0] }
 0x37c   :  { %v13735_v36 = vld [vmem:[#allocation2 + $0x208] sm:$0xf]  ;;  %v13480_v56 = vor.u32 %v18219_v13, %v13479_v50 }
 0x37d   :  { %6572 = vmatpush.bf16.msra.mxu3 %v14344_v16  ;;  %6545 = vmatpush.bf16.msra.mxu1 %v13800_v43  ;;  %v18283_v37 = vld [vmem:[#allocation2 + $0x224] sm:$0xf0] }
 0x37e   :  { %v13991_v54 = vld [vmem:[#allocation2 + $0x408] sm:$0xf]  ;;  %v13736_v3 = vor.u32 %v18283_v37, %v13735_v36  ;;  %v6311_v37 = vpop.f32.mrf.mxu0 }
 0x37f   :  { %6559 = vmatpush.bf16.msra.mxu2 %v14056_v59  ;;  %v18347_v44 = vld [vmem:[#allocation2 + $0x424] sm:$0xf0]  ;;  %6532 = vmatpush.bf16.msra.mxu0 %v13512_v30 }
 0x380   :  { %v14247_v45 = vld [vmem:[#allocation2 + $0x608] sm:$0xf]  ;;  %v13992_v12 = vor.u32 %v18347_v44, %v13991_v54 }
 0x381   :  { %6573 = vmatpush.bf16.msra.mxu3 %v14312_v17  ;;  %v18411_v6 = vld [vmem:[#allocation2 + $0x624] sm:$0xf0]  ;;  %6546 = vmatpush.bf16.msra.mxu1 %v13768_v22  ;;  %v3726_v17 = vperm.slane %v19889_v38, 0 }
 0x382   :  { %v14727_v47 = vld [vmem:[#allocation2 + $0x9c8] sm:$0xf]  ;;  %v14248_v63 = vor.u32 %v18411_v6, %v14247_v45 }
 0x383   :  { %v18531_v48 = vld [vmem:[#allocation2 + $0x9e4] sm:$0xf0]  ;;  %6560 = vmatpush.bf16.msra.mxu2 %v14024_v23  ;;  %6533 = vmatpush.bf16.msra.mxu0 %v13480_v56 }
 0x384   :  { %v14983_v51 = vld [vmem:[#allocation2 + $0xbc8] sm:$0xf]  ;;  %v14728_v53 = vor.u32 %v18531_v48, %v14727_v47 }
 0x385   :  { %v18595_v49 = vld [vmem:[#allocation2 + $0xbe4] sm:$0xf0]  ;;  %6574 = vmatpush.bf16.msra.mxu3 %v14280_v57  ;;  %6547 = vmatpush.bf16.msra.mxu1 %v13736_v3  ;;  %v6312_v57 = vadd.f32 %v6311_v37, %v3726_v17 }
 0x386   :  { %v15239_v0 = vld [vmem:[#allocation2 + $0xdc8] sm:$0xf]  ;;  %v14984_v31 = vor.u32 %v18595_v49, %v14983_v51  ;;  %6534 = vmatmul.bf16.vlgmr.msra.gmra.mxu0 %v19829_v27  ;;  %v6325_v51 = vpop.f32.mrf.mxu1 }
 0x387   :  { %v18659_v2 = vld [vmem:[#allocation2 + $0xde4] sm:$0xf0]  ;;  %6561 = vmatpush.bf16.msra.mxu2 %v13992_v12  ;;  %6582 = vmatpush.bf16.msrb.mxu0 %v14728_v53  ;;  %v6326_v3 = vadd.f32 %v6325_v51, %v6312_v57  ;;  %v18271_v57 = vld [vmem:[#allocation2 + $0x1cc] sm:$0xf] }
 0x388   :  { %v15495_v52 = vld [vmem:[#allocation2 + $0xfc8] sm:$0xf]  ;;  %v15240_v33 = vor.u32 %v18659_v2, %v15239_v0  ;;  %6548 = vmatmul.bf16.vlgmr.msra.gmra.mxu1 %v19841_v9  ;;  %v14217_v51 = vld [vmem:[#allocation2 + $0x5e8] sm:$0xf0] }
 0x389   :  { %v18723_v58 = vld [vmem:[#allocation2 + $0xfe4] sm:$0xf0]  ;;  %6575 = vmatpush.bf16.msra.mxu3 %v14248_v63  ;;  %6596 = vmatpush.bf16.msrb.mxu1 %v14984_v31 }
 0x38a   :  { %v14695_v46 = vld [vmem:[#allocation2 + $0x988] sm:$0xf]  ;;  %v15496_v41 = vor.u32 %v18723_v58, %v15495_v52  ;;  %6562 = vmatmul.bf16.vlgmr.msra.gmra.mxu2 %v19835_v8 }
 0x38b   :  { %v18523_v35 = vld [vmem:[#allocation2 + $0x9a4] sm:$0xf0]  ;;  %6610 = vmatpush.bf16.msrb.mxu2 %v15240_v33 }
 0x38c   :  { %v14951_v39 = vld [vmem:[#allocation2 + $0xb88] sm:$0xf]  ;;  %v14696_v40 = vor.u32 %v18523_v35, %v14695_v46  ;;  %6576 = vmatmul.bf16.vlgmr.msra.gmra.mxu3 %v19847_v19 }
 0x38d   :  { %v18587_v29 = vld [vmem:[#allocation2 + $0xba4] sm:$0xf0]  ;;  %6624 = vmatpush.bf16.msrb.mxu3 %v15496_v41 }
 0x38e   :  { %v15207_v42 = vld [vmem:[#allocation2 + $0xd88] sm:$0xf]  ;;  %v14952_v16 = vor.u32 %v18587_v29, %v14951_v39  ;;  %6583 = vmatpush.bf16.msrb.mxu0 %v14696_v40 }
 0x38f   :  { %v18651_v4 = vld [vmem:[#allocation2 + $0xda4] sm:$0xf0] }
 0x390   :  { %v15463_v61 = vld [vmem:[#allocation2 + $0xf88] sm:$0xf]  ;;  %v15208_v20 = vor.u32 %v18651_v4, %v15207_v42  ;;  %6597 = vmatpush.bf16.msrb.mxu1 %v14952_v16  ;;  %v6339_v42 = vpop.f32.mrf.mxu2 }
 0x391   :  { %v18715_v5 = vld [vmem:[#allocation2 + $0xfa4] sm:$0xf0] }
 0x392   :  { %v14663_v32 = vld [vmem:[#allocation2 + $0x948] sm:$0xf]  ;;  %v15464_v60 = vor.u32 %v18715_v5, %v15463_v61  ;;  %6611 = vmatpush.bf16.msrb.mxu2 %v15208_v20  ;;  %v6340_v5 = vadd.f32 %v6339_v42, %v6326_v3  ;;  %v18455_v42 = vld [vmem:[#allocation2 + $0x78c] sm:$0xf] }
 0x393   :  { %v18515_v25 = vld [vmem:[#allocation2 + $0x964] sm:$0xf0] }
 0x394   :  { %v14919_v28 = vld [vmem:[#allocation2 + $0xb48] sm:$0xf]  ;;  %v14664_v15 = vor.u32 %v18515_v25, %v14663_v32  ;;  %6625 = vmatpush.bf16.msrb.mxu3 %v15464_v60  ;;  %v6353_v32 = vpop.f32.mrf.mxu3 }
 0x395   :  { %v18579_v14 = vld [vmem:[#allocation2 + $0xb64] sm:$0xf0] }
 0x396   :  { %v15175_v43 = vld [vmem:[#allocation2 + $0xd48] sm:$0xf]  ;;  %v14920_v62 = vor.u32 %v18579_v14, %v14919_v28  ;;  %6584 = vmatpush.bf16.msrb.mxu0 %v14664_v15  ;;  %v19898_v14 = vadd.f32 %v6353_v32, %v6340_v5 }
 0x397   :  { %v18643_v59 = vld [vmem:[#allocation2 + $0xd64] sm:$0xf0] }
 0x398   :  { %v15431_v11 = vld [vmem:[#allocation2 + $0xf48] sm:$0xf]  ;;  %v15176_v7 = vor.u32 %v18643_v59, %v15175_v43  ;;  %6598 = vmatpush.bf16.msrb.mxu1 %v14920_v62 }
 0x399   :  { %v18707_v18 = vld [vmem:[#allocation2 + $0xf64] sm:$0xf0] }
 0x39a   :  { %v14631_v21 = vld [vmem:[#allocation2 + $0x908] sm:$0xf]  ;;  %v15432_v30 = vor.u32 %v18707_v18, %v15431_v11  ;;  %6612 = vmatpush.bf16.msrb.mxu2 %v15176_v7 }
 0x39b   :  { %v18507_v24 = vld [vmem:[#allocation2 + $0x924] sm:$0xf0] }
 0x39c   :  { %v14887_v10 = vld [vmem:[#allocation2 + $0xb08] sm:$0xf]  ;;  %v14632_v54 = vor.u32 %v18507_v24, %v14631_v21  ;;  %6626 = vmatpush.bf16.msrb.mxu3 %v15432_v30 }
 0x39d   :  { %v18571_v50 = vld [vmem:[#allocation2 + $0xb24] sm:$0xf0] }
 0x39e   :  { %v15143_v13 = vld [vmem:[#allocation2 + $0xd08] sm:$0xf]  ;;  %v14888_v44 = vor.u32 %v18571_v50, %v14887_v10  ;;  %6585 = vmatpush.bf16.msrb.mxu0 %v14632_v54 }
 0x39f   :  { %v18635_v22 = vld [vmem:[#allocation2 + $0xd24] sm:$0xf0] }
 0x3a0   :  { %v15399_v23 = vld [vmem:[#allocation2 + $0xf08] sm:$0xf]  ;;  %v15144_v45 = vor.u32 %v18635_v22, %v15143_v13  ;;  %6599 = vmatpush.bf16.msrb.mxu1 %v14888_v44  ;;  %v13705_v44 = vld [vmem:[#allocation2 + $0x1e8] sm:$0xf0] }
 0x3a1   :  { %v18699_v36 = vld [vmem:[#allocation2 + $0xf24] sm:$0xf0] }
 0x3a2   :  { %v14599_v6 = vld [vmem:[#allocation2 + $0x8c8] sm:$0xf]  ;;  %v15400_v56 = vor.u32 %v18699_v36, %v15399_v23  ;;  %6613 = vmatpush.bf16.msrb.mxu2 %v15144_v45  ;;  %v18335_v45 = vld [vmem:[#allocation2 + $0x3cc] sm:$0xf] }
 0x3a3   :  { %v18499_v47 = vld [vmem:[#allocation2 + $0x8e4] sm:$0xf0] }
 0x3a4   :  { %v14855_v48 = vld [vmem:[#allocation2 + $0xac8] sm:$0xf]  ;;  %v14600_v58 = vor.u32 %v18499_v47, %v14599_v6  ;;  %6627 = vmatpush.bf16.msrb.mxu3 %v15400_v56  ;;  %v13961_v47 = vld [vmem:[#allocation2 + $0x3e8] sm:$0xf0] }
 0x3a5   :  { %v18563_v49 = vld [vmem:[#allocation2 + $0xae4] sm:$0xf0] }
 0x3a6   :  { %v15111_v0 = vld [vmem:[#allocation2 + $0xcc8] sm:$0xf]  ;;  %v14856_v63 = vor.u32 %v18563_v49, %v14855_v48  ;;  %6586 = vmatpush.bf16.msrb.mxu0 %v14600_v58  ;;  %v18399_v48 = vld [vmem:[#allocation2 + $0x5cc] sm:$0xf] }
 0x3a7   :  { %v18627_v2 = vld [vmem:[#allocation2 + $0xce4] sm:$0xf0]  ;;  %v14220_v58 = vor.u32 %v18399_v48, %v14217_v51 }
 0x3a8   :  { %v15367_v12 = vld [vmem:[#allocation2 + $0xec8] sm:$0xf]  ;;  %v15112_v53 = vor.u32 %v18627_v2, %v15111_v0  ;;  %6600 = vmatpush.bf16.msrb.mxu1 %v14856_v63  ;;  %v18463_v0 = vld [vmem:[#allocation2 + $0x7cc] sm:$0xf]  ;;  %v6313_v63 = vpop.f32.mrf.mxu0 }
 0x3a9   :  { %v18691_v52 = vld [vmem:[#allocation2 + $0xee4] sm:$0xf0]  ;;  %v14473_v2 = vld [vmem:[#allocation2 + $0x7e8] sm:$0xf0]  ;;  %v6314_v5 = vadd.f32 %v6313_v63, %v3726_v17 }
 0x3aa   :  { %v14567_v31 = vld [vmem:[#allocation2 + $0x888] sm:$0xf]  ;;  %v15368_v35 = vor.u32 %v18691_v52, %v15367_v12  ;;  %6614 = vmatpush.bf16.msrb.mxu2 %v15112_v53  ;;  %v13708_v12 = vor.u32 %v18271_v57, %v13705_v44  ;;  %v13964_v52 = vor.u32 %v18335_v45, %v13961_v47  ;;  %v18263_v53 = vld [vmem:[#allocation2 + $0x18c] sm:$0xf] }
 0x3ab   :  { %v18491_v33 = vld [vmem:[#allocation2 + $0x8a4] sm:$0xf0]  ;;  %v14377_v57 = vld [vmem:[#allocation2 + $0x728] sm:$0xf0] }
 0x3ac   :  { %v14823_v46 = vld [vmem:[#allocation2 + $0xa88] sm:$0xf]  ;;  %v14568_v40 = vor.u32 %v18491_v33, %v14567_v31  ;;  %6628 = vmatpush.bf16.msrb.mxu3 %v15368_v35  ;;  %v13673_v31 = vld [vmem:[#allocation2 + $0x1a8] sm:$0xf0] }
 0x3ad   :  { %v18555_v39 = vld [vmem:[#allocation2 + $0xaa4] sm:$0xf0]  ;;  %v18327_v33 = vld [vmem:[#allocation2 + $0x38c] sm:$0xf] }
 0x3ae   :  { %v15079_v41 = vld [vmem:[#allocation2 + $0xc88] sm:$0xf]  ;;  %v14824_v16 = vor.u32 %v18555_v39, %v14823_v46  ;;  %6587 = vmatpush.bf16.msrb.mxu0 %v14568_v40  ;;  %v14476_v46 = vor.u32 %v18463_v0, %v14473_v2  ;;  %v13929_v35 = vld [vmem:[#allocation2 + $0x3a8] sm:$0xf0] }
 0x3af   :  { %v18619_v29 = vld [vmem:[#allocation2 + $0xca4] sm:$0xf0]  ;;  %v18391_v39 = vld [vmem:[#allocation2 + $0x58c] sm:$0xf]  ;;  %v13932_v40 = vor.u32 %v18327_v33, %v13929_v35 }
 0x3b0   :  { %v15335_v4 = vld [vmem:[#allocation2 + $0xe88] sm:$0xf]  ;;  %v15080_v20 = vor.u32 %v18619_v29, %v15079_v41  ;;  %6601 = vmatpush.bf16.msrb.mxu1 %v14824_v16  ;;  %v14185_v41 = vld [vmem:[#allocation2 + $0x5a8] sm:$0xf0]  ;;  %v6327_v29 = vpop.f32.mrf.mxu1 }
 0x3b1   :  { %v18683_v61 = vld [vmem:[#allocation2 + $0xea4] sm:$0xf0]  ;;  %v14188_v32 = vor.u32 %v18391_v39, %v14185_v41  ;;  %v18255_v16 = vld [vmem:[#allocation2 + $0x14c] sm:$0xf] }
 0x3b2   :  { %v14535_v25 = vld [vmem:[#allocation2 + $0x848] sm:$0xf]  ;;  %v15336_v43 = vor.u32 %v18683_v61, %v15335_v4  ;;  %6615 = vmatpush.bf16.msrb.mxu2 %v15080_v20  ;;  %v14441_v4 = vld [vmem:[#allocation2 + $0x7a8] sm:$0xf0]  ;;  %v13676_v61 = vor.u32 %v18263_v53, %v13673_v31 }
 0x3b3   :  { %v18483_v28 = vld [vmem:[#allocation2 + $0x864] sm:$0xf0]  ;;  %v13641_v20 = vld [vmem:[#allocation2 + $0x168] sm:$0xf0] }
 0x3b4   :  { %v14791_v60 = vld [vmem:[#allocation2 + $0xa48] sm:$0xf]  ;;  %v14536_v7 = vor.u32 %v18483_v28, %v14535_v25  ;;  %6629 = vmatpush.bf16.msrb.mxu3 %v15336_v43  ;;  %v18319_v25 = vld [vmem:[#allocation2 + $0x34c] sm:$0xf]  ;;  %v14444_v28 = vor.u32 %v18455_v42, %v14441_v4  ;;  %v13644_v17 = vor.u32 %v18255_v16, %v13641_v20 }
 0x3b5   :  { %v18547_v59 = vld [vmem:[#allocation2 + $0xa64] sm:$0xf0]  ;;  %v18383_v43 = vld [vmem:[#allocation2 + $0x54c] sm:$0xf] }
 0x3b6   :  { %v15047_v11 = vld [vmem:[#allocation2 + $0xc48] sm:$0xf]  ;;  %v14792_v10 = vor.u32 %v18547_v59, %v14791_v60  ;;  %6588 = vmatpush.bf16.msrb.mxu0 %v14536_v7  ;;  %v13897_v60 = vld [vmem:[#allocation2 + $0x368] sm:$0xf0] }
 0x3b7   :  { %v18611_v18 = vld [vmem:[#allocation2 + $0xc64] sm:$0xf0]  ;;  %v14153_v59 = vld [vmem:[#allocation2 + $0x568] sm:$0xf0]  ;;  %v13900_v7 = vor.u32 %v18319_v25, %v13897_v60 }
 0x3b8   :  { %v15303_v15 = vld [vmem:[#allocation2 + $0xe48] sm:$0xf]  ;;  %v15048_v30 = vor.u32 %v18611_v18, %v15047_v11  ;;  %6602 = vmatpush.bf16.msrb.mxu1 %v14792_v10  ;;  %v18447_v11 = vld [vmem:[#allocation2 + $0x74c] sm:$0xf] }
 0x3b9   :  { %v18675_v62 = vld [vmem:[#allocation2 + $0xe64] sm:$0xf0]  ;;  %v14409_v18 = vld [vmem:[#allocation2 + $0x768] sm:$0xf0] }
 0x3ba   :  { %v14503_v21 = vld [vmem:[#allocation2 + $0x808] sm:$0xf]  ;;  %v15304_v23 = vor.u32 %v18675_v62, %v15303_v15  ;;  %6616 = vmatpush.bf16.msrb.mxu2 %v15048_v30  ;;  %v6341_v15 = vpop.f32.mrf.mxu2  ;;  %v6328_v62 = vadd.f32 %v6327_v29, %v6314_v5  ;;  %v18247_v10 = vld [vmem:[#allocation2 + $0x10c] sm:$0xf] }
 0x3bb   :  { %v18475_v24 = vld [vmem:[#allocation2 + $0x824] sm:$0xf0]  ;;  %v13609_v30 = vld [vmem:[#allocation2 + $0x128] sm:$0xf0] }
 0x3bc   :  { %v14759_v50 = vld [vmem:[#allocation2 + $0xa08] sm:$0xf]  ;;  %v14504_v6 = vor.u32 %v18475_v24, %v14503_v21  ;;  %6630 = vmatpush.bf16.msrb.mxu3 %v15304_v23  ;;  %v14156_v21 = vor.u32 %v18383_v43, %v14153_v59  ;;  %v6355_v24 = vpop.f32.mrf.mxu3  ;;  %v18375_v23 = vld [vmem:[#allocation2 + $0x50c] sm:$0xf]  ;;  %v13612_v45 = vor.u32 %v18247_v10, %v13609_v30  ;;  %v6342_v47 = vadd.f32 %v6341_v15, %v6328_v62 }
 0x3bd   :  { %v18539_v13 = vld [vmem:[#allocation2 + $0xa24] sm:$0xf0]  ;;  %v18303_v0 = vld [vmem:[#allocation2 + $0x2cc] sm:$0xf] }
 0x3be   :  { %v15015_v22 = vld [vmem:[#allocation2 + $0xc08] sm:$0xf]  ;;  %v14760_v56 = vor.u32 %v18539_v13, %v14759_v50  ;;  %6589 = vmatpush.bf16.msrb.mxu0 %v14504_v6  ;;  %v18311_v50 = vld [vmem:[#allocation2 + $0x30c] sm:$0xf]  ;;  %v14412_v13 = vor.u32 %v18447_v11, %v14409_v18  ;;  %v6381_v6 = vpop.f32.mrf.mxu1  ;;  %v6356_v33 = vadd.f32 %v6355_v24, %v6342_v47 }
 0x3bf   :  { %v18603_v36 = vld [vmem:[#allocation2 + $0xc24] sm:$0xf0]  ;;  %v18431_v63 = vld [vmem:[#allocation2 + $0x6cc] sm:$0xf] }
 0x3c0   :  { %v15271_v37 = vld [vmem:[#allocation2 + $0xe08] sm:$0xf]  ;;  %v15016_v49 = vor.u32 %v18603_v36, %v15015_v22  ;;  %6603 = vmatpush.bf16.msrb.mxu1 %v14760_v56  ;;  %v13865_v22 = vld [vmem:[#allocation2 + $0x328] sm:$0xf0] }
 0x3c1   :  { %v18667_v54 = vld [vmem:[#allocation2 + $0xe24] sm:$0xf0]  ;;  %6590 = vmatmul.bf16.vlgmr.msrb.gmra.mxu0 %v19857_v55  ;;  %v14121_v36 = vld [vmem:[#allocation2 + $0x528] sm:$0xf0]  ;;  %v13868_v48 = vor.u32 %v18311_v50, %v13865_v22 }
 0x3c2   :  { %v15272_v3 = vor.u32 %v18667_v54, %v15271_v37  ;;  %6617 = vmatpush.bf16.msrb.mxu2 %v15016_v49  ;;  %6638 = vmatpush.bf16.msra.mxu0 %v13708_v12  ;;  %v6367_v37 = vpop.f32.mrf.mxu0  ;;  %v18439_v54 = vld [vmem:[#allocation2 + $0x70c] sm:$0xf]  ;;  %v14124_v51 = vor.u32 %v18375_v23, %v14121_v36  ;;  %v6395_v4 = vpop.f32.mrf.mxu2 }
 0x3c3   :  { %6604 = vmatmul.bf16.vlgmr.msrb.gmra.mxu1 %v19869_v26  ;;  %v6368_v44 = vadd.f32 %v6367_v37, %v19898_v14  ;;  %v18239_v56 = vld [vmem:[#allocation2 + $0xcc] sm:$0xf]  ;;  %v14380_v2 = vor.u32 %v18439_v54, %v14377_v57 }
 0x3c4   :  { %6631 = vmatpush.bf16.msrb.mxu3 %v15272_v3  ;;  %6652 = vmatpush.bf16.msra.mxu1 %v13964_v52  ;;  %v13577_v49 = vld [vmem:[#allocation2 + $0xe8] sm:$0xf0]  ;;  %v6409_v16 = vpop.f32.mrf.mxu3 }
 0x3c5   :  { %6618 = vmatmul.bf16.vlgmr.msrb.gmra.mxu2 %v19863_v1  ;;  %v6382_v3 = vadd.f32 %v6381_v6, %v6368_v44  ;;  %v13833_v12 = vld [vmem:[#allocation2 + $0x2e8] sm:$0xf0]  ;;  %v13580_v14 = vor.u32 %v18239_v56, %v13577_v49 }
 0x3c6   :  { %6666 = vmatpush.bf16.msra.mxu2 %v14220_v58  ;;  %6639 = vmatpush.bf16.msra.mxu0 %v13676_v61  ;;  %v18367_v52 = vld [vmem:[#allocation2 + $0x4cc] sm:$0xf] }
 0x3c7   :  { %6632 = vmatmul.bf16.vlgmr.msrb.gmra.mxu3 %v19875_v34  ;;  %v14089_v58 = vld [vmem:[#allocation2 + $0x4e8] sm:$0xf0] }
 0x3c8   :  { %6680 = vmatpush.bf16.msra.mxu3 %v14476_v46  ;;  %6653 = vmatpush.bf16.msra.mxu1 %v13932_v40  ;;  %v14345_v53 = vld [vmem:[#allocation2 + $0x6e8] sm:$0xf0]  ;;  %v13836_v46 = vor.u32 %v18303_v0, %v13833_v12  ;;  %v14092_v35 = vor.u32 %v18367_v52, %v14089_v58  ;;  %v6396_v40 = vadd.f32 %v6395_v4, %v6382_v3 }
 0x3c9   :  { %v18231_v31 = vld [vmem:[#allocation2 + $0x8c] sm:$0xf]  ;;  %v14348_v42 = vor.u32 %v18431_v63, %v14345_v53 }
 0x3ca   :  { %6667 = vmatpush.bf16.msra.mxu2 %v14188_v32  ;;  %6640 = vmatpush.bf16.msra.mxu0 %v13644_v17  ;;  %v13545_v39 = vld [vmem:[#allocation2 + $0xa8] sm:$0xf0]  ;;  %v6369_v32 = vpop.f32.mrf.mxu0  ;;  %v19907_v59 = vadd.f32 %v6409_v16, %v6396_v40 }
 0x3cb   :  { %v18295_v41 = vld [vmem:[#allocation2 + $0x28c] sm:$0xf]  ;;  %v6370_v43 = vadd.f32 %v6369_v32, %v6356_v33 }
 0x3cc   :  { %6681 = vmatpush.bf16.msra.mxu3 %v14444_v28  ;;  %6654 = vmatpush.bf16.msra.mxu1 %v13900_v7  ;;  %v13801_v29 = vld [vmem:[#allocation2 + $0x2a8] sm:$0xf0]  ;;  %v13548_v28 = vor.u32 %v18231_v31, %v13545_v39  ;;  %v6383_v7 = vpop.f32.mrf.mxu1  ;;  %v7198_v30 = vmax.f32 %v19907_v59, 0.0 }
 0x3cd   :  { %v18359_v61 = vld [vmem:[#allocation2 + $0x48c] sm:$0xf]  ;;  %v13804_v60 = vor.u32 %v18295_v41, %v13801_v29  ;;  %v6384_v37 = vadd.f32 %v6383_v7, %v6370_v43 }
 0x3ce   :  { %6668 = vmatpush.bf16.msra.mxu2 %v14156_v21  ;;  %6641 = vmatpush.bf16.msra.mxu0 %v13612_v45  ;;  %v14057_v5 = vld [vmem:[#allocation2 + $0x4a8] sm:$0xf0] }
 0x3cf   :  { %v18423_v20 = vld [vmem:[#allocation2 + $0x68c] sm:$0xf]  ;;  %v14060_v11 = vor.u32 %v18359_v61, %v14057_v5 }
 0x3d0   :  { %6682 = vmatpush.bf16.msra.mxu3 %v14412_v13  ;;  %6655 = vmatpush.bf16.msra.mxu1 %v13868_v48  ;;  %v14313_v25 = vld [vmem:[#allocation2 + $0x6a8] sm:$0xf0]  ;;  %v6397_v48 = vpop.f32.mrf.mxu2 }
 0x3d1   :  { %v18223_v18 = vld [vmem:[#allocation2 + $0x4c] sm:$0xf]  ;;  %v14316_v62 = vor.u32 %v18423_v20, %v14313_v25  ;;  %v6398_v0 = vadd.f32 %v6397_v48, %v6384_v37 }
 0x3d2   :  { %6669 = vmatpush.bf16.msra.mxu2 %v14124_v51  ;;  %6642 = vmatpush.bf16.msra.mxu0 %v13580_v14  ;;  %v13513_v17 = vld [vmem:[#allocation2 + $0x68] sm:$0xf0] }
 0x3d3   :  { %v18287_v15 = vld [vmem:[#allocation2 + $0x24c] sm:$0xf]  ;;  %v13516_v22 = vor.u32 %v18223_v18, %v13513_v17 }
 0x3d4   :  { %6683 = vmatpush.bf16.msra.mxu3 %v14380_v2  ;;  %6656 = vmatpush.bf16.msra.mxu1 %v13836_v46  ;;  %v13769_v21 = vld [vmem:[#allocation2 + $0x268] sm:$0xf0]  ;;  %v6411_v2 = vpop.f32.mrf.mxu3 }
 0x3d5   :  { %v18351_v24 = vld [vmem:[#allocation2 + $0x44c] sm:$0xf]  ;;  %v13772_v54 = vor.u32 %v18287_v15, %v13769_v21  ;;  %v19910_v31 = vadd.f32 %v6411_v2, %v6398_v0  ;;  %v6423_v0 = vpop.f32.mrf.mxu0 }
 0x3d6   :  { %6670 = vmatpush.bf16.msra.mxu2 %v14092_v35  ;;  %v14025_v10 = vld [vmem:[#allocation2 + $0x468] sm:$0xf0]  ;;  %6643 = vmatpush.bf16.msra.mxu0 %v13548_v28 }
 0x3d7   :  { %v18415_v50 = vld [vmem:[#allocation2 + $0x64c] sm:$0xf]  ;;  %v14028_v57 = vor.u32 %v18351_v24, %v14025_v10  ;;  %v7206_v4 = vmax.f32 %v19910_v31, 0.0 }
 0x3d8   :  { %6684 = vmatpush.bf16.msra.mxu3 %v14348_v42  ;;  %v14281_v13 = vld [vmem:[#allocation2 + $0x668] sm:$0xf0]  ;;  %6657 = vmatpush.bf16.msra.mxu1 %v13804_v60 }
 0x3d9   :  { %v18215_v23 = vld [vmem:[#allocation2 + $0xc] sm:$0xf]  ;;  %v14284_v47 = vor.u32 %v18415_v50, %v14281_v13 }
 0x3da   :  { %v13481_v36 = vld [vmem:[#allocation2 + $0x28] sm:$0xf0]  ;;  %6671 = vmatpush.bf16.msra.mxu2 %v14060_v11  ;;  %6644 = vmatpush.bf16.msra.mxu0 %v13516_v22 }
 0x3db   :  { %v18279_v44 = vld [vmem:[#allocation2 + $0x20c] sm:$0xf]  ;;  %v13484_v58 = vor.u32 %v18215_v23, %v13481_v36  ;;  %v3727_v36 = vperm.slane %v19889_v38, 1 }
 0x3dc   :  { %v13737_v45 = vld [vmem:[#allocation2 + $0x228] sm:$0xf0]  ;;  %6685 = vmatpush.bf16.msra.mxu3 %v14316_v62  ;;  %6658 = vmatpush.bf16.msra.mxu1 %v13772_v54 }
 0x3dd   :  { %v18343_v6 = vld [vmem:[#allocation2 + $0x40c] sm:$0xf]  ;;  %v13740_v33 = vor.u32 %v18279_v44, %v13737_v45 }
 0x3de   :  { %v13993_v51 = vld [vmem:[#allocation2 + $0x428] sm:$0xf0]  ;;  %6672 = vmatpush.bf16.msra.mxu2 %v14028_v57  ;;  %6645 = vmatpush.bf16.msra.mxu0 %v13484_v58 }
 0x3df   :  { %v18407_v56 = vld [vmem:[#allocation2 + $0x60c] sm:$0xf]  ;;  %v13996_v46 = vor.u32 %v18343_v6, %v13993_v51 }
 0x3e0   :  { %v14249_v49 = vld [vmem:[#allocation2 + $0x628] sm:$0xf0]  ;;  %6686 = vmatpush.bf16.msra.mxu3 %v14284_v47  ;;  %6659 = vmatpush.bf16.msra.mxu1 %v13740_v33 }
 0x3e1   :  { %v18527_v3 = vld [vmem:[#allocation2 + $0x9cc] sm:$0xf]  ;;  %v14252_v41 = vor.u32 %v18407_v56, %v14249_v49  ;;  %6646 = vmatmul.bf16.vlgmr.msra.gmra.mxu0 %v19829_v27 }
 0x3e2   :  { %v14729_v12 = vld [vmem:[#allocation2 + $0x9e8] sm:$0xf0]  ;;  %6673 = vmatpush.bf16.msra.mxu2 %v13996_v46 }
 0x3e3   :  { %v18591_v52 = vld [vmem:[#allocation2 + $0xbcc] sm:$0xf]  ;;  %v14732_v29 = vor.u32 %v18527_v3, %v14729_v12  ;;  %6660 = vmatmul.bf16.vlgmr.msra.gmra.mxu1 %v19841_v9  ;;  %v6424_v3 = vadd.f32 %v6423_v0, %v3727_v36 }
 0x3e4   :  { %v14985_v63 = vld [vmem:[#allocation2 + $0xbe8] sm:$0xf0]  ;;  %6687 = vmatpush.bf16.msra.mxu3 %v14252_v41 }
 0x3e5   :  { %v18655_v53 = vld [vmem:[#allocation2 + $0xdcc] sm:$0xf]  ;;  %v14988_v61 = vor.u32 %v18591_v52, %v14985_v63  ;;  %6694 = vmatpush.bf16.msrb.mxu0 %v14732_v29  ;;  %6674 = vmatmul.bf16.vlgmr.msra.gmra.mxu2 %v19835_v8 }
 0x3e6   :  { %v15241_v14 = vld [vmem:[#allocation2 + $0xde8] sm:$0xf0] }
 0x3e7   :  { %v18719_v35 = vld [vmem:[#allocation2 + $0xfcc] sm:$0xf]  ;;  %v15244_v5 = vor.u32 %v18655_v53, %v15241_v14  ;;  %6708 = vmatpush.bf16.msrb.mxu1 %v14988_v61  ;;  %6688 = vmatmul.bf16.vlgmr.msra.gmra.mxu3 %v19847_v19  ;;  %v6437_v14 = vpop.f32.mrf.mxu1 }
 0x3e8   :  { %v15497_v39 = vld [vmem:[#allocation2 + $0xfe8] sm:$0xf0]  ;;  %v6438_v41 = vadd.f32 %v6437_v14, %v6424_v3  ;;  %v13967_v14 = vld [vmem:[#allocation2 + $0x3d0] sm:$0xf] }
 0x3e9   :  { %v18519_v42 = vld [vmem:[#allocation2 + $0x98c] sm:$0xf]  ;;  %v15500_v16 = vor.u32 %v18719_v35, %v15497_v39  ;;  %6722 = vmatpush.bf16.msrb.mxu2 %v15244_v5 }
 0x3ea   :  { %v14697_v40 = vld [vmem:[#allocation2 + $0x9a8] sm:$0xf0] }
 0x3eb   :  { %v18583_v32 = vld [vmem:[#allocation2 + $0xb8c] sm:$0xf]  ;;  %v14700_v11 = vor.u32 %v18519_v42, %v14697_v40  ;;  %6736 = vmatpush.bf16.msrb.mxu3 %v15500_v16 }
 0x3ec   :  { %v14953_v20 = vld [vmem:[#allocation2 + $0xba8] sm:$0xf0] }
 0x3ed   :  { %v18647_v25 = vld [vmem:[#allocation2 + $0xd8c] sm:$0xf]  ;;  %v14956_v18 = vor.u32 %v18583_v32, %v14953_v20  ;;  %6695 = vmatpush.bf16.msrb.mxu0 %v14700_v11  ;;  %v6451_v11 = vpop.f32.mrf.mxu2 }
 0x3ee   :  { %v15209_v28 = vld [vmem:[#allocation2 + $0xda8] sm:$0xf0] }
 0x3ef   :  { %v18711_v60 = vld [vmem:[#allocation2 + $0xf8c] sm:$0xf]  ;;  %v15212_v17 = vor.u32 %v18647_v25, %v15209_v28  ;;  %6709 = vmatpush.bf16.msrb.mxu1 %v14956_v18 }
 0x3f0   :  { %v15465_v43 = vld [vmem:[#allocation2 + $0xfa8] sm:$0xf0] }
 0x3f1   :  { %v18511_v15 = vld [vmem:[#allocation2 + $0x94c] sm:$0xf]  ;;  %v15468_v21 = vor.u32 %v18711_v60, %v15465_v43  ;;  %6723 = vmatpush.bf16.msrb.mxu2 %v15212_v17 }
 0x3f2   :  { %v14665_v62 = vld [vmem:[#allocation2 + $0x968] sm:$0xf0] }
 0x3f3   :  { %v18575_v7 = vld [vmem:[#allocation2 + $0xb4c] sm:$0xf]  ;;  %v14668_v23 = vor.u32 %v18511_v15, %v14665_v62  ;;  %6737 = vmatpush.bf16.msrb.mxu3 %v15468_v21  ;;  %v6452_v15 = vadd.f32 %v6451_v11, %v6438_v41  ;;  %v18332_v11 = vld [vmem:[#allocation2 + $0x3ac] sm:$0xf0] }
 0x3f4   :  { %v14921_v24 = vld [vmem:[#allocation2 + $0xb68] sm:$0xf0] }
 0x3f5   :  { %v18639_v10 = vld [vmem:[#allocation2 + $0xd4c] sm:$0xf]  ;;  %v14924_v37 = vor.u32 %v18575_v7, %v14921_v24  ;;  %6696 = vmatpush.bf16.msrb.mxu0 %v14668_v23  ;;  %v6465_v7 = vpop.f32.mrf.mxu3 }
 0x3f6   :  { %v15177_v50 = vld [vmem:[#allocation2 + $0xd68] sm:$0xf0] }
 0x3f7   :  { %v18703_v13 = vld [vmem:[#allocation2 + $0xf4c] sm:$0xf]  ;;  %v15180_v54 = vor.u32 %v18639_v10, %v15177_v50  ;;  %6710 = vmatpush.bf16.msrb.mxu1 %v14924_v37 }
 0x3f8   :  { %v15433_v22 = vld [vmem:[#allocation2 + $0xf68] sm:$0xf0] }
 0x3f9   :  { %v18503_v57 = vld [vmem:[#allocation2 + $0x90c] sm:$0xf]  ;;  %v15436_v6 = vor.u32 %v18703_v13, %v15433_v22  ;;  %6724 = vmatpush.bf16.msrb.mxu2 %v15180_v54  ;;  %v19920_v22 = vadd.f32 %v6465_v7, %v6452_v15  ;;  %v6439_v15 = vpop.f32.mrf.mxu1  ;;  %v18460_v7 = vld [vmem:[#allocation2 + $0x7ac] sm:$0xf0] }
 0x3fa   :  { %v14633_v44 = vld [vmem:[#allocation2 + $0x928] sm:$0xf0] }
 0x3fb   :  { %v18567_v45 = vld [vmem:[#allocation2 + $0xb0c] sm:$0xf]  ;;  %v14636_v2 = vor.u32 %v18503_v57, %v14633_v44  ;;  %6738 = vmatpush.bf16.msrb.mxu3 %v15436_v6 }
 0x3fc   :  { %v14889_v47 = vld [vmem:[#allocation2 + $0xb28] sm:$0xf0] }
 0x3fd   :  { %v18631_v48 = vld [vmem:[#allocation2 + $0xd0c] sm:$0xf]  ;;  %v14892_v12 = vor.u32 %v18567_v45, %v14889_v47  ;;  %6697 = vmatpush.bf16.msrb.mxu0 %v14636_v2 }
 0x3fe   :  { %v15145_v51 = vld [vmem:[#allocation2 + $0xd28] sm:$0xf0] }
 0x3ff   :  { %v18695_v56 = vld [vmem:[#allocation2 + $0xf0c] sm:$0xf]  ;;  %v15148_v52 = vor.u32 %v18631_v48, %v15145_v51  ;;  %6711 = vmatpush.bf16.msrb.mxu1 %v14892_v12 }
 0x400   :  { %v15401_v49 = vld [vmem:[#allocation2 + $0xf28] sm:$0xf0] }
 0x401   :  { %v18495_v58 = vld [vmem:[#allocation2 + $0x8cc] sm:$0xf]  ;;  %v15404_v33 = vor.u32 %v18695_v56, %v15401_v49  ;;  %6725 = vmatpush.bf16.msrb.mxu2 %v15148_v52 }
 0x402   :  { %v14601_v63 = vld [vmem:[#allocation2 + $0x8e8] sm:$0xf0] }
 0x403   :  { %v18559_v53 = vld [vmem:[#allocation2 + $0xacc] sm:$0xf]  ;;  %v14604_v61 = vor.u32 %v18495_v58, %v14601_v63  ;;  %6739 = vmatpush.bf16.msrb.mxu3 %v15404_v33  ;;  %v13711_v63 = vld [vmem:[#allocation2 + $0x1d0] sm:$0xf] }
 0x404   :  { %v14857_v46 = vld [vmem:[#allocation2 + $0xae8] sm:$0xf0] }
 0x405   :  { %v18623_v35 = vld [vmem:[#allocation2 + $0xccc] sm:$0xf]  ;;  %v14860_v5 = vor.u32 %v18559_v53, %v14857_v46  ;;  %6698 = vmatpush.bf16.msrb.mxu0 %v14604_v61  ;;  %v18276_v53 = vld [vmem:[#allocation2 + $0x1ec] sm:$0xf0] }
 0x406   :  { %v15113_v39 = vld [vmem:[#allocation2 + $0xce8] sm:$0xf0]  ;;  %v18340_v46 = vld [vmem:[#allocation2 + $0x3ec] sm:$0xf0] }
 0x407   :  { %v18687_v29 = vld [vmem:[#allocation2 + $0xecc] sm:$0xf]  ;;  %v15116_v40 = vor.u32 %v18623_v35, %v15113_v39  ;;  %6712 = vmatpush.bf16.msrb.mxu1 %v14860_v5  ;;  %v14223_v35 = vld [vmem:[#allocation2 + $0x5d0] sm:$0xf] }
 0x408   :  { %v15369_v42 = vld [vmem:[#allocation2 + $0xee8] sm:$0xf0]  ;;  %v18404_v39 = vld [vmem:[#allocation2 + $0x5ec] sm:$0xf0] }
 0x409   :  { %v18487_v32 = vld [vmem:[#allocation2 + $0x88c] sm:$0xf]  ;;  %v15372_v25 = vor.u32 %v18687_v29, %v15369_v42  ;;  %6726 = vmatpush.bf16.msrb.mxu2 %v15116_v40  ;;  %v14479_v42 = vld [vmem:[#allocation2 + $0x7d0] sm:$0xf]  ;;  %v13712_v40 = vor.u32 %v18276_v53, %v13711_v63 }
 0x40a   :  { %v14569_v16 = vld [vmem:[#allocation2 + $0x8a8] sm:$0xf0]  ;;  %v18468_v61 = vld [vmem:[#allocation2 + $0x7ec] sm:$0xf0] }
 0x40b   :  { %v18551_v20 = vld [vmem:[#allocation2 + $0xa8c] sm:$0xf]  ;;  %v14572_v62 = vor.u32 %v18487_v32, %v14569_v16  ;;  %6740 = vmatpush.bf16.msrb.mxu3 %v15372_v25  ;;  %v13968_v32 = vor.u32 %v18340_v46, %v13967_v14  ;;  %v14224_v16 = vor.u32 %v18404_v39, %v14223_v35  ;;  %v13679_v25 = vld [vmem:[#allocation2 + $0x190] sm:$0xf]  ;;  %v6493_v39 = vpop.f32.mrf.mxu1 }
 0x40c   :  { %v14825_v28 = vld [vmem:[#allocation2 + $0xaa8] sm:$0xf0]  ;;  %v18380_v63 = vld [vmem:[#allocation2 + $0x52c] sm:$0xf0] }
 0x40d   :  { %v18615_v60 = vld [vmem:[#allocation2 + $0xc8c] sm:$0xf]  ;;  %v14828_v21 = vor.u32 %v18551_v20, %v14825_v28  ;;  %6699 = vmatpush.bf16.msrb.mxu0 %v14572_v62  ;;  %v6425_v20 = vpop.f32.mrf.mxu0  ;;  %v18268_v28 = vld [vmem:[#allocation2 + $0x1ac] sm:$0xf0] }
 0x40e   :  { %v15081_v43 = vld [vmem:[#allocation2 + $0xca8] sm:$0xf0]  ;;  %v14447_v62 = vld [vmem:[#allocation2 + $0x790] sm:$0xf] }
 0x40f   :  { %v18679_v18 = vld [vmem:[#allocation2 + $0xe8c] sm:$0xf]  ;;  %v15084_v24 = vor.u32 %v18615_v60, %v15081_v43  ;;  %6713 = vmatpush.bf16.msrb.mxu1 %v14828_v21  ;;  %v13935_v60 = vld [vmem:[#allocation2 + $0x390] sm:$0xf]  ;;  %v14480_v43 = vor.u32 %v18468_v61, %v14479_v42  ;;  %v13680_v21 = vor.u32 %v18268_v28, %v13679_v25 }
 0x410   :  { %v15337_v17 = vld [vmem:[#allocation2 + $0xea8] sm:$0xf0]  ;;  %v14383_v14 = vld [vmem:[#allocation2 + $0x710] sm:$0xf] }
 0x411   :  { %v18479_v10 = vld [vmem:[#allocation2 + $0x84c] sm:$0xf]  ;;  %v15340_v23 = vor.u32 %v18679_v18, %v15337_v17  ;;  %6727 = vmatpush.bf16.msrb.mxu2 %v15084_v24  ;;  %v14191_v18 = vld [vmem:[#allocation2 + $0x590] sm:$0xf]  ;;  %v6426_v24 = vadd.f32 %v6425_v20, %v3727_v36  ;;  %v6453_v36 = vpop.f32.mrf.mxu2 }
 0x412   :  { %v14537_v50 = vld [vmem:[#allocation2 + $0x868] sm:$0xf0]  ;;  %v18396_v17 = vld [vmem:[#allocation2 + $0x5ac] sm:$0xf0] }
 0x413   :  { %v18543_v13 = vld [vmem:[#allocation2 + $0xa4c] sm:$0xf]  ;;  %v14540_v6 = vor.u32 %v18479_v10, %v14537_v50  ;;  %6741 = vmatpush.bf16.msrb.mxu3 %v15340_v23  ;;  %v13936_v10 = vor.u32 %v18332_v11, %v13935_v60  ;;  %v14192_v50 = vor.u32 %v18396_v17, %v14191_v18  ;;  %v18260_v23 = vld [vmem:[#allocation2 + $0x16c] sm:$0xf0] }
 0x414   :  { %v14793_v37 = vld [vmem:[#allocation2 + $0xa68] sm:$0xf0]  ;;  %v13583_v61 = vld [vmem:[#allocation2 + $0xd0] sm:$0xf] }
 0x415   :  { %v18607_v54 = vld [vmem:[#allocation2 + $0xc4c] sm:$0xf]  ;;  %v14796_v51 = vor.u32 %v18543_v13, %v14793_v37  ;;  %6700 = vmatpush.bf16.msrb.mxu0 %v14540_v6  ;;  %v13647_v13 = vld [vmem:[#allocation2 + $0x150] sm:$0xf]  ;;  %v6479_v53 = vpop.f32.mrf.mxu0 }
 0x416   :  { %v15049_v57 = vld [vmem:[#allocation2 + $0xc68] sm:$0xf0]  ;;  %v13903_v37 = vld [vmem:[#allocation2 + $0x350] sm:$0xf]  ;;  %v13648_v38 = vor.u32 %v18260_v23, %v13647_v13  ;;  %v6480_v46 = vadd.f32 %v6479_v53, %v19920_v22 }
 0x417   :  { %v18671_v44 = vld [vmem:[#allocation2 + $0xe4c] sm:$0xf]  ;;  %v15052_v56 = vor.u32 %v18607_v54, %v15049_v57  ;;  %6714 = vmatpush.bf16.msrb.mxu1 %v14796_v51  ;;  %v14448_v54 = vor.u32 %v18460_v7, %v14447_v62  ;;  %v18324_v57 = vld [vmem:[#allocation2 + $0x36c] sm:$0xf0] }
 0x418   :  { %v15305_v45 = vld [vmem:[#allocation2 + $0xe68] sm:$0xf0]  ;;  %v14415_v6 = vld [vmem:[#allocation2 + $0x750] sm:$0xf]  ;;  %v13904_v51 = vor.u32 %v18324_v57, %v13903_v37 }
 0x419   :  { %v18471_v47 = vld [vmem:[#allocation2 + $0x80c] sm:$0xf]  ;;  %v15308_v3 = vor.u32 %v18671_v44, %v15305_v45  ;;  %6728 = vmatpush.bf16.msrb.mxu2 %v15052_v56  ;;  %v14159_v44 = vld [vmem:[#allocation2 + $0x550] sm:$0xf] }
 0x41a   :  { %v14505_v48 = vld [vmem:[#allocation2 + $0x828] sm:$0xf0]  ;;  %v18388_v45 = vld [vmem:[#allocation2 + $0x56c] sm:$0xf0] }
 0x41b   :  { %v18535_v49 = vld [vmem:[#allocation2 + $0xa0c] sm:$0xf]  ;;  %v14508_v33 = vor.u32 %v18471_v47, %v14505_v48  ;;  %6742 = vmatpush.bf16.msrb.mxu3 %v15308_v3  ;;  %v18452_v47 = vld [vmem:[#allocation2 + $0x76c] sm:$0xf0]  ;;  %v6440_v48 = vadd.f32 %v6439_v15, %v6426_v24  ;;  %v14160_v56 = vor.u32 %v18388_v45, %v14159_v44 }
 0x41c   :  { %v14761_v0 = vld [vmem:[#allocation2 + $0xa28] sm:$0xf0]  ;;  %v13871_v3 = vld [vmem:[#allocation2 + $0x310] sm:$0xf] }
 0x41d   :  { %v18599_v2 = vld [vmem:[#allocation2 + $0xc0c] sm:$0xf]  ;;  %v14764_v41 = vor.u32 %v18535_v49, %v14761_v0  ;;  %6701 = vmatpush.bf16.msrb.mxu0 %v14508_v33  ;;  %v6467_v49 = vpop.f32.mrf.mxu3  ;;  %v13615_v0 = vld [vmem:[#allocation2 + $0x110] sm:$0xf]  ;;  %v6481_v37 = vpop.f32.mrf.mxu0 }
 0x41e   :  { %v15017_v12 = vld [vmem:[#allocation2 + $0xc28] sm:$0xf0]  ;;  %v18444_v33 = vld [vmem:[#allocation2 + $0x72c] sm:$0xf0] }
 0x41f   :  { %v18663_v52 = vld [vmem:[#allocation2 + $0xe0c] sm:$0xf]  ;;  %v15020_v29 = vor.u32 %v18599_v2, %v15017_v12  ;;  %6715 = vmatpush.bf16.msrb.mxu1 %v14764_v41  ;;  %v18252_v2 = vld [vmem:[#allocation2 + $0x12c] sm:$0xf0]  ;;  %v14416_v12 = vor.u32 %v18452_v47, %v14415_v6  ;;  %v6454_v41 = vadd.f32 %v6453_v36, %v6440_v48 }
 0x420   :  { %v15273_v58 = vld [vmem:[#allocation2 + $0xe28] sm:$0xf0]  ;;  %6702 = vmatmul.bf16.vlgmr.msrb.gmra.mxu0 %v19857_v55  ;;  %v13616_v35 = vor.u32 %v18252_v2, %v13615_v0  ;;  %v18308_v20 = vld [vmem:[#allocation2 + $0x2ec] sm:$0xf0]  ;;  %v6495_v0 = vpop.f32.mrf.mxu1 }
 0x421   :  { %v15276_v5 = vor.u32 %v18663_v52, %v15273_v58  ;;  %6729 = vmatpush.bf16.msrb.mxu2 %v15020_v29  ;;  %6750 = vmatpush.bf16.msra.mxu0 %v13712_v40  ;;  %v18316_v52 = vld [vmem:[#allocation2 + $0x32c] sm:$0xf0]  ;;  %v6468_v18 = vadd.f32 %v6467_v49, %v6454_v41 }
 0x422   :  { %6716 = vmatmul.bf16.vlgmr.msrb.gmra.mxu1 %v19869_v26  ;;  %v14127_v58 = vld [vmem:[#allocation2 + $0x510] sm:$0xf]  ;;  %v13872_v29 = vor.u32 %v18316_v52, %v13871_v3 }
 0x423   :  { %6743 = vmatpush.bf16.msrb.mxu3 %v15276_v5  ;;  %6764 = vmatpush.bf16.msra.mxu1 %v13968_v32  ;;  %v14128_v42 = vor.u32 %v18380_v63, %v14127_v58  ;;  %v18244_v5 = vld [vmem:[#allocation2 + $0xec] sm:$0xf0]  ;;  %v14384_v32 = vor.u32 %v18444_v33, %v14383_v14  ;;  %v6482_v47 = vadd.f32 %v6481_v37, %v6468_v18 }
 0x424   :  { %6730 = vmatmul.bf16.vlgmr.msrb.gmra.mxu2 %v19863_v1  ;;  %v13839_v40 = vld [vmem:[#allocation2 + $0x2d0] sm:$0xf]  ;;  %v13584_v22 = vor.u32 %v18244_v5, %v13583_v61 }
 0x425   :  { %6778 = vmatpush.bf16.msra.mxu2 %v14224_v16  ;;  %6751 = vmatpush.bf16.msra.mxu0 %v13680_v21  ;;  %v6494_v16 = vadd.f32 %v6493_v39, %v6480_v46  ;;  %v14095_v25 = vld [vmem:[#allocation2 + $0x4d0] sm:$0xf]  ;;  %v13840_v17 = vor.u32 %v18308_v20, %v13839_v40  ;;  %v6496_v46 = vadd.f32 %v6495_v0, %v6482_v47 }
 0x426   :  { %6744 = vmatmul.bf16.vlgmr.msrb.gmra.mxu3 %v19875_v34  ;;  %v18372_v28 = vld [vmem:[#allocation2 + $0x4ec] sm:$0xf0] }
 0x427   :  { %6792 = vmatpush.bf16.msra.mxu3 %v14480_v43  ;;  %6765 = vmatpush.bf16.msra.mxu1 %v13936_v10  ;;  %v14351_v60 = vld [vmem:[#allocation2 + $0x6d0] sm:$0xf]  ;;  %v14096_v15 = vor.u32 %v18372_v28, %v14095_v25  ;;  %v6507_v10 = vpop.f32.mrf.mxu2 }
 0x428   :  { %v18436_v43 = vld [vmem:[#allocation2 + $0x6ec] sm:$0xf0]  ;;  %v6508_v23 = vadd.f32 %v6507_v10, %v6494_v16 }
 0x429   :  { %6779 = vmatpush.bf16.msra.mxu2 %v14192_v50  ;;  %6752 = vmatpush.bf16.msra.mxu0 %v13648_v38  ;;  %v13551_v11 = vld [vmem:[#allocation2 + $0x90] sm:$0xf]  ;;  %v14352_v24 = vor.u32 %v18436_v43, %v14351_v60 }
 0x42a   :  { %v18236_v62 = vld [vmem:[#allocation2 + $0xac] sm:$0xf0] }
 0x42b   :  { %6793 = vmatpush.bf16.msra.mxu3 %v14448_v54  ;;  %6766 = vmatpush.bf16.msra.mxu1 %v13904_v51  ;;  %v13807_v7 = vld [vmem:[#allocation2 + $0x290] sm:$0xf]  ;;  %v6521_v54 = vpop.f32.mrf.mxu3  ;;  %v13552_v45 = vor.u32 %v18236_v62, %v13551_v11 }
 0x42c   :  { %v18300_v21 = vld [vmem:[#allocation2 + $0x2ac] sm:$0xf0]  ;;  %v19929_v38 = vadd.f32 %v6521_v54, %v6508_v23 }
 0x42d   :  { %6780 = vmatpush.bf16.msra.mxu2 %v14160_v56  ;;  %6753 = vmatpush.bf16.msra.mxu0 %v13616_v35  ;;  %v14063_v50 = vld [vmem:[#allocation2 + $0x490] sm:$0xf]  ;;  %v13808_v6 = vor.u32 %v18300_v21, %v13807_v7 }
 0x42e   :  { %v18364_v13 = vld [vmem:[#allocation2 + $0x4ac] sm:$0xf0]  ;;  %v7199_v52 = vmax.f32 %v19929_v38, 0.0 }
 0x42f   :  { %6794 = vmatpush.bf16.msra.mxu3 %v14416_v12  ;;  %6767 = vmatpush.bf16.msra.mxu1 %v13872_v29  ;;  %v14319_v57 = vld [vmem:[#allocation2 + $0x690] sm:$0xf]  ;;  %v14064_v36 = vor.u32 %v18364_v13, %v14063_v50  ;;  %v6509_v5 = vpop.f32.mrf.mxu2 }
 0x430   :  { %v18428_v44 = vld [vmem:[#allocation2 + $0x6ac] sm:$0xf0]  ;;  %v6510_v20 = vadd.f32 %v6509_v5, %v6496_v46 }
 0x431   :  { %6781 = vmatpush.bf16.msra.mxu2 %v14128_v42  ;;  %6754 = vmatpush.bf16.msra.mxu0 %v13584_v22  ;;  %v13519_v48 = vld [vmem:[#allocation2 + $0x50] sm:$0xf]  ;;  %v14320_v49 = vor.u32 %v18428_v44, %v14319_v57 }
 0x432   :  { %v18228_v51 = vld [vmem:[#allocation2 + $0x6c] sm:$0xf0] }
 0x433   :  { %6795 = vmatpush.bf16.msra.mxu3 %v14384_v32  ;;  %6768 = vmatpush.bf16.msra.mxu1 %v13840_v17  ;;  %v13775_v56 = vld [vmem:[#allocation2 + $0x250] sm:$0xf]  ;;  %v13520_v53 = vor.u32 %v18228_v51, %v13519_v48  ;;  %v6523_v25 = vpop.f32.mrf.mxu3 }
 0x434   :  { %v18292_v2 = vld [vmem:[#allocation2 + $0x26c] sm:$0xf0] }
 0x435   :  { %6782 = vmatpush.bf16.msra.mxu2 %v14096_v15  ;;  %v14031_v3 = vld [vmem:[#allocation2 + $0x450] sm:$0xf]  ;;  %6755 = vmatpush.bf16.msra.mxu0 %v13552_v45  ;;  %v13776_v35 = vor.u32 %v18292_v2, %v13775_v56  ;;  %v19932_v15 = vadd.f32 %v6523_v25, %v6510_v20 }
 0x436   :  { %v18356_v12 = vld [vmem:[#allocation2 + $0x46c] sm:$0xf0] }
 0x437   :  { %6796 = vmatpush.bf16.msra.mxu3 %v14352_v24  ;;  %v14287_v58 = vld [vmem:[#allocation2 + $0x650] sm:$0xf]  ;;  %6769 = vmatpush.bf16.msra.mxu1 %v13808_v6  ;;  %v14032_v39 = vor.u32 %v18356_v12, %v14031_v3  ;;  %v7207_v23 = vmax.f32 %v19932_v15, 0.0 }
 0x438   :  { %v18420_v63 = vld [vmem:[#allocation2 + $0x66c] sm:$0xf0] }
 0x439   :  { %v13487_v14 = vld [vmem:[#allocation2 + $0x10] sm:$0xf]  ;;  %6783 = vmatpush.bf16.msra.mxu2 %v14064_v36  ;;  %v14288_v61 = vor.u32 %v18420_v63, %v14287_v58  ;;  %6756 = vmatpush.bf16.msra.mxu0 %v13520_v53 }
 0x43a   :  { %v18220_v33 = vld [vmem:[#allocation2 + $0x2c] sm:$0xf0] }
 0x43b   :  { %v13743_v41 = vld [vmem:[#allocation2 + $0x210] sm:$0xf]  ;;  %6797 = vmatpush.bf16.msra.mxu3 %v14320_v49  ;;  %v13488_v22 = vor.u32 %v18220_v33, %v13487_v14  ;;  %6770 = vmatpush.bf16.msra.mxu1 %v13776_v35 }
 0x43c   :  { %v18284_v29 = vld [vmem:[#allocation2 + $0x22c] sm:$0xf0] }
 0x43d   :  { %v13999_v42 = vld [vmem:[#allocation2 + $0x410] sm:$0xf]  ;;  %6784 = vmatpush.bf16.msra.mxu2 %v14032_v39  ;;  %v13744_v62 = vor.u32 %v18284_v29, %v13743_v41  ;;  %6757 = vmatpush.bf16.msra.mxu0 %v13488_v22  ;;  %v19939_v39 = vld [vmem:[#allocation12] sm:$0xff] }
 0x43e   :  { %v18348_v40 = vld [vmem:[#allocation2 + $0x42c] sm:$0xf0]  ;;  %v3728_v41 = vperm.slane %v19939_v39, 2 }
 0x43f   :  { %v14255_v32 = vld [vmem:[#allocation2 + $0x610] sm:$0xf]  ;;  %v14000_v7 = vor.u32 %v18348_v40, %v13999_v42  ;;  %6798 = vmatpush.bf16.msra.mxu3 %v14288_v61  ;;  %6771 = vmatpush.bf16.msra.mxu1 %v13744_v62 }
 0x440   :  { %v18412_v16 = vld [vmem:[#allocation2 + $0x62c] sm:$0xf0]  ;;  %6758 = vmatmul.bf16.vlgmr.msra.gmra.mxu0 %v19829_v27 }
 0x441   :  { %v14735_v28 = vld [vmem:[#allocation2 + $0x9d0] sm:$0xf]  ;;  %v14256_v10 = vor.u32 %v18412_v16, %v14255_v32  ;;  %6785 = vmatpush.bf16.msra.mxu2 %v14000_v7 }
 0x442   :  { %v18532_v60 = vld [vmem:[#allocation2 + $0x9ec] sm:$0xf0]  ;;  %6772 = vmatmul.bf16.vlgmr.msra.gmra.mxu1 %v19841_v9 }
 0x443   :  { %v14991_v43 = vld [vmem:[#allocation2 + $0xbd0] sm:$0xf]  ;;  %v14736_v50 = vor.u32 %v18532_v60, %v14735_v28  ;;  %6799 = vmatpush.bf16.msra.mxu3 %v14256_v10 }
 0x444   :  { %v18596_v11 = vld [vmem:[#allocation2 + $0xbec] sm:$0xf0]  ;;  %6786 = vmatmul.bf16.vlgmr.msra.gmra.mxu2 %v19835_v8 }
 0x445   :  { %v15247_v18 = vld [vmem:[#allocation2 + $0xdd0] sm:$0xf]  ;;  %v14992_v37 = vor.u32 %v18596_v11, %v14991_v43  ;;  %6806 = vmatpush.bf16.msrb.mxu0 %v14736_v50  ;;  %v6535_v43 = vpop.f32.mrf.mxu0 }
 0x446   :  { %v18660_v17 = vld [vmem:[#allocation2 + $0xdec] sm:$0xf0]  ;;  %6800 = vmatmul.bf16.vlgmr.msra.gmra.mxu3 %v19847_v19  ;;  %v6536_v11 = vadd.f32 %v6535_v43, %v3728_v41 }
 0x447   :  { %v15503_v21 = vld [vmem:[#allocation2 + $0xfd0] sm:$0xf]  ;;  %v15248_v54 = vor.u32 %v18660_v17, %v15247_v18  ;;  %6820 = vmatpush.bf16.msrb.mxu1 %v14992_v37  ;;  %v6549_v18 = vpop.f32.mrf.mxu1 }
 0x448   :  { %v18724_v24 = vld [vmem:[#allocation2 + $0xfec] sm:$0xf0] }
 0x449   :  { %v14703_v13 = vld [vmem:[#allocation2 + $0x990] sm:$0xf]  ;;  %v15504_v45 = vor.u32 %v18724_v24, %v15503_v21  ;;  %6834 = vmatpush.bf16.msrb.mxu2 %v15248_v54  ;;  %v6550_v54 = vadd.f32 %v6549_v18, %v6536_v11 }
 0x44a   :  { %v18524_v57 = vld [vmem:[#allocation2 + $0x9ac] sm:$0xf0] }
 0x44b   :  { %v14959_v44 = vld [vmem:[#allocation2 + $0xb90] sm:$0xf]  ;;  %v14704_v56 = vor.u32 %v18524_v57, %v14703_v13  ;;  %6848 = vmatpush.bf16.msrb.mxu3 %v15504_v45 }
 0x44c   :  { %v18588_v6 = vld [vmem:[#allocation2 + $0xbac] sm:$0xf0] }
 0x44d   :  { %v15215_v47 = vld [vmem:[#allocation2 + $0xd90] sm:$0xf]  ;;  %v14960_v49 = vor.u32 %v18588_v6, %v14959_v44  ;;  %6807 = vmatpush.bf16.msrb.mxu0 %v14704_v56 }
 0x44e   :  { %v18652_v36 = vld [vmem:[#allocation2 + $0xdac] sm:$0xf0] }
 0x44f   :  { %v15471_v48 = vld [vmem:[#allocation2 + $0xf90] sm:$0xf]  ;;  %v15216_v0 = vor.u32 %v18652_v36, %v15215_v47  ;;  %6821 = vmatpush.bf16.msrb.mxu1 %v14960_v49 }
 0x450   :  { %v18716_v51 = vld [vmem:[#allocation2 + $0xfac] sm:$0xf0] }
 0x451   :  { %v14671_v2 = vld [vmem:[#allocation2 + $0x950] sm:$0xf]  ;;  %v15472_v58 = vor.u32 %v18716_v51, %v15471_v48  ;;  %6835 = vmatpush.bf16.msrb.mxu2 %v15216_v0 }
 0x452   :  { %v18516_v3 = vld [vmem:[#allocation2 + $0x96c] sm:$0xf0] }
 0x453   :  { %v14927_v12 = vld [vmem:[#allocation2 + $0xb50] sm:$0xf]  ;;  %v14672_v35 = vor.u32 %v18516_v3, %v14671_v2  ;;  %6849 = vmatpush.bf16.msrb.mxu3 %v15472_v58  ;;  %v6563_v3 = vpop.f32.mrf.mxu2 }
 0x454   :  { %v18580_v63 = vld [vmem:[#allocation2 + $0xb6c] sm:$0xf0] }
 0x455   :  { %v15183_v53 = vld [vmem:[#allocation2 + $0xd50] sm:$0xf]  ;;  %v14928_v29 = vor.u32 %v18580_v63, %v14927_v12  ;;  %6808 = vmatpush.bf16.msrb.mxu0 %v14672_v35  ;;  %v6564_v63 = vadd.f32 %v6563_v3, %v6550_v54  ;;  %v14481_v3 = vld [vmem:[#allocation2 + $0x7f0] sm:$0xf0] }
 0x456   :  { %v18644_v14 = vld [vmem:[#allocation2 + $0xd6c] sm:$0xf0] }
 0x457   :  { %v15439_v33 = vld [vmem:[#allocation2 + $0xf50] sm:$0xf]  ;;  %v15184_v42 = vor.u32 %v18644_v14, %v15183_v53  ;;  %6822 = vmatpush.bf16.msrb.mxu1 %v14928_v29  ;;  %v6537_v53 = vpop.f32.mrf.mxu0  ;;  %v6577_v14 = vpop.f32.mrf.mxu3 }
 0x458   :  { %v18708_v46 = vld [vmem:[#allocation2 + $0xf6c] sm:$0xf0] }
 0x459   :  { %v14639_v61 = vld [vmem:[#allocation2 + $0x910] sm:$0xf]  ;;  %v15440_v32 = vor.u32 %v18708_v46, %v15439_v33  ;;  %6836 = vmatpush.bf16.msrb.mxu2 %v15184_v42  ;;  %v6538_v46 = vadd.f32 %v6537_v53, %v3728_v41 }
 0x45a   :  { %v18508_v5 = vld [vmem:[#allocation2 + $0x92c] sm:$0xf0] }
 0x45b   :  { %v14895_v40 = vld [vmem:[#allocation2 + $0xb10] sm:$0xf]  ;;  %v14640_v22 = vor.u32 %v18508_v5, %v14639_v61  ;;  %6850 = vmatpush.bf16.msrb.mxu3 %v15440_v32  ;;  %v6551_v32 = vpop.f32.mrf.mxu1  ;;  %v6565_v54 = vpop.f32.mrf.mxu2 }
 0x45c   :  { %v18572_v16 = vld [vmem:[#allocation2 + $0xb2c] sm:$0xf0] }
 0x45d   :  { %v15151_v20 = vld [vmem:[#allocation2 + $0xd10] sm:$0xf]  ;;  %v14896_v17 = vor.u32 %v18572_v16, %v14895_v40  ;;  %6809 = vmatpush.bf16.msrb.mxu0 %v14640_v22  ;;  %v19942_v40 = vadd.f32 %v6577_v14, %v6564_v63 }
 0x45e   :  { %v18636_v25 = vld [vmem:[#allocation2 + $0xd2c] sm:$0xf0] }
 0x45f   :  { %v15407_v28 = vld [vmem:[#allocation2 + $0xf10] sm:$0xf]  ;;  %v15152_v62 = vor.u32 %v18636_v25, %v15151_v20  ;;  %6823 = vmatpush.bf16.msrb.mxu1 %v14896_v17 }
 0x460   :  { %v18700_v60 = vld [vmem:[#allocation2 + $0xf2c] sm:$0xf0] }
 0x461   :  { %v14607_v7 = vld [vmem:[#allocation2 + $0x8d0] sm:$0xf]  ;;  %v15408_v10 = vor.u32 %v18700_v60, %v15407_v28  ;;  %6837 = vmatpush.bf16.msrb.mxu2 %v15152_v62  ;;  %v6552_v60 = vadd.f32 %v6551_v32, %v6538_v46  ;;  %v13681_v46 = vld [vmem:[#allocation2 + $0x1b0] sm:$0xf0] }
 0x462   :  { %v18500_v21 = vld [vmem:[#allocation2 + $0x8ec] sm:$0xf0]  ;;  %v18456_v32 = vld [vmem:[#allocation2 + $0x794] sm:$0xf] }
 0x463   :  { %v14863_v24 = vld [vmem:[#allocation2 + $0xad0] sm:$0xf]  ;;  %v14608_v45 = vor.u32 %v18500_v21, %v14607_v7  ;;  %6851 = vmatpush.bf16.msrb.mxu3 %v15408_v10 }
 0x464   :  { %v18564_v50 = vld [vmem:[#allocation2 + $0xaec] sm:$0xf0] }
 0x465   :  { %v15119_v13 = vld [vmem:[#allocation2 + $0xcd0] sm:$0xf]  ;;  %v14864_v6 = vor.u32 %v18564_v50, %v14863_v24  ;;  %6810 = vmatpush.bf16.msrb.mxu0 %v14608_v45  ;;  %v18336_v45 = vld [vmem:[#allocation2 + $0x3d4] sm:$0xf] }
 0x466   :  { %v18628_v37 = vld [vmem:[#allocation2 + $0xcec] sm:$0xf0] }
 0x467   :  { %v15375_v57 = vld [vmem:[#allocation2 + $0xed0] sm:$0xf]  ;;  %v15120_v47 = vor.u32 %v18628_v37, %v15119_v13  ;;  %6824 = vmatpush.bf16.msrb.mxu1 %v14864_v6  ;;  %v6566_v6 = vadd.f32 %v6565_v54, %v6552_v60  ;;  %v18256_v60 = vld [vmem:[#allocation2 + $0x154] sm:$0xf] }
 0x468   :  { %v18692_v44 = vld [vmem:[#allocation2 + $0xeec] sm:$0xf0] }
 0x469   :  { %v14575_v36 = vld [vmem:[#allocation2 + $0x890] sm:$0xf]  ;;  %v15376_v56 = vor.u32 %v18692_v44, %v15375_v57  ;;  %6838 = vmatpush.bf16.msrb.mxu2 %v15120_v47  ;;  %v18272_v57 = vld [vmem:[#allocation2 + $0x1d4] sm:$0xf] }
 0x46a   :  { %v18492_v48 = vld [vmem:[#allocation2 + $0x8ac] sm:$0xf0]  ;;  %v13713_v44 = vld [vmem:[#allocation2 + $0x1f0] sm:$0xf0] }
 0x46b   :  { %v14831_v51 = vld [vmem:[#allocation2 + $0xa90] sm:$0xf]  ;;  %v14576_v33 = vor.u32 %v18492_v48, %v14575_v36  ;;  %6852 = vmatpush.bf16.msrb.mxu3 %v15376_v56  ;;  %v13969_v36 = vld [vmem:[#allocation2 + $0x3f0] sm:$0xf0]  ;;  %v6579_v56 = vpop.f32.mrf.mxu3  ;;  %v13716_v63 = vor.u32 %v18272_v57, %v13713_v44 }
 0x46c   :  { %v18556_v49 = vld [vmem:[#allocation2 + $0xaac] sm:$0xf0]  ;;  %v18400_v48 = vld [vmem:[#allocation2 + $0x5d4] sm:$0xf]  ;;  %v13972_v53 = vor.u32 %v18336_v45, %v13969_v36 }
 0x46d   :  { %v15087_v0 = vld [vmem:[#allocation2 + $0xc90] sm:$0xf]  ;;  %v14832_v35 = vor.u32 %v18556_v49, %v14831_v51  ;;  %6811 = vmatpush.bf16.msrb.mxu0 %v14576_v33  ;;  %v14225_v51 = vld [vmem:[#allocation2 + $0x5f0] sm:$0xf0] }
 0x46e   :  { %v18620_v2 = vld [vmem:[#allocation2 + $0xcac] sm:$0xf0]  ;;  %v14228_v14 = vor.u32 %v18400_v48, %v14225_v51  ;;  %v18264_v33 = vld [vmem:[#allocation2 + $0x194] sm:$0xf] }
 0x46f   :  { %v15343_v12 = vld [vmem:[#allocation2 + $0xe90] sm:$0xf]  ;;  %v15088_v29 = vor.u32 %v18620_v2, %v15087_v0  ;;  %6825 = vmatpush.bf16.msrb.mxu1 %v14832_v35  ;;  %v18464_v2 = vld [vmem:[#allocation2 + $0x7d4] sm:$0xf] }
 0x470   :  { %v18684_v58 = vld [vmem:[#allocation2 + $0xeac] sm:$0xf0]  ;;  %v18328_v35 = vld [vmem:[#allocation2 + $0x394] sm:$0xf] }
 0x471   :  { %v14543_v42 = vld [vmem:[#allocation2 + $0x850] sm:$0xf]  ;;  %v15344_v16 = vor.u32 %v18684_v58, %v15343_v12  ;;  %6839 = vmatpush.bf16.msrb.mxu2 %v15088_v29  ;;  %v19944_v12 = vadd.f32 %v6579_v56, %v6566_v6  ;;  %v14484_v29 = vor.u32 %v18464_v2, %v14481_v3  ;;  %v13873_v57 = vld [vmem:[#allocation2 + $0x330] sm:$0xf0]  ;;  %v6591_v6 = vpop.f32.mrf.mxu0  ;;  %v6605_v56 = vpop.f32.mrf.mxu1 }
 0x472   :  { %v18484_v61 = vld [vmem:[#allocation2 + $0x86c] sm:$0xf0]  ;;  %v18376_v44 = vld [vmem:[#allocation2 + $0x514] sm:$0xf]  ;;  %v6592_v48 = vadd.f32 %v6591_v6, %v19942_v40 }
 0x473   :  { %v14799_v5 = vld [vmem:[#allocation2 + $0xa50] sm:$0xf]  ;;  %v14544_v41 = vor.u32 %v18484_v61, %v14543_v42  ;;  %6853 = vmatpush.bf16.msrb.mxu3 %v15344_v16  ;;  %v13937_v42 = vld [vmem:[#allocation2 + $0x3b0] sm:$0xf0] }
 0x474   :  { %v18548_v20 = vld [vmem:[#allocation2 + $0xa6c] sm:$0xf0]  ;;  %v18392_v61 = vld [vmem:[#allocation2 + $0x594] sm:$0xf] }
 0x475   :  { %v15055_v25 = vld [vmem:[#allocation2 + $0xc50] sm:$0xf]  ;;  %v14800_v17 = vor.u32 %v18548_v20, %v14799_v5  ;;  %6812 = vmatpush.bf16.msrb.mxu0 %v14544_v41  ;;  %v14193_v5 = vld [vmem:[#allocation2 + $0x5b0] sm:$0xf0]  ;;  %v13684_v20 = vor.u32 %v18264_v33, %v13681_v46 }
 0x476   :  { %v18612_v28 = vld [vmem:[#allocation2 + $0xc6c] sm:$0xf0]  ;;  %v14449_v16 = vld [vmem:[#allocation2 + $0x7b0] sm:$0xf0] }
 0x477   :  { %v15311_v43 = vld [vmem:[#allocation2 + $0xe50] sm:$0xf]  ;;  %v15056_v62 = vor.u32 %v18612_v28, %v15055_v25  ;;  %6826 = vmatpush.bf16.msrb.mxu1 %v14800_v17  ;;  %v13940_v25 = vor.u32 %v18328_v35, %v13937_v42  ;;  %v14196_v28 = vor.u32 %v18392_v61, %v14193_v5  ;;  %v14452_v41 = vor.u32 %v18456_v32, %v14449_v16  ;;  %v14161_v17 = vld [vmem:[#allocation2 + $0x570] sm:$0xf0] }
 0x478   :  { %v18676_v22 = vld [vmem:[#allocation2 + $0xe6c] sm:$0xf0]  ;;  %v14129_v45 = vld [vmem:[#allocation2 + $0x530] sm:$0xf0] }
 0x479   :  { %v14511_v11 = vld [vmem:[#allocation2 + $0x810] sm:$0xf]  ;;  %v15312_v10 = vor.u32 %v18676_v22, %v15311_v43  ;;  %6840 = vmatpush.bf16.msrb.mxu2 %v15056_v62  ;;  %v13649_v43 = vld [vmem:[#allocation2 + $0x170] sm:$0xf0] }
 0x47a   :  { %v18476_v18 = vld [vmem:[#allocation2 + $0x82c] sm:$0xf0]  ;;  %v18320_v22 = vld [vmem:[#allocation2 + $0x354] sm:$0xf] }
 0x47b   :  { %v14767_v7 = vld [vmem:[#allocation2 + $0xa10] sm:$0xf]  ;;  %v14512_v47 = vor.u32 %v18476_v18, %v14511_v11  ;;  %6854 = vmatpush.bf16.msrb.mxu3 %v15312_v10  ;;  %v13905_v11 = vld [vmem:[#allocation2 + $0x370] sm:$0xf0] }
 0x47c   :  { %v18540_v21 = vld [vmem:[#allocation2 + $0xa2c] sm:$0xf0]  ;;  %v18384_v18 = vld [vmem:[#allocation2 + $0x554] sm:$0xf] }
 0x47d   :  { %v15023_v24 = vld [vmem:[#allocation2 + $0xc10] sm:$0xf]  ;;  %v14768_v49 = vor.u32 %v18540_v21, %v14767_v7  ;;  %6813 = vmatpush.bf16.msrb.mxu0 %v14512_v47  ;;  %v18448_v62 = vld [vmem:[#allocation2 + $0x754] sm:$0xf]  ;;  %v13652_v21 = vor.u32 %v18256_v60, %v13649_v43  ;;  %v14164_v10 = vor.u32 %v18384_v18, %v14161_v17 }
 0x47e   :  { %v18604_v50 = vld [vmem:[#allocation2 + $0xc2c] sm:$0xf0]  ;;  %v14417_v7 = vld [vmem:[#allocation2 + $0x770] sm:$0xf0] }
 0x47f   :  { %v15279_v13 = vld [vmem:[#allocation2 + $0xe10] sm:$0xf]  ;;  %v15024_v0 = vor.u32 %v18604_v50, %v15023_v24  ;;  %6827 = vmatpush.bf16.msrb.mxu1 %v14768_v49  ;;  %v13908_v24 = vor.u32 %v18320_v22, %v13905_v11  ;;  %v18248_v50 = vld [vmem:[#allocation2 + $0x114] sm:$0xf]  ;;  %v14420_v54 = vor.u32 %v18448_v62, %v14417_v7  ;;  %v6633_v11 = vpop.f32.mrf.mxu3 }
 0x480   :  { %v18668_v37 = vld [vmem:[#allocation2 + $0xe2c] sm:$0xf0]  ;;  %6814 = vmatmul.bf16.vlgmr.msrb.gmra.mxu0 %v19857_v55  ;;  %v18440_v47 = vld [vmem:[#allocation2 + $0x714] sm:$0xf] }
 0x481   :  { %v15280_v58 = vor.u32 %v18668_v37, %v15279_v13  ;;  %6841 = vmatpush.bf16.msrb.mxu2 %v15024_v0  ;;  %6862 = vmatpush.bf16.msra.mxu0 %v13716_v63  ;;  %v13617_v13 = vld [vmem:[#allocation2 + $0x130] sm:$0xf0]  ;;  %v14132_v0 = vor.u32 %v18376_v44, %v14129_v45 }
 0x482   :  { %6828 = vmatmul.bf16.vlgmr.msrb.gmra.mxu1 %v19869_v26  ;;  %v18312_v37 = vld [vmem:[#allocation2 + $0x314] sm:$0xf]  ;;  %v13620_v51 = vor.u32 %v18248_v50, %v13617_v13 }
 0x483   :  { %6855 = vmatpush.bf16.msrb.mxu3 %v15280_v58  ;;  %6876 = vmatpush.bf16.msra.mxu1 %v13972_v53  ;;  %v14385_v36 = vld [vmem:[#allocation2 + $0x730] sm:$0xf0]  ;;  %v13876_v49 = vor.u32 %v18312_v37, %v13873_v57  ;;  %v6606_v53 = vadd.f32 %v6605_v56, %v6592_v48 }
 0x484   :  { %6842 = vmatmul.bf16.vlgmr.msrb.gmra.mxu2 %v19863_v1  ;;  %v18240_v2 = vld [vmem:[#allocation2 + $0xd4] sm:$0xf]  ;;  %v14388_v63 = vor.u32 %v18440_v47, %v14385_v36 }
 0x485   :  { %6890 = vmatpush.bf16.msra.mxu2 %v14228_v14  ;;  %6863 = vmatpush.bf16.msra.mxu0 %v13684_v20  ;;  %v13585_v3 = vld [vmem:[#allocation2 + $0xf0] sm:$0xf0] }
 0x486   :  { %6856 = vmatmul.bf16.vlgmr.msrb.gmra.mxu3 %v19875_v34  ;;  %v18304_v58 = vld [vmem:[#allocation2 + $0x2d4] sm:$0xf]  ;;  %v13588_v42 = vor.u32 %v18240_v2, %v13585_v3 }
 0x487   :  { %6904 = vmatpush.bf16.msra.mxu3 %v14484_v29  ;;  %6877 = vmatpush.bf16.msra.mxu1 %v13940_v25  ;;  %v13841_v14 = vld [vmem:[#allocation2 + $0x2f0] sm:$0xf0]  ;;  %v6619_v25 = vpop.f32.mrf.mxu2 }
 0x488   :  { %v18368_v33 = vld [vmem:[#allocation2 + $0x4d4] sm:$0xf]  ;;  %v13844_v40 = vor.u32 %v18304_v58, %v13841_v14  ;;  %v6620_v22 = vadd.f32 %v6619_v25, %v6606_v53 }
 0x489   :  { %6891 = vmatpush.bf16.msra.mxu2 %v14196_v28  ;;  %6864 = vmatpush.bf16.msra.mxu0 %v13652_v21  ;;  %v14097_v46 = vld [vmem:[#allocation2 + $0x4f0] sm:$0xf0]  ;;  %v6607_v21 = vpop.f32.mrf.mxu1 }
 0x48a   :  { %v18432_v35 = vld [vmem:[#allocation2 + $0x6d4] sm:$0xf]  ;;  %v14100_v61 = vor.u32 %v18368_v33, %v14097_v46 }
 0x48b   :  { %6905 = vmatpush.bf16.msra.mxu3 %v14452_v41  ;;  %6878 = vmatpush.bf16.msra.mxu1 %v13908_v24  ;;  %v14353_v29 = vld [vmem:[#allocation2 + $0x6f0] sm:$0xf0]  ;;  %v6593_v41 = vpop.f32.mrf.mxu0  ;;  %v19952_v24 = vadd.f32 %v6633_v11, %v6620_v22 }
 0x48c   :  { %v18232_v5 = vld [vmem:[#allocation2 + $0x94] sm:$0xf]  ;;  %v14356_v20 = vor.u32 %v18432_v35, %v14353_v29  ;;  %v6594_v62 = vadd.f32 %v6593_v41, %v19944_v12 }
 0x48d   :  { %6892 = vmatpush.bf16.msra.mxu2 %v14164_v10  ;;  %6865 = vmatpush.bf16.msra.mxu0 %v13620_v51  ;;  %v13553_v32 = vld [vmem:[#allocation2 + $0xb0] sm:$0xf0]  ;;  %v7200_v36 = vmax.f32 %v19952_v24, 0.0 }
 0x48e   :  { %v18296_v16 = vld [vmem:[#allocation2 + $0x294] sm:$0xf]  ;;  %v13556_v7 = vor.u32 %v18232_v5, %v13553_v32  ;;  %v6608_v44 = vadd.f32 %v6607_v21, %v6594_v62 }
 0x48f   :  { %6906 = vmatpush.bf16.msra.mxu3 %v14420_v54  ;;  %6879 = vmatpush.bf16.msra.mxu1 %v13876_v49  ;;  %v13809_v28 = vld [vmem:[#allocation2 + $0x2b0] sm:$0xf0]  ;;  %v6621_v14 = vpop.f32.mrf.mxu2 }
 0x490   :  { %v18360_v60 = vld [vmem:[#allocation2 + $0x494] sm:$0xf]  ;;  %v13812_v10 = vor.u32 %v18296_v16, %v13809_v28  ;;  %v6622_v29 = vadd.f32 %v6621_v14, %v6608_v44  ;;  %v3729_v14 = vperm.slane %v19939_v39, 3 }
 0x491   :  { %6893 = vmatpush.bf16.msra.mxu2 %v14132_v0  ;;  %v14065_v43 = vld [vmem:[#allocation2 + $0x4b0] sm:$0xf0]  ;;  %6866 = vmatpush.bf16.msra.mxu0 %v13588_v42  ;;  %v6635_v42 = vpop.f32.mrf.mxu3 }
 0x492   :  { %v18424_v18 = vld [vmem:[#allocation2 + $0x694] sm:$0xf]  ;;  %v14068_v50 = vor.u32 %v18360_v60, %v14065_v43  ;;  %v19955_v28 = vadd.f32 %v6635_v42, %v6622_v29 }
 0x493   :  { %6907 = vmatpush.bf16.msra.mxu3 %v14388_v63  ;;  %v14321_v17 = vld [vmem:[#allocation2 + $0x6b0] sm:$0xf0]  ;;  %6880 = vmatpush.bf16.msra.mxu1 %v13844_v40 }
 0x494   :  { %v18224_v13 = vld [vmem:[#allocation2 + $0x54] sm:$0xf]  ;;  %v14324_v57 = vor.u32 %v18424_v18, %v14321_v17  ;;  %v7208_v62 = vmax.f32 %v19955_v28, 0.0 }
 0x495   :  { %6894 = vmatpush.bf16.msra.mxu2 %v14100_v61  ;;  %v13521_v37 = vld [vmem:[#allocation2 + $0x70] sm:$0xf0]  ;;  %6867 = vmatpush.bf16.msra.mxu0 %v13556_v7 }
 0x496   :  { %v18288_v54 = vld [vmem:[#allocation2 + $0x254] sm:$0xf]  ;;  %v13524_v51 = vor.u32 %v18224_v13, %v13521_v37 }
 0x497   :  { %6908 = vmatpush.bf16.msra.mxu3 %v14356_v20  ;;  %v13777_v45 = vld [vmem:[#allocation2 + $0x270] sm:$0xf0]  ;;  %6881 = vmatpush.bf16.msra.mxu1 %v13812_v10 }
 0x498   :  { %v18352_v6 = vld [vmem:[#allocation2 + $0x454] sm:$0xf]  ;;  %v13780_v0 = vor.u32 %v18288_v54, %v13777_v45 }
 0x499   :  { %v14033_v47 = vld [vmem:[#allocation2 + $0x470] sm:$0xf0]  ;;  %6895 = vmatpush.bf16.msra.mxu2 %v14068_v50  ;;  %6868 = vmatpush.bf16.msra.mxu0 %v13524_v51 }
 0x49a   :  { %v18416_v12 = vld [vmem:[#allocation2 + $0x654] sm:$0xf]  ;;  %v14036_v2 = vor.u32 %v18352_v6, %v14033_v47 }
 0x49b   :  { %v14289_v48 = vld [vmem:[#allocation2 + $0x670] sm:$0xf0]  ;;  %6909 = vmatpush.bf16.msra.mxu3 %v14324_v57  ;;  %6882 = vmatpush.bf16.msra.mxu1 %v13780_v0 }
 0x49c   :  { %v18216_v56 = vld [vmem:[#allocation2 + $0x14] sm:$0xf]  ;;  %v14292_v53 = vor.u32 %v18416_v12, %v14289_v48 }
 0x49d   :  { %v13489_v49 = vld [vmem:[#allocation2 + $0x30] sm:$0xf0]  ;;  %6896 = vmatpush.bf16.msra.mxu2 %v14036_v2 }
 0x49e   :  { %v18280_v3 = vld [vmem:[#allocation2 + $0x214] sm:$0xf]  ;;  %v13492_v32 = vor.u32 %v18216_v56, %v13489_v49 }
 0x49f   :  { %v13745_v58 = vld [vmem:[#allocation2 + $0x230] sm:$0xf0]  ;;  %6910 = vmatpush.bf16.msra.mxu3 %v14292_v53 }
 0x4a0   :  { %v18344_v63 = vld [vmem:[#allocation2 + $0x414] sm:$0xf]  ;;  %v13748_v60 = vor.u32 %v18280_v3, %v13745_v58  ;;  %6869 = vmatpush.bf16.msra.mxu0 %v13492_v32 }
 0x4a1   :  { %v14001_v33 = vld [vmem:[#allocation2 + $0x430] sm:$0xf0] }
 0x4a2   :  { %v18408_v46 = vld [vmem:[#allocation2 + $0x614] sm:$0xf]  ;;  %v14004_v43 = vor.u32 %v18344_v63, %v14001_v33  ;;  %6883 = vmatpush.bf16.msra.mxu1 %v13748_v60 }
 0x4a3   :  { %v14257_v35 = vld [vmem:[#allocation2 + $0x630] sm:$0xf0]  ;;  %6870 = vmatmul.bf16.vlgmr.msra.gmra.mxu0 %v19829_v27 }
 0x4a4   :  { %v18528_v40 = vld [vmem:[#allocation2 + $0x9d4] sm:$0xf]  ;;  %v14260_v11 = vor.u32 %v18408_v46, %v14257_v35  ;;  %6897 = vmatpush.bf16.msra.mxu2 %v14004_v43 }
 0x4a5   :  { %v14737_v61 = vld [vmem:[#allocation2 + $0x9f0] sm:$0xf0]  ;;  %6884 = vmatmul.bf16.vlgmr.msra.gmra.mxu1 %v19841_v9 }
 0x4a6   :  { %v18592_v5 = vld [vmem:[#allocation2 + $0xbd4] sm:$0xf]  ;;  %v14740_v18 = vor.u32 %v18528_v40, %v14737_v61  ;;  %6911 = vmatpush.bf16.msra.mxu3 %v14260_v11 }
 0x4a7   :  { %v14993_v16 = vld [vmem:[#allocation2 + $0xbf0] sm:$0xf0]  ;;  %6898 = vmatmul.bf16.vlgmr.msra.gmra.mxu2 %v19835_v8 }
 0x4a8   :  { %v18656_v20 = vld [vmem:[#allocation2 + $0xdd4] sm:$0xf]  ;;  %v14996_v7 = vor.u32 %v18592_v5, %v14993_v16  ;;  %6918 = vmatpush.bf16.msrb.mxu0 %v14740_v18 }
 0x4a9   :  { %v15249_v25 = vld [vmem:[#allocation2 + $0xdf0] sm:$0xf0]  ;;  %6912 = vmatmul.bf16.vlgmr.msra.gmra.mxu3 %v19847_v19 }
 0x4aa   :  { %v18720_v22 = vld [vmem:[#allocation2 + $0xfd4] sm:$0xf]  ;;  %v15252_v21 = vor.u32 %v18656_v20, %v15249_v25  ;;  %6932 = vmatpush.bf16.msrb.mxu1 %v14996_v7  ;;  %v6647_v25 = vpop.f32.mrf.mxu0 }
 0x4ab   :  { %v15505_v41 = vld [vmem:[#allocation2 + $0xff0] sm:$0xf0]  ;;  %v6648_v43 = vadd.f32 %v6647_v25, %v3729_v14 }
 0x4ac   :  { %v18520_v17 = vld [vmem:[#allocation2 + $0x994] sm:$0xf]  ;;  %v15508_v13 = vor.u32 %v18720_v22, %v15505_v41  ;;  %6946 = vmatpush.bf16.msrb.mxu2 %v15252_v21  ;;  %v6661_v22 = vpop.f32.mrf.mxu1 }
 0x4ad   :  { %v14705_v10 = vld [vmem:[#allocation2 + $0x9b0] sm:$0xf0] }
 0x4ae   :  { %v18584_v50 = vld [vmem:[#allocation2 + $0xb94] sm:$0xf]  ;;  %v14708_v6 = vor.u32 %v18520_v17, %v14705_v10  ;;  %6960 = vmatpush.bf16.msrb.mxu3 %v15508_v13  ;;  %v6662_v13 = vadd.f32 %v6661_v22, %v6648_v43 }
 0x4af   :  { %v14961_v37 = vld [vmem:[#allocation2 + $0xbb0] sm:$0xf0] }
 0x4b0   :  { %v18648_v54 = vld [vmem:[#allocation2 + $0xd94] sm:$0xf]  ;;  %v14964_v47 = vor.u32 %v18584_v50, %v14961_v37  ;;  %6919 = vmatpush.bf16.msrb.mxu0 %v14708_v6 }
 0x4b1   :  { %v15217_v57 = vld [vmem:[#allocation2 + $0xdb0] sm:$0xf0] }
 0x4b2   :  { %v18712_v44 = vld [vmem:[#allocation2 + $0xf94] sm:$0xf]  ;;  %v15220_v12 = vor.u32 %v18648_v54, %v15217_v57  ;;  %6933 = vmatpush.bf16.msrb.mxu1 %v14964_v47 }
 0x4b3   :  { %v15473_v45 = vld [vmem:[#allocation2 + $0xfb0] sm:$0xf0] }
 0x4b4   :  { %v18512_v48 = vld [vmem:[#allocation2 + $0x954] sm:$0xf]  ;;  %v15476_v49 = vor.u32 %v18712_v44, %v15473_v45  ;;  %6947 = vmatpush.bf16.msrb.mxu2 %v15220_v12 }
 0x4b5   :  { %v14673_v51 = vld [vmem:[#allocation2 + $0x970] sm:$0xf0] }
 0x4b6   :  { %v18576_v56 = vld [vmem:[#allocation2 + $0xb54] sm:$0xf]  ;;  %v14676_v53 = vor.u32 %v18512_v48, %v14673_v51  ;;  %6961 = vmatpush.bf16.msrb.mxu3 %v15476_v49 }
 0x4b7   :  { %v14929_v0 = vld [vmem:[#allocation2 + $0xb70] sm:$0xf0] }
 0x4b8   :  { %v18640_v2 = vld [vmem:[#allocation2 + $0xd54] sm:$0xf]  ;;  %v14932_v33 = vor.u32 %v18576_v56, %v14929_v0  ;;  %6920 = vmatpush.bf16.msrb.mxu0 %v14676_v53  ;;  %v6675_v0 = vpop.f32.mrf.mxu2  ;;  %v6689_v53 = vpop.f32.mrf.mxu3 }
 0x4b9   :  { %v15185_v3 = vld [vmem:[#allocation2 + $0xd70] sm:$0xf0] }
 0x4ba   :  { %v18704_v58 = vld [vmem:[#allocation2 + $0xf54] sm:$0xf]  ;;  %v15188_v46 = vor.u32 %v18640_v2, %v15185_v3  ;;  %6934 = vmatpush.bf16.msrb.mxu1 %v14932_v33 }
 0x4bb   :  { %v15441_v63 = vld [vmem:[#allocation2 + $0xf70] sm:$0xf0] }
 0x4bc   :  { %v18504_v35 = vld [vmem:[#allocation2 + $0x914] sm:$0xf]  ;;  %v15444_v40 = vor.u32 %v18704_v58, %v15441_v63  ;;  %6948 = vmatpush.bf16.msrb.mxu2 %v15188_v46  ;;  %v6676_v58 = vadd.f32 %v6675_v0, %v6662_v13  ;;  %v6649_v63 = vpop.f32.mrf.mxu0 }
 0x4bd   :  { %v14641_v29 = vld [vmem:[#allocation2 + $0x930] sm:$0xf0]  ;;  %v6650_v46 = vadd.f32 %v6649_v63, %v3729_v14 }
 0x4be   :  { %v18568_v42 = vld [vmem:[#allocation2 + $0xb14] sm:$0xf]  ;;  %v14644_v60 = vor.u32 %v18504_v35, %v14641_v29  ;;  %6962 = vmatpush.bf16.msrb.mxu3 %v15444_v40 }
 0x4bf   :  { %v14897_v61 = vld [vmem:[#allocation2 + $0xb30] sm:$0xf0] }
 0x4c0   :  { %v18632_v5 = vld [vmem:[#allocation2 + $0xd14] sm:$0xf]  ;;  %v14900_v39 = vor.u32 %v18568_v42, %v14897_v61  ;;  %6921 = vmatpush.bf16.msrb.mxu0 %v14644_v60 }
 0x4c1   :  { %v15153_v32 = vld [vmem:[#allocation2 + $0xd30] sm:$0xf0] }
 0x4c2   :  { %v18696_v16 = vld [vmem:[#allocation2 + $0xf14] sm:$0xf]  ;;  %v15156_v41 = vor.u32 %v18632_v5, %v15153_v32  ;;  %6935 = vmatpush.bf16.msrb.mxu1 %v14900_v39  ;;  %v19963_v5 = vadd.f32 %v6689_v53, %v6676_v58  ;;  %v6663_v32 = vpop.f32.mrf.mxu1  ;;  %v18469_v58 = vld [vmem:[#allocation2 + $0x7f4] sm:$0xf0] }
 0x4c3   :  { %v15409_v20 = vld [vmem:[#allocation2 + $0xf30] sm:$0xf0]  ;;  %v6664_v43 = vadd.f32 %v6663_v32, %v6650_v46  ;;  %v18333_v32 = vld [vmem:[#allocation2 + $0x3b4] sm:$0xf0] }
 0x4c4   :  { %v18496_v11 = vld [vmem:[#allocation2 + $0x8d4] sm:$0xf]  ;;  %v15412_v7 = vor.u32 %v18696_v16, %v15409_v20  ;;  %6949 = vmatpush.bf16.msrb.mxu2 %v15156_v41 }
 0x4c5   :  { %v14609_v18 = vld [vmem:[#allocation2 + $0x8f0] sm:$0xf0] }
 0x4c6   :  { %v18560_v17 = vld [vmem:[#allocation2 + $0xad4] sm:$0xf]  ;;  %v14612_v57 = vor.u32 %v18496_v11, %v14609_v18  ;;  %6963 = vmatpush.bf16.msrb.mxu3 %v15412_v7 }
 0x4c7   :  { %v14865_v21 = vld [vmem:[#allocation2 + $0xaf0] sm:$0xf0] }
 0x4c8   :  { %v18624_v10 = vld [vmem:[#allocation2 + $0xcd4] sm:$0xf]  ;;  %v14868_v44 = vor.u32 %v18560_v17, %v14865_v21  ;;  %6922 = vmatpush.bf16.msrb.mxu0 %v14612_v57  ;;  %v6677_v57 = vpop.f32.mrf.mxu2 }
 0x4c9   :  { %v15121_v50 = vld [vmem:[#allocation2 + $0xcf0] sm:$0xf0] }
 0x4ca   :  { %v18688_v37 = vld [vmem:[#allocation2 + $0xed4] sm:$0xf]  ;;  %v15124_v45 = vor.u32 %v18624_v10, %v15121_v50  ;;  %6936 = vmatpush.bf16.msrb.mxu1 %v14868_v44  ;;  %v13719_v44 = vld [vmem:[#allocation2 + $0x1d8] sm:$0xf] }
 0x4cb   :  { %v15377_v54 = vld [vmem:[#allocation2 + $0xef0] sm:$0xf0] }
 0x4cc   :  { %v18488_v6 = vld [vmem:[#allocation2 + $0x894] sm:$0xf]  ;;  %v15380_v48 = vor.u32 %v18688_v37, %v15377_v54  ;;  %6950 = vmatpush.bf16.msrb.mxu2 %v15124_v45  ;;  %v18277_v45 = vld [vmem:[#allocation2 + $0x1f4] sm:$0xf0] }
 0x4cd   :  { %v14577_v47 = vld [vmem:[#allocation2 + $0x8b0] sm:$0xf0] }
 0x4ce   :  { %v18552_v12 = vld [vmem:[#allocation2 + $0xa94] sm:$0xf]  ;;  %v14580_v33 = vor.u32 %v18488_v6, %v14577_v47  ;;  %6964 = vmatpush.bf16.msrb.mxu3 %v15380_v48  ;;  %v13975_v6 = vld [vmem:[#allocation2 + $0x3d8] sm:$0xf]  ;;  %v6678_v47 = vadd.f32 %v6677_v57, %v6664_v43 }
 0x4cf   :  { %v14833_v51 = vld [vmem:[#allocation2 + $0xab0] sm:$0xf0]  ;;  %v18341_v48 = vld [vmem:[#allocation2 + $0x3f4] sm:$0xf0] }
 0x4d0   :  { %v18616_v56 = vld [vmem:[#allocation2 + $0xc94] sm:$0xf]  ;;  %v14836_v35 = vor.u32 %v18552_v12, %v14833_v51  ;;  %6923 = vmatpush.bf16.msrb.mxu0 %v14580_v33  ;;  %v14231_v51 = vld [vmem:[#allocation2 + $0x5d8] sm:$0xf]  ;;  %v13720_v33 = vor.u32 %v18277_v45, %v13719_v44  ;;  %v13976_v46 = vor.u32 %v18341_v48, %v13975_v6 }
 0x4d1   :  { %v15089_v49 = vld [vmem:[#allocation2 + $0xcb0] sm:$0xf0]  ;;  %v13623_v57 = vld [vmem:[#allocation2 + $0x118] sm:$0xf] }
 0x4d2   :  { %v18680_v2 = vld [vmem:[#allocation2 + $0xe94] sm:$0xf]  ;;  %v15092_v29 = vor.u32 %v18616_v56, %v15089_v49  ;;  %6937 = vmatpush.bf16.msrb.mxu1 %v14836_v35  ;;  %v18405_v56 = vld [vmem:[#allocation2 + $0x5f4] sm:$0xf0]  ;;  %v6691_v49 = vpop.f32.mrf.mxu3 }
 0x4d3   :  { %v15345_v3 = vld [vmem:[#allocation2 + $0xeb0] sm:$0xf0]  ;;  %v19965_v63 = vadd.f32 %v6691_v49, %v6678_v47  ;;  %v14232_v35 = vor.u32 %v18405_v56, %v14231_v51  ;;  %v18253_v44 = vld [vmem:[#allocation2 + $0x134] sm:$0xf0]  ;;  %v6703_v51 = vpop.f32.mrf.mxu0 }
 0x4d4   :  { %v18480_v42 = vld [vmem:[#allocation2 + $0x854] sm:$0xf]  ;;  %v15348_v16 = vor.u32 %v18680_v2, %v15345_v3  ;;  %6951 = vmatpush.bf16.msrb.mxu2 %v15092_v29  ;;  %v14487_v3 = vld [vmem:[#allocation2 + $0x7d8] sm:$0xf] }
 0x4d5   :  { %v14545_v40 = vld [vmem:[#allocation2 + $0x870] sm:$0xf0]  ;;  %v13687_v29 = vld [vmem:[#allocation2 + $0x198] sm:$0xf] }
 0x4d6   :  { %v18544_v61 = vld [vmem:[#allocation2 + $0xa54] sm:$0xf]  ;;  %v14548_v14 = vor.u32 %v18480_v42, %v14545_v40  ;;  %6965 = vmatpush.bf16.msrb.mxu3 %v15348_v16  ;;  %v18269_v42 = vld [vmem:[#allocation2 + $0x1b4] sm:$0xf0] }
 0x4d7   :  { %v14801_v20 = vld [vmem:[#allocation2 + $0xa70] sm:$0xf0]  ;;  %v13943_v40 = vld [vmem:[#allocation2 + $0x398] sm:$0xf]  ;;  %v13688_v43 = vor.u32 %v18269_v42, %v13687_v29 }
 0x4d8   :  { %v18608_v25 = vld [vmem:[#allocation2 + $0xc54] sm:$0xf]  ;;  %v14804_v18 = vor.u32 %v18544_v61, %v14801_v20  ;;  %6924 = vmatpush.bf16.msrb.mxu0 %v14548_v14  ;;  %v14488_v61 = vor.u32 %v18469_v58, %v14487_v3  ;;  %v14199_v16 = vld [vmem:[#allocation2 + $0x598] sm:$0xf]  ;;  %v6717_v3 = vpop.f32.mrf.mxu1 }
 0x4d9   :  { %v15057_v60 = vld [vmem:[#allocation2 + $0xc70] sm:$0xf0]  ;;  %v18397_v20 = vld [vmem:[#allocation2 + $0x5b4] sm:$0xf0] }
 0x4da   :  { %v18672_v22 = vld [vmem:[#allocation2 + $0xe54] sm:$0xf]  ;;  %v15060_v17 = vor.u32 %v18608_v25, %v15057_v60  ;;  %6938 = vmatpush.bf16.msrb.mxu1 %v14804_v18  ;;  %v14455_v25 = vld [vmem:[#allocation2 + $0x798] sm:$0xf] }
 0x4db   :  { %v15313_v39 = vld [vmem:[#allocation2 + $0xe70] sm:$0xf0]  ;;  %v18461_v60 = vld [vmem:[#allocation2 + $0x7b4] sm:$0xf0] }
 0x4dc   :  { %v18472_v41 = vld [vmem:[#allocation2 + $0x814] sm:$0xf]  ;;  %v15316_v50 = vor.u32 %v18672_v22, %v15313_v39  ;;  %6952 = vmatpush.bf16.msrb.mxu2 %v15060_v17  ;;  %v13944_v22 = vor.u32 %v18333_v32, %v13943_v40  ;;  %v14200_v39 = vor.u32 %v18397_v20, %v14199_v16  ;;  %v13655_v14 = vld [vmem:[#allocation2 + $0x158] sm:$0xf]  ;;  %v14456_v18 = vor.u32 %v18461_v60, %v14455_v25 }
 0x4dd   :  { %v14513_v11 = vld [vmem:[#allocation2 + $0x830] sm:$0xf0]  ;;  %v18325_v17 = vld [vmem:[#allocation2 + $0x374] sm:$0xf0] }
 0x4de   :  { %v18536_v7 = vld [vmem:[#allocation2 + $0xa14] sm:$0xf]  ;;  %v14516_v12 = vor.u32 %v18472_v41, %v14513_v11  ;;  %6966 = vmatpush.bf16.msrb.mxu3 %v15316_v50  ;;  %v18261_v41 = vld [vmem:[#allocation2 + $0x174] sm:$0xf0] }
 0x4df   :  { %v14769_v21 = vld [vmem:[#allocation2 + $0xa30] sm:$0xf0]  ;;  %v13911_v11 = vld [vmem:[#allocation2 + $0x358] sm:$0xf] }
 0x4e0   :  { %v18600_v10 = vld [vmem:[#allocation2 + $0xc14] sm:$0xf]  ;;  %v14772_v0 = vor.u32 %v18536_v7, %v14769_v21  ;;  %6925 = vmatpush.bf16.msrb.mxu0 %v14516_v12  ;;  %v14167_v7 = vld [vmem:[#allocation2 + $0x558] sm:$0xf] }
 0x4e1   :  { %v15025_v13 = vld [vmem:[#allocation2 + $0xc30] sm:$0xf0]  ;;  %v18389_v21 = vld [vmem:[#allocation2 + $0x574] sm:$0xf0] }
 0x4e2   :  { %v18664_v37 = vld [vmem:[#allocation2 + $0xe14] sm:$0xf]  ;;  %v15028_v2 = vor.u32 %v18600_v10, %v15025_v13  ;;  %6939 = vmatpush.bf16.msrb.mxu1 %v14772_v0  ;;  %v14423_v10 = vld [vmem:[#allocation2 + $0x758] sm:$0xf]  ;;  %v13656_v13 = vor.u32 %v18261_v41, %v13655_v14  ;;  %v6704_v0 = vadd.f32 %v6703_v51, %v19963_v5  ;;  %v6731_v41 = vpop.f32.mrf.mxu2 }
 0x4e3   :  { %v15281_v54 = vld [vmem:[#allocation2 + $0xe30] sm:$0xf0]  ;;  %6926 = vmatmul.bf16.vlgmr.msrb.gmra.mxu0 %v19857_v55  ;;  %v18453_v50 = vld [vmem:[#allocation2 + $0x774] sm:$0xf0] }
 0x4e4   :  { %v15284_v53 = vor.u32 %v18664_v37, %v15281_v54  ;;  %6953 = vmatpush.bf16.msrb.mxu2 %v15028_v2  ;;  %6974 = vmatpush.bf16.msra.mxu0 %v13720_v33  ;;  %v13912_v37 = vor.u32 %v18325_v17, %v13911_v11  ;;  %v14168_v54 = vor.u32 %v18389_v21, %v14167_v7  ;;  %v13879_v45 = vld [vmem:[#allocation2 + $0x318] sm:$0xf]  ;;  %v6705_v21 = vpop.f32.mrf.mxu0 }
 0x4e5   :  { %6940 = vmatmul.bf16.vlgmr.msrb.gmra.mxu1 %v19869_v26  ;;  %v14424_v6 = vor.u32 %v18453_v50, %v14423_v10  ;;  %v18317_v47 = vld [vmem:[#allocation2 + $0x334] sm:$0xf0]  ;;  %v13624_v2 = vor.u32 %v18253_v44, %v13623_v57  ;;  %v6718_v42 = vadd.f32 %v6717_v3, %v6704_v0  ;;  %v6745_v10 = vpop.f32.mrf.mxu3  ;;  %v6719_v57 = vpop.f32.mrf.mxu1 }
 0x4e6   :  { %6967 = vmatpush.bf16.msrb.mxu3 %v15284_v53  ;;  %6988 = vmatpush.bf16.msra.mxu1 %v13976_v46  ;;  %v14135_v12 = vld [vmem:[#allocation2 + $0x518] sm:$0xf]  ;;  %v13880_v58 = vor.u32 %v18317_v47, %v13879_v45 }
 0x4e7   :  { %6954 = vmatmul.bf16.vlgmr.msrb.gmra.mxu2 %v19863_v1  ;;  %v18381_v48 = vld [vmem:[#allocation2 + $0x534] sm:$0xf0]  ;;  %v6732_v7 = vadd.f32 %v6731_v41, %v6718_v42 }
 0x4e8   :  { %7002 = vmatpush.bf16.msra.mxu2 %v14232_v35  ;;  %6975 = vmatpush.bf16.msra.mxu0 %v13688_v43  ;;  %v14391_v56 = vld [vmem:[#allocation2 + $0x718] sm:$0xf]  ;;  %v14136_v53 = vor.u32 %v18381_v48, %v14135_v12 }
 0x4e9   :  { %6968 = vmatmul.bf16.vlgmr.msrb.gmra.mxu3 %v19875_v34  ;;  %v18445_v49 = vld [vmem:[#allocation2 + $0x734] sm:$0xf0]  ;;  %v19973_v44 = vadd.f32 %v6745_v10, %v6732_v7 }
 0x4ea   :  { %7016 = vmatpush.bf16.msra.mxu3 %v14488_v61  ;;  %6989 = vmatpush.bf16.msra.mxu1 %v13944_v22  ;;  %v13591_v33 = vld [vmem:[#allocation2 + $0xd8] sm:$0xf]  ;;  %v14392_v29 = vor.u32 %v18445_v49, %v14391_v56 }
 0x4eb   :  { %v18245_v46 = vld [vmem:[#allocation2 + $0xf4] sm:$0xf0]  ;;  %v7201_v3 = vmax.f32 %v19973_v44, 0.0 }
 0x4ec   :  { %7003 = vmatpush.bf16.msra.mxu2 %v14200_v39  ;;  %6976 = vmatpush.bf16.msra.mxu0 %v13656_v13  ;;  %v13847_v35 = vld [vmem:[#allocation2 + $0x2d8] sm:$0xf]  ;;  %v13592_v25 = vor.u32 %v18245_v46, %v13591_v33 }
 0x4ed   :  { %v18309_v40 = vld [vmem:[#allocation2 + $0x2f4] sm:$0xf0] }
 0x4ee   :  { %7017 = vmatpush.bf16.msra.mxu3 %v14456_v18  ;;  %6990 = vmatpush.bf16.msra.mxu1 %v13912_v37  ;;  %v14103_v61 = vld [vmem:[#allocation2 + $0x4d8] sm:$0xf]  ;;  %v13848_v5 = vor.u32 %v18309_v40, %v13847_v35  ;;  %v6706_v37 = vadd.f32 %v6705_v21, %v19965_v63 }
 0x4ef   :  { %v18373_v32 = vld [vmem:[#allocation2 + $0x4f4] sm:$0xf0] }
 0x4f0   :  { %7004 = vmatpush.bf16.msra.mxu2 %v14168_v54  ;;  %v14359_v16 = vld [vmem:[#allocation2 + $0x6d8] sm:$0xf]  ;;  %6977 = vmatpush.bf16.msra.mxu0 %v13624_v2  ;;  %v14104_v60 = vor.u32 %v18373_v32, %v14103_v61  ;;  %v6720_v56 = vadd.f32 %v6719_v57, %v6706_v37 }
 0x4f1   :  { %v18437_v20 = vld [vmem:[#allocation2 + $0x6f4] sm:$0xf0] }
 0x4f2   :  { %7018 = vmatpush.bf16.msra.mxu3 %v14424_v6  ;;  %6991 = vmatpush.bf16.msra.mxu1 %v13880_v58  ;;  %v13559_v43 = vld [vmem:[#allocation2 + $0x98] sm:$0xf]  ;;  %v14360_v14 = vor.u32 %v18437_v20, %v14359_v16  ;;  %v6733_v16 = vpop.f32.mrf.mxu2 }
 0x4f3   :  { %v18237_v22 = vld [vmem:[#allocation2 + $0xb4] sm:$0xf0] }
 0x4f4   :  { %7005 = vmatpush.bf16.msra.mxu2 %v14136_v53  ;;  %v13815_v39 = vld [vmem:[#allocation2 + $0x298] sm:$0xf]  ;;  %6978 = vmatpush.bf16.msra.mxu0 %v13592_v25  ;;  %v13560_v54 = vor.u32 %v18237_v22, %v13559_v43  ;;  %v6747_v43 = vpop.f32.mrf.mxu3 }
 0x4f5   :  { %v18301_v11 = vld [vmem:[#allocation2 + $0x2b4] sm:$0xf0] }
 0x4f6   :  { %7019 = vmatpush.bf16.msra.mxu3 %v14392_v29  ;;  %v14071_v18 = vld [vmem:[#allocation2 + $0x498] sm:$0xf]  ;;  %6992 = vmatpush.bf16.msra.mxu1 %v13848_v5  ;;  %v13816_v45 = vor.u32 %v18301_v11, %v13815_v39 }
 0x4f7   :  { %v18365_v17 = vld [vmem:[#allocation2 + $0x4b4] sm:$0xf0] }
 0x4f8   :  { %v14327_v50 = vld [vmem:[#allocation2 + $0x698] sm:$0xf]  ;;  %7006 = vmatpush.bf16.msra.mxu2 %v14104_v60  ;;  %v14072_v6 = vor.u32 %v18365_v17, %v14071_v18  ;;  %6979 = vmatpush.bf16.msra.mxu0 %v13560_v54  ;;  %v6734_v60 = vadd.f32 %v6733_v16, %v6720_v56 }
 0x4f9   :  { %v18429_v13 = vld [vmem:[#allocation2 + $0x6b4] sm:$0xf0] }
 0x4fa   :  { %v13527_v47 = vld [vmem:[#allocation2 + $0x58] sm:$0xf]  ;;  %7020 = vmatpush.bf16.msra.mxu3 %v14360_v14  ;;  %v14328_v51 = vor.u32 %v18429_v13, %v14327_v50  ;;  %6993 = vmatpush.bf16.msra.mxu1 %v13816_v45  ;;  %v19976_v7 = vadd.f32 %v6747_v43, %v6734_v60 }
 0x4fb   :  { %v18229_v12 = vld [vmem:[#allocation2 + $0x74] sm:$0xf0] }
 0x4fc   :  { %v13783_v48 = vld [vmem:[#allocation2 + $0x258] sm:$0xf]  ;;  %v13528_v53 = vor.u32 %v18229_v12, %v13527_v47  ;;  %7007 = vmatpush.bf16.msra.mxu2 %v14072_v6  ;;  %v7209_v45 = vmax.f32 %v19976_v7, 0.0 }
 0x4fd   :  { %v18293_v49 = vld [vmem:[#allocation2 + $0x274] sm:$0xf0] }
 0x4fe   :  { %v14039_v0 = vld [vmem:[#allocation2 + $0x458] sm:$0xf]  ;;  %v13784_v35 = vor.u32 %v18293_v49, %v13783_v48  ;;  %7021 = vmatpush.bf16.msra.mxu3 %v14328_v51  ;;  %6980 = vmatpush.bf16.msra.mxu0 %v13528_v53 }
 0x4ff   :  { %v18357_v2 = vld [vmem:[#allocation2 + $0x474] sm:$0xf0] }
 0x500   :  { %v14295_v63 = vld [vmem:[#allocation2 + $0x658] sm:$0xf]  ;;  %v14040_v29 = vor.u32 %v18357_v2, %v14039_v0  ;;  %6994 = vmatpush.bf16.msra.mxu1 %v13784_v35 }
 0x501   :  { %v18421_v58 = vld [vmem:[#allocation2 + $0x674] sm:$0xf0] }
 0x502   :  { %v13495_v33 = vld [vmem:[#allocation2 + $0x18] sm:$0xf]  ;;  %v14296_v32 = vor.u32 %v18421_v58, %v14295_v63  ;;  %7008 = vmatpush.bf16.msra.mxu2 %v14040_v29 }
 0x503   :  { %v18221_v46 = vld [vmem:[#allocation2 + $0x34] sm:$0xf0] }
 0x504   :  { %v13751_v42 = vld [vmem:[#allocation2 + $0x218] sm:$0xf]  ;;  %v13496_v41 = vor.u32 %v18221_v46, %v13495_v33  ;;  %7022 = vmatpush.bf16.msra.mxu3 %v14296_v32 }
 0x505   :  { %v18285_v40 = vld [vmem:[#allocation2 + $0x234] sm:$0xf0] }
 0x506   :  { %v14007_v61 = vld [vmem:[#allocation2 + $0x418] sm:$0xf]  ;;  %v13752_v21 = vor.u32 %v18285_v40, %v13751_v42  ;;  %6981 = vmatpush.bf16.msra.mxu0 %v13496_v41 }
 0x507   :  { %v18349_v20 = vld [vmem:[#allocation2 + $0x434] sm:$0xf0] }
 0x508   :  { %v14263_v25 = vld [vmem:[#allocation2 + $0x618] sm:$0xf]  ;;  %v14008_v10 = vor.u32 %v18349_v20, %v14007_v61  ;;  %6995 = vmatpush.bf16.msra.mxu1 %v13752_v21 }
 0x509   :  { %v18413_v5 = vld [vmem:[#allocation2 + $0x634] sm:$0xf0]  ;;  %6982 = vmatmul.bf16.vlgmr.msra.gmra.mxu0 %v19829_v27 }
 0x50a   :  { %v14743_v22 = vld [vmem:[#allocation2 + $0x9d8] sm:$0xf]  ;;  %v14264_v37 = vor.u32 %v18413_v5, %v14263_v25  ;;  %7009 = vmatpush.bf16.msra.mxu2 %v14008_v10 }
 0x50b   :  { %v18533_v39 = vld [vmem:[#allocation2 + $0x9f4] sm:$0xf0]  ;;  %6996 = vmatmul.bf16.vlgmr.msra.gmra.mxu1 %v19841_v9 }
 0x50c   :  { %v14999_v14 = vld [vmem:[#allocation2 + $0xbd8] sm:$0xf]  ;;  %v14744_v54 = vor.u32 %v18533_v39, %v14743_v22  ;;  %7023 = vmatpush.bf16.msra.mxu3 %v14264_v37 }
 0x50d   :  { %v18597_v11 = vld [vmem:[#allocation2 + $0xbf4] sm:$0xf0]  ;;  %7010 = vmatmul.bf16.vlgmr.msra.gmra.mxu2 %v19835_v8 }
 0x50e   :  { %v15255_v18 = vld [vmem:[#allocation2 + $0xdd8] sm:$0xf]  ;;  %v15000_v6 = vor.u32 %v18597_v11, %v14999_v14  ;;  %7030 = vmatpush.bf16.msrb.mxu0 %v14744_v54 }
 0x50f   :  { %v18661_v17 = vld [vmem:[#allocation2 + $0xdf4] sm:$0xf0]  ;;  %7024 = vmatmul.bf16.vlgmr.msra.gmra.mxu3 %v19847_v19 }
 0x510   :  { %v15511_v50 = vld [vmem:[#allocation2 + $0xfd8] sm:$0xf]  ;;  %v15256_v47 = vor.u32 %v18661_v17, %v15255_v18  ;;  %7044 = vmatpush.bf16.msrb.mxu1 %v15000_v6 }
 0x511   :  { %v18725_v13 = vld [vmem:[#allocation2 + $0xff4] sm:$0xf0] }
 0x512   :  { %v14711_v57 = vld [vmem:[#allocation2 + $0x998] sm:$0xf]  ;;  %v15512_v51 = vor.u32 %v18725_v13, %v15511_v50  ;;  %7058 = vmatpush.bf16.msrb.mxu2 %v15256_v47  ;;  %v6759_v13 = vpop.f32.mrf.mxu0 }
 0x513   :  { %v18525_v12 = vld [vmem:[#allocation2 + $0x9b4] sm:$0xf0] }
 0x514   :  { %v14967_v48 = vld [vmem:[#allocation2 + $0xb98] sm:$0xf]  ;;  %v14712_v58 = vor.u32 %v18525_v12, %v14711_v57  ;;  %7072 = vmatpush.bf16.msrb.mxu3 %v15512_v51  ;;  %v6773_v57 = vpop.f32.mrf.mxu1 }
 0x515   :  { %v18589_v56 = vld [vmem:[#allocation2 + $0xbb4] sm:$0xf0] }
 0x516   :  { %v15223_v49 = vld [vmem:[#allocation2 + $0xd98] sm:$0xf]  ;;  %v14968_v53 = vor.u32 %v18589_v56, %v14967_v48  ;;  %7031 = vmatpush.bf16.msrb.mxu0 %v14712_v58 }
 0x517   :  { %v18653_v0 = vld [vmem:[#allocation2 + $0xdb4] sm:$0xf0] }
 0x518   :  { %v15479_v2 = vld [vmem:[#allocation2 + $0xf98] sm:$0xf]  ;;  %v15224_v33 = vor.u32 %v18653_v0, %v15223_v49  ;;  %7045 = vmatpush.bf16.msrb.mxu1 %v14968_v53 }
 0x519   :  { %v18717_v63 = vld [vmem:[#allocation2 + $0xfb4] sm:$0xf0] }
 0x51a   :  { %v14679_v46 = vld [vmem:[#allocation2 + $0x958] sm:$0xf]  ;;  %v15480_v42 = vor.u32 %v18717_v63, %v15479_v2  ;;  %7059 = vmatpush.bf16.msrb.mxu2 %v15224_v33 }
 0x51b   :  { %v18517_v35 = vld [vmem:[#allocation2 + $0x974] sm:$0xf0] }
 0x51c   :  { %v14935_v29 = vld [vmem:[#allocation2 + $0xb58] sm:$0xf]  ;;  %v14680_v25 = vor.u32 %v18517_v35, %v14679_v46  ;;  %7073 = vmatpush.bf16.msrb.mxu3 %v15480_v42 }
 0x51d   :  { %v18581_v40 = vld [vmem:[#allocation2 + $0xb74] sm:$0xf0] }
 0x51e   :  { %v15191_v61 = vld [vmem:[#allocation2 + $0xd58] sm:$0xf]  ;;  %v14936_v43 = vor.u32 %v18581_v40, %v14935_v29  ;;  %7032 = vmatpush.bf16.msrb.mxu0 %v14680_v25  ;;  %v6787_v25 = vpop.f32.mrf.mxu2 }
 0x51f   :  { %v18645_v32 = vld [vmem:[#allocation2 + $0xd74] sm:$0xf0] }
 0x520   :  { %v15447_v16 = vld [vmem:[#allocation2 + $0xf58] sm:$0xf]  ;;  %v15192_v22 = vor.u32 %v18645_v32, %v15191_v61  ;;  %7046 = vmatpush.bf16.msrb.mxu1 %v14936_v43 }
 0x521   :  { %v18709_v20 = vld [vmem:[#allocation2 + $0xf74] sm:$0xf0] }
 0x522   :  { %v19983_v5 = vld [vmem:[#allocation12] sm:$0xff]  ;;  %v15448_v11 = vor.u32 %v18709_v20, %v15447_v16  ;;  %7060 = vmatpush.bf16.msrb.mxu2 %v15192_v22 }
 0x523   :  { %v3730_v60 = vperm.slane %v19983_v5, 4  ;;  %v14647_v39 = vld [vmem:[#allocation2 + $0x918] sm:$0xf] }
 0x524   :  { %v18509_v14 = vld [vmem:[#allocation2 + $0x934] sm:$0xf0]  ;;  %7074 = vmatpush.bf16.msrb.mxu3 %v15448_v11 }
 0x525   :  { %v14903_v41 = vld [vmem:[#allocation2 + $0xb18] sm:$0xf]  ;;  %v14648_v37 = vor.u32 %v18509_v14, %v14647_v39  ;;  %v6760_v54 = vadd.f32 %v6759_v13, %v3730_v60  ;;  %v6761_v14 = vpop.f32.mrf.mxu0 }
 0x526   :  { %v18573_v18 = vld [vmem:[#allocation2 + $0xb34] sm:$0xf0] }
 0x527   :  { %v15159_v17 = vld [vmem:[#allocation2 + $0xd18] sm:$0xf]  ;;  %v14904_v6 = vor.u32 %v18573_v18, %v14903_v41  ;;  %v6774_v63 = vadd.f32 %v6773_v57, %v6760_v54  ;;  %7033 = vmatpush.bf16.msrb.mxu0 %v14648_v37  ;;  %v6801_v41 = vpop.f32.mrf.mxu3  ;;  %v6762_v18 = vadd.f32 %v6761_v14, %v3730_v60  ;;  %v6775_v54 = vpop.f32.mrf.mxu1 }
 0x528   :  { %v18637_v21 = vld [vmem:[#allocation2 + $0xd34] sm:$0xf0] }
 0x529   :  { %v15415_v10 = vld [vmem:[#allocation2 + $0xf18] sm:$0xf]  ;;  %v15160_v47 = vor.u32 %v18637_v21, %v15159_v17  ;;  %7047 = vmatpush.bf16.msrb.mxu1 %v14904_v6  ;;  %v6788_v39 = vadd.f32 %v6787_v25, %v6774_v63 }
 0x52a   :  { %v18701_v50 = vld [vmem:[#allocation2 + $0xf34] sm:$0xf0] }
 0x52b   :  { %v14615_v12 = vld [vmem:[#allocation2 + $0x8d8] sm:$0xf]  ;;  %v15416_v56 = vor.u32 %v18701_v50, %v15415_v10  ;;  %7061 = vmatpush.bf16.msrb.mxu2 %v15160_v47  ;;  %v19986_v37 = vadd.f32 %v6801_v41, %v6788_v39  ;;  %v14233_v39 = vld [vmem:[#allocation2 + $0x5f8] sm:$0xf0] }
 0x52c   :  { %v18501_v48 = vld [vmem:[#allocation2 + $0x8f4] sm:$0xf0] }
 0x52d   :  { %v14871_v51 = vld [vmem:[#allocation2 + $0xad8] sm:$0xf]  ;;  %v14616_v33 = vor.u32 %v18501_v48, %v14615_v12  ;;  %7075 = vmatpush.bf16.msrb.mxu3 %v15416_v56  ;;  %v6776_v48 = vadd.f32 %v6775_v54, %v6762_v18  ;;  %v18465_v18 = vld [vmem:[#allocation2 + $0x7dc] sm:$0xf] }
 0x52e   :  { %v18565_v49 = vld [vmem:[#allocation2 + $0xaf4] sm:$0xf0] }
 0x52f   :  { %v15127_v0 = vld [vmem:[#allocation2 + $0xcd8] sm:$0xf]  ;;  %v14872_v46 = vor.u32 %v18565_v49, %v14871_v51  ;;  %7034 = vmatpush.bf16.msrb.mxu0 %v14616_v33  ;;  %v6803_v14 = vpop.f32.mrf.mxu3 }
 0x530   :  { %v18629_v2 = vld [vmem:[#allocation2 + $0xcf4] sm:$0xf0] }
 0x531   :  { %v15383_v58 = vld [vmem:[#allocation2 + $0xed8] sm:$0xf]  ;;  %v15128_v35 = vor.u32 %v18629_v2, %v15127_v0  ;;  %7048 = vmatpush.bf16.msrb.mxu1 %v14872_v46 }
 0x532   :  { %v18693_v53 = vld [vmem:[#allocation2 + $0xef4] sm:$0xf0] }
 0x533   :  { %v14583_v29 = vld [vmem:[#allocation2 + $0x898] sm:$0xf]  ;;  %v15384_v61 = vor.u32 %v18693_v53, %v15383_v58  ;;  %7062 = vmatpush.bf16.msrb.mxu2 %v15128_v35 }
 0x534   :  { %v18493_v42 = vld [vmem:[#allocation2 + $0x8b4] sm:$0xf0] }
 0x535   :  { %v14839_v40 = vld [vmem:[#allocation2 + $0xa98] sm:$0xf]  ;;  %v14584_v11 = vor.u32 %v18493_v42, %v14583_v29  ;;  %7076 = vmatpush.bf16.msrb.mxu3 %v15384_v61  ;;  %v18273_v61 = vld [vmem:[#allocation2 + $0x1dc] sm:$0xf] }
 0x536   :  { %v18557_v32 = vld [vmem:[#allocation2 + $0xab4] sm:$0xf0] }
 0x537   :  { %v15095_v16 = vld [vmem:[#allocation2 + $0xc98] sm:$0xf]  ;;  %v14840_v17 = vor.u32 %v18557_v32, %v14839_v40  ;;  %7035 = vmatpush.bf16.msrb.mxu0 %v14584_v11  ;;  %v6789_v40 = vpop.f32.mrf.mxu2  ;;  %v13721_v32 = vld [vmem:[#allocation2 + $0x1f8] sm:$0xf0] }
 0x538   :  { %v18621_v20 = vld [vmem:[#allocation2 + $0xcb4] sm:$0xf0] }
 0x539   :  { %v15351_v43 = vld [vmem:[#allocation2 + $0xe98] sm:$0xf]  ;;  %v15096_v21 = vor.u32 %v18621_v20, %v15095_v16  ;;  %7049 = vmatpush.bf16.msrb.mxu1 %v14840_v17  ;;  %v18337_v16 = vld [vmem:[#allocation2 + $0x3dc] sm:$0xf]  ;;  %v6790_v20 = vadd.f32 %v6789_v40, %v6776_v48 }
 0x53a   :  { %v18685_v22 = vld [vmem:[#allocation2 + $0xeb4] sm:$0xf0]  ;;  %v14489_v17 = vld [vmem:[#allocation2 + $0x7f8] sm:$0xf0] }
 0x53b   :  { %v14551_v10 = vld [vmem:[#allocation2 + $0x858] sm:$0xf]  ;;  %v15352_v57 = vor.u32 %v18685_v22, %v15351_v43  ;;  %7063 = vmatpush.bf16.msrb.mxu2 %v15096_v21  ;;  %v13977_v43 = vld [vmem:[#allocation2 + $0x3f8] sm:$0xf0]  ;;  %v19988_v21 = vadd.f32 %v6803_v14, %v6790_v20 }
 0x53c   :  { %v18485_v50 = vld [vmem:[#allocation2 + $0x874] sm:$0xf0]  ;;  %v18401_v22 = vld [vmem:[#allocation2 + $0x5dc] sm:$0xf] }
 0x53d   :  { %v14807_v13 = vld [vmem:[#allocation2 + $0xa58] sm:$0xf]  ;;  %v14552_v60 = vor.u32 %v18485_v50, %v14551_v10  ;;  %7077 = vmatpush.bf16.msrb.mxu3 %v15352_v57  ;;  %v13724_v50 = vor.u32 %v18273_v61, %v13721_v32  ;;  %v14236_v54 = vor.u32 %v18401_v22, %v14233_v39  ;;  %v18265_v57 = vld [vmem:[#allocation2 + $0x19c] sm:$0xf] }
 0x53e   :  { %v18549_v6 = vld [vmem:[#allocation2 + $0xa74] sm:$0xf0]  ;;  %v13945_v48 = vld [vmem:[#allocation2 + $0x3b8] sm:$0xf0] }
 0x53f   :  { %v15063_v47 = vld [vmem:[#allocation2 + $0xc58] sm:$0xf]  ;;  %v14808_v2 = vor.u32 %v18549_v6, %v14807_v13  ;;  %7036 = vmatpush.bf16.msrb.mxu0 %v14552_v60  ;;  %v13980_v13 = vor.u32 %v18337_v16, %v13977_v43  ;;  %v13689_v6 = vld [vmem:[#allocation2 + $0x1b8] sm:$0xf0] }
 0x540   :  { %v18613_v12 = vld [vmem:[#allocation2 + $0xc74] sm:$0xf0]  ;;  %v18457_v60 = vld [vmem:[#allocation2 + $0x79c] sm:$0xf] }
 0x541   :  { %v15319_v51 = vld [vmem:[#allocation2 + $0xe58] sm:$0xf]  ;;  %v15064_v63 = vor.u32 %v18613_v12, %v15063_v47  ;;  %7050 = vmatpush.bf16.msrb.mxu1 %v14808_v2  ;;  %v18329_v47 = vld [vmem:[#allocation2 + $0x39c] sm:$0xf]  ;;  %v14492_v12 = vor.u32 %v18465_v18, %v14489_v17  ;;  %v6815_v18 = vpop.f32.mrf.mxu0 }
 0x542   :  { %v18677_v56 = vld [vmem:[#allocation2 + $0xe74] sm:$0xf0]  ;;  %v13948_v2 = vor.u32 %v18329_v47, %v13945_v48  ;;  %v18449_v40 = vld [vmem:[#allocation2 + $0x75c] sm:$0xf] }
 0x543   :  { %v14519_v49 = vld [vmem:[#allocation2 + $0x818] sm:$0xf]  ;;  %v15320_v46 = vor.u32 %v18677_v56, %v15319_v51  ;;  %7064 = vmatpush.bf16.msrb.mxu2 %v15064_v63  ;;  %v18393_v51 = vld [vmem:[#allocation2 + $0x59c] sm:$0xf] }
 0x544   :  { %v18477_v0 = vld [vmem:[#allocation2 + $0x834] sm:$0xf0]  ;;  %v14201_v56 = vld [vmem:[#allocation2 + $0x5b8] sm:$0xf0] }
 0x545   :  { %v14775_v58 = vld [vmem:[#allocation2 + $0xa18] sm:$0xf]  ;;  %v14520_v25 = vor.u32 %v18477_v0, %v14519_v49  ;;  %7078 = vmatpush.bf16.msrb.mxu3 %v15320_v46  ;;  %v14457_v49 = vld [vmem:[#allocation2 + $0x7b8] sm:$0xf0]  ;;  %v13692_v0 = vor.u32 %v18265_v57, %v13689_v6  ;;  %v14204_v63 = vor.u32 %v18393_v51, %v14201_v56 }
 0x546   :  { %v18541_v53 = vld [vmem:[#allocation2 + $0xa34] sm:$0xf0]  ;;  %v14460_v46 = vor.u32 %v18457_v60, %v14457_v49  ;;  %v14425_v61 = vld [vmem:[#allocation2 + $0x778] sm:$0xf0] }
 0x547   :  { %v15031_v33 = vld [vmem:[#allocation2 + $0xc18] sm:$0xf]  ;;  %v14776_v41 = vor.u32 %v18541_v53, %v14775_v58  ;;  %7037 = vmatpush.bf16.msrb.mxu0 %v14520_v25  ;;  %v18257_v58 = vld [vmem:[#allocation2 + $0x15c] sm:$0xf]  ;;  %v14428_v39 = vor.u32 %v18449_v40, %v14425_v61 }
 0x548   :  { %v18605_v35 = vld [vmem:[#allocation2 + $0xc34] sm:$0xf0]  ;;  %v13657_v53 = vld [vmem:[#allocation2 + $0x178] sm:$0xf0] }
 0x549   :  { %v15287_v29 = vld [vmem:[#allocation2 + $0xe18] sm:$0xf]  ;;  %v15032_v11 = vor.u32 %v18605_v35, %v15031_v33  ;;  %7051 = vmatpush.bf16.msrb.mxu1 %v14776_v41  ;;  %v18321_v33 = vld [vmem:[#allocation2 + $0x35c] sm:$0xf]  ;;  %v13660_v32 = vor.u32 %v18257_v58, %v13657_v53 }
 0x54a   :  { %v18669_v42 = vld [vmem:[#allocation2 + $0xe34] sm:$0xf0]  ;;  %7038 = vmatmul.bf16.vlgmr.msrb.gmra.mxu0 %v19857_v55  ;;  %v13913_v35 = vld [vmem:[#allocation2 + $0x378] sm:$0xf0] }
 0x54b   :  { %v15288_v10 = vor.u32 %v18669_v42, %v15287_v29  ;;  %7065 = vmatpush.bf16.msrb.mxu2 %v15032_v11  ;;  %7086 = vmatpush.bf16.msra.mxu0 %v13724_v50  ;;  %v18385_v29 = vld [vmem:[#allocation2 + $0x55c] sm:$0xf]  ;;  %v13916_v16 = vor.u32 %v18321_v33, %v13913_v35  ;;  %v6816_v50 = vadd.f32 %v6815_v18, %v19986_v37 }
 0x54c   :  { %v14169_v42 = vld [vmem:[#allocation2 + $0x578] sm:$0xf0]  ;;  %7052 = vmatmul.bf16.vlgmr.msrb.gmra.mxu1 %v19869_v26 }
 0x54d   :  { %7079 = vmatpush.bf16.msrb.mxu3 %v15288_v10  ;;  %7100 = vmatpush.bf16.msra.mxu1 %v13980_v13  ;;  %v14172_v20 = vor.u32 %v18385_v29, %v14169_v42  ;;  %v18249_v25 = vld [vmem:[#allocation2 + $0x11c] sm:$0xf]  ;;  %v6843_v42 = vpop.f32.mrf.mxu2 }
 0x54e   :  { %7066 = vmatmul.bf16.vlgmr.msrb.gmra.mxu2 %v19863_v1  ;;  %v13625_v43 = vld [vmem:[#allocation2 + $0x138] sm:$0xf0] }
 0x54f   :  { %7114 = vmatpush.bf16.msra.mxu2 %v14236_v54  ;;  %7087 = vmatpush.bf16.msra.mxu0 %v13692_v0  ;;  %v18313_v22 = vld [vmem:[#allocation2 + $0x31c] sm:$0xf]  ;;  %v13628_v13 = vor.u32 %v18249_v25, %v13625_v43  ;;  %v6829_v54 = vpop.f32.mrf.mxu1  ;;  %v6857_v25 = vpop.f32.mrf.mxu3 }
 0x550   :  { %7080 = vmatmul.bf16.vlgmr.msrb.gmra.mxu3 %v19875_v34  ;;  %v13881_v14 = vld [vmem:[#allocation2 + $0x338] sm:$0xf0]  ;;  %v6830_v56 = vadd.f32 %v6829_v54, %v6816_v50 }
 0x551   :  { %7128 = vmatpush.bf16.msra.mxu3 %v14492_v12  ;;  %7101 = vmatpush.bf16.msra.mxu1 %v13948_v2  ;;  %v18377_v41 = vld [vmem:[#allocation2 + $0x51c] sm:$0xf]  ;;  %v13884_v57 = vor.u32 %v18313_v22, %v13881_v14 }
 0x552   :  { %v14137_v11 = vld [vmem:[#allocation2 + $0x538] sm:$0xf0] }
 0x553   :  { %7115 = vmatpush.bf16.msra.mxu2 %v14204_v63  ;;  %v18441_v17 = vld [vmem:[#allocation2 + $0x71c] sm:$0xf]  ;;  %7088 = vmatpush.bf16.msra.mxu0 %v13660_v32  ;;  %v14140_v6 = vor.u32 %v18377_v41, %v14137_v11 }
 0x554   :  { %v14393_v10 = vld [vmem:[#allocation2 + $0x738] sm:$0xf0] }
 0x555   :  { %7129 = vmatpush.bf16.msra.mxu3 %v14460_v46  ;;  %7102 = vmatpush.bf16.msra.mxu1 %v13916_v16  ;;  %v18241_v47 = vld [vmem:[#allocation2 + $0xdc] sm:$0xf]  ;;  %v14396_v51 = vor.u32 %v18441_v17, %v14393_v10  ;;  %v6844_v16 = vadd.f32 %v6843_v42, %v6830_v56 }
 0x556   :  { %v13593_v12 = vld [vmem:[#allocation2 + $0xf8] sm:$0xf0] }
 0x557   :  { %7116 = vmatpush.bf16.msra.mxu2 %v14172_v20  ;;  %v18305_v48 = vld [vmem:[#allocation2 + $0x2dc] sm:$0xf]  ;;  %7089 = vmatpush.bf16.msra.mxu0 %v13628_v13  ;;  %v13596_v58 = vor.u32 %v18241_v47, %v13593_v12  ;;  %v6817_v20 = vpop.f32.mrf.mxu0  ;;  %v6831_v41 = vpop.f32.mrf.mxu1  ;;  %v19996_v11 = vadd.f32 %v6857_v25, %v6844_v16 }
 0x558   :  { %v13849_v60 = vld [vmem:[#allocation2 + $0x2f8] sm:$0xf0] }
 0x559   :  { %7130 = vmatpush.bf16.msra.mxu3 %v14428_v39  ;;  %v18369_v49 = vld [vmem:[#allocation2 + $0x4dc] sm:$0xf]  ;;  %7103 = vmatpush.bf16.msra.mxu1 %v13884_v57  ;;  %v13852_v37 = vor.u32 %v18305_v48, %v13849_v60  ;;  %v6818_v39 = vadd.f32 %v6817_v20, %v19988_v21  ;;  %v7202_v48 = vmax.f32 %v19996_v11, 0.0 }
 0x55a   :  { %v14105_v0 = vld [vmem:[#allocation2 + $0x4f8] sm:$0xf0] }
 0x55b   :  { %v18433_v2 = vld [vmem:[#allocation2 + $0x6dc] sm:$0xf]  ;;  %7117 = vmatpush.bf16.msra.mxu2 %v14140_v6  ;;  %v14108_v53 = vor.u32 %v18369_v49, %v14105_v0  ;;  %7090 = vmatpush.bf16.msra.mxu0 %v13596_v58  ;;  %v6832_v57 = vadd.f32 %v6831_v41, %v6818_v39 }
 0x55c   :  { %v14361_v63 = vld [vmem:[#allocation2 + $0x6f8] sm:$0xf0] }
 0x55d   :  { %v18233_v33 = vld [vmem:[#allocation2 + $0x9c] sm:$0xf]  ;;  %7131 = vmatpush.bf16.msra.mxu3 %v14396_v51  ;;  %v14364_v29 = vor.u32 %v18433_v2, %v14361_v63  ;;  %7104 = vmatpush.bf16.msra.mxu1 %v13852_v37 }
 0x55e   :  { %v13561_v46 = vld [vmem:[#allocation2 + $0xb8] sm:$0xf0] }
 0x55f   :  { %v18297_v35 = vld [vmem:[#allocation2 + $0x29c] sm:$0xf]  ;;  %v13564_v14 = vor.u32 %v18233_v33, %v13561_v46  ;;  %7118 = vmatpush.bf16.msra.mxu2 %v14108_v53  ;;  %v6845_v33 = vpop.f32.mrf.mxu2 }
 0x560   :  { %v13817_v40 = vld [vmem:[#allocation2 + $0x2b8] sm:$0xf0]  ;;  %v6846_v42 = vadd.f32 %v6845_v33, %v6832_v57 }
 0x561   :  { %v18361_v61 = vld [vmem:[#allocation2 + $0x49c] sm:$0xf]  ;;  %v13820_v18 = vor.u32 %v18297_v35, %v13817_v40  ;;  %7132 = vmatpush.bf16.msra.mxu3 %v14364_v29  ;;  %7091 = vmatpush.bf16.msra.mxu0 %v13564_v14  ;;  %v6859_v40 = vpop.f32.mrf.mxu3 }
 0x562   :  { %v14073_v32 = vld [vmem:[#allocation2 + $0x4b8] sm:$0xf0]  ;;  %v19999_v39 = vadd.f32 %v6859_v40, %v6846_v42 }
 0x563   :  { %v18425_v43 = vld [vmem:[#allocation2 + $0x69c] sm:$0xf]  ;;  %v14076_v17 = vor.u32 %v18361_v61, %v14073_v32  ;;  %7105 = vmatpush.bf16.msra.mxu1 %v13820_v18 }
 0x564   :  { %v14329_v22 = vld [vmem:[#allocation2 + $0x6b8] sm:$0xf0] }
 0x565   :  { %v18225_v10 = vld [vmem:[#allocation2 + $0x5c] sm:$0xf]  ;;  %v14332_v54 = vor.u32 %v18425_v43, %v14329_v22  ;;  %7119 = vmatpush.bf16.msra.mxu2 %v14076_v17 }
 0x566   :  { %v13529_v50 = vld [vmem:[#allocation2 + $0x78] sm:$0xf0] }
 0x567   :  { %v18289_v13 = vld [vmem:[#allocation2 + $0x25c] sm:$0xf]  ;;  %v13532_v56 = vor.u32 %v18225_v10, %v13529_v50  ;;  %7133 = vmatpush.bf16.msra.mxu3 %v14332_v54  ;;  %v7210_v54 = vmax.f32 %v19999_v39, 0.0 }
 0x568   :  { %v13785_v6 = vld [vmem:[#allocation2 + $0x278] sm:$0xf0] }
 0x569   :  { %v18353_v47 = vld [vmem:[#allocation2 + $0x45c] sm:$0xf]  ;;  %v13788_v0 = vor.u32 %v18289_v13, %v13785_v6  ;;  %7092 = vmatpush.bf16.msra.mxu0 %v13532_v56 }
 0x56a   :  { %v14041_v12 = vld [vmem:[#allocation2 + $0x478] sm:$0xf0] }
 0x56b   :  { %v18417_v21 = vld [vmem:[#allocation2 + $0x65c] sm:$0xf]  ;;  %v14044_v2 = vor.u32 %v18353_v47, %v14041_v12  ;;  %7106 = vmatpush.bf16.msra.mxu1 %v13788_v0 }
 0x56c   :  { %v14297_v51 = vld [vmem:[#allocation2 + $0x678] sm:$0xf0] }
 0x56d   :  { %v18217_v60 = vld [vmem:[#allocation2 + $0x1c] sm:$0xf]  ;;  %v14300_v53 = vor.u32 %v18417_v21, %v14297_v51  ;;  %7120 = vmatpush.bf16.msra.mxu2 %v14044_v2 }
 0x56e   :  { %v13497_v49 = vld [vmem:[#allocation2 + $0x38] sm:$0xf0] }
 0x56f   :  { %v18281_v63 = vld [vmem:[#allocation2 + $0x21c] sm:$0xf]  ;;  %v13500_v20 = vor.u32 %v18217_v60, %v13497_v49  ;;  %7134 = vmatpush.bf16.msra.mxu3 %v14300_v53 }
 0x570   :  { %v13753_v58 = vld [vmem:[#allocation2 + $0x238] sm:$0xf0] }
 0x571   :  { %v18345_v37 = vld [vmem:[#allocation2 + $0x41c] sm:$0xf]  ;;  %v13756_v14 = vor.u32 %v18281_v63, %v13753_v58  ;;  %7093 = vmatpush.bf16.msra.mxu0 %v13500_v20 }
 0x572   :  { %v14009_v46 = vld [vmem:[#allocation2 + $0x438] sm:$0xf0] }
 0x573   :  { %v18409_v35 = vld [vmem:[#allocation2 + $0x61c] sm:$0xf]  ;;  %v14012_v41 = vor.u32 %v18345_v37, %v14009_v46  ;;  %7107 = vmatpush.bf16.msra.mxu1 %v13756_v14 }
 0x574   :  { %v14265_v29 = vld [vmem:[#allocation2 + $0x638] sm:$0xf0]  ;;  %7094 = vmatmul.bf16.vlgmr.msra.gmra.mxu0 %v19829_v27 }
 0x575   :  { %v18529_v61 = vld [vmem:[#allocation2 + $0x9dc] sm:$0xf]  ;;  %v14268_v10 = vor.u32 %v18409_v35, %v14265_v29  ;;  %7121 = vmatpush.bf16.msra.mxu2 %v14012_v41 }
 0x576   :  { %v14745_v32 = vld [vmem:[#allocation2 + $0x9f8] sm:$0xf0]  ;;  %7108 = vmatmul.bf16.vlgmr.msra.gmra.mxu1 %v19841_v9 }
 0x577   :  { %v18593_v16 = vld [vmem:[#allocation2 + $0xbdc] sm:$0xf]  ;;  %v14748_v50 = vor.u32 %v18529_v61, %v14745_v32  ;;  %7135 = vmatpush.bf16.msra.mxu3 %v14268_v10  ;;  %v6871_v10 = vpop.f32.mrf.mxu0 }
 0x578   :  { %v15001_v25 = vld [vmem:[#allocation2 + $0xbf8] sm:$0xf0]  ;;  %7122 = vmatmul.bf16.vlgmr.msra.gmra.mxu2 %v19835_v8 }
 0x579   :  { %v18657_v43 = vld [vmem:[#allocation2 + $0xddc] sm:$0xf]  ;;  %v15004_v57 = vor.u32 %v18593_v16, %v15001_v25  ;;  %7142 = vmatpush.bf16.msrb.mxu0 %v14748_v50  ;;  %v3731_v16 = vperm.slane %v19983_v5, 5 }
 0x57a   :  { %v15257_v22 = vld [vmem:[#allocation2 + $0xdf8] sm:$0xf0]  ;;  %7136 = vmatmul.bf16.vlgmr.msra.gmra.mxu3 %v19847_v19 }
 0x57b   :  { %v18721_v18 = vld [vmem:[#allocation2 + $0xfdc] sm:$0xf]  ;;  %v15260_v6 = vor.u32 %v18657_v43, %v15257_v22  ;;  %7156 = vmatpush.bf16.msrb.mxu1 %v15004_v57  ;;  %v6872_v9 = vadd.f32 %v6871_v10, %v3731_v16 }
 0x57c   :  { %v15513_v17 = vld [vmem:[#allocation2 + $0xff8] sm:$0xf0] }
 0x57d   :  { %v18521_v13 = vld [vmem:[#allocation2 + $0x99c] sm:$0xf]  ;;  %v15516_v21 = vor.u32 %v18721_v18, %v15513_v17  ;;  %7170 = vmatpush.bf16.msrb.mxu2 %v15260_v6 }
 0x57e   :  { %v14713_v47 = vld [vmem:[#allocation2 + $0x9b8] sm:$0xf0] }
 0x57f   :  { %v18585_v12 = vld [vmem:[#allocation2 + $0xb9c] sm:$0xf]  ;;  %v14716_v2 = vor.u32 %v18521_v13, %v14713_v47  ;;  %7184 = vmatpush.bf16.msrb.mxu3 %v15516_v21  ;;  %v6885_v13 = vpop.f32.mrf.mxu1 }
 0x580   :  { %v14969_v51 = vld [vmem:[#allocation2 + $0xbb8] sm:$0xf0] }
 0x581   :  { %v18649_v56 = vld [vmem:[#allocation2 + $0xd9c] sm:$0xf]  ;;  %v14972_v63 = vor.u32 %v18585_v12, %v14969_v51  ;;  %7143 = vmatpush.bf16.msrb.mxu0 %v14716_v2 }
 0x582   :  { %v15225_v60 = vld [vmem:[#allocation2 + $0xdb8] sm:$0xf0] }
 0x583   :  { %v18713_v49 = vld [vmem:[#allocation2 + $0xf9c] sm:$0xf]  ;;  %v15228_v58 = vor.u32 %v18649_v56, %v15225_v60  ;;  %7157 = vmatpush.bf16.msrb.mxu1 %v14972_v63 }
 0x584   :  { %v15481_v0 = vld [vmem:[#allocation2 + $0xfb8] sm:$0xf0] }
 0x585   :  { %v18513_v37 = vld [vmem:[#allocation2 + $0x95c] sm:$0xf]  ;;  %v15484_v46 = vor.u32 %v18713_v49, %v15481_v0  ;;  %7171 = vmatpush.bf16.msrb.mxu2 %v15228_v58  ;;  %v6886_v0 = vadd.f32 %v6885_v13, %v6872_v9 }
 0x586   :  { %v14681_v53 = vld [vmem:[#allocation2 + $0x978] sm:$0xf0] }
 0x587   :  { %v18577_v33 = vld [vmem:[#allocation2 + $0xb5c] sm:$0xf]  ;;  %v14684_v32 = vor.u32 %v18513_v37, %v14681_v53  ;;  %7185 = vmatpush.bf16.msrb.mxu3 %v15484_v46  ;;  %v6887_v9 = vpop.f32.mrf.mxu1 }
 0x588   :  { %v14937_v35 = vld [vmem:[#allocation2 + $0xb78] sm:$0xf0] }
 0x589   :  { %v18641_v29 = vld [vmem:[#allocation2 + $0xd5c] sm:$0xf]  ;;  %v14940_v20 = vor.u32 %v18577_v33, %v14937_v35  ;;  %7144 = vmatpush.bf16.msrb.mxu0 %v14684_v32  ;;  %v6899_v32 = vpop.f32.mrf.mxu2 }
 0x58a   :  { %v15193_v42 = vld [vmem:[#allocation2 + $0xd78] sm:$0xf0] }
 0x58b   :  { %v18705_v40 = vld [vmem:[#allocation2 + $0xf5c] sm:$0xf]  ;;  %v15196_v25 = vor.u32 %v18641_v29, %v15193_v42  ;;  %7158 = vmatpush.bf16.msrb.mxu1 %v14940_v20 }
 0x58c   :  { %v15449_v61 = vld [vmem:[#allocation2 + $0xf78] sm:$0xf0] }
 0x58d   :  { %v18505_v8 = vld [vmem:[#allocation2 + $0x91c] sm:$0xf]  ;;  %v15452_v14 = vor.u32 %v18705_v40, %v15449_v61  ;;  %7172 = vmatpush.bf16.msrb.mxu2 %v15196_v25 }
 0x58e   :  { %v14649_v43 = vld [vmem:[#allocation2 + $0x938] sm:$0xf0] }
 0x58f   :  { %v18569_v22 = vld [vmem:[#allocation2 + $0xb1c] sm:$0xf]  ;;  %v14652_v50 = vor.u32 %v18505_v8, %v14649_v43  ;;  %7186 = vmatpush.bf16.msrb.mxu3 %v15452_v14  ;;  %v6900_v8 = vadd.f32 %v6899_v32, %v6886_v0  ;;  %v6873_v43 = vpop.f32.mrf.mxu0 }
 0x590   :  { %v14905_v41 = vld [vmem:[#allocation2 + $0xb38] sm:$0xf0] }
 0x591   :  { %v18633_v18 = vld [vmem:[#allocation2 + $0xd1c] sm:$0xf]  ;;  %v14908_v57 = vor.u32 %v18569_v22, %v14905_v41  ;;  %7145 = vmatpush.bf16.msrb.mxu0 %v14652_v50  ;;  %v6913_v22 = vpop.f32.mrf.mxu3  ;;  %v6874_v41 = vadd.f32 %v6873_v43, %v3731_v16 }
 0x592   :  { %v15161_v27 = vld [vmem:[#allocation2 + $0xd38] sm:$0xf0]  ;;  %v6914_v50 = vadd.f32 %v6913_v22, %v6900_v8  ;;  %v6941_v22 = vpop.f32.mrf.mxu1 }
 0x593   :  { %v18697_v17 = vld [vmem:[#allocation2 + $0xf1c] sm:$0xf]  ;;  %v15164_v6 = vor.u32 %v18633_v18, %v15161_v27  ;;  %7159 = vmatpush.bf16.msrb.mxu1 %v14908_v57 }
 0x594   :  { %v15417_v19 = vld [vmem:[#allocation2 + $0xf38] sm:$0xf0] }
 0x595   :  { %v18497_v47 = vld [vmem:[#allocation2 + $0x8dc] sm:$0xf]  ;;  %v15420_v51 = vor.u32 %v18697_v17, %v15417_v19  ;;  %7173 = vmatpush.bf16.msrb.mxu2 %v15164_v6 }
 0x596   :  { %v14617_v12 = vld [vmem:[#allocation2 + $0x8f8] sm:$0xf0] }
 0x597   :  { %v18561_v21 = vld [vmem:[#allocation2 + $0xadc] sm:$0xf]  ;;  %v14620_v58 = vor.u32 %v18497_v47, %v14617_v12  ;;  %7187 = vmatpush.bf16.msrb.mxu3 %v15420_v51  ;;  %v6888_v12 = vadd.f32 %v6887_v9, %v6874_v41  ;;  %v6927_v8 = vpop.f32.mrf.mxu0 }
 0x598   :  { %v14873_v56 = vld [vmem:[#allocation2 + $0xaf8] sm:$0xf0]  ;;  %v6928_v43 = vadd.f32 %v6927_v8, %v6914_v50 }
 0x599   :  { %v18625_v60 = vld [vmem:[#allocation2 + $0xcdc] sm:$0xf]  ;;  %v14876_v37 = vor.u32 %v18561_v21, %v14873_v56  ;;  %7146 = vmatpush.bf16.msrb.mxu0 %v14620_v58 }
 0x59a   :  { %v15129_v49 = vld [vmem:[#allocation2 + $0xcf8] sm:$0xf0] }
 0x59b   :  { %v18689_v2 = vld [vmem:[#allocation2 + $0xedc] sm:$0xf]  ;;  %v15132_v53 = vor.u32 %v18625_v60, %v15129_v49  ;;  %7160 = vmatpush.bf16.msrb.mxu1 %v14876_v37 }
 0x59c   :  { %v15385_v63 = vld [vmem:[#allocation2 + $0xef8] sm:$0xf0] }
 0x59d   :  { %v18489_v33 = vld [vmem:[#allocation2 + $0x89c] sm:$0xf]  ;;  %v15388_v29 = vor.u32 %v18689_v2, %v15385_v63  ;;  %7174 = vmatpush.bf16.msrb.mxu2 %v15132_v53 }
 0x59e   :  { %v14585_v46 = vld [vmem:[#allocation2 + $0x8b8] sm:$0xf0] }
 0x59f   :  { %v18553_v35 = vld [vmem:[#allocation2 + $0xa9c] sm:$0xf]  ;;  %v14588_v14 = vor.u32 %v18489_v33, %v14585_v46  ;;  %7188 = vmatpush.bf16.msrb.mxu3 %v15388_v29  ;;  %v6901_v33 = vpop.f32.mrf.mxu2 }
 0x5a0   :  { %v14841_v42 = vld [vmem:[#allocation2 + $0xab8] sm:$0xf0]  ;;  %v6902_v29 = vadd.f32 %v6901_v33, %v6888_v12 }
 0x5a1   :  { %v18617_v40 = vld [vmem:[#allocation2 + $0xc9c] sm:$0xf]  ;;  %v14844_v18 = vor.u32 %v18553_v35, %v14841_v42  ;;  %7147 = vmatpush.bf16.msrb.mxu0 %v14588_v14  ;;  %v6942_v14 = vadd.f32 %v6941_v22, %v6928_v43 }
 0x5a2   :  { %v15097_v61 = vld [vmem:[#allocation2 + $0xcb8] sm:$0xf0] }
 0x5a3   :  { %v18681_v20 = vld [vmem:[#allocation2 + $0xe9c] sm:$0xf]  ;;  %v15100_v27 = vor.u32 %v18617_v40, %v15097_v61  ;;  %7161 = vmatpush.bf16.msrb.mxu1 %v14844_v18  ;;  %v6915_v40 = vpop.f32.mrf.mxu3 }
 0x5a4   :  { %v15353_v25 = vld [vmem:[#allocation2 + $0xeb8] sm:$0xf0] }
 0x5a5   :  { %v18481_v17 = vld [vmem:[#allocation2 + $0x85c] sm:$0xf]  ;;  %v15356_v13 = vor.u32 %v18681_v20, %v15353_v25  ;;  %7175 = vmatpush.bf16.msrb.mxu2 %v15100_v27  ;;  %v6916_v20 = vadd.f32 %v6915_v40, %v6902_v29  ;;  %v6929_v27 = vpop.f32.mrf.mxu0 }
 0x5a6   :  { %v14553_v19 = vld [vmem:[#allocation2 + $0x878] sm:$0xf0] }
 0x5a7   :  { %v18545_v10 = vld [vmem:[#allocation2 + $0xa5c] sm:$0xf]  ;;  %v14556_v56 = vor.u32 %v18481_v17, %v14553_v19  ;;  %7189 = vmatpush.bf16.msrb.mxu3 %v15356_v13  ;;  %v6955_v41 = vpop.f32.mrf.mxu2  ;;  %v6930_v19 = vadd.f32 %v6929_v27, %v6916_v20 }
 0x5a8   :  { %v14809_v57 = vld [vmem:[#allocation2 + $0xa78] sm:$0xf0]  ;;  %v6956_v18 = vadd.f32 %v6955_v41, %v6942_v14 }
 0x5a9   :  { %v18609_v6 = vld [vmem:[#allocation2 + $0xc5c] sm:$0xf]  ;;  %v14812_v16 = vor.u32 %v18545_v10, %v14809_v57  ;;  %7148 = vmatpush.bf16.msrb.mxu0 %v14556_v56  ;;  %v6943_v10 = vpop.f32.mrf.mxu1 }
 0x5aa   :  { %v15065_v47 = vld [vmem:[#allocation2 + $0xc78] sm:$0xf0]  ;;  %v6944_v13 = vadd.f32 %v6943_v10, %v6930_v19 }
 0x5ab   :  { %v18673_v21 = vld [vmem:[#allocation2 + $0xe5c] sm:$0xf]  ;;  %v15068_v60 = vor.u32 %v18609_v6, %v15065_v47  ;;  %7162 = vmatpush.bf16.msrb.mxu1 %v14812_v16  ;;  %v6969_v17 = vpop.f32.mrf.mxu3  ;;  %v3732_v47 = vperm.slane %v19983_v5, 6 }
 0x5ac   :  { %v15321_v51 = vld [vmem:[#allocation2 + $0xe78] sm:$0xf0]  ;;  %v20011_v9 = vadd.f32 %v6969_v17, %v6956_v18 }
 0x5ad   :  { %v18473_v49 = vld [vmem:[#allocation2 + $0x81c] sm:$0xf]  ;;  %v15324_v63 = vor.u32 %v18673_v21, %v15321_v51  ;;  %7176 = vmatpush.bf16.msrb.mxu2 %v15068_v60  ;;  %v6983_v50 = vpop.f32.mrf.mxu0 }
 0x5ae   :  { %v14521_v0 = vld [vmem:[#allocation2 + $0x838] sm:$0xf0]  ;;  %v6984_v21 = vadd.f32 %v6983_v50, %v3732_v47 }
 0x5af   :  { %v18537_v2 = vld [vmem:[#allocation2 + $0xa1c] sm:$0xf]  ;;  %v14524_v42 = vor.u32 %v18473_v49, %v14521_v0  ;;  %7190 = vmatpush.bf16.msrb.mxu3 %v15324_v63 }
 0x5b0   :  { %v14777_v58 = vld [vmem:[#allocation2 + $0xa38] sm:$0xf0] }
 0x5b1   :  { %v18601_v37 = vld [vmem:[#allocation2 + $0xc1c] sm:$0xf]  ;;  %v14780_v61 = vor.u32 %v18537_v2, %v14777_v58  ;;  %7149 = vmatpush.bf16.msrb.mxu0 %v14524_v42  ;;  %v6997_v12 = vpop.f32.mrf.mxu1 }
 0x5b2   :  { %v15033_v53 = vld [vmem:[#allocation2 + $0xc38] sm:$0xf0]  ;;  %v6998_v16 = vadd.f32 %v6997_v12, %v6984_v21 }
 0x5b3   :  { %v18665_v46 = vld [vmem:[#allocation2 + $0xe1c] sm:$0xf]  ;;  %v15036_v32 = vor.u32 %v18601_v37, %v15033_v53  ;;  %7163 = vmatpush.bf16.msrb.mxu1 %v14780_v61 }
 0x5b4   :  { %v15289_v35 = vld [vmem:[#allocation2 + $0xe38] sm:$0xf0]  ;;  %7150 = vmatmul.bf16.vlgmr.msrb.gmra.mxu0 %v19857_v55  ;;  %v7203_v55 = vmax.f32 %v20011_v9, 0.0 }
 0x5b5   :  { %v15292_v25 = vor.u32 %v18665_v46, %v15289_v35  ;;  %7177 = vmatpush.bf16.msrb.mxu2 %v15036_v32  ;;  %v6985_v60 = vpop.f32.mrf.mxu0 }
 0x5b6   :  { %7164 = vmatmul.bf16.vlgmr.msrb.gmra.mxu1 %v19869_v26  ;;  %v6957_v26 = vpop.f32.mrf.mxu2  ;;  %v6986_v2 = vadd.f32 %v6985_v60, %v3732_v47 }
 0x5b7   :  { %7191 = vmatpush.bf16.msrb.mxu3 %v15292_v25  ;;  %v6958_v57 = vadd.f32 %v6957_v26, %v6944_v13  ;;  %v3733_v26 = vperm.slane %v19983_v5, 7 }
 0x5b8   :  { %7178 = vmatmul.bf16.vlgmr.msrb.gmra.mxu2 %v19863_v1  ;;  %v6971_v1 = vpop.f32.mrf.mxu3 }
 0x5b9   :  { %v20014_v6 = vadd.f32 %v6971_v1, %v6958_v57  ;;  %v6999_v49 = vpop.f32.mrf.mxu1 }
 0x5ba   :  { %7192 = vmatmul.bf16.vlgmr.msrb.gmra.mxu3 %v19875_v34  ;;  %v7000_v37 = vadd.f32 %v6999_v49, %v6986_v2 }
 0x5bb   :  { %v7211_v34 = vmax.f32 %v20014_v6, 0.0 }
 0x5be   :  { %v7011_v51 = vpop.f32.mrf.mxu2 }
 0x5bf   :  { %v7012_v0 = vadd.f32 %v7011_v51, %v6998_v16 }
 0x5c0   :  { %v7025_v56 = vpop.f32.mrf.mxu3 }
 0x5c1   :  { %v7026_v63 = vadd.f32 %v7025_v56, %v7012_v0 }
 0x5c6   :  { %v7013_v58 = vpop.f32.mrf.mxu2 }
 0x5c7   :  { %v7039_v33 = vpop.f32.mrf.mxu0  ;;  %v7014_v29 = vadd.f32 %v7013_v58, %v7000_v37 }
 0x5c8   :  { %v7027_v53 = vpop.f32.mrf.mxu3  ;;  %v7040_v46 = vadd.f32 %v7039_v33, %v7026_v63 }
 0x5c9   :  { %v7053_v35 = vpop.f32.mrf.mxu1  ;;  %v7028_v40 = vadd.f32 %v7027_v53, %v7014_v29 }
 0x5ca   :  { %v7054_v42 = vadd.f32 %v7053_v35, %v7040_v46 }
 0x5cf   :  { %v7041_v20 = vpop.f32.mrf.mxu0 }
 0x5d0   :  { %v7042_v8 = vadd.f32 %v7041_v20, %v7028_v40 }
 0x5d1   :  { %v7067_v61 = vpop.f32.mrf.mxu2  ;;  %v7055_v22 = vpop.f32.mrf.mxu1 }
 0x5d2   :  { %v7068_v32 = vadd.f32 %v7067_v61, %v7054_v42  ;;  %v7056_v41 = vadd.f32 %v7055_v22, %v7042_v8 }
 0x5d3   :  { %v7081_v25 = vpop.f32.mrf.mxu3 }
 0x5d4   :  { %v20018_v43 = vadd.f32 %v7081_v25, %v7068_v32 }
 0x5d6   :  { %v7204_v14 = vmax.f32 %v20018_v43, 0.0 }
 0x5d9   :  { %v7069_v18 = vpop.f32.mrf.mxu2 }
 0x5da   :  { %v7070_v27 = vadd.f32 %v7069_v18, %v7056_v41 }
 0x5db   :  { %v7083_v17 = vpop.f32.mrf.mxu3 }
 0x5dc   :  { %v20021_v19 = vadd.f32 %v7083_v17, %v7070_v27 }
 0x5de   :  { %v7212_v10 = vmax.f32 %v20021_v19, 0.0 }
 0x5f1   :  { %v7095_v13 = vpop.f32.mrf.mxu0 }
 0x5f2   :  { %v7096_v1 = vadd.f32 %v7095_v13, %v3733_v26 }
 0x5f3   :  { %v7109_v57 = vpop.f32.mrf.mxu1 }
 0x5f4   :  { %v7110_v12 = vadd.f32 %v7109_v57, %v7096_v1 }
 0x5f9   :  { %v7097_v21 = vpop.f32.mrf.mxu0 }
 0x5fa   :  { %v7098_v16 = vadd.f32 %v7097_v21, %v3733_v26 }
 0x5fb   :  { %v7123_v50 = vpop.f32.mrf.mxu2  ;;  %v7111_v51 = vpop.f32.mrf.mxu1 }
 0x5fc   :  { %v7124_v56 = vadd.f32 %v7123_v50, %v7110_v12  ;;  %v7112_v0 = vadd.f32 %v7111_v51, %v7098_v16 }
 0x5fd   :  { %v7137_v47 = vpop.f32.mrf.mxu3 }
 0x5fe   :  { %v7138_v49 = vadd.f32 %v7137_v47, %v7124_v56 }
 0x603   :  { %v7125_v60 = vpop.f32.mrf.mxu2 }
 0x604   :  { %v7126_v53 = vadd.f32 %v7125_v60, %v7112_v0 }
 0x605   :  { %v7139_v2 = vpop.f32.mrf.mxu3 }
 0x606   :  { %v7140_v5 = vadd.f32 %v7139_v2, %v7126_v53 }
 0x631   :  { %v7151_v63 = vpop.f32.mrf.mxu0 }
 0x632   :  { %v7152_v58 = vadd.f32 %v7151_v63, %v7138_v49 }
 0x633   :  { %v7165_v37 = vpop.f32.mrf.mxu1 }
 0x634   :  { %v7166_v33 = vadd.f32 %v7165_v37, %v7152_v58 }
 0x639   :  { %v7153_v42 = vpop.f32.mrf.mxu0 }
 0x63a   :  { %v7154_v61 = vadd.f32 %v7153_v42, %v7140_v5 }
 0x63b   :  { %v7179_v46 = vpop.f32.mrf.mxu2  ;;  %v7167_v20 = vpop.f32.mrf.mxu1 }
 0x63c   :  { %v7180_v35 = vadd.f32 %v7179_v46, %v7166_v33  ;;  %v7168_v25 = vadd.f32 %v7167_v20, %v7154_v61 }
 0x63d   :  { %v7193_v29 = vpop.f32.mrf.mxu3 }
 0x63e   :  { %v20025_v40 = vadd.f32 %v7193_v29, %v7180_v35 }
 0x640   :  { %v7205_v32 = vmax.f32 %v20025_v40, 0.0 }
 0x643   :  { %v7181_v8 = vpop.f32.mrf.mxu2 }
 0x644   :  { %v7182_v22 = vadd.f32 %v7181_v8, %v7168_v25 }
 0x645   :  { %v7195_v41 = vpop.f32.mrf.mxu3 }
 0x646   :  { %v20028_v18 = vadd.f32 %v7195_v41, %v7182_v22 }
 0x648   :  { %v7213_v27 = vmax.f32 %v20028_v18, 0.0 }
 0x649   :  { %19574 = dma.done.wait [#allocation5 + $0x1], 65536 }
 0x64a   :  { %19575 = vsyncadd [#allocation5 + $0x1], 4294901760  ;;  %v15743_v17 = vld [vmem:[#allocation3 + $0x1c0] sm:$0xf]  ;;  %v20075_v11 = vpack.c.bf16 %v7211_v34, %v7203_v55  ;;  %v18966_v39 = vld [vmem:[#allocation3 + $0x784] sm:$0xf] }
 0x64b   :  { %v18786_v13 = vld [vmem:[#allocation3 + $0x1dc] sm:$0xf0]  ;;  %v18766_v9 = vld [vmem:[#allocation3 + $0x144] sm:$0xf] }
 0x64c   :  { %v15999_v26 = vld [vmem:[#allocation3 + $0x3c0] sm:$0xf]  ;;  %v15744_v57 = vor.u32 %v18786_v13, %v15743_v17  ;;  %v18830_v6 = vld [vmem:[#allocation3 + $0x344] sm:$0xf] }
 0x64d   :  { %v18850_v1 = vld [vmem:[#allocation3 + $0x3dc] sm:$0xf0]  ;;  %v15937_v34 = vld [vmem:[#allocation3 + $0x360] sm:$0xf0] }
 0x64e   :  { %v16255_v50 = vld [vmem:[#allocation3 + $0x5c0] sm:$0xf]  ;;  %v16000_v12 = vor.u32 %v18850_v1, %v15999_v26  ;;  %10314 = vmatpush.bf16.msra.mxu0 %v15744_v57  ;;  %v18958_v40 = vld [vmem:[#allocation3 + $0x744] sm:$0xf] }
 0x64f   :  { %v18914_v47 = vld [vmem:[#allocation3 + $0x5dc] sm:$0xf0] }
 0x650   :  { %v16256_v21 = vor.u32 %v18914_v47, %v16255_v50  ;;  %v16511_v51 = vld [vmem:[#allocation3 + $0x7c0] sm:$0xf]  ;;  %10328 = vmatpush.bf16.msra.mxu1 %v16000_v12 }
 0x651   :  { %v18978_v56 = vld [vmem:[#allocation3 + $0x7dc] sm:$0xf0] }
 0x652   :  { %v15711_v16 = vld [vmem:[#allocation3 + $0x180] sm:$0xf]  ;;  %v16512_v60 = vor.u32 %v18978_v56, %v16511_v51  ;;  %10342 = vmatpush.bf16.msra.mxu2 %v16256_v21 }
 0x653   :  { %v18778_v49 = vld [vmem:[#allocation3 + $0x19c] sm:$0xf0] }
 0x654   :  { %v15967_v0 = vld [vmem:[#allocation3 + $0x380] sm:$0xf]  ;;  %v15712_v63 = vor.u32 %v18778_v49, %v15711_v16  ;;  %10356 = vmatpush.bf16.msra.mxu3 %v16512_v60 }
 0x655   :  { %v18842_v2 = vld [vmem:[#allocation3 + $0x39c] sm:$0xf0] }
 0x656   :  { %v15968_v58 = vor.u32 %v18842_v2, %v15967_v0  ;;  %v16223_v37 = vld [vmem:[#allocation3 + $0x580] sm:$0xf]  ;;  %10315 = vmatpush.bf16.msra.mxu0 %v15712_v63 }
 0x657   :  { %v18906_v53 = vld [vmem:[#allocation3 + $0x59c] sm:$0xf0] }
 0x658   :  { %v16479_v33 = vld [vmem:[#allocation3 + $0x780] sm:$0xf]  ;;  %v16224_v46 = vor.u32 %v18906_v53, %v16223_v37  ;;  %10329 = vmatpush.bf16.msra.mxu1 %v15968_v58 }
 0x659   :  { %v18970_v5 = vld [vmem:[#allocation3 + $0x79c] sm:$0xf0] }
 0x65a   :  { %v15679_v35 = vld [vmem:[#allocation3 + $0x140] sm:$0xf]  ;;  %v16480_v42 = vor.u32 %v18970_v5, %v16479_v33  ;;  %10343 = vmatpush.bf16.msra.mxu2 %v16224_v46 }
 0x65b   :  { %v18770_v29 = vld [vmem:[#allocation3 + $0x15c] sm:$0xf0] }
 0x65c   :  { %v15935_v61 = vld [vmem:[#allocation3 + $0x340] sm:$0xf]  ;;  %v15680_v8 = vor.u32 %v18770_v29, %v15679_v35  ;;  %10357 = vmatpush.bf16.msra.mxu3 %v16480_v42 }
 0x65d   :  { %v18834_v20 = vld [vmem:[#allocation3 + $0x35c] sm:$0xf0] }
 0x65e   :  { %v16191_v25 = vld [vmem:[#allocation3 + $0x540] sm:$0xf]  ;;  %v15936_v13 = vor.u32 %v18834_v20, %v15935_v61  ;;  %10316 = vmatpush.bf16.msra.mxu0 %v15680_v8 }
 0x65f   :  { %v18898_v22 = vld [vmem:[#allocation3 + $0x55c] sm:$0xf0] }
 0x660   :  { %v16447_v41 = vld [vmem:[#allocation3 + $0x740] sm:$0xf]  ;;  %v16192_v26 = vor.u32 %v18898_v22, %v16191_v25  ;;  %10330 = vmatpush.bf16.msra.mxu1 %v15936_v13 }
 0x661   :  { %v18962_v17 = vld [vmem:[#allocation3 + $0x75c] sm:$0xf0] }
 0x662   :  { %v15647_v57 = vld [vmem:[#allocation3 + $0x100] sm:$0xf]  ;;  %v16448_v47 = vor.u32 %v18962_v17, %v16447_v41  ;;  %10344 = vmatpush.bf16.msra.mxu2 %v16192_v26 }
 0x663   :  { %v18762_v1 = vld [vmem:[#allocation3 + $0x11c] sm:$0xf0] }
 0x664   :  { %v15903_v50 = vld [vmem:[#allocation3 + $0x300] sm:$0xf]  ;;  %v15648_v60 = vor.u32 %v18762_v1, %v15647_v57  ;;  %10358 = vmatpush.bf16.msra.mxu3 %v16448_v47 }
 0x665   :  { %v18826_v12 = vld [vmem:[#allocation3 + $0x31c] sm:$0xf0] }
 0x666   :  { %v16159_v21 = vld [vmem:[#allocation3 + $0x500] sm:$0xf]  ;;  %v15904_v49 = vor.u32 %v18826_v12, %v15903_v50  ;;  %10317 = vmatpush.bf16.msra.mxu0 %v15648_v60 }
 0x667   :  { %v18890_v51 = vld [vmem:[#allocation3 + $0x51c] sm:$0xf0] }
 0x668   :  { %v16415_v56 = vld [vmem:[#allocation3 + $0x700] sm:$0xf]  ;;  %v16160_v0 = vor.u32 %v18890_v51, %v16159_v21  ;;  %10331 = vmatpush.bf16.msra.mxu1 %v15904_v49 }
 0x669   :  { %v18954_v16 = vld [vmem:[#allocation3 + $0x71c] sm:$0xf0] }
 0x66a   :  { %v15615_v2 = vld [vmem:[#allocation3 + $0xc0] sm:$0xf]  ;;  %v16416_v37 = vor.u32 %v18954_v16, %v16415_v56  ;;  %10345 = vmatpush.bf16.msra.mxu2 %v16160_v0 }
 0x66b   :  { %v18754_v63 = vld [vmem:[#allocation3 + $0xdc] sm:$0xf0] }
 0x66c   :  { %v15871_v58 = vld [vmem:[#allocation3 + $0x2c0] sm:$0xf]  ;;  %v15616_v29 = vor.u32 %v18754_v63, %v15615_v2  ;;  %10359 = vmatpush.bf16.msra.mxu3 %v16416_v37 }
 0x66d   :  { %v18818_v53 = vld [vmem:[#allocation3 + $0x2dc] sm:$0xf0] }
 0x66e   :  { %v16127_v33 = vld [vmem:[#allocation3 + $0x4c0] sm:$0xf]  ;;  %v15872_v42 = vor.u32 %v18818_v53, %v15871_v58  ;;  %10318 = vmatpush.bf16.msra.mxu0 %v15616_v29 }
 0x66f   :  { %v18882_v46 = vld [vmem:[#allocation3 + $0x4dc] sm:$0xf0] }
 0x670   :  { %v16383_v5 = vld [vmem:[#allocation3 + $0x6c0] sm:$0xf]  ;;  %v16128_v61 = vor.u32 %v18882_v46, %v16127_v33  ;;  %10332 = vmatpush.bf16.msra.mxu1 %v15872_v42 }
 0x671   :  { %v18946_v35 = vld [vmem:[#allocation3 + $0x6dc] sm:$0xf0] }
 0x672   :  { %v15583_v20 = vld [vmem:[#allocation3 + $0x80] sm:$0xf]  ;;  %v16384_v22 = vor.u32 %v18946_v35, %v16383_v5  ;;  %10346 = vmatpush.bf16.msra.mxu2 %v16128_v61 }
 0x673   :  { %v18746_v25 = vld [vmem:[#allocation3 + $0x9c] sm:$0xf0] }
 0x674   :  { %v15839_v8 = vld [vmem:[#allocation3 + $0x280] sm:$0xf]  ;;  %v15584_v1 = vor.u32 %v18746_v25, %v15583_v20  ;;  %10360 = vmatpush.bf16.msra.mxu3 %v16384_v22 }
 0x675   :  { %v18810_v41 = vld [vmem:[#allocation3 + $0x29c] sm:$0xf0] }
 0x676   :  { %v16095_v17 = vld [vmem:[#allocation3 + $0x480] sm:$0xf]  ;;  %v15840_v50 = vor.u32 %v18810_v41, %v15839_v8  ;;  %10319 = vmatpush.bf16.msra.mxu0 %v15584_v1 }
 0x677   :  { %v18874_v13 = vld [vmem:[#allocation3 + $0x49c] sm:$0xf0] }
 0x678   :  { %v16351_v26 = vld [vmem:[#allocation3 + $0x680] sm:$0xf]  ;;  %v16096_v47 = vor.u32 %v18874_v13, %v16095_v17  ;;  %10333 = vmatpush.bf16.msra.mxu1 %v15840_v50 }
 0x679   :  { %v18938_v57 = vld [vmem:[#allocation3 + $0x69c] sm:$0xf0] }
 0x67a   :  { %v15551_v12 = vld [vmem:[#allocation3 + $0x40] sm:$0xf]  ;;  %v16352_v56 = vor.u32 %v18938_v57, %v16351_v26  ;;  %10347 = vmatpush.bf16.msra.mxu2 %v16096_v47 }
 0x67b   :  { %v18738_v21 = vld [vmem:[#allocation3 + $0x5c] sm:$0xf0] }
 0x67c   :  { %v15807_v51 = vld [vmem:[#allocation3 + $0x240] sm:$0xf]  ;;  %v15552_v63 = vor.u32 %v18738_v21, %v15551_v12  ;;  %10361 = vmatpush.bf16.msra.mxu3 %v16352_v56 }
 0x67d   :  { %v18802_v16 = vld [vmem:[#allocation3 + $0x25c] sm:$0xf0] }
 0x67e   :  { %v16063_v60 = vld [vmem:[#allocation3 + $0x440] sm:$0xf]  ;;  %v15808_v53 = vor.u32 %v18802_v16, %v15807_v51  ;;  %10320 = vmatpush.bf16.msra.mxu0 %v15552_v63 }
 0x67f   :  { %v18866_v49 = vld [vmem:[#allocation3 + $0x45c] sm:$0xf0] }
 0x680   :  { %v16319_v0 = vld [vmem:[#allocation3 + $0x640] sm:$0xf]  ;;  %v16064_v33 = vor.u32 %v18866_v49, %v16063_v60  ;;  %10334 = vmatpush.bf16.msra.mxu1 %v15808_v53 }
 0x681   :  { %v18930_v2 = vld [vmem:[#allocation3 + $0x65c] sm:$0xf0] }
 0x682   :  { %v15519_v58 = vld [vmem:[#allocation3] sm:$0xf]  ;;  %v16320_v29 = vor.u32 %v18930_v2, %v16319_v0  ;;  %10348 = vmatpush.bf16.msra.mxu2 %v16064_v33 }
 0x683   :  { %v18730_v37 = vld [vmem:[#allocation3 + $0x1c] sm:$0xf0] }
 0x684   :  { %v15775_v46 = vld [vmem:[#allocation3 + $0x200] sm:$0xf]  ;;  %v15520_v41 = vor.u32 %v18730_v37, %v15519_v58  ;;  %10362 = vmatpush.bf16.msra.mxu3 %v16320_v29  ;;  %v20035_v37 = vpack.c.bf16 %v7206_v4, %v7198_v30  ;;  %v20053_v30 = vpack.c.bf16 %v7209_v45, %v7201_v3 }
 0x685   :  { %v18794_v5 = vld [vmem:[#allocation3 + $0x21c] sm:$0xf0] }
 0x686   :  { %v16031_v35 = vld [vmem:[#allocation3 + $0x400] sm:$0xf]  ;;  %v15776_v57 = vor.u32 %v18794_v5, %v15775_v46  ;;  %10321 = vmatpush.bf16.msra.mxu0 %v15520_v41  ;;  %v20041_v46 = vpack.c.bf16 %v7208_v62, %v7200_v36  ;;  %v20047_v5 = vpack.c.bf16 %v7207_v23, %v7199_v52 }
 0x687   :  { %v18858_v42 = vld [vmem:[#allocation3 + $0x41c] sm:$0xf0] }
 0x688   :  { %v16287_v61 = vld [vmem:[#allocation3 + $0x600] sm:$0xf]  ;;  %v16032_v1 = vor.u32 %v18858_v42, %v16031_v35  ;;  %10335 = vmatpush.bf16.msra.mxu1 %v15776_v57 }
 0x689   :  { %v18922_v20 = vld [vmem:[#allocation3 + $0x61c] sm:$0xf0]  ;;  %10322 = vmatmul.bf16.vlgmr.msra.gmra.mxu0 %v20035_v37 }
 0x68a   :  { %v16767_v25 = vld [vmem:[#allocation3 + $0x9c0] sm:$0xf]  ;;  %v16288_v12 = vor.u32 %v18922_v20, %v16287_v61  ;;  %10349 = vmatpush.bf16.msra.mxu2 %v16032_v1 }
 0x68b   :  { %v19042_v8 = vld [vmem:[#allocation3 + $0x9dc] sm:$0xf0]  ;;  %10336 = vmatmul.bf16.vlgmr.msra.gmra.mxu1 %v20047_v5 }
 0x68c   :  { %v17023_v22 = vld [vmem:[#allocation3 + $0xbc0] sm:$0xf]  ;;  %v16768_v21 = vor.u32 %v19042_v8, %v16767_v25  ;;  %10363 = vmatpush.bf16.msra.mxu3 %v16288_v12 }
 0x68d   :  { %v19106_v17 = vld [vmem:[#allocation3 + $0xbdc] sm:$0xf0]  ;;  %10350 = vmatmul.bf16.vlgmr.msra.gmra.mxu2 %v20041_v46 }
 0x68e   :  { %v17279_v13 = vld [vmem:[#allocation3 + $0xdc0] sm:$0xf]  ;;  %v17024_v51 = vor.u32 %v19106_v17, %v17023_v22  ;;  %10370 = vmatpush.bf16.msrb.mxu0 %v16768_v21 }
 0x68f   :  { %v19170_v26 = vld [vmem:[#allocation3 + $0xddc] sm:$0xf0]  ;;  %10364 = vmatmul.bf16.vlgmr.msra.gmra.mxu3 %v20053_v30 }
 0x690   :  { %v17535_v50 = vld [vmem:[#allocation3 + $0xfc0] sm:$0xf]  ;;  %v17280_v56 = vor.u32 %v19170_v26, %v17279_v13  ;;  %10384 = vmatpush.bf16.msrb.mxu1 %v17024_v51 }
 0x691   :  { %v19234_v47 = vld [vmem:[#allocation3 + $0xfdc] sm:$0xf0] }
 0x692   :  { %v16735_v16 = vld [vmem:[#allocation3 + $0x980] sm:$0xf]  ;;  %v17536_v0 = vor.u32 %v19234_v47, %v17535_v50  ;;  %10398 = vmatpush.bf16.msrb.mxu2 %v17280_v56 }
 0x693   :  { %v19034_v60 = vld [vmem:[#allocation3 + $0x99c] sm:$0xf0] }
 0x694   :  { %v16991_v49 = vld [vmem:[#allocation3 + $0xb80] sm:$0xf]  ;;  %v16736_v59 = vor.u32 %v19034_v60, %v16735_v16  ;;  %10412 = vmatpush.bf16.msrb.mxu3 %v17536_v0 }
 0x695   :  { %v19098_v2 = vld [vmem:[#allocation3 + $0xb9c] sm:$0xf0] }
 0x696   :  { %v17247_v63 = vld [vmem:[#allocation3 + $0xd80] sm:$0xf]  ;;  %v16992_v31 = vor.u32 %v19098_v2, %v16991_v49  ;;  %10371 = vmatpush.bf16.msrb.mxu0 %v16736_v59 }
 0x697   :  { %v19162_v58 = vld [vmem:[#allocation3 + $0xd9c] sm:$0xf0] }
 0x698   :  { %v17503_v53 = vld [vmem:[#allocation3 + $0xf80] sm:$0xf]  ;;  %v17248_v4 = vor.u32 %v19162_v58, %v17247_v63  ;;  %10385 = vmatpush.bf16.msrb.mxu1 %v16992_v31 }
 0x699   :  { %v19226_v33 = vld [vmem:[#allocation3 + $0xf9c] sm:$0xf0] }
 0x69a   :  { %v16703_v24 = vld [vmem:[#allocation3 + $0x940] sm:$0xf]  ;;  %v17504_v15 = vor.u32 %v19226_v33, %v17503_v53  ;;  %10399 = vmatpush.bf16.msrb.mxu2 %v17248_v4 }
 0x69b   :  { %v19026_v36 = vld [vmem:[#allocation3 + $0x95c] sm:$0xf0] }
 0x69c   :  { %v16959_v38 = vld [vmem:[#allocation3 + $0xb40] sm:$0xf]  ;;  %v16704_v3 = vor.u32 %v19026_v36, %v16703_v24  ;;  %10413 = vmatpush.bf16.msrb.mxu3 %v17504_v15 }
 0x69d   :  { %v19090_v52 = vld [vmem:[#allocation3 + $0xb5c] sm:$0xf0] }
 0x69e   :  { %v17215_v23 = vld [vmem:[#allocation3 + $0xd40] sm:$0xf]  ;;  %v16960_v7 = vor.u32 %v19090_v52, %v16959_v38  ;;  %10372 = vmatpush.bf16.msrb.mxu0 %v16704_v3 }
 0x69f   :  { %v19154_v28 = vld [vmem:[#allocation3 + $0xd5c] sm:$0xf0] }
 0x6a0   :  { %v17471_v62 = vld [vmem:[#allocation3 + $0xf40] sm:$0xf]  ;;  %v17216_v45 = vor.u32 %v19154_v28, %v17215_v23  ;;  %10386 = vmatpush.bf16.msrb.mxu1 %v16960_v7 }
 0x6a1   :  { %v19218_v44 = vld [vmem:[#allocation3 + $0xf5c] sm:$0xf0] }
 0x6a2   :  { %v16671_v35 = vld [vmem:[#allocation3 + $0x900] sm:$0xf]  ;;  %v17472_v61 = vor.u32 %v19218_v44, %v17471_v62  ;;  %10400 = vmatpush.bf16.msrb.mxu2 %v17216_v45 }
 0x6a3   :  { %v19018_v29 = vld [vmem:[#allocation3 + $0x91c] sm:$0xf0] }
 0x6a4   :  { %v16927_v42 = vld [vmem:[#allocation3 + $0xb00] sm:$0xf]  ;;  %v16672_v17 = vor.u32 %v19018_v29, %v16671_v35  ;;  %10414 = vmatpush.bf16.msrb.mxu3 %v17472_v61 }
 0x6a5   :  { %v19082_v20 = vld [vmem:[#allocation3 + $0xb1c] sm:$0xf0] }
 0x6a6   :  { %v17183_v25 = vld [vmem:[#allocation3 + $0xd00] sm:$0xf]  ;;  %v16928_v13 = vor.u32 %v19082_v20, %v16927_v42  ;;  %10373 = vmatpush.bf16.msrb.mxu0 %v16672_v17 }
 0x6a7   :  { %v19146_v8 = vld [vmem:[#allocation3 + $0xd1c] sm:$0xf0] }
 0x6a8   :  { %v17439_v22 = vld [vmem:[#allocation3 + $0xf00] sm:$0xf]  ;;  %v17184_v26 = vor.u32 %v19146_v8, %v17183_v25  ;;  %10387 = vmatpush.bf16.msrb.mxu1 %v16928_v13 }
 0x6a9   :  { %v19210_v41 = vld [vmem:[#allocation3 + $0xf1c] sm:$0xf0] }
 0x6aa   :  { %v16639_v57 = vld [vmem:[#allocation3 + $0x8c0] sm:$0xf]  ;;  %v17440_v47 = vor.u32 %v19210_v41, %v17439_v22  ;;  %10401 = vmatpush.bf16.msrb.mxu2 %v17184_v26 }
 0x6ab   :  { %v19010_v1 = vld [vmem:[#allocation3 + $0x8dc] sm:$0xf0] }
 0x6ac   :  { %v16895_v50 = vld [vmem:[#allocation3 + $0xac0] sm:$0xf]  ;;  %v16640_v60 = vor.u32 %v19010_v1, %v16639_v57  ;;  %10415 = vmatpush.bf16.msrb.mxu3 %v17440_v47  ;;  %v18782_v1 = vld [vmem:[#allocation3 + $0x1c4] sm:$0xf] }
 0x6ad   :  { %v19074_v12 = vld [vmem:[#allocation3 + $0xadc] sm:$0xf0]  ;;  %v18846_v47 = vld [vmem:[#allocation3 + $0x3c4] sm:$0xf] }
 0x6ae   :  { %v17151_v21 = vld [vmem:[#allocation3 + $0xcc0] sm:$0xf]  ;;  %v16896_v49 = vor.u32 %v19074_v12, %v16895_v50  ;;  %10374 = vmatpush.bf16.msrb.mxu0 %v16640_v60  ;;  %v15745_v50 = vld [vmem:[#allocation3 + $0x1e0] sm:$0xf0] }
 0x6af   :  { %v19138_v51 = vld [vmem:[#allocation3 + $0xcdc] sm:$0xf0] }
 0x6b0   :  { %v17407_v56 = vld [vmem:[#allocation3 + $0xec0] sm:$0xf]  ;;  %v17152_v0 = vor.u32 %v19138_v51, %v17151_v21  ;;  %10388 = vmatpush.bf16.msrb.mxu1 %v16896_v49  ;;  %v16001_v21 = vld [vmem:[#allocation3 + $0x3e0] sm:$0xf0] }
 0x6b1   :  { %v19202_v16 = vld [vmem:[#allocation3 + $0xedc] sm:$0xf0]  ;;  %v18910_v51 = vld [vmem:[#allocation3 + $0x5c4] sm:$0xf] }
 0x6b2   :  { %v16607_v2 = vld [vmem:[#allocation3 + $0x880] sm:$0xf]  ;;  %v17408_v53 = vor.u32 %v19202_v16, %v17407_v56  ;;  %10402 = vmatpush.bf16.msrb.mxu2 %v17152_v0  ;;  %v16257_v56 = vld [vmem:[#allocation3 + $0x5e0] sm:$0xf0] }
 0x6b3   :  { %v19002_v63 = vld [vmem:[#allocation3 + $0x89c] sm:$0xf0]  ;;  %v18974_v49 = vld [vmem:[#allocation3 + $0x7c4] sm:$0xf] }
 0x6b4   :  { %v16863_v58 = vld [vmem:[#allocation3 + $0xa80] sm:$0xf]  ;;  %v16608_v36 = vor.u32 %v19002_v63, %v16607_v2  ;;  %10416 = vmatpush.bf16.msrb.mxu3 %v17408_v53  ;;  %v16513_v0 = vld [vmem:[#allocation3 + $0x7e0] sm:$0xf0]  ;;  %v15748_v63 = vor.u32 %v18782_v1, %v15745_v50  ;;  %v16260_v53 = vor.u32 %v18910_v51, %v16257_v56 }
 0x6b5   :  { %v19066_v33 = vld [vmem:[#allocation3 + $0xa9c] sm:$0xf0]  ;;  %v18878_v1 = vld [vmem:[#allocation3 + $0x4c4] sm:$0xf] }
 0x6b6   :  { %v17119_v59 = vld [vmem:[#allocation3 + $0xc80] sm:$0xf]  ;;  %v16864_v38 = vor.u32 %v19066_v33, %v16863_v58  ;;  %10375 = vmatpush.bf16.msrb.mxu0 %v16608_v36  ;;  %v16004_v58 = vor.u32 %v18846_v47, %v16001_v21  ;;  %v18774_v33 = vld [vmem:[#allocation3 + $0x184] sm:$0xf] }
 0x6b7   :  { %v19130_v31 = vld [vmem:[#allocation3 + $0xc9c] sm:$0xf0]  ;;  %v15969_v36 = vld [vmem:[#allocation3 + $0x3a0] sm:$0xf0] }
 0x6b8   :  { %v17375_v4 = vld [vmem:[#allocation3 + $0xe80] sm:$0xf]  ;;  %v17120_v15 = vor.u32 %v19130_v31, %v17119_v59  ;;  %10389 = vmatpush.bf16.msrb.mxu1 %v16864_v38  ;;  %v15713_v59 = vld [vmem:[#allocation3 + $0x1a0] sm:$0xf0] }
 0x6b9   :  { %v19194_v24 = vld [vmem:[#allocation3 + $0xe9c] sm:$0xf0]  ;;  %v18838_v31 = vld [vmem:[#allocation3 + $0x384] sm:$0xf]  ;;  %v15716_v43 = vor.u32 %v18774_v33, %v15713_v59 }
 0x6ba   :  { %v16575_v52 = vld [vmem:[#allocation3 + $0x840] sm:$0xf]  ;;  %v17376_v62 = vor.u32 %v19194_v24, %v17375_v4  ;;  %10403 = vmatpush.bf16.msrb.mxu2 %v17120_v15  ;;  %v16516_v4 = vor.u32 %v18974_v49, %v16513_v0  ;;  %v20063_v24 = vpack.c.bf16 %v7210_v54, %v7202_v48  ;;  %v18902_v38 = vld [vmem:[#allocation3 + $0x584] sm:$0xf]  ;;  %v20081_v54 = vpack.c.bf16 %v7213_v27, %v7205_v32 }
 0x6bb   :  { %v18994_v23 = vld [vmem:[#allocation3 + $0x85c] sm:$0xf0]  ;;  %v16225_v15 = vld [vmem:[#allocation3 + $0x5a0] sm:$0xf0]  ;;  %v15940_v27 = vor.u32 %v18830_v6, %v15937_v34 }
 0x6bc   :  { %v16831_v28 = vld [vmem:[#allocation3 + $0xa40] sm:$0xf]  ;;  %v16576_v29 = vor.u32 %v18994_v23, %v16575_v52  ;;  %10417 = vmatpush.bf16.msrb.mxu3 %v17376_v62  ;;  %v20069_v52 = vpack.c.bf16 %v7212_v10, %v7204_v14  ;;  %v16481_v48 = vld [vmem:[#allocation3 + $0x7a0] sm:$0xf0]  ;;  %v15972_v14 = vor.u32 %v18838_v31, %v15969_v36  ;;  %v16228_v19 = vor.u32 %v18902_v38, %v16225_v15 }
 0x6bd   :  { %v19058_v44 = vld [vmem:[#allocation3 + $0xa5c] sm:$0xf0]  ;;  %v15681_v10 = vld [vmem:[#allocation3 + $0x160] sm:$0xf0]  ;;  %v16484_v55 = vor.u32 %v18966_v39, %v16481_v48 }
 0x6be   :  { %v17087_v3 = vld [vmem:[#allocation3 + $0xc40] sm:$0xf]  ;;  %v16832_v20 = vor.u32 %v19058_v44, %v16831_v28  ;;  %10376 = vmatpush.bf16.msrb.mxu0 %v16576_v29  ;;  %v18894_v23 = vld [vmem:[#allocation3 + $0x544] sm:$0xf]  ;;  %v15684_v18 = vor.u32 %v18766_v9, %v15681_v10 }
 0x6bf   :  { %v19122_v7 = vld [vmem:[#allocation3 + $0xc5c] sm:$0xf0]  ;;  %v16193_v28 = vld [vmem:[#allocation3 + $0x560] sm:$0xf0] }
 0x6c0   :  { %v17343_v45 = vld [vmem:[#allocation3 + $0xe40] sm:$0xf]  ;;  %v17088_v25 = vor.u32 %v19122_v7, %v17087_v3  ;;  %10390 = vmatpush.bf16.msrb.mxu1 %v16832_v20  ;;  %v16449_v32 = vld [vmem:[#allocation3 + $0x760] sm:$0xf0]  ;;  %v16196_v62 = vor.u32 %v18894_v23, %v16193_v28 }
 0x6c1   :  { %v19186_v35 = vld [vmem:[#allocation3 + $0xe5c] sm:$0xf0]  ;;  %v18758_v44 = vld [vmem:[#allocation3 + $0x104] sm:$0xf] }
 0x6c2   :  { %v16543_v42 = vld [vmem:[#allocation3 + $0x800] sm:$0xf]  ;;  %v17344_v17 = vor.u32 %v19186_v35, %v17343_v45  ;;  %10404 = vmatpush.bf16.msrb.mxu2 %v17088_v25  ;;  %v15649_v3 = vld [vmem:[#allocation3 + $0x120] sm:$0xf0]  ;;  %v16452_v45 = vor.u32 %v18958_v40, %v16449_v32 }
 0x6c3   :  { %v18986_v61 = vld [vmem:[#allocation3 + $0x81c] sm:$0xf0]  ;;  %v18822_v7 = vld [vmem:[#allocation3 + $0x304] sm:$0xf]  ;;  %v15652_v25 = vor.u32 %v18758_v44, %v15649_v3 }
 0x6c4   :  { %v16799_v8 = vld [vmem:[#allocation3 + $0xa00] sm:$0xf]  ;;  %v16544_v12 = vor.u32 %v18986_v61, %v16543_v42  ;;  %10418 = vmatpush.bf16.msrb.mxu3 %v17344_v17  ;;  %v15905_v35 = vld [vmem:[#allocation3 + $0x320] sm:$0xf0] }
 0x6c5   :  { %v19050_v22 = vld [vmem:[#allocation3 + $0xa1c] sm:$0xf0]  ;;  %v18886_v29 = vld [vmem:[#allocation3 + $0x504] sm:$0xf] }
 0x6c6   :  { %v17055_v41 = vld [vmem:[#allocation3 + $0xc00] sm:$0xf]  ;;  %v16800_v16 = vor.u32 %v19050_v22, %v16799_v8  ;;  %10377 = vmatpush.bf16.msrb.mxu0 %v16544_v12  ;;  %v16161_v42 = vld [vmem:[#allocation3 + $0x520] sm:$0xf0]  ;;  %v15908_v8 = vor.u32 %v18822_v7, %v15905_v35 }
 0x6c7   :  { %v19114_v13 = vld [vmem:[#allocation3 + $0xc1c] sm:$0xf0]  ;;  %v18950_v61 = vld [vmem:[#allocation3 + $0x704] sm:$0xf]  ;;  %v16164_v22 = vor.u32 %v18886_v29, %v16161_v42 }
 0x6c8   :  { %v17311_v26 = vld [vmem:[#allocation3 + $0xe00] sm:$0xf]  ;;  %v17056_v60 = vor.u32 %v19114_v13, %v17055_v41  ;;  %10391 = vmatpush.bf16.msrb.mxu1 %v16800_v16  ;;  %v16417_v20 = vld [vmem:[#allocation3 + $0x720] sm:$0xf0] }
 0x6c9   :  { %v19178_v57 = vld [vmem:[#allocation3 + $0xe1c] sm:$0xf0]  ;;  %10378 = vmatmul.bf16.vlgmr.msrb.gmra.mxu0 %v20063_v24  ;;  %v18750_v41 = vld [vmem:[#allocation3 + $0xc4] sm:$0xf] }
 0x6ca   :  { %v17312_v2 = vor.u32 %v19178_v57, %v17311_v26  ;;  %10405 = vmatpush.bf16.msrb.mxu2 %v17056_v60  ;;  %10426 = vmatpush.bf16.msra.mxu0 %v15748_v63  ;;  %v15617_v17 = vld [vmem:[#allocation3 + $0xe0] sm:$0xf0]  ;;  %v16420_v26 = vor.u32 %v18950_v61, %v16417_v20 }
 0x6cb   :  { %10392 = vmatmul.bf16.vlgmr.msrb.gmra.mxu1 %v20075_v11  ;;  %v18814_v13 = vld [vmem:[#allocation3 + $0x2c4] sm:$0xf]  ;;  %v15620_v21 = vor.u32 %v18750_v41, %v15617_v17 }
 0x6cc   :  { %10419 = vmatpush.bf16.msrb.mxu3 %v17312_v2  ;;  %10440 = vmatpush.bf16.msra.mxu1 %v16004_v58  ;;  %v15873_v57 = vld [vmem:[#allocation3 + $0x2e0] sm:$0xf0] }
 0x6cd   :  { %10406 = vmatmul.bf16.vlgmr.msrb.gmra.mxu2 %v20069_v52  ;;  %v16129_v50 = vld [vmem:[#allocation3 + $0x4e0] sm:$0xf0]  ;;  %v15876_v51 = vor.u32 %v18814_v13, %v15873_v57 }
 0x6ce   :  { %10454 = vmatpush.bf16.msra.mxu2 %v16260_v53  ;;  %10427 = vmatpush.bf16.msra.mxu0 %v15716_v43  ;;  %v18942_v47 = vld [vmem:[#allocation3 + $0x6c4] sm:$0xf]  ;;  %v16132_v56 = vor.u32 %v18878_v1, %v16129_v50 }
 0x6cf   :  { %10420 = vmatmul.bf16.vlgmr.msrb.gmra.mxu3 %v20081_v54  ;;  %v16385_v12 = vld [vmem:[#allocation3 + $0x6e0] sm:$0xf0] }
 0x6d0   :  { %10468 = vmatpush.bf16.msra.mxu3 %v16516_v4  ;;  %10441 = vmatpush.bf16.msra.mxu1 %v15972_v14  ;;  %v18742_v16 = vld [vmem:[#allocation3 + $0x84] sm:$0xf]  ;;  %v16388_v0 = vor.u32 %v18942_v47, %v16385_v12 }
 0x6d1   :  { %v15585_v60 = vld [vmem:[#allocation3 + $0xa0] sm:$0xf0] }
 0x6d2   :  { %10455 = vmatpush.bf16.msra.mxu2 %v16228_v19  ;;  %10428 = vmatpush.bf16.msra.mxu0 %v15684_v18  ;;  %v18806_v49 = vld [vmem:[#allocation3 + $0x284] sm:$0xf]  ;;  %v15588_v59 = vor.u32 %v18742_v16, %v15585_v60 }
 0x6d3   :  { %v15841_v2 = vld [vmem:[#allocation3 + $0x2a0] sm:$0xf0] }
 0x6d4   :  { %10469 = vmatpush.bf16.msra.mxu3 %v16484_v55  ;;  %10442 = vmatpush.bf16.msra.mxu1 %v15940_v27  ;;  %v18870_v63 = vld [vmem:[#allocation3 + $0x484] sm:$0xf]  ;;  %v15844_v31 = vor.u32 %v18806_v49, %v15841_v2 }
 0x6d5   :  { %v16097_v58 = vld [vmem:[#allocation3 + $0x4a0] sm:$0xf0] }
 0x6d6   :  { %10456 = vmatpush.bf16.msra.mxu2 %v16196_v62  ;;  %10429 = vmatpush.bf16.msra.mxu0 %v15652_v25  ;;  %v18934_v53 = vld [vmem:[#allocation3 + $0x684] sm:$0xf]  ;;  %v16100_v4 = vor.u32 %v18870_v63, %v16097_v58 }
 0x6d7   :  { %v16353_v33 = vld [vmem:[#allocation3 + $0x6a0] sm:$0xf0] }
 0x6d8   :  { %10470 = vmatpush.bf16.msra.mxu3 %v16452_v45  ;;  %10443 = vmatpush.bf16.msra.mxu1 %v15908_v8  ;;  %v18734_v36 = vld [vmem:[#allocation3 + $0x44] sm:$0xf]  ;;  %v16356_v39 = vor.u32 %v18934_v53, %v16353_v33 }
 0x6d9   :  { %v15553_v38 = vld [vmem:[#allocation3 + $0x60] sm:$0xf0] }
 0x6da   :  { %10457 = vmatpush.bf16.msra.mxu2 %v16164_v22  ;;  %10430 = vmatpush.bf16.msra.mxu0 %v15620_v21  ;;  %v18798_v15 = vld [vmem:[#allocation3 + $0x244] sm:$0xf]  ;;  %v15556_v10 = vor.u32 %v18734_v36, %v15553_v38 }
 0x6db   :  { %v15809_v48 = vld [vmem:[#allocation3 + $0x260] sm:$0xf0] }
 0x6dc   :  { %10471 = vmatpush.bf16.msra.mxu3 %v16420_v26  ;;  %10444 = vmatpush.bf16.msra.mxu1 %v15876_v51  ;;  %v18862_v43 = vld [vmem:[#allocation3 + $0x444] sm:$0xf]  ;;  %v15812_v34 = vor.u32 %v18798_v15, %v15809_v48 }
 0x6dd   :  { %v16065_v14 = vld [vmem:[#allocation3 + $0x460] sm:$0xf0] }
 0x6de   :  { %10458 = vmatpush.bf16.msra.mxu2 %v16132_v56  ;;  %v18926_v19 = vld [vmem:[#allocation3 + $0x644] sm:$0xf]  ;;  %10431 = vmatpush.bf16.msra.mxu0 %v15588_v59  ;;  %v16068_v23 = vor.u32 %v18862_v43, %v16065_v14 }
 0x6df   :  { %v16321_v9 = vld [vmem:[#allocation3 + $0x660] sm:$0xf0] }
 0x6e0   :  { %10472 = vmatpush.bf16.msra.mxu3 %v16388_v0  ;;  %v18726_v6 = vld [vmem:[#allocation3 + $0x4] sm:$0xf]  ;;  %10445 = vmatpush.bf16.msra.mxu1 %v15844_v31  ;;  %v16324_v18 = vor.u32 %v18926_v19, %v16321_v9 }
 0x6e1   :  { %v15521_v55 = vld [vmem:[#allocation3 + $0x20] sm:$0xf0] }
 0x6e2   :  { %10459 = vmatpush.bf16.msra.mxu2 %v16100_v4  ;;  %v18790_v28 = vld [vmem:[#allocation3 + $0x204] sm:$0xf]  ;;  %10432 = vmatpush.bf16.msra.mxu0 %v15556_v10  ;;  %v15524_v35 = vor.u32 %v18726_v6, %v15521_v55 }
 0x6e3   :  { %v15777_v40 = vld [vmem:[#allocation3 + $0x220] sm:$0xf0] }
 0x6e4   :  { %v18854_v32 = vld [vmem:[#allocation3 + $0x404] sm:$0xf]  ;;  %10473 = vmatpush.bf16.msra.mxu3 %v16356_v39  ;;  %10446 = vmatpush.bf16.msra.mxu1 %v15812_v34  ;;  %v15780_v20 = vor.u32 %v18790_v28, %v15777_v40 }
 0x6e5   :  { %v16033_v27 = vld [vmem:[#allocation3 + $0x420] sm:$0xf0] }
 0x6e6   :  { %v18918_v62 = vld [vmem:[#allocation3 + $0x604] sm:$0xf]  ;;  %10460 = vmatpush.bf16.msra.mxu2 %v16068_v23  ;;  %v16036_v25 = vor.u32 %v18854_v32, %v16033_v27  ;;  %10433 = vmatpush.bf16.msra.mxu0 %v15524_v35 }
 0x6e7   :  { %v16289_v44 = vld [vmem:[#allocation3 + $0x620] sm:$0xf0] }
 0x6e8   :  { %v19038_v3 = vld [vmem:[#allocation3 + $0x9c4] sm:$0xf]  ;;  %10474 = vmatpush.bf16.msra.mxu3 %v16324_v18  ;;  %v16292_v41 = vor.u32 %v18918_v62, %v16289_v44  ;;  %10447 = vmatpush.bf16.msra.mxu1 %v15780_v20 }
 0x6e9   :  { %v16769_v7 = vld [vmem:[#allocation3 + $0x9e0] sm:$0xf0]  ;;  %10434 = vmatmul.bf16.vlgmr.msra.gmra.mxu0 %v20035_v37 }
 0x6ea   :  { %v19102_v45 = vld [vmem:[#allocation3 + $0xbc4] sm:$0xf]  ;;  %v16772_v17 = vor.u32 %v19038_v3, %v16769_v7  ;;  %10461 = vmatpush.bf16.msra.mxu2 %v16036_v25 }
 0x6eb   :  { %v17025_v29 = vld [vmem:[#allocation3 + $0xbe0] sm:$0xf0]  ;;  %10448 = vmatmul.bf16.vlgmr.msra.gmra.mxu1 %v20047_v5 }
 0x6ec   :  { %v19166_v42 = vld [vmem:[#allocation3 + $0xdc4] sm:$0xf]  ;;  %v17028_v13 = vor.u32 %v19102_v45, %v17025_v29  ;;  %10475 = vmatpush.bf16.msra.mxu3 %v16292_v41  ;;  %10482 = vmatpush.bf16.msrb.mxu0 %v16772_v17 }
 0x6ed   :  { %v17281_v61 = vld [vmem:[#allocation3 + $0xde0] sm:$0xf0]  ;;  %10462 = vmatmul.bf16.vlgmr.msra.gmra.mxu2 %v20041_v46 }
 0x6ee   :  { %v19230_v8 = vld [vmem:[#allocation3 + $0xfc4] sm:$0xf]  ;;  %v17284_v26 = vor.u32 %v19166_v42, %v17281_v61  ;;  %10496 = vmatpush.bf16.msrb.mxu1 %v17028_v13 }
 0x6ef   :  { %v17537_v22 = vld [vmem:[#allocation3 + $0xfe0] sm:$0xf0]  ;;  %10476 = vmatmul.bf16.vlgmr.msra.gmra.mxu3 %v20053_v30 }
 0x6f0   :  { %v19030_v57 = vld [vmem:[#allocation3 + $0x984] sm:$0xf]  ;;  %v17540_v47 = vor.u32 %v19230_v8, %v17537_v22  ;;  %10510 = vmatpush.bf16.msrb.mxu2 %v17284_v26 }
 0x6f1   :  { %v16737_v1 = vld [vmem:[#allocation3 + $0x9a0] sm:$0xf0] }
 0x6f2   :  { %v19094_v50 = vld [vmem:[#allocation3 + $0xb84] sm:$0xf]  ;;  %v16740_v60 = vor.u32 %v19030_v57, %v16737_v1  ;;  %10524 = vmatpush.bf16.msrb.mxu3 %v17540_v47 }
 0x6f3   :  { %v16993_v12 = vld [vmem:[#allocation3 + $0xba0] sm:$0xf0] }
 0x6f4   :  { %v19158_v21 = vld [vmem:[#allocation3 + $0xd84] sm:$0xf]  ;;  %v16996_v49 = vor.u32 %v19094_v50, %v16993_v12  ;;  %10483 = vmatpush.bf16.msrb.mxu0 %v16740_v60 }
 0x6f5   :  { %v17249_v51 = vld [vmem:[#allocation3 + $0xda0] sm:$0xf0] }
 0x6f6   :  { %v19222_v56 = vld [vmem:[#allocation3 + $0xf84] sm:$0xf]  ;;  %v17252_v0 = vor.u32 %v19158_v21, %v17249_v51  ;;  %10497 = vmatpush.bf16.msrb.mxu1 %v16996_v49 }
 0x6f7   :  { %v17505_v16 = vld [vmem:[#allocation3 + $0xfa0] sm:$0xf0] }
 0x6f8   :  { %v19022_v2 = vld [vmem:[#allocation3 + $0x944] sm:$0xf]  ;;  %v17508_v53 = vor.u32 %v19222_v56, %v17505_v16  ;;  %10511 = vmatpush.bf16.msrb.mxu2 %v17252_v0 }
 0x6f9   :  { %v16705_v63 = vld [vmem:[#allocation3 + $0x960] sm:$0xf0] }
 0x6fa   :  { %v19086_v58 = vld [vmem:[#allocation3 + $0xb44] sm:$0xf]  ;;  %v16708_v38 = vor.u32 %v19022_v2, %v16705_v63  ;;  %10525 = vmatpush.bf16.msrb.mxu3 %v17508_v53 }
 0x6fb   :  { %v16961_v33 = vld [vmem:[#allocation3 + $0xb60] sm:$0xf0] }
 0x6fc   :  { %v19150_v59 = vld [vmem:[#allocation3 + $0xd44] sm:$0xf]  ;;  %v16964_v15 = vor.u32 %v19086_v58, %v16961_v33  ;;  %10484 = vmatpush.bf16.msrb.mxu0 %v16708_v38 }
 0x6fd   :  { %v17217_v31 = vld [vmem:[#allocation3 + $0xd60] sm:$0xf0] }
 0x6fe   :  { %v19214_v4 = vld [vmem:[#allocation3 + $0xf44] sm:$0xf]  ;;  %v17220_v39 = vor.u32 %v19150_v59, %v17217_v31  ;;  %10498 = vmatpush.bf16.msrb.mxu1 %v16964_v15 }
 0x6ff   :  { %v17473_v36 = vld [vmem:[#allocation3 + $0xf60] sm:$0xf0] }
 0x700   :  { %v19014_v48 = vld [vmem:[#allocation3 + $0x904] sm:$0xf]  ;;  %v17476_v19 = vor.u32 %v19214_v4, %v17473_v36  ;;  %10512 = vmatpush.bf16.msrb.mxu2 %v17220_v39 }
 0x701   :  { %v16673_v43 = vld [vmem:[#allocation3 + $0x920] sm:$0xf0] }
 0x702   :  { %v19078_v14 = vld [vmem:[#allocation3 + $0xb04] sm:$0xf]  ;;  %v16676_v23 = vor.u32 %v19014_v48, %v16673_v43  ;;  %10526 = vmatpush.bf16.msrb.mxu3 %v17476_v19  ;;  %v15751_v43 = vld [vmem:[#allocation3 + $0x1c8] sm:$0xf] }
 0x703   :  { %v16929_v9 = vld [vmem:[#allocation3 + $0xb20] sm:$0xf0]  ;;  %v16007_v19 = vld [vmem:[#allocation3 + $0x3c8] sm:$0xf] }
 0x704   :  { %v19142_v10 = vld [vmem:[#allocation3 + $0xd04] sm:$0xf]  ;;  %v16932_v28 = vor.u32 %v19078_v14, %v16929_v9  ;;  %10485 = vmatpush.bf16.msrb.mxu0 %v16676_v23  ;;  %v18787_v14 = vld [vmem:[#allocation3 + $0x1e4] sm:$0xf0] }
 0x705   :  { %v17185_v6 = vld [vmem:[#allocation3 + $0xd20] sm:$0xf0] }
 0x706   :  { %v19206_v55 = vld [vmem:[#allocation3 + $0xf04] sm:$0xf]  ;;  %v17188_v40 = vor.u32 %v19142_v10, %v17185_v6  ;;  %10499 = vmatpush.bf16.msrb.mxu1 %v16932_v28  ;;  %v18851_v10 = vld [vmem:[#allocation3 + $0x3e4] sm:$0xf0] }
 0x707   :  { %v17441_v34 = vld [vmem:[#allocation3 + $0xf20] sm:$0xf0]  ;;  %v16263_v6 = vld [vmem:[#allocation3 + $0x5c8] sm:$0xf] }
 0x708   :  { %v19006_v32 = vld [vmem:[#allocation3 + $0x8c4] sm:$0xf]  ;;  %v17444_v62 = vor.u32 %v19206_v55, %v17441_v34  ;;  %10513 = vmatpush.bf16.msrb.mxu2 %v17188_v40  ;;  %v18915_v55 = vld [vmem:[#allocation3 + $0x5e4] sm:$0xf0] }
 0x709   :  { %v16641_v18 = vld [vmem:[#allocation3 + $0x8e0] sm:$0xf0]  ;;  %v16519_v28 = vld [vmem:[#allocation3 + $0x7c8] sm:$0xf] }
 0x70a   :  { %v19070_v27 = vld [vmem:[#allocation3 + $0xac4] sm:$0xf]  ;;  %v16644_v29 = vor.u32 %v19006_v32, %v16641_v18  ;;  %10527 = vmatpush.bf16.msrb.mxu3 %v17444_v62  ;;  %v18979_v40 = vld [vmem:[#allocation3 + $0x7e4] sm:$0xf0]  ;;  %v15752_v18 = vor.u32 %v18787_v14, %v15751_v43  ;;  %v16264_v62 = vor.u32 %v18915_v55, %v16263_v6 }
 0x70b   :  { %v16897_v44 = vld [vmem:[#allocation3 + $0xae0] sm:$0xf0]  ;;  %v16135_v43 = vld [vmem:[#allocation3 + $0x4c8] sm:$0xf] }
 0x70c   :  { %v19134_v3 = vld [vmem:[#allocation3 + $0xcc4] sm:$0xf]  ;;  %v16900_v42 = vor.u32 %v19070_v27, %v16897_v44  ;;  %10486 = vmatpush.bf16.msrb.mxu0 %v16644_v29  ;;  %v16008_v27 = vor.u32 %v18851_v10, %v16007_v19  ;;  %v15719_v44 = vld [vmem:[#allocation3 + $0x188] sm:$0xf] }
 0x70d   :  { %v17153_v7 = vld [vmem:[#allocation3 + $0xce0] sm:$0xf0]  ;;  %v16231_v29 = vld [vmem:[#allocation3 + $0x588] sm:$0xf] }
 0x70e   :  { %v19198_v45 = vld [vmem:[#allocation3 + $0xec4] sm:$0xf]  ;;  %v17156_v61 = vor.u32 %v19134_v3, %v17153_v7  ;;  %10500 = vmatpush.bf16.msrb.mxu1 %v16900_v42  ;;  %v18779_v3 = vld [vmem:[#allocation3 + $0x1a4] sm:$0xf0] }
 0x70f   :  { %v17409_v35 = vld [vmem:[#allocation3 + $0xee0] sm:$0xf0]  ;;  %v15975_v7 = vld [vmem:[#allocation3 + $0x388] sm:$0xf] }
 0x710   :  { %v18998_v20 = vld [vmem:[#allocation3 + $0x884] sm:$0xf]  ;;  %v17412_v22 = vor.u32 %v19198_v45, %v17409_v35  ;;  %10514 = vmatpush.bf16.msrb.mxu2 %v17156_v61  ;;  %v16520_v45 = vor.u32 %v18979_v40, %v16519_v28  ;;  %v18843_v35 = vld [vmem:[#allocation3 + $0x3a4] sm:$0xf0] }
 0x711   :  { %v16609_v25 = vld [vmem:[#allocation3 + $0x8a0] sm:$0xf0]  ;;  %v18907_v42 = vld [vmem:[#allocation3 + $0x5a4] sm:$0xf0] }
 0x712   :  { %v19062_v8 = vld [vmem:[#allocation3 + $0xa84] sm:$0xf]  ;;  %v16612_v1 = vor.u32 %v18998_v20, %v16609_v25  ;;  %10528 = vmatpush.bf16.msrb.mxu3 %v17412_v22  ;;  %v16487_v61 = vld [vmem:[#allocation3 + $0x788] sm:$0xf]  ;;  %v15720_v25 = vor.u32 %v18779_v3, %v15719_v44  ;;  %v16232_v22 = vor.u32 %v18907_v42, %v16231_v29 }
 0x713   :  { %v16865_v41 = vld [vmem:[#allocation3 + $0xaa0] sm:$0xf0]  ;;  %v18971_v20 = vld [vmem:[#allocation3 + $0x7a4] sm:$0xf0] }
 0x714   :  { %v19126_v17 = vld [vmem:[#allocation3 + $0xc84] sm:$0xf]  ;;  %v16868_v50 = vor.u32 %v19062_v8, %v16865_v41  ;;  %10487 = vmatpush.bf16.msrb.mxu0 %v16612_v1  ;;  %v15976_v8 = vor.u32 %v18843_v35, %v15975_v7  ;;  %v15687_v41 = vld [vmem:[#allocation3 + $0x148] sm:$0xf] }
 0x715   :  { %v17121_v13 = vld [vmem:[#allocation3 + $0xca0] sm:$0xf0]  ;;  %v16199_v1 = vld [vmem:[#allocation3 + $0x548] sm:$0xf] }
 0x716   :  { %v19190_v26 = vld [vmem:[#allocation3 + $0xe84] sm:$0xf]  ;;  %v17124_v47 = vor.u32 %v19126_v17, %v17121_v13  ;;  %10501 = vmatpush.bf16.msrb.mxu1 %v16868_v50  ;;  %v18771_v17 = vld [vmem:[#allocation3 + $0x164] sm:$0xf0] }
 0x717   :  { %v17377_v57 = vld [vmem:[#allocation3 + $0xea0] sm:$0xf0]  ;;  %v15943_v13 = vld [vmem:[#allocation3 + $0x348] sm:$0xf] }
 0x718   :  { %v18990_v12 = vld [vmem:[#allocation3 + $0x844] sm:$0xf]  ;;  %v17380_v56 = vor.u32 %v19190_v26, %v17377_v57  ;;  %10515 = vmatpush.bf16.msrb.mxu2 %v17124_v47  ;;  %v16488_v26 = vor.u32 %v18971_v20, %v16487_v61  ;;  %v18835_v57 = vld [vmem:[#allocation3 + $0x364] sm:$0xf0] }
 0x719   :  { %v16577_v21 = vld [vmem:[#allocation3 + $0x860] sm:$0xf0]  ;;  %v18899_v50 = vld [vmem:[#allocation3 + $0x564] sm:$0xf0] }
 0x71a   :  { %v19054_v51 = vld [vmem:[#allocation3 + $0xa44] sm:$0xf]  ;;  %v16580_v63 = vor.u32 %v18990_v12, %v16577_v21  ;;  %10529 = vmatpush.bf16.msrb.mxu3 %v17380_v56  ;;  %v16455_v47 = vld [vmem:[#allocation3 + $0x748] sm:$0xf]  ;;  %v15688_v21 = vor.u32 %v18771_v17, %v15687_v41  ;;  %v16200_v56 = vor.u32 %v18899_v50, %v16199_v1 }
 0x71b   :  { %v16833_v16 = vld [vmem:[#allocation3 + $0xa60] sm:$0xf0]  ;;  %v18963_v12 = vld [vmem:[#allocation3 + $0x764] sm:$0xf0] }
 0x71c   :  { %v19118_v60 = vld [vmem:[#allocation3 + $0xc44] sm:$0xf]  ;;  %v16836_v33 = vor.u32 %v19054_v51, %v16833_v16  ;;  %10488 = vmatpush.bf16.msrb.mxu0 %v16580_v63  ;;  %v15944_v51 = vor.u32 %v18835_v57, %v15943_v13  ;;  %v15655_v16 = vld [vmem:[#allocation3 + $0x108] sm:$0xf] }
 0x71d   :  { %v17089_v49 = vld [vmem:[#allocation3 + $0xc60] sm:$0xf0]  ;;  %v16167_v63 = vld [vmem:[#allocation3 + $0x508] sm:$0xf] }
 0x71e   :  { %v19182_v0 = vld [vmem:[#allocation3 + $0xe44] sm:$0xf]  ;;  %v17092_v59 = vor.u32 %v19118_v60, %v17089_v49  ;;  %10502 = vmatpush.bf16.msrb.mxu1 %v16836_v33  ;;  %v18763_v60 = vld [vmem:[#allocation3 + $0x124] sm:$0xf0] }
 0x71f   :  { %v17345_v2 = vld [vmem:[#allocation3 + $0xe60] sm:$0xf0]  ;;  %v15911_v49 = vld [vmem:[#allocation3 + $0x308] sm:$0xf] }
 0x720   :  { %v18982_v58 = vld [vmem:[#allocation3 + $0x804] sm:$0xf]  ;;  %v17348_v38 = vor.u32 %v19182_v0, %v17345_v2  ;;  %10516 = vmatpush.bf16.msrb.mxu2 %v17092_v59  ;;  %v16456_v0 = vor.u32 %v18963_v12, %v16455_v47  ;;  %v18827_v2 = vld [vmem:[#allocation3 + $0x324] sm:$0xf0]  ;;  %v15656_v59 = vor.u32 %v18763_v60, %v15655_v16 }
 0x721   :  { %v16545_v53 = vld [vmem:[#allocation3 + $0x820] sm:$0xf0]  ;;  %v18955_v33 = vld [vmem:[#allocation3 + $0x724] sm:$0xf0] }
 0x722   :  { %v19046_v31 = vld [vmem:[#allocation3 + $0xa04] sm:$0xf]  ;;  %v16548_v9 = vor.u32 %v18982_v58, %v16545_v53  ;;  %10530 = vmatpush.bf16.msrb.mxu3 %v17348_v38  ;;  %v18891_v58 = vld [vmem:[#allocation3 + $0x524] sm:$0xf0] }
 0x723   :  { %v16801_v4 = vld [vmem:[#allocation3 + $0xa20] sm:$0xf0]  ;;  %v16423_v53 = vld [vmem:[#allocation3 + $0x708] sm:$0xf] }
 0x724   :  { %v19110_v36 = vld [vmem:[#allocation3 + $0xc04] sm:$0xf]  ;;  %v16804_v34 = vor.u32 %v19046_v31, %v16801_v4  ;;  %10489 = vmatpush.bf16.msrb.mxu0 %v16548_v9  ;;  %v15912_v31 = vor.u32 %v18827_v2, %v15911_v49  ;;  %v16168_v4 = vor.u32 %v18891_v58, %v16167_v63  ;;  %v18755_v38 = vld [vmem:[#allocation3 + $0xe4] sm:$0xf0] }
 0x725   :  { %v17057_v15 = vld [vmem:[#allocation3 + $0xc20] sm:$0xf0]  ;;  %v18883_v14 = vld [vmem:[#allocation3 + $0x4e4] sm:$0xf0] }
 0x726   :  { %v19174_v39 = vld [vmem:[#allocation3 + $0xe04] sm:$0xf]  ;;  %v17060_v23 = vor.u32 %v19110_v36, %v17057_v15  ;;  %10503 = vmatpush.bf16.msrb.mxu1 %v16804_v34  ;;  %v15623_v36 = vld [vmem:[#allocation3 + $0xc8] sm:$0xf]  ;;  %v16136_v55 = vor.u32 %v18883_v14, %v16135_v43 }
 0x727   :  { %v17313_v48 = vld [vmem:[#allocation3 + $0xe20] sm:$0xf0]  ;;  %10490 = vmatmul.bf16.vlgmr.msrb.gmra.mxu0 %v20063_v24  ;;  %v15879_v15 = vld [vmem:[#allocation3 + $0x2c8] sm:$0xf]  ;;  %v15624_v10 = vor.u32 %v18755_v38, %v15623_v36 }
 0x728   :  { %v17316_v32 = vor.u32 %v19174_v39, %v17313_v48  ;;  %10517 = vmatpush.bf16.msrb.mxu2 %v17060_v23  ;;  %10538 = vmatpush.bf16.msra.mxu0 %v15752_v18  ;;  %v16424_v39 = vor.u32 %v18955_v33, %v16423_v53  ;;  %v18819_v48 = vld [vmem:[#allocation3 + $0x2e4] sm:$0xf0] }
 0x729   :  { %10504 = vmatmul.bf16.vlgmr.msrb.gmra.mxu1 %v20075_v11  ;;  %v16391_v19 = vld [vmem:[#allocation3 + $0x6c8] sm:$0xf]  ;;  %v15880_v6 = vor.u32 %v18819_v48, %v15879_v15 }
 0x72a   :  { %10531 = vmatpush.bf16.msrb.mxu3 %v17316_v32  ;;  %10552 = vmatpush.bf16.msra.mxu1 %v16008_v27  ;;  %v18947_v9 = vld [vmem:[#allocation3 + $0x6e4] sm:$0xf0] }
 0x72b   :  { %10518 = vmatmul.bf16.vlgmr.msrb.gmra.mxu2 %v20069_v52  ;;  %v15591_v34 = vld [vmem:[#allocation3 + $0x88] sm:$0xf]  ;;  %v16392_v40 = vor.u32 %v18947_v9, %v16391_v19 }
 0x72c   :  { %10566 = vmatpush.bf16.msra.mxu2 %v16264_v62  ;;  %10539 = vmatpush.bf16.msra.mxu0 %v15720_v25  ;;  %v18747_v23 = vld [vmem:[#allocation3 + $0xa4] sm:$0xf0] }
 0x72d   :  { %10532 = vmatmul.bf16.vlgmr.msrb.gmra.mxu3 %v20081_v54  ;;  %v15847_v28 = vld [vmem:[#allocation3 + $0x288] sm:$0xf]  ;;  %v15592_v3 = vor.u32 %v18747_v23, %v15591_v34 }
 0x72e   :  { %10580 = vmatpush.bf16.msra.mxu3 %v16520_v45  ;;  %10553 = vmatpush.bf16.msra.mxu1 %v15976_v8  ;;  %v18811_v32 = vld [vmem:[#allocation3 + $0x2a4] sm:$0xf0] }
 0x72f   :  { %v16103_v18 = vld [vmem:[#allocation3 + $0x488] sm:$0xf]  ;;  %v15848_v7 = vor.u32 %v18811_v32, %v15847_v28 }
 0x730   :  { %10567 = vmatpush.bf16.msra.mxu2 %v16232_v22  ;;  %10540 = vmatpush.bf16.msra.mxu0 %v15688_v21  ;;  %v18875_v27 = vld [vmem:[#allocation3 + $0x4a4] sm:$0xf0] }
 0x731   :  { %v16359_v62 = vld [vmem:[#allocation3 + $0x688] sm:$0xf]  ;;  %v16104_v45 = vor.u32 %v18875_v27, %v16103_v18 }
 0x732   :  { %10581 = vmatpush.bf16.msra.mxu3 %v16488_v26  ;;  %10554 = vmatpush.bf16.msra.mxu1 %v15944_v51  ;;  %v18939_v44 = vld [vmem:[#allocation3 + $0x6a4] sm:$0xf0] }
 0x733   :  { %v15559_v35 = vld [vmem:[#allocation3 + $0x48] sm:$0xf]  ;;  %v16360_v61 = vor.u32 %v18939_v44, %v16359_v62  ;;  %v20095_v62 = vld [vmem:[#allocation14] sm:$0xff] }
 0x734   :  { %10568 = vmatpush.bf16.msra.mxu2 %v16200_v56  ;;  %10541 = vmatpush.bf16.msra.mxu0 %v15656_v59  ;;  %v18739_v29 = vld [vmem:[#allocation3 + $0x64] sm:$0xf0] }
 0x735   :  { %v15815_v42 = vld [vmem:[#allocation3 + $0x248] sm:$0xf]  ;;  %v15560_v17 = vor.u32 %v18739_v29, %v15559_v35 }
 0x736   :  { %10582 = vmatpush.bf16.msra.mxu3 %v16456_v0  ;;  %10555 = vmatpush.bf16.msra.mxu1 %v15912_v31  ;;  %v18803_v20 = vld [vmem:[#allocation3 + $0x264] sm:$0xf0] }
 0x737   :  { %v16071_v25 = vld [vmem:[#allocation3 + $0x448] sm:$0xf]  ;;  %v15816_v57 = vor.u32 %v18803_v20, %v15815_v42 }
 0x738   :  { %10569 = vmatpush.bf16.msra.mxu2 %v16168_v4  ;;  %10542 = vmatpush.bf16.msra.mxu0 %v15624_v10  ;;  %v18867_v8 = vld [vmem:[#allocation3 + $0x464] sm:$0xf0] }
 0x739   :  { %v16327_v22 = vld [vmem:[#allocation3 + $0x648] sm:$0xf]  ;;  %v16072_v1 = vor.u32 %v18867_v8, %v16071_v25 }
 0x73a   :  { %10583 = vmatpush.bf16.msra.mxu3 %v16424_v39  ;;  %10556 = vmatpush.bf16.msra.mxu1 %v15880_v6  ;;  %v18931_v41 = vld [vmem:[#allocation3 + $0x664] sm:$0xf0] }
 0x73b   :  { %v15527_v13 = vld [vmem:[#allocation3 + $0x8] sm:$0xf]  ;;  %v16328_v21 = vor.u32 %v18931_v41, %v16327_v22 }
 0x73c   :  { %10570 = vmatpush.bf16.msra.mxu2 %v16136_v55  ;;  %10543 = vmatpush.bf16.msra.mxu0 %v15592_v3  ;;  %v18731_v26 = vld [vmem:[#allocation3 + $0x24] sm:$0xf0] }
 0x73d   :  { %v15783_v50 = vld [vmem:[#allocation3 + $0x208] sm:$0xf]  ;;  %v15528_v2 = vor.u32 %v18731_v26, %v15527_v13 }
 0x73e   :  { %10584 = vmatpush.bf16.msra.mxu3 %v16392_v40  ;;  %10557 = vmatpush.bf16.msra.mxu1 %v15848_v7  ;;  %v18795_v47 = vld [vmem:[#allocation3 + $0x224] sm:$0xf0] }
 0x73f   :  { %v16039_v12 = vld [vmem:[#allocation3 + $0x408] sm:$0xf]  ;;  %v15784_v33 = vor.u32 %v18795_v47, %v15783_v50  ;;  %v10323_v47 = vpop.f32.mrf.mxu0 }
 0x740   :  { %10571 = vmatpush.bf16.msra.mxu2 %v16104_v45  ;;  %v18859_v51 = vld [vmem:[#allocation3 + $0x424] sm:$0xf0]  ;;  %10544 = vmatpush.bf16.msra.mxu0 %v15560_v17 }
 0x741   :  { %v16295_v56 = vld [vmem:[#allocation3 + $0x608] sm:$0xf]  ;;  %v16040_v59 = vor.u32 %v18859_v51, %v16039_v12 }
 0x742   :  { %10585 = vmatpush.bf16.msra.mxu3 %v16360_v61  ;;  %v18923_v16 = vld [vmem:[#allocation3 + $0x624] sm:$0xf0]  ;;  %10558 = vmatpush.bf16.msra.mxu1 %v15816_v57  ;;  %v7738_v61 = vperm.slane %v20095_v62, 0 }
 0x743   :  { %v16775_v60 = vld [vmem:[#allocation3 + $0x9c8] sm:$0xf]  ;;  %v16296_v36 = vor.u32 %v18923_v16, %v16295_v56 }
 0x744   :  { %v19043_v49 = vld [vmem:[#allocation3 + $0x9e4] sm:$0xf0]  ;;  %10572 = vmatpush.bf16.msra.mxu2 %v16072_v1  ;;  %10545 = vmatpush.bf16.msra.mxu0 %v15528_v2 }
 0x745   :  { %v17031_v0 = vld [vmem:[#allocation3 + $0xbc8] sm:$0xf]  ;;  %v16776_v38 = vor.u32 %v19043_v49, %v16775_v60 }
 0x746   :  { %v19107_v63 = vld [vmem:[#allocation3 + $0xbe4] sm:$0xf0]  ;;  %10586 = vmatpush.bf16.msra.mxu3 %v16328_v21  ;;  %10559 = vmatpush.bf16.msra.mxu1 %v15784_v33  ;;  %v10324_v21 = vadd.f32 %v10323_v47, %v7738_v61 }
 0x747   :  { %v17287_v58 = vld [vmem:[#allocation3 + $0xdc8] sm:$0xf]  ;;  %v17032_v15 = vor.u32 %v19107_v63, %v17031_v0  ;;  %10546 = vmatmul.bf16.vlgmr.msra.gmra.mxu0 %v20035_v37  ;;  %v10337_v0 = vpop.f32.mrf.mxu1 }
 0x748   :  { %v19171_v53 = vld [vmem:[#allocation3 + $0xde4] sm:$0xf0]  ;;  %10573 = vmatpush.bf16.msra.mxu2 %v16040_v59  ;;  %10594 = vmatpush.bf16.msrb.mxu0 %v16776_v38  ;;  %v10338_v33 = vadd.f32 %v10337_v0, %v10324_v21  ;;  %v18783_v21 = vld [vmem:[#allocation3 + $0x1cc] sm:$0xf] }
 0x749   :  { %v17543_v31 = vld [vmem:[#allocation3 + $0xfc8] sm:$0xf]  ;;  %v17288_v39 = vor.u32 %v19171_v53, %v17287_v58  ;;  %10560 = vmatmul.bf16.vlgmr.msra.gmra.mxu1 %v20047_v5  ;;  %v16265_v0 = vld [vmem:[#allocation3 + $0x5e8] sm:$0xf0] }
 0x74a   :  { %v19235_v4 = vld [vmem:[#allocation3 + $0xfe4] sm:$0xf0]  ;;  %10587 = vmatpush.bf16.msra.mxu3 %v16296_v36  ;;  %10608 = vmatpush.bf16.msrb.mxu1 %v17032_v15 }
 0x74b   :  { %v16743_v48 = vld [vmem:[#allocation3 + $0x988] sm:$0xf]  ;;  %v17544_v19 = vor.u32 %v19235_v4, %v17543_v31  ;;  %10574 = vmatmul.bf16.vlgmr.msra.gmra.mxu2 %v20041_v46 }
 0x74c   :  { %v19035_v43 = vld [vmem:[#allocation3 + $0x9a4] sm:$0xf0]  ;;  %10622 = vmatpush.bf16.msrb.mxu2 %v17288_v39 }
 0x74d   :  { %v16999_v14 = vld [vmem:[#allocation3 + $0xb88] sm:$0xf]  ;;  %v16744_v23 = vor.u32 %v19035_v43, %v16743_v48  ;;  %10588 = vmatmul.bf16.vlgmr.msra.gmra.mxu3 %v20053_v30 }
 0x74e   :  { %v19099_v9 = vld [vmem:[#allocation3 + $0xba4] sm:$0xf0]  ;;  %10636 = vmatpush.bf16.msrb.mxu3 %v17544_v19 }
 0x74f   :  { %v17255_v10 = vld [vmem:[#allocation3 + $0xd88] sm:$0xf]  ;;  %v17000_v40 = vor.u32 %v19099_v9, %v16999_v14  ;;  %10595 = vmatpush.bf16.msrb.mxu0 %v16744_v23 }
 0x750   :  { %v19163_v6 = vld [vmem:[#allocation3 + $0xda4] sm:$0xf0] }
 0x751   :  { %v17511_v55 = vld [vmem:[#allocation3 + $0xf88] sm:$0xf]  ;;  %v17256_v32 = vor.u32 %v19163_v6, %v17255_v10  ;;  %10609 = vmatpush.bf16.msrb.mxu1 %v17000_v40  ;;  %v10351_v10 = vpop.f32.mrf.mxu2 }
 0x752   :  { %v19227_v34 = vld [vmem:[#allocation3 + $0xfa4] sm:$0xf0] }
 0x753   :  { %v16711_v28 = vld [vmem:[#allocation3 + $0x948] sm:$0xf]  ;;  %v17512_v44 = vor.u32 %v19227_v34, %v17511_v55  ;;  %10623 = vmatpush.bf16.msrb.mxu2 %v17256_v32  ;;  %v10352_v34 = vadd.f32 %v10351_v10, %v10338_v33  ;;  %v18967_v10 = vld [vmem:[#allocation3 + $0x78c] sm:$0xf] }
 0x754   :  { %v19027_v18 = vld [vmem:[#allocation3 + $0x964] sm:$0xf0] }
 0x755   :  { %v16967_v27 = vld [vmem:[#allocation3 + $0xb48] sm:$0xf]  ;;  %v16712_v42 = vor.u32 %v19027_v18, %v16711_v28  ;;  %10637 = vmatpush.bf16.msrb.mxu3 %v17512_v44  ;;  %v10365_v28 = vpop.f32.mrf.mxu3 }
 0x756   :  { %v19091_v3 = vld [vmem:[#allocation3 + $0xb64] sm:$0xf0] }
 0x757   :  { %v17223_v7 = vld [vmem:[#allocation3 + $0xd48] sm:$0xf]  ;;  %v16968_v20 = vor.u32 %v19091_v3, %v16967_v27  ;;  %10596 = vmatpush.bf16.msrb.mxu0 %v16712_v42  ;;  %v20104_v3 = vadd.f32 %v10365_v28, %v10352_v34 }
 0x758   :  { %v19155_v45 = vld [vmem:[#allocation3 + $0xd64] sm:$0xf0] }
 0x759   :  { %v17479_v35 = vld [vmem:[#allocation3 + $0xf48] sm:$0xf]  ;;  %v17224_v25 = vor.u32 %v19155_v45, %v17223_v7  ;;  %10610 = vmatpush.bf16.msrb.mxu1 %v16968_v20 }
 0x75a   :  { %v19219_v29 = vld [vmem:[#allocation3 + $0xf64] sm:$0xf0] }
 0x75b   :  { %v16679_v8 = vld [vmem:[#allocation3 + $0x908] sm:$0xf]  ;;  %v17480_v17 = vor.u32 %v19219_v29, %v17479_v35  ;;  %10624 = vmatpush.bf16.msrb.mxu2 %v17224_v25 }
 0x75c   :  { %v19019_v22 = vld [vmem:[#allocation3 + $0x924] sm:$0xf0] }
 0x75d   :  { %v16935_v41 = vld [vmem:[#allocation3 + $0xb08] sm:$0xf]  ;;  %v16680_v12 = vor.u32 %v19019_v22, %v16679_v8  ;;  %10638 = vmatpush.bf16.msrb.mxu3 %v17480_v17 }
 0x75e   :  { %v19083_v13 = vld [vmem:[#allocation3 + $0xb24] sm:$0xf0] }
 0x75f   :  { %v17191_v26 = vld [vmem:[#allocation3 + $0xd08] sm:$0xf]  ;;  %v16936_v51 = vor.u32 %v19083_v13, %v16935_v41  ;;  %10597 = vmatpush.bf16.msrb.mxu0 %v16680_v12 }
 0x760   :  { %v19147_v57 = vld [vmem:[#allocation3 + $0xd24] sm:$0xf0] }
 0x761   :  { %v17447_v1 = vld [vmem:[#allocation3 + $0xf08] sm:$0xf]  ;;  %v17192_v56 = vor.u32 %v19147_v57, %v17191_v26  ;;  %10611 = vmatpush.bf16.msrb.mxu1 %v16936_v51  ;;  %v15753_v51 = vld [vmem:[#allocation3 + $0x1e8] sm:$0xf0] }
 0x762   :  { %v19211_v50 = vld [vmem:[#allocation3 + $0xf24] sm:$0xf0] }
 0x763   :  { %v16647_v16 = vld [vmem:[#allocation3 + $0x8c8] sm:$0xf]  ;;  %v17448_v2 = vor.u32 %v19211_v50, %v17447_v1  ;;  %10625 = vmatpush.bf16.msrb.mxu2 %v17192_v56  ;;  %v18847_v56 = vld [vmem:[#allocation3 + $0x3cc] sm:$0xf] }
 0x764   :  { %v19011_v60 = vld [vmem:[#allocation3 + $0x8e4] sm:$0xf0] }
 0x765   :  { %v16903_v49 = vld [vmem:[#allocation3 + $0xac8] sm:$0xf]  ;;  %v16648_v4 = vor.u32 %v19011_v60, %v16647_v16  ;;  %10639 = vmatpush.bf16.msrb.mxu3 %v17448_v2  ;;  %v16009_v60 = vld [vmem:[#allocation3 + $0x3e8] sm:$0xf0] }
 0x766   :  { %v19075_v63 = vld [vmem:[#allocation3 + $0xae4] sm:$0xf0] }
 0x767   :  { %v17159_v58 = vld [vmem:[#allocation3 + $0xcc8] sm:$0xf]  ;;  %v16904_v36 = vor.u32 %v19075_v63, %v16903_v49  ;;  %10598 = vmatpush.bf16.msrb.mxu0 %v16648_v4  ;;  %v18911_v49 = vld [vmem:[#allocation3 + $0x5cc] sm:$0xf] }
 0x768   :  { %v19139_v53 = vld [vmem:[#allocation3 + $0xce4] sm:$0xf0]  ;;  %v16268_v4 = vor.u32 %v18911_v49, %v16265_v0 }
 0x769   :  { %v17415_v59 = vld [vmem:[#allocation3 + $0xec8] sm:$0xf]  ;;  %v17160_v38 = vor.u32 %v19139_v53, %v17159_v58  ;;  %10612 = vmatpush.bf16.msrb.mxu1 %v16904_v36  ;;  %v18975_v58 = vld [vmem:[#allocation3 + $0x7cc] sm:$0xf]  ;;  %v10325_v36 = vpop.f32.mrf.mxu0 }
 0x76a   :  { %v19203_v31 = vld [vmem:[#allocation3 + $0xee4] sm:$0xf0]  ;;  %v16521_v53 = vld [vmem:[#allocation3 + $0x7e8] sm:$0xf0]  ;;  %v10326_v34 = vadd.f32 %v10325_v36, %v7738_v61 }
 0x76b   :  { %v16615_v15 = vld [vmem:[#allocation3 + $0x888] sm:$0xf]  ;;  %v17416_v43 = vor.u32 %v19203_v31, %v17415_v59  ;;  %10626 = vmatpush.bf16.msrb.mxu2 %v17160_v38  ;;  %v15756_v59 = vor.u32 %v18783_v21, %v15753_v51  ;;  %v16012_v31 = vor.u32 %v18847_v56, %v16009_v60  ;;  %v18775_v38 = vld [vmem:[#allocation3 + $0x18c] sm:$0xf] }
 0x76c   :  { %v19003_v39 = vld [vmem:[#allocation3 + $0x8a4] sm:$0xf0]  ;;  %v16425_v21 = vld [vmem:[#allocation3 + $0x728] sm:$0xf0] }
 0x76d   :  { %v16871_v48 = vld [vmem:[#allocation3 + $0xa88] sm:$0xf]  ;;  %v16616_v23 = vor.u32 %v19003_v39, %v16615_v15  ;;  %10640 = vmatpush.bf16.msrb.mxu3 %v17416_v43  ;;  %v15721_v15 = vld [vmem:[#allocation3 + $0x1a8] sm:$0xf0] }
 0x76e   :  { %v19067_v14 = vld [vmem:[#allocation3 + $0xaa4] sm:$0xf0]  ;;  %v18839_v39 = vld [vmem:[#allocation3 + $0x38c] sm:$0xf] }
 0x76f   :  { %v17127_v19 = vld [vmem:[#allocation3 + $0xc88] sm:$0xf]  ;;  %v16872_v40 = vor.u32 %v19067_v14, %v16871_v48  ;;  %10599 = vmatpush.bf16.msrb.mxu0 %v16616_v23  ;;  %v16524_v48 = vor.u32 %v18975_v58, %v16521_v53  ;;  %v15977_v43 = vld [vmem:[#allocation3 + $0x3a8] sm:$0xf0] }
 0x770   :  { %v19131_v9 = vld [vmem:[#allocation3 + $0xca4] sm:$0xf0]  ;;  %v18903_v14 = vld [vmem:[#allocation3 + $0x58c] sm:$0xf]  ;;  %v15980_v23 = vor.u32 %v18839_v39, %v15977_v43 }
 0x771   :  { %v17383_v6 = vld [vmem:[#allocation3 + $0xe88] sm:$0xf]  ;;  %v17128_v32 = vor.u32 %v19131_v9, %v17127_v19  ;;  %10613 = vmatpush.bf16.msrb.mxu1 %v16872_v40  ;;  %v16233_v19 = vld [vmem:[#allocation3 + $0x5a8] sm:$0xf0]  ;;  %v10339_v9 = vpop.f32.mrf.mxu1 }
 0x772   :  { %v19195_v55 = vld [vmem:[#allocation3 + $0xea4] sm:$0xf0]  ;;  %v16236_v28 = vor.u32 %v18903_v14, %v16233_v19  ;;  %v18767_v40 = vld [vmem:[#allocation3 + $0x14c] sm:$0xf] }
 0x773   :  { %v16583_v18 = vld [vmem:[#allocation3 + $0x848] sm:$0xf]  ;;  %v17384_v7 = vor.u32 %v19195_v55, %v17383_v6  ;;  %10627 = vmatpush.bf16.msrb.mxu2 %v17128_v32  ;;  %v16489_v6 = vld [vmem:[#allocation3 + $0x7a8] sm:$0xf0]  ;;  %v15724_v55 = vor.u32 %v18775_v38, %v15721_v15 }
 0x774   :  { %v18995_v27 = vld [vmem:[#allocation3 + $0x864] sm:$0xf0]  ;;  %v15689_v32 = vld [vmem:[#allocation3 + $0x168] sm:$0xf0] }
 0x775   :  { %v16839_v44 = vld [vmem:[#allocation3 + $0xa48] sm:$0xf]  ;;  %v16584_v25 = vor.u32 %v18995_v27, %v16583_v18  ;;  %10641 = vmatpush.bf16.msrb.mxu3 %v17384_v7  ;;  %v18831_v18 = vld [vmem:[#allocation3 + $0x34c] sm:$0xf]  ;;  %v16492_v27 = vor.u32 %v18967_v10, %v16489_v6  ;;  %v15692_v61 = vor.u32 %v18767_v40, %v15689_v32 }
 0x776   :  { %v19059_v45 = vld [vmem:[#allocation3 + $0xa64] sm:$0xf0]  ;;  %v18895_v7 = vld [vmem:[#allocation3 + $0x54c] sm:$0xf] }
 0x777   :  { %v17095_v35 = vld [vmem:[#allocation3 + $0xc48] sm:$0xf]  ;;  %v16840_v41 = vor.u32 %v19059_v45, %v16839_v44  ;;  %10600 = vmatpush.bf16.msrb.mxu0 %v16584_v25  ;;  %v15945_v44 = vld [vmem:[#allocation3 + $0x368] sm:$0xf0] }
 0x778   :  { %v19123_v29 = vld [vmem:[#allocation3 + $0xc64] sm:$0xf0]  ;;  %v16201_v45 = vld [vmem:[#allocation3 + $0x568] sm:$0xf0]  ;;  %v15948_v25 = vor.u32 %v18831_v18, %v15945_v44 }
 0x779   :  { %v17351_v42 = vld [vmem:[#allocation3 + $0xe48] sm:$0xf]  ;;  %v17096_v17 = vor.u32 %v19123_v29, %v17095_v35  ;;  %10614 = vmatpush.bf16.msrb.mxu1 %v16840_v41  ;;  %v18959_v35 = vld [vmem:[#allocation3 + $0x74c] sm:$0xf] }
 0x77a   :  { %v19187_v20 = vld [vmem:[#allocation3 + $0xe64] sm:$0xf0]  ;;  %v16457_v29 = vld [vmem:[#allocation3 + $0x768] sm:$0xf0] }
 0x77b   :  { %v16551_v8 = vld [vmem:[#allocation3 + $0x808] sm:$0xf]  ;;  %v17352_v1 = vor.u32 %v19187_v20, %v17351_v42  ;;  %10628 = vmatpush.bf16.msrb.mxu2 %v17096_v17  ;;  %v10353_v42 = vpop.f32.mrf.mxu2  ;;  %v10340_v20 = vadd.f32 %v10339_v9, %v10326_v34  ;;  %v18759_v41 = vld [vmem:[#allocation3 + $0x10c] sm:$0xf] }
 0x77c   :  { %v18987_v22 = vld [vmem:[#allocation3 + $0x824] sm:$0xf0]  ;;  %v15657_v17 = vld [vmem:[#allocation3 + $0x128] sm:$0xf0] }
 0x77d   :  { %v16807_v13 = vld [vmem:[#allocation3 + $0xa08] sm:$0xf]  ;;  %v16552_v16 = vor.u32 %v18987_v22, %v16551_v8  ;;  %10642 = vmatpush.bf16.msrb.mxu3 %v17352_v1  ;;  %v16204_v8 = vor.u32 %v18895_v7, %v16201_v45  ;;  %v10367_v22 = vpop.f32.mrf.mxu3  ;;  %v18887_v1 = vld [vmem:[#allocation3 + $0x50c] sm:$0xf]  ;;  %v15660_v56 = vor.u32 %v18759_v41, %v15657_v17  ;;  %v10354_v60 = vadd.f32 %v10353_v42, %v10340_v20 }
 0x77e   :  { %v19051_v26 = vld [vmem:[#allocation3 + $0xa24] sm:$0xf0]  ;;  %v18815_v58 = vld [vmem:[#allocation3 + $0x2cc] sm:$0xf] }
 0x77f   :  { %v17063_v57 = vld [vmem:[#allocation3 + $0xc08] sm:$0xf]  ;;  %v16808_v2 = vor.u32 %v19051_v26, %v16807_v13  ;;  %10601 = vmatpush.bf16.msrb.mxu0 %v16552_v16  ;;  %v18823_v13 = vld [vmem:[#allocation3 + $0x30c] sm:$0xf]  ;;  %v16460_v26 = vor.u32 %v18959_v35, %v16457_v29  ;;  %v10393_v16 = vpop.f32.mrf.mxu1  ;;  %v10368_v39 = vadd.f32 %v10367_v22, %v10354_v60 }
 0x780   :  { %v19115_v50 = vld [vmem:[#allocation3 + $0xc24] sm:$0xf0]  ;;  %v18943_v36 = vld [vmem:[#allocation3 + $0x6cc] sm:$0xf] }
 0x781   :  { %v17319_v47 = vld [vmem:[#allocation3 + $0xe08] sm:$0xf]  ;;  %v17064_v63 = vor.u32 %v19115_v50, %v17063_v57  ;;  %10615 = vmatpush.bf16.msrb.mxu1 %v16808_v2  ;;  %v15913_v57 = vld [vmem:[#allocation3 + $0x328] sm:$0xf0] }
 0x782   :  { %v19179_v12 = vld [vmem:[#allocation3 + $0xe24] sm:$0xf0]  ;;  %10602 = vmatmul.bf16.vlgmr.msrb.gmra.mxu0 %v20063_v24  ;;  %v16169_v50 = vld [vmem:[#allocation3 + $0x528] sm:$0xf0]  ;;  %v15916_v49 = vor.u32 %v18823_v13, %v15913_v57 }
 0x783   :  { %v17320_v33 = vor.u32 %v19179_v12, %v17319_v47  ;;  %10629 = vmatpush.bf16.msrb.mxu2 %v17064_v63  ;;  %10650 = vmatpush.bf16.msra.mxu0 %v15756_v59  ;;  %v10379_v47 = vpop.f32.mrf.mxu0  ;;  %v18951_v12 = vld [vmem:[#allocation3 + $0x70c] sm:$0xf]  ;;  %v16172_v0 = vor.u32 %v18887_v1, %v16169_v50  ;;  %v10407_v6 = vpop.f32.mrf.mxu2 }
 0x784   :  { %10616 = vmatmul.bf16.vlgmr.msrb.gmra.mxu1 %v20075_v11  ;;  %v10380_v51 = vadd.f32 %v10379_v47, %v20104_v3  ;;  %v18751_v2 = vld [vmem:[#allocation3 + $0xcc] sm:$0xf]  ;;  %v16428_v53 = vor.u32 %v18951_v12, %v16425_v21 }
 0x785   :  { %10643 = vmatpush.bf16.msrb.mxu3 %v17320_v33  ;;  %10664 = vmatpush.bf16.msra.mxu1 %v16012_v31  ;;  %v15625_v63 = vld [vmem:[#allocation3 + $0xe8] sm:$0xf0]  ;;  %v10421_v40 = vpop.f32.mrf.mxu3 }
 0x786   :  { %10630 = vmatmul.bf16.vlgmr.msrb.gmra.mxu2 %v20069_v52  ;;  %v10394_v33 = vadd.f32 %v10393_v16, %v10380_v51  ;;  %v15881_v59 = vld [vmem:[#allocation3 + $0x2e8] sm:$0xf0]  ;;  %v15628_v3 = vor.u32 %v18751_v2, %v15625_v63 }
 0x787   :  { %10678 = vmatpush.bf16.msra.mxu2 %v16268_v4  ;;  %10651 = vmatpush.bf16.msra.mxu0 %v15724_v55  ;;  %v18879_v31 = vld [vmem:[#allocation3 + $0x4cc] sm:$0xf] }
 0x788   :  { %10644 = vmatmul.bf16.vlgmr.msrb.gmra.mxu3 %v20081_v54  ;;  %v16137_v4 = vld [vmem:[#allocation3 + $0x4e8] sm:$0xf0] }
 0x789   :  { %10692 = vmatpush.bf16.msra.mxu3 %v16524_v48  ;;  %10665 = vmatpush.bf16.msra.mxu1 %v15980_v23  ;;  %v16393_v38 = vld [vmem:[#allocation3 + $0x6e8] sm:$0xf0]  ;;  %v15884_v48 = vor.u32 %v18815_v58, %v15881_v59  ;;  %v16140_v43 = vor.u32 %v18879_v31, %v16137_v4  ;;  %v10408_v23 = vadd.f32 %v10407_v6, %v10394_v33 }
 0x78a   :  { %v18743_v15 = vld [vmem:[#allocation3 + $0x8c] sm:$0xf]  ;;  %v16396_v10 = vor.u32 %v18943_v36, %v16393_v38 }
 0x78b   :  { %10679 = vmatpush.bf16.msra.mxu2 %v16236_v28  ;;  %10652 = vmatpush.bf16.msra.mxu0 %v15692_v61  ;;  %v15593_v14 = vld [vmem:[#allocation3 + $0xa8] sm:$0xf0]  ;;  %v10381_v28 = vpop.f32.mrf.mxu0  ;;  %v20113_v45 = vadd.f32 %v10421_v40, %v10408_v23 }
 0x78c   :  { %v18807_v19 = vld [vmem:[#allocation3 + $0x28c] sm:$0xf]  ;;  %v10382_v7 = vadd.f32 %v10381_v28, %v10368_v39 }
 0x78d   :  { %10693 = vmatpush.bf16.msra.mxu3 %v16492_v27  ;;  %10666 = vmatpush.bf16.msra.mxu1 %v15948_v25  ;;  %v15849_v9 = vld [vmem:[#allocation3 + $0x2a8] sm:$0xf0]  ;;  %v15596_v27 = vor.u32 %v18743_v15, %v15593_v14  ;;  %v10395_v25 = vpop.f32.mrf.mxu1  ;;  %v11210_v17 = vmax.f32 %v20113_v45, 0.0 }
 0x78e   :  { %v18871_v55 = vld [vmem:[#allocation3 + $0x48c] sm:$0xf]  ;;  %v15852_v44 = vor.u32 %v18807_v19, %v15849_v9  ;;  %v10396_v47 = vadd.f32 %v10395_v25, %v10382_v7 }
 0x78f   :  { %10680 = vmatpush.bf16.msra.mxu2 %v16204_v8  ;;  %10653 = vmatpush.bf16.msra.mxu0 %v15660_v56  ;;  %v16105_v34 = vld [vmem:[#allocation3 + $0x4a8] sm:$0xf0] }
 0x790   :  { %v18935_v32 = vld [vmem:[#allocation3 + $0x68c] sm:$0xf]  ;;  %v16108_v35 = vor.u32 %v18871_v55, %v16105_v34 }
 0x791   :  { %10694 = vmatpush.bf16.msra.mxu3 %v16460_v26  ;;  %10667 = vmatpush.bf16.msra.mxu1 %v15916_v49  ;;  %v16361_v18 = vld [vmem:[#allocation3 + $0x6a8] sm:$0xf0]  ;;  %v10409_v49 = vpop.f32.mrf.mxu2 }
 0x792   :  { %v18735_v29 = vld [vmem:[#allocation3 + $0x4c] sm:$0xf]  ;;  %v16364_v20 = vor.u32 %v18935_v32, %v16361_v18  ;;  %v10410_v58 = vadd.f32 %v10409_v49, %v10396_v47 }
 0x793   :  { %10681 = vmatpush.bf16.msra.mxu2 %v16172_v0  ;;  %10654 = vmatpush.bf16.msra.mxu0 %v15628_v3  ;;  %v15561_v61 = vld [vmem:[#allocation3 + $0x68] sm:$0xf0] }
 0x794   :  { %v18799_v42 = vld [vmem:[#allocation3 + $0x24c] sm:$0xf]  ;;  %v15564_v57 = vor.u32 %v18735_v29, %v15561_v61 }
 0x795   :  { %10695 = vmatpush.bf16.msra.mxu3 %v16428_v53  ;;  %10668 = vmatpush.bf16.msra.mxu1 %v15884_v48  ;;  %v15817_v8 = vld [vmem:[#allocation3 + $0x268] sm:$0xf0]  ;;  %v10423_v53 = vpop.f32.mrf.mxu3 }
 0x796   :  { %v18863_v22 = vld [vmem:[#allocation3 + $0x44c] sm:$0xf]  ;;  %v15820_v12 = vor.u32 %v18799_v42, %v15817_v8  ;;  %v20116_v15 = vadd.f32 %v10423_v53, %v10410_v58  ;;  %v10435_v58 = vpop.f32.mrf.mxu0 }
 0x797   :  { %10682 = vmatpush.bf16.msra.mxu2 %v16140_v43  ;;  %v16073_v41 = vld [vmem:[#allocation3 + $0x468] sm:$0xf0]  ;;  %10655 = vmatpush.bf16.msra.mxu0 %v15596_v27 }
 0x798   :  { %v18927_v13 = vld [vmem:[#allocation3 + $0x64c] sm:$0xf]  ;;  %v16076_v21 = vor.u32 %v18863_v22, %v16073_v41  ;;  %v11218_v6 = vmax.f32 %v20116_v15, 0.0 }
 0x799   :  { %10696 = vmatpush.bf16.msra.mxu3 %v16396_v10  ;;  %v16329_v26 = vld [vmem:[#allocation3 + $0x668] sm:$0xf0]  ;;  %10669 = vmatpush.bf16.msra.mxu1 %v15852_v44 }
 0x79a   :  { %v18727_v1 = vld [vmem:[#allocation3 + $0xc] sm:$0xf]  ;;  %v16332_v60 = vor.u32 %v18927_v13, %v16329_v26 }
 0x79b   :  { %v15529_v50 = vld [vmem:[#allocation3 + $0x28] sm:$0xf0]  ;;  %10683 = vmatpush.bf16.msra.mxu2 %v16108_v35  ;;  %10656 = vmatpush.bf16.msra.mxu0 %v15564_v57 }
 0x79c   :  { %v18791_v51 = vld [vmem:[#allocation3 + $0x20c] sm:$0xf]  ;;  %v15532_v4 = vor.u32 %v18727_v1, %v15529_v50  ;;  %v7739_v50 = vperm.slane %v20095_v62, 1 }
 0x79d   :  { %v15785_v56 = vld [vmem:[#allocation3 + $0x228] sm:$0xf0]  ;;  %10697 = vmatpush.bf16.msra.mxu3 %v16364_v20  ;;  %10670 = vmatpush.bf16.msra.mxu1 %v15820_v12 }
 0x79e   :  { %v18855_v16 = vld [vmem:[#allocation3 + $0x40c] sm:$0xf]  ;;  %v15788_v39 = vor.u32 %v18791_v51, %v15785_v56 }
 0x79f   :  { %v16041_v0 = vld [vmem:[#allocation3 + $0x428] sm:$0xf0]  ;;  %10684 = vmatpush.bf16.msra.mxu2 %v16076_v21  ;;  %10657 = vmatpush.bf16.msra.mxu0 %v15532_v4 }
 0x7a0   :  { %v18919_v2 = vld [vmem:[#allocation3 + $0x60c] sm:$0xf]  ;;  %v16044_v48 = vor.u32 %v18855_v16, %v16041_v0 }
 0x7a1   :  { %v16297_v63 = vld [vmem:[#allocation3 + $0x628] sm:$0xf0]  ;;  %10698 = vmatpush.bf16.msra.mxu3 %v16332_v60  ;;  %10671 = vmatpush.bf16.msra.mxu1 %v15788_v39 }
 0x7a2   :  { %v19039_v33 = vld [vmem:[#allocation3 + $0x9cc] sm:$0xf]  ;;  %v16300_v19 = vor.u32 %v18919_v2, %v16297_v63  ;;  %10658 = vmatmul.bf16.vlgmr.msra.gmra.mxu0 %v20035_v37 }
 0x7a3   :  { %v16777_v59 = vld [vmem:[#allocation3 + $0x9e8] sm:$0xf0]  ;;  %10685 = vmatpush.bf16.msra.mxu2 %v16044_v48 }
 0x7a4   :  { %v19103_v31 = vld [vmem:[#allocation3 + $0xbcc] sm:$0xf]  ;;  %v16780_v9 = vor.u32 %v19039_v33, %v16777_v59  ;;  %10672 = vmatmul.bf16.vlgmr.msra.gmra.mxu1 %v20047_v5  ;;  %v10436_v33 = vadd.f32 %v10435_v58, %v7739_v50 }
 0x7a5   :  { %v17033_v36 = vld [vmem:[#allocation3 + $0xbe8] sm:$0xf0]  ;;  %10699 = vmatpush.bf16.msra.mxu3 %v16300_v19 }
 0x7a6   :  { %v19167_v38 = vld [vmem:[#allocation3 + $0xdcc] sm:$0xf]  ;;  %v17036_v55 = vor.u32 %v19103_v31, %v17033_v36  ;;  %10706 = vmatpush.bf16.msrb.mxu0 %v16780_v9  ;;  %10686 = vmatmul.bf16.vlgmr.msra.gmra.mxu2 %v20041_v46 }
 0x7a7   :  { %v17289_v3 = vld [vmem:[#allocation3 + $0xde8] sm:$0xf0] }
 0x7a8   :  { %v19231_v43 = vld [vmem:[#allocation3 + $0xfcc] sm:$0xf]  ;;  %v17292_v34 = vor.u32 %v19167_v38, %v17289_v3  ;;  %10720 = vmatpush.bf16.msrb.mxu1 %v17036_v55  ;;  %10700 = vmatmul.bf16.vlgmr.msra.gmra.mxu3 %v20053_v30  ;;  %v10449_v3 = vpop.f32.mrf.mxu1 }
 0x7a9   :  { %v17545_v14 = vld [vmem:[#allocation3 + $0xfe8] sm:$0xf0]  ;;  %v10450_v19 = vadd.f32 %v10449_v3, %v10436_v33  ;;  %v16015_v3 = vld [vmem:[#allocation3 + $0x3d0] sm:$0xf] }
 0x7aa   :  { %v19031_v10 = vld [vmem:[#allocation3 + $0x98c] sm:$0xf]  ;;  %v17548_v40 = vor.u32 %v19231_v43, %v17545_v14  ;;  %10734 = vmatpush.bf16.msrb.mxu2 %v17292_v34 }
 0x7ab   :  { %v16745_v23 = vld [vmem:[#allocation3 + $0x9a8] sm:$0xf0] }
 0x7ac   :  { %v19095_v28 = vld [vmem:[#allocation3 + $0xb8c] sm:$0xf]  ;;  %v16748_v35 = vor.u32 %v19031_v10, %v16745_v23  ;;  %10748 = vmatpush.bf16.msrb.mxu3 %v17548_v40 }
 0x7ad   :  { %v17001_v32 = vld [vmem:[#allocation3 + $0xba8] sm:$0xf0] }
 0x7ae   :  { %v19159_v18 = vld [vmem:[#allocation3 + $0xd8c] sm:$0xf]  ;;  %v17004_v29 = vor.u32 %v19095_v28, %v17001_v32  ;;  %10707 = vmatpush.bf16.msrb.mxu0 %v16748_v35  ;;  %v10463_v35 = vpop.f32.mrf.mxu2 }
 0x7af   :  { %v17257_v27 = vld [vmem:[#allocation3 + $0xda8] sm:$0xf0] }
 0x7b0   :  { %v19223_v44 = vld [vmem:[#allocation3 + $0xf8c] sm:$0xf]  ;;  %v17260_v61 = vor.u32 %v19159_v18, %v17257_v27  ;;  %10721 = vmatpush.bf16.msrb.mxu1 %v17004_v29 }
 0x7b1   :  { %v17513_v7 = vld [vmem:[#allocation3 + $0xfa8] sm:$0xf0] }
 0x7b2   :  { %v19023_v42 = vld [vmem:[#allocation3 + $0x94c] sm:$0xf]  ;;  %v17516_v8 = vor.u32 %v19223_v44, %v17513_v7  ;;  %10735 = vmatpush.bf16.msrb.mxu2 %v17260_v61 }
 0x7b3   :  { %v16713_v20 = vld [vmem:[#allocation3 + $0x968] sm:$0xf0] }
 0x7b4   :  { %v19087_v25 = vld [vmem:[#allocation3 + $0xb4c] sm:$0xf]  ;;  %v16716_v1 = vor.u32 %v19023_v42, %v16713_v20  ;;  %10749 = vmatpush.bf16.msrb.mxu3 %v17516_v8  ;;  %v10464_v42 = vadd.f32 %v10463_v35, %v10450_v19  ;;  %v18844_v35 = vld [vmem:[#allocation3 + $0x3ac] sm:$0xf0] }
 0x7b5   :  { %v16969_v22 = vld [vmem:[#allocation3 + $0xb68] sm:$0xf0] }
 0x7b6   :  { %v19151_v41 = vld [vmem:[#allocation3 + $0xd4c] sm:$0xf]  ;;  %v16972_v47 = vor.u32 %v19087_v25, %v16969_v22  ;;  %10708 = vmatpush.bf16.msrb.mxu0 %v16716_v1  ;;  %v10477_v25 = vpop.f32.mrf.mxu3 }
 0x7b7   :  { %v17225_v13 = vld [vmem:[#allocation3 + $0xd68] sm:$0xf0] }
 0x7b8   :  { %v19215_v26 = vld [vmem:[#allocation3 + $0xf4c] sm:$0xf]  ;;  %v17228_v12 = vor.u32 %v19151_v41, %v17225_v13  ;;  %10722 = vmatpush.bf16.msrb.mxu1 %v16972_v47 }
 0x7b9   :  { %v17481_v57 = vld [vmem:[#allocation3 + $0xf68] sm:$0xf0] }
 0x7ba   :  { %v19015_v21 = vld [vmem:[#allocation3 + $0x90c] sm:$0xf]  ;;  %v17484_v16 = vor.u32 %v19215_v26, %v17481_v57  ;;  %10736 = vmatpush.bf16.msrb.mxu2 %v17228_v12  ;;  %v20126_v57 = vadd.f32 %v10477_v25, %v10464_v42  ;;  %v10451_v42 = vpop.f32.mrf.mxu1  ;;  %v18972_v25 = vld [vmem:[#allocation3 + $0x7ac] sm:$0xf0] }
 0x7bb   :  { %v16681_v51 = vld [vmem:[#allocation3 + $0x928] sm:$0xf0] }
 0x7bc   :  { %v19079_v56 = vld [vmem:[#allocation3 + $0xb0c] sm:$0xf]  ;;  %v16684_v53 = vor.u32 %v19015_v21, %v16681_v51  ;;  %10750 = vmatpush.bf16.msrb.mxu3 %v17484_v16 }
 0x7bd   :  { %v16937_v60 = vld [vmem:[#allocation3 + $0xb28] sm:$0xf0] }
 0x7be   :  { %v19143_v49 = vld [vmem:[#allocation3 + $0xd0c] sm:$0xf]  ;;  %v16940_v59 = vor.u32 %v19079_v56, %v16937_v60  ;;  %10709 = vmatpush.bf16.msrb.mxu0 %v16684_v53 }
 0x7bf   :  { %v17193_v0 = vld [vmem:[#allocation3 + $0xd28] sm:$0xf0] }
 0x7c0   :  { %v19207_v2 = vld [vmem:[#allocation3 + $0xf0c] sm:$0xf]  ;;  %v17196_v31 = vor.u32 %v19143_v49, %v17193_v0  ;;  %10723 = vmatpush.bf16.msrb.mxu1 %v16940_v59 }
 0x7c1   :  { %v17449_v63 = vld [vmem:[#allocation3 + $0xf28] sm:$0xf0] }
 0x7c2   :  { %v19007_v4 = vld [vmem:[#allocation3 + $0x8cc] sm:$0xf]  ;;  %v17452_v39 = vor.u32 %v19207_v2, %v17449_v63  ;;  %10737 = vmatpush.bf16.msrb.mxu2 %v17196_v31 }
 0x7c3   :  { %v16649_v36 = vld [vmem:[#allocation3 + $0x8e8] sm:$0xf0] }
 0x7c4   :  { %v19071_v38 = vld [vmem:[#allocation3 + $0xacc] sm:$0xf]  ;;  %v16652_v55 = vor.u32 %v19007_v4, %v16649_v36  ;;  %10751 = vmatpush.bf16.msrb.mxu3 %v17452_v39  ;;  %v15759_v36 = vld [vmem:[#allocation3 + $0x1d0] sm:$0xf] }
 0x7c5   :  { %v16905_v48 = vld [vmem:[#allocation3 + $0xae8] sm:$0xf0] }
 0x7c6   :  { %v19135_v43 = vld [vmem:[#allocation3 + $0xccc] sm:$0xf]  ;;  %v16908_v34 = vor.u32 %v19071_v38, %v16905_v48  ;;  %10710 = vmatpush.bf16.msrb.mxu0 %v16652_v55  ;;  %v18788_v38 = vld [vmem:[#allocation3 + $0x1ec] sm:$0xf0] }
 0x7c7   :  { %v17161_v14 = vld [vmem:[#allocation3 + $0xce8] sm:$0xf0]  ;;  %v18852_v48 = vld [vmem:[#allocation3 + $0x3ec] sm:$0xf0] }
 0x7c8   :  { %v19199_v9 = vld [vmem:[#allocation3 + $0xecc] sm:$0xf]  ;;  %v17164_v23 = vor.u32 %v19135_v43, %v17161_v14  ;;  %10724 = vmatpush.bf16.msrb.mxu1 %v16908_v34  ;;  %v16271_v43 = vld [vmem:[#allocation3 + $0x5d0] sm:$0xf] }
 0x7c9   :  { %v17417_v10 = vld [vmem:[#allocation3 + $0xee8] sm:$0xf0]  ;;  %v18916_v14 = vld [vmem:[#allocation3 + $0x5ec] sm:$0xf0] }
 0x7ca   :  { %v18999_v28 = vld [vmem:[#allocation3 + $0x88c] sm:$0xf]  ;;  %v17420_v18 = vor.u32 %v19199_v9, %v17417_v10  ;;  %10738 = vmatpush.bf16.msrb.mxu2 %v17164_v23  ;;  %v16527_v10 = vld [vmem:[#allocation3 + $0x7d0] sm:$0xf]  ;;  %v15760_v23 = vor.u32 %v18788_v38, %v15759_v36 }
 0x7cb   :  { %v16617_v40 = vld [vmem:[#allocation3 + $0x8a8] sm:$0xf0]  ;;  %v18980_v55 = vld [vmem:[#allocation3 + $0x7ec] sm:$0xf0] }
 0x7cc   :  { %v19063_v32 = vld [vmem:[#allocation3 + $0xa8c] sm:$0xf]  ;;  %v16620_v20 = vor.u32 %v18999_v28, %v16617_v40  ;;  %10752 = vmatpush.bf16.msrb.mxu3 %v17420_v18  ;;  %v16016_v28 = vor.u32 %v18852_v48, %v16015_v3  ;;  %v16272_v40 = vor.u32 %v18916_v14, %v16271_v43  ;;  %v15727_v18 = vld [vmem:[#allocation3 + $0x190] sm:$0xf]  ;;  %v10505_v14 = vpop.f32.mrf.mxu1 }
 0x7cd   :  { %v16873_v27 = vld [vmem:[#allocation3 + $0xaa8] sm:$0xf0]  ;;  %v18892_v36 = vld [vmem:[#allocation3 + $0x52c] sm:$0xf0] }
 0x7ce   :  { %v19127_v44 = vld [vmem:[#allocation3 + $0xc8c] sm:$0xf]  ;;  %v16876_v8 = vor.u32 %v19063_v32, %v16873_v27  ;;  %10711 = vmatpush.bf16.msrb.mxu0 %v16620_v20  ;;  %v10437_v32 = vpop.f32.mrf.mxu0  ;;  %v18780_v27 = vld [vmem:[#allocation3 + $0x1ac] sm:$0xf0] }
 0x7cf   :  { %v17129_v7 = vld [vmem:[#allocation3 + $0xca8] sm:$0xf0]  ;;  %v16495_v20 = vld [vmem:[#allocation3 + $0x790] sm:$0xf] }
 0x7d0   :  { %v19191_v29 = vld [vmem:[#allocation3 + $0xe8c] sm:$0xf]  ;;  %v17132_v22 = vor.u32 %v19127_v44, %v17129_v7  ;;  %10725 = vmatpush.bf16.msrb.mxu1 %v16876_v8  ;;  %v15983_v44 = vld [vmem:[#allocation3 + $0x390] sm:$0xf]  ;;  %v16528_v7 = vor.u32 %v18980_v55, %v16527_v10  ;;  %v15728_v8 = vor.u32 %v18780_v27, %v15727_v18 }
 0x7d1   :  { %v17385_v61 = vld [vmem:[#allocation3 + $0xea8] sm:$0xf0]  ;;  %v16431_v3 = vld [vmem:[#allocation3 + $0x710] sm:$0xf] }
 0x7d2   :  { %v18991_v41 = vld [vmem:[#allocation3 + $0x84c] sm:$0xf]  ;;  %v17388_v1 = vor.u32 %v19191_v29, %v17385_v61  ;;  %10739 = vmatpush.bf16.msrb.mxu2 %v17132_v22  ;;  %v16239_v29 = vld [vmem:[#allocation3 + $0x590] sm:$0xf]  ;;  %v10438_v22 = vadd.f32 %v10437_v32, %v7739_v50  ;;  %v10465_v50 = vpop.f32.mrf.mxu2 }
 0x7d3   :  { %v16585_v13 = vld [vmem:[#allocation3 + $0x868] sm:$0xf0]  ;;  %v18908_v61 = vld [vmem:[#allocation3 + $0x5ac] sm:$0xf0] }
 0x7d4   :  { %v19055_v26 = vld [vmem:[#allocation3 + $0xa4c] sm:$0xf]  ;;  %v16588_v16 = vor.u32 %v18991_v41, %v16585_v13  ;;  %10753 = vmatpush.bf16.msrb.mxu3 %v17388_v1  ;;  %v15984_v41 = vor.u32 %v18844_v35, %v15983_v44  ;;  %v16240_v13 = vor.u32 %v18908_v61, %v16239_v29  ;;  %v18772_v1 = vld [vmem:[#allocation3 + $0x16c] sm:$0xf0] }
 0x7d5   :  { %v16841_v47 = vld [vmem:[#allocation3 + $0xa68] sm:$0xf0]  ;;  %v15631_v55 = vld [vmem:[#allocation3 + $0xd0] sm:$0xf] }
 0x7d6   :  { %v19119_v12 = vld [vmem:[#allocation3 + $0xc4c] sm:$0xf]  ;;  %v16844_v0 = vor.u32 %v19055_v26, %v16841_v47  ;;  %10712 = vmatpush.bf16.msrb.mxu0 %v16588_v16  ;;  %v15695_v26 = vld [vmem:[#allocation3 + $0x150] sm:$0xf]  ;;  %v10491_v38 = vpop.f32.mrf.mxu0 }
 0x7d7   :  { %v17097_v21 = vld [vmem:[#allocation3 + $0xc68] sm:$0xf0]  ;;  %v15951_v47 = vld [vmem:[#allocation3 + $0x350] sm:$0xf]  ;;  %v15696_v62 = vor.u32 %v18772_v1, %v15695_v26  ;;  %v10492_v48 = vadd.f32 %v10491_v38, %v20126_v57 }
 0x7d8   :  { %v19183_v51 = vld [vmem:[#allocation3 + $0xe4c] sm:$0xf]  ;;  %v17100_v2 = vor.u32 %v19119_v12, %v17097_v21  ;;  %10726 = vmatpush.bf16.msrb.mxu1 %v16844_v0  ;;  %v16496_v12 = vor.u32 %v18972_v25, %v16495_v20  ;;  %v18836_v21 = vld [vmem:[#allocation3 + $0x36c] sm:$0xf0] }
 0x7d9   :  { %v17353_v56 = vld [vmem:[#allocation3 + $0xe68] sm:$0xf0]  ;;  %v16463_v16 = vld [vmem:[#allocation3 + $0x750] sm:$0xf]  ;;  %v15952_v0 = vor.u32 %v18836_v21, %v15951_v47 }
 0x7da   :  { %v18983_v60 = vld [vmem:[#allocation3 + $0x80c] sm:$0xf]  ;;  %v17356_v33 = vor.u32 %v19183_v51, %v17353_v56  ;;  %10740 = vmatpush.bf16.msrb.mxu2 %v17100_v2  ;;  %v16207_v51 = vld [vmem:[#allocation3 + $0x550] sm:$0xf] }
 0x7db   :  { %v16553_v49 = vld [vmem:[#allocation3 + $0x828] sm:$0xf0]  ;;  %v18900_v56 = vld [vmem:[#allocation3 + $0x56c] sm:$0xf0] }
 0x7dc   :  { %v19047_v63 = vld [vmem:[#allocation3 + $0xa0c] sm:$0xf]  ;;  %v16556_v39 = vor.u32 %v18983_v60, %v16553_v49  ;;  %10754 = vmatpush.bf16.msrb.mxu3 %v17356_v33  ;;  %v18964_v60 = vld [vmem:[#allocation3 + $0x76c] sm:$0xf0]  ;;  %v10452_v49 = vadd.f32 %v10451_v42, %v10438_v22  ;;  %v16208_v2 = vor.u32 %v18900_v56, %v16207_v51 }
 0x7dd   :  { %v16809_v58 = vld [vmem:[#allocation3 + $0xa28] sm:$0xf0]  ;;  %v15919_v33 = vld [vmem:[#allocation3 + $0x310] sm:$0xf] }
 0x7de   :  { %v19111_v53 = vld [vmem:[#allocation3 + $0xc0c] sm:$0xf]  ;;  %v16812_v19 = vor.u32 %v19047_v63, %v16809_v58  ;;  %10713 = vmatpush.bf16.msrb.mxu0 %v16556_v39  ;;  %v10479_v63 = vpop.f32.mrf.mxu3  ;;  %v15663_v58 = vld [vmem:[#allocation3 + $0x110] sm:$0xf]  ;;  %v10493_v47 = vpop.f32.mrf.mxu0 }
 0x7df   :  { %v17065_v59 = vld [vmem:[#allocation3 + $0xc28] sm:$0xf0]  ;;  %v18956_v39 = vld [vmem:[#allocation3 + $0x72c] sm:$0xf0] }
 0x7e0   :  { %v19175_v31 = vld [vmem:[#allocation3 + $0xe0c] sm:$0xf]  ;;  %v17068_v9 = vor.u32 %v19111_v53, %v17065_v59  ;;  %10727 = vmatpush.bf16.msrb.mxu1 %v16812_v19  ;;  %v18764_v53 = vld [vmem:[#allocation3 + $0x12c] sm:$0xf0]  ;;  %v16464_v59 = vor.u32 %v18964_v60, %v16463_v16  ;;  %v10466_v19 = vadd.f32 %v10465_v50, %v10452_v49 }
 0x7e1   :  { %v17321_v4 = vld [vmem:[#allocation3 + $0xe28] sm:$0xf0]  ;;  %10714 = vmatmul.bf16.vlgmr.msrb.gmra.mxu0 %v20063_v24  ;;  %v15664_v43 = vor.u32 %v18764_v53, %v15663_v58  ;;  %v18820_v32 = vld [vmem:[#allocation3 + $0x2ec] sm:$0xf0]  ;;  %v10507_v58 = vpop.f32.mrf.mxu1 }
 0x7e2   :  { %v17324_v34 = vor.u32 %v19175_v31, %v17321_v4  ;;  %10741 = vmatpush.bf16.msrb.mxu2 %v17068_v9  ;;  %10762 = vmatpush.bf16.msra.mxu0 %v15760_v23  ;;  %v18828_v31 = vld [vmem:[#allocation3 + $0x32c] sm:$0xf0]  ;;  %v10480_v29 = vadd.f32 %v10479_v63, %v10466_v19 }
 0x7e3   :  { %10728 = vmatmul.bf16.vlgmr.msrb.gmra.mxu1 %v20075_v11  ;;  %v16175_v4 = vld [vmem:[#allocation3 + $0x510] sm:$0xf]  ;;  %v15920_v9 = vor.u32 %v18828_v31, %v15919_v33 }
 0x7e4   :  { %10755 = vmatpush.bf16.msrb.mxu3 %v17324_v34  ;;  %10776 = vmatpush.bf16.msra.mxu1 %v16016_v28  ;;  %v16176_v10 = vor.u32 %v18892_v36, %v16175_v4  ;;  %v18756_v34 = vld [vmem:[#allocation3 + $0xec] sm:$0xf0]  ;;  %v16432_v28 = vor.u32 %v18956_v39, %v16431_v3  ;;  %v10494_v60 = vadd.f32 %v10493_v47, %v10480_v29 }
 0x7e5   :  { %10742 = vmatmul.bf16.vlgmr.msrb.gmra.mxu2 %v20069_v52  ;;  %v15887_v23 = vld [vmem:[#allocation3 + $0x2d0] sm:$0xf]  ;;  %v15632_v57 = vor.u32 %v18756_v34, %v15631_v55 }
 0x7e6   :  { %10790 = vmatpush.bf16.msra.mxu2 %v16272_v40  ;;  %10763 = vmatpush.bf16.msra.mxu0 %v15728_v8  ;;  %v10506_v40 = vadd.f32 %v10505_v14, %v10492_v48  ;;  %v16143_v18 = vld [vmem:[#allocation3 + $0x4d0] sm:$0xf]  ;;  %v15888_v61 = vor.u32 %v18820_v32, %v15887_v23  ;;  %v10508_v48 = vadd.f32 %v10507_v58, %v10494_v60 }
 0x7e7   :  { %10756 = vmatmul.bf16.vlgmr.msrb.gmra.mxu3 %v20081_v54  ;;  %v18884_v27 = vld [vmem:[#allocation3 + $0x4ec] sm:$0xf0] }
 0x7e8   :  { %10804 = vmatpush.bf16.msra.mxu3 %v16528_v7  ;;  %10777 = vmatpush.bf16.msra.mxu1 %v15984_v41  ;;  %v16399_v44 = vld [vmem:[#allocation3 + $0x6d0] sm:$0xf]  ;;  %v16144_v42 = vor.u32 %v18884_v27, %v16143_v18  ;;  %v10519_v41 = vpop.f32.mrf.mxu2 }
 0x7e9   :  { %v18948_v7 = vld [vmem:[#allocation3 + $0x6ec] sm:$0xf0]  ;;  %v10520_v1 = vadd.f32 %v10519_v41, %v10506_v40 }
 0x7ea   :  { %10791 = vmatpush.bf16.msra.mxu2 %v16240_v13  ;;  %10764 = vmatpush.bf16.msra.mxu0 %v15696_v62  ;;  %v15599_v35 = vld [vmem:[#allocation3 + $0x90] sm:$0xf]  ;;  %v16400_v22 = vor.u32 %v18948_v7, %v16399_v44 }
 0x7eb   :  { %v18748_v20 = vld [vmem:[#allocation3 + $0xac] sm:$0xf0] }
 0x7ec   :  { %10805 = vmatpush.bf16.msra.mxu3 %v16496_v12  ;;  %10778 = vmatpush.bf16.msra.mxu1 %v15952_v0  ;;  %v15855_v25 = vld [vmem:[#allocation3 + $0x290] sm:$0xf]  ;;  %v10533_v12 = vpop.f32.mrf.mxu3  ;;  %v15600_v56 = vor.u32 %v18748_v20, %v15599_v35 }
 0x7ed   :  { %v18812_v8 = vld [vmem:[#allocation3 + $0x2ac] sm:$0xf0]  ;;  %v20135_v62 = vadd.f32 %v10533_v12, %v10520_v1 }
 0x7ee   :  { %10792 = vmatpush.bf16.msra.mxu2 %v16208_v2  ;;  %10765 = vmatpush.bf16.msra.mxu0 %v15664_v43  ;;  %v16111_v13 = vld [vmem:[#allocation3 + $0x490] sm:$0xf]  ;;  %v15856_v16 = vor.u32 %v18812_v8, %v15855_v25 }
 0x7ef   :  { %v18876_v26 = vld [vmem:[#allocation3 + $0x4ac] sm:$0xf0]  ;;  %v11211_v31 = vmax.f32 %v20135_v62, 0.0 }
 0x7f0   :  { %10806 = vmatpush.bf16.msra.mxu3 %v16464_v59  ;;  %10779 = vmatpush.bf16.msra.mxu1 %v15920_v9  ;;  %v16367_v21 = vld [vmem:[#allocation3 + $0x690] sm:$0xf]  ;;  %v16112_v50 = vor.u32 %v18876_v26, %v16111_v13  ;;  %v10521_v34 = vpop.f32.mrf.mxu2 }
 0x7f1   :  { %v18940_v51 = vld [vmem:[#allocation3 + $0x6ac] sm:$0xf0]  ;;  %v10522_v32 = vadd.f32 %v10521_v34, %v10508_v48 }
 0x7f2   :  { %10793 = vmatpush.bf16.msra.mxu2 %v16176_v10  ;;  %10766 = vmatpush.bf16.msra.mxu0 %v15632_v57  ;;  %v15567_v49 = vld [vmem:[#allocation3 + $0x50] sm:$0xf]  ;;  %v16368_v63 = vor.u32 %v18940_v51, %v16367_v21 }
 0x7f3   :  { %v18740_v0 = vld [vmem:[#allocation3 + $0x6c] sm:$0xf0] }
 0x7f4   :  { %10807 = vmatpush.bf16.msra.mxu3 %v16432_v28  ;;  %10780 = vmatpush.bf16.msra.mxu1 %v15888_v61  ;;  %v15823_v2 = vld [vmem:[#allocation3 + $0x250] sm:$0xf]  ;;  %v15568_v38 = vor.u32 %v18740_v0, %v15567_v49  ;;  %v10535_v18 = vpop.f32.mrf.mxu3 }
 0x7f5   :  { %v18804_v53 = vld [vmem:[#allocation3 + $0x26c] sm:$0xf0] }
 0x7f6   :  { %10794 = vmatpush.bf16.msra.mxu2 %v16144_v42  ;;  %v16079_v33 = vld [vmem:[#allocation3 + $0x450] sm:$0xf]  ;;  %10767 = vmatpush.bf16.msra.mxu0 %v15600_v56  ;;  %v15824_v43 = vor.u32 %v18804_v53, %v15823_v2  ;;  %v20138_v42 = vadd.f32 %v10535_v18, %v10522_v32 }
 0x7f7   :  { %v18868_v59 = vld [vmem:[#allocation3 + $0x46c] sm:$0xf0] }
 0x7f8   :  { %10808 = vmatpush.bf16.msra.mxu3 %v16400_v22  ;;  %v16335_v4 = vld [vmem:[#allocation3 + $0x650] sm:$0xf]  ;;  %10781 = vmatpush.bf16.msra.mxu1 %v15856_v16  ;;  %v16080_v14 = vor.u32 %v18868_v59, %v16079_v33  ;;  %v11219_v1 = vmax.f32 %v20138_v42, 0.0 }
 0x7f9   :  { %v18932_v36 = vld [vmem:[#allocation3 + $0x66c] sm:$0xf0] }
 0x7fa   :  { %v15535_v3 = vld [vmem:[#allocation3 + $0x10] sm:$0xf]  ;;  %10795 = vmatpush.bf16.msra.mxu2 %v16112_v50  ;;  %v16336_v55 = vor.u32 %v18932_v36, %v16335_v4  ;;  %10768 = vmatpush.bf16.msra.mxu0 %v15568_v38 }
 0x7fb   :  { %v18732_v39 = vld [vmem:[#allocation3 + $0x2c] sm:$0xf0] }
 0x7fc   :  { %v15791_v19 = vld [vmem:[#allocation3 + $0x210] sm:$0xf]  ;;  %10809 = vmatpush.bf16.msra.mxu3 %v16368_v63  ;;  %v15536_v57 = vor.u32 %v18732_v39, %v15535_v3  ;;  %10782 = vmatpush.bf16.msra.mxu1 %v15824_v43 }
 0x7fd   :  { %v18796_v9 = vld [vmem:[#allocation3 + $0x22c] sm:$0xf0] }
 0x7fe   :  { %v16047_v10 = vld [vmem:[#allocation3 + $0x410] sm:$0xf]  ;;  %10796 = vmatpush.bf16.msra.mxu2 %v16080_v14  ;;  %v15792_v20 = vor.u32 %v18796_v9, %v15791_v19  ;;  %10769 = vmatpush.bf16.msra.mxu0 %v15536_v57  ;;  %v20145_v14 = vld [vmem:[#allocation14] sm:$0xff] }
 0x7ff   :  { %v18860_v23 = vld [vmem:[#allocation3 + $0x42c] sm:$0xf0]  ;;  %v7740_v19 = vperm.slane %v20145_v14, 2 }
 0x800   :  { %v16303_v28 = vld [vmem:[#allocation3 + $0x610] sm:$0xf]  ;;  %v16048_v25 = vor.u32 %v18860_v23, %v16047_v10  ;;  %10810 = vmatpush.bf16.msra.mxu3 %v16336_v55  ;;  %10783 = vmatpush.bf16.msra.mxu1 %v15792_v20 }
 0x801   :  { %v18924_v40 = vld [vmem:[#allocation3 + $0x62c] sm:$0xf0]  ;;  %10770 = vmatmul.bf16.vlgmr.msra.gmra.mxu0 %v20035_v37 }
 0x802   :  { %v16783_v27 = vld [vmem:[#allocation3 + $0x9d0] sm:$0xf]  ;;  %v16304_v41 = vor.u32 %v18924_v40, %v16303_v28  ;;  %10797 = vmatpush.bf16.msra.mxu2 %v16048_v25 }
 0x803   :  { %v19044_v44 = vld [vmem:[#allocation3 + $0x9ec] sm:$0xf0]  ;;  %10784 = vmatmul.bf16.vlgmr.msra.gmra.mxu1 %v20047_v5 }
 0x804   :  { %v17039_v7 = vld [vmem:[#allocation3 + $0xbd0] sm:$0xf]  ;;  %v16784_v13 = vor.u32 %v19044_v44, %v16783_v27  ;;  %10811 = vmatpush.bf16.msra.mxu3 %v16304_v41 }
 0x805   :  { %v19108_v35 = vld [vmem:[#allocation3 + $0xbec] sm:$0xf0]  ;;  %10798 = vmatmul.bf16.vlgmr.msra.gmra.mxu2 %v20041_v46 }
 0x806   :  { %v17295_v29 = vld [vmem:[#allocation3 + $0xdd0] sm:$0xf]  ;;  %v17040_v47 = vor.u32 %v19108_v35, %v17039_v7  ;;  %10818 = vmatpush.bf16.msrb.mxu0 %v16784_v13  ;;  %v10547_v7 = vpop.f32.mrf.mxu0 }
 0x807   :  { %v19172_v61 = vld [vmem:[#allocation3 + $0xdec] sm:$0xf0]  ;;  %10812 = vmatmul.bf16.vlgmr.msra.gmra.mxu3 %v20053_v30  ;;  %v10548_v35 = vadd.f32 %v10547_v7, %v7740_v19 }
 0x808   :  { %v17551_v8 = vld [vmem:[#allocation3 + $0xfd0] sm:$0xf]  ;;  %v17296_v12 = vor.u32 %v19172_v61, %v17295_v29  ;;  %10832 = vmatpush.bf16.msrb.mxu1 %v17040_v47  ;;  %v10561_v29 = vpop.f32.mrf.mxu1 }
 0x809   :  { %v19236_v22 = vld [vmem:[#allocation3 + $0xfec] sm:$0xf0] }
 0x80a   :  { %v16751_v26 = vld [vmem:[#allocation3 + $0x990] sm:$0xf]  ;;  %v17552_v56 = vor.u32 %v19236_v22, %v17551_v8  ;;  %10846 = vmatpush.bf16.msrb.mxu2 %v17296_v12  ;;  %v10562_v12 = vadd.f32 %v10561_v29, %v10548_v35 }
 0x80b   :  { %v19036_v21 = vld [vmem:[#allocation3 + $0x9ac] sm:$0xf0] }
 0x80c   :  { %v17007_v51 = vld [vmem:[#allocation3 + $0xb90] sm:$0xf]  ;;  %v16752_v2 = vor.u32 %v19036_v21, %v16751_v26  ;;  %10860 = vmatpush.bf16.msrb.mxu3 %v17552_v56 }
 0x80d   :  { %v19100_v16 = vld [vmem:[#allocation3 + $0xbac] sm:$0xf0] }
 0x80e   :  { %v17263_v60 = vld [vmem:[#allocation3 + $0xd90] sm:$0xf]  ;;  %v17008_v63 = vor.u32 %v19100_v16, %v17007_v51  ;;  %10819 = vmatpush.bf16.msrb.mxu0 %v16752_v2 }
 0x80f   :  { %v19164_v50 = vld [vmem:[#allocation3 + $0xdac] sm:$0xf0] }
 0x810   :  { %v17519_v49 = vld [vmem:[#allocation3 + $0xf90] sm:$0xf]  ;;  %v17264_v58 = vor.u32 %v19164_v50, %v17263_v60  ;;  %10833 = vmatpush.bf16.msrb.mxu1 %v17008_v63 }
 0x811   :  { %v19228_v0 = vld [vmem:[#allocation3 + $0xfac] sm:$0xf0] }
 0x812   :  { %v16719_v53 = vld [vmem:[#allocation3 + $0x950] sm:$0xf]  ;;  %v17520_v4 = vor.u32 %v19228_v0, %v17519_v49  ;;  %10847 = vmatpush.bf16.msrb.mxu2 %v17264_v58 }
 0x813   :  { %v19028_v33 = vld [vmem:[#allocation3 + $0x96c] sm:$0xf0] }
 0x814   :  { %v16975_v59 = vld [vmem:[#allocation3 + $0xb50] sm:$0xf]  ;;  %v16720_v43 = vor.u32 %v19028_v33, %v16719_v53  ;;  %10861 = vmatpush.bf16.msrb.mxu3 %v17520_v4  ;;  %v10575_v33 = vpop.f32.mrf.mxu2 }
 0x815   :  { %v19092_v36 = vld [vmem:[#allocation3 + $0xb6c] sm:$0xf0] }
 0x816   :  { %v17231_v38 = vld [vmem:[#allocation3 + $0xd50] sm:$0xf]  ;;  %v16976_v9 = vor.u32 %v19092_v36, %v16975_v59  ;;  %10820 = vmatpush.bf16.msrb.mxu0 %v16720_v43  ;;  %v10576_v36 = vadd.f32 %v10575_v33, %v10562_v12  ;;  %v16529_v33 = vld [vmem:[#allocation3 + $0x7f0] sm:$0xf0] }
 0x817   :  { %v19156_v3 = vld [vmem:[#allocation3 + $0xd6c] sm:$0xf0] }
 0x818   :  { %v17487_v39 = vld [vmem:[#allocation3 + $0xf50] sm:$0xf]  ;;  %v17232_v10 = vor.u32 %v19156_v3, %v17231_v38  ;;  %10834 = vmatpush.bf16.msrb.mxu1 %v16976_v9  ;;  %v10549_v38 = vpop.f32.mrf.mxu0  ;;  %v10589_v3 = vpop.f32.mrf.mxu3 }
 0x819   :  { %v19220_v48 = vld [vmem:[#allocation3 + $0xf6c] sm:$0xf0] }
 0x81a   :  { %v16687_v55 = vld [vmem:[#allocation3 + $0x910] sm:$0xf]  ;;  %v17488_v28 = vor.u32 %v19220_v48, %v17487_v39  ;;  %10848 = vmatpush.bf16.msrb.mxu2 %v17232_v10  ;;  %v10550_v48 = vadd.f32 %v10549_v38, %v7740_v19 }
 0x81b   :  { %v19020_v34 = vld [vmem:[#allocation3 + $0x92c] sm:$0xf0] }
 0x81c   :  { %v16943_v23 = vld [vmem:[#allocation3 + $0xb10] sm:$0xf]  ;;  %v16688_v57 = vor.u32 %v19020_v34, %v16687_v55  ;;  %10862 = vmatpush.bf16.msrb.mxu3 %v17488_v28  ;;  %v10563_v28 = vpop.f32.mrf.mxu1  ;;  %v10577_v12 = vpop.f32.mrf.mxu2 }
 0x81d   :  { %v19084_v40 = vld [vmem:[#allocation3 + $0xb2c] sm:$0xf0] }
 0x81e   :  { %v17199_v32 = vld [vmem:[#allocation3 + $0xd10] sm:$0xf]  ;;  %v16944_v61 = vor.u32 %v19084_v40, %v16943_v23  ;;  %10821 = vmatpush.bf16.msrb.mxu0 %v16688_v57  ;;  %v20148_v23 = vadd.f32 %v10589_v3, %v10576_v36 }
 0x81f   :  { %v19148_v18 = vld [vmem:[#allocation3 + $0xd2c] sm:$0xf0] }
 0x820   :  { %v17455_v27 = vld [vmem:[#allocation3 + $0xf10] sm:$0xf]  ;;  %v17200_v20 = vor.u32 %v19148_v18, %v17199_v32  ;;  %10835 = vmatpush.bf16.msrb.mxu1 %v16944_v61 }
 0x821   :  { %v19212_v44 = vld [vmem:[#allocation3 + $0xf2c] sm:$0xf0] }
 0x822   :  { %v16655_v25 = vld [vmem:[#allocation3 + $0x8d0] sm:$0xf]  ;;  %v17456_v41 = vor.u32 %v19212_v44, %v17455_v27  ;;  %10849 = vmatpush.bf16.msrb.mxu2 %v17200_v20  ;;  %v10564_v44 = vadd.f32 %v10563_v28, %v10550_v48  ;;  %v15729_v48 = vld [vmem:[#allocation3 + $0x1b0] sm:$0xf0] }
 0x823   :  { %v19012_v8 = vld [vmem:[#allocation3 + $0x8ec] sm:$0xf0]  ;;  %v18968_v28 = vld [vmem:[#allocation3 + $0x794] sm:$0xf] }
 0x824   :  { %v16911_v22 = vld [vmem:[#allocation3 + $0xad0] sm:$0xf]  ;;  %v16656_v56 = vor.u32 %v19012_v8, %v16655_v25  ;;  %10863 = vmatpush.bf16.msrb.mxu3 %v17456_v41 }
 0x825   :  { %v19076_v13 = vld [vmem:[#allocation3 + $0xaec] sm:$0xf0] }
 0x826   :  { %v17167_v26 = vld [vmem:[#allocation3 + $0xcd0] sm:$0xf]  ;;  %v16912_v16 = vor.u32 %v19076_v13, %v16911_v22  ;;  %10822 = vmatpush.bf16.msrb.mxu0 %v16656_v56  ;;  %v18848_v56 = vld [vmem:[#allocation3 + $0x3d4] sm:$0xf] }
 0x827   :  { %v19140_v47 = vld [vmem:[#allocation3 + $0xcec] sm:$0xf0] }
 0x828   :  { %v17423_v21 = vld [vmem:[#allocation3 + $0xed0] sm:$0xf]  ;;  %v17168_v60 = vor.u32 %v19140_v47, %v17167_v26  ;;  %10836 = vmatpush.bf16.msrb.mxu1 %v16912_v16  ;;  %v10578_v16 = vadd.f32 %v10577_v12, %v10564_v44  ;;  %v18768_v44 = vld [vmem:[#allocation3 + $0x154] sm:$0xf] }
 0x829   :  { %v19204_v51 = vld [vmem:[#allocation3 + $0xeec] sm:$0xf0] }
 0x82a   :  { %v16623_v50 = vld [vmem:[#allocation3 + $0x890] sm:$0xf]  ;;  %v17424_v2 = vor.u32 %v19204_v51, %v17423_v21  ;;  %10850 = vmatpush.bf16.msrb.mxu2 %v17168_v60  ;;  %v18784_v21 = vld [vmem:[#allocation3 + $0x1d4] sm:$0xf] }
 0x82b   :  { %v19004_v49 = vld [vmem:[#allocation3 + $0x8ac] sm:$0xf0]  ;;  %v15761_v51 = vld [vmem:[#allocation3 + $0x1f0] sm:$0xf0] }
 0x82c   :  { %v16879_v0 = vld [vmem:[#allocation3 + $0xa90] sm:$0xf]  ;;  %v16624_v39 = vor.u32 %v19004_v49, %v16623_v50  ;;  %10864 = vmatpush.bf16.msrb.mxu3 %v17424_v2  ;;  %v16017_v50 = vld [vmem:[#allocation3 + $0x3f0] sm:$0xf0]  ;;  %v10591_v2 = vpop.f32.mrf.mxu3  ;;  %v15764_v36 = vor.u32 %v18784_v21, %v15761_v51 }
 0x82d   :  { %v19068_v63 = vld [vmem:[#allocation3 + $0xaac] sm:$0xf0]  ;;  %v18912_v49 = vld [vmem:[#allocation3 + $0x5d4] sm:$0xf]  ;;  %v16020_v38 = vor.u32 %v18848_v56, %v16017_v50 }
 0x82e   :  { %v17135_v58 = vld [vmem:[#allocation3 + $0xc90] sm:$0xf]  ;;  %v16880_v43 = vor.u32 %v19068_v63, %v16879_v0  ;;  %10823 = vmatpush.bf16.msrb.mxu0 %v16624_v39  ;;  %v16273_v0 = vld [vmem:[#allocation3 + $0x5f0] sm:$0xf0] }
 0x82f   :  { %v19132_v53 = vld [vmem:[#allocation3 + $0xcac] sm:$0xf0]  ;;  %v16276_v3 = vor.u32 %v18912_v49, %v16273_v0  ;;  %v18776_v39 = vld [vmem:[#allocation3 + $0x194] sm:$0xf] }
 0x830   :  { %v17391_v59 = vld [vmem:[#allocation3 + $0xe90] sm:$0xf]  ;;  %v17136_v9 = vor.u32 %v19132_v53, %v17135_v58  ;;  %10837 = vmatpush.bf16.msrb.mxu1 %v16880_v43  ;;  %v18976_v53 = vld [vmem:[#allocation3 + $0x7d4] sm:$0xf] }
 0x831   :  { %v19196_v4 = vld [vmem:[#allocation3 + $0xeac] sm:$0xf0]  ;;  %v18840_v43 = vld [vmem:[#allocation3 + $0x394] sm:$0xf] }
 0x832   :  { %v16591_v10 = vld [vmem:[#allocation3 + $0x850] sm:$0xf]  ;;  %v17392_v40 = vor.u32 %v19196_v4, %v17391_v59  ;;  %10851 = vmatpush.bf16.msrb.mxu2 %v17136_v9  ;;  %v20150_v59 = vadd.f32 %v10591_v2, %v10578_v16  ;;  %v16532_v9 = vor.u32 %v18976_v53, %v16529_v33  ;;  %v15921_v21 = vld [vmem:[#allocation3 + $0x330] sm:$0xf0]  ;;  %v10603_v16 = vpop.f32.mrf.mxu0  ;;  %v10617_v2 = vpop.f32.mrf.mxu1 }
 0x833   :  { %v18996_v55 = vld [vmem:[#allocation3 + $0x86c] sm:$0xf0]  ;;  %v18888_v51 = vld [vmem:[#allocation3 + $0x514] sm:$0xf]  ;;  %v10604_v49 = vadd.f32 %v10603_v16, %v20148_v23 }
 0x834   :  { %v16847_v34 = vld [vmem:[#allocation3 + $0xa50] sm:$0xf]  ;;  %v16592_v19 = vor.u32 %v18996_v55, %v16591_v10  ;;  %10865 = vmatpush.bf16.msrb.mxu3 %v17392_v40  ;;  %v15985_v10 = vld [vmem:[#allocation3 + $0x3b0] sm:$0xf0] }
 0x835   :  { %v19060_v32 = vld [vmem:[#allocation3 + $0xa6c] sm:$0xf0]  ;;  %v18904_v55 = vld [vmem:[#allocation3 + $0x594] sm:$0xf] }
 0x836   :  { %v17103_v18 = vld [vmem:[#allocation3 + $0xc50] sm:$0xf]  ;;  %v16848_v61 = vor.u32 %v19060_v32, %v16847_v34  ;;  %10824 = vmatpush.bf16.msrb.mxu0 %v16592_v19  ;;  %v16241_v34 = vld [vmem:[#allocation3 + $0x5b0] sm:$0xf0]  ;;  %v15732_v32 = vor.u32 %v18776_v39, %v15729_v48 }
 0x837   :  { %v19124_v27 = vld [vmem:[#allocation3 + $0xc6c] sm:$0xf0]  ;;  %v16497_v40 = vld [vmem:[#allocation3 + $0x7b0] sm:$0xf0] }
 0x838   :  { %v17359_v7 = vld [vmem:[#allocation3 + $0xe50] sm:$0xf]  ;;  %v17104_v20 = vor.u32 %v19124_v27, %v17103_v18  ;;  %10838 = vmatpush.bf16.msrb.mxu1 %v16848_v61  ;;  %v15988_v18 = vor.u32 %v18840_v43, %v15985_v10  ;;  %v16244_v27 = vor.u32 %v18904_v55, %v16241_v34  ;;  %v16500_v19 = vor.u32 %v18968_v28, %v16497_v40  ;;  %v16209_v61 = vld [vmem:[#allocation3 + $0x570] sm:$0xf0] }
 0x839   :  { %v19188_v57 = vld [vmem:[#allocation3 + $0xe6c] sm:$0xf0]  ;;  %v16177_v56 = vld [vmem:[#allocation3 + $0x530] sm:$0xf0] }
 0x83a   :  { %v16559_v35 = vld [vmem:[#allocation3 + $0x810] sm:$0xf]  ;;  %v17360_v41 = vor.u32 %v19188_v57, %v17359_v7  ;;  %10852 = vmatpush.bf16.msrb.mxu2 %v17104_v20  ;;  %v15697_v7 = vld [vmem:[#allocation3 + $0x170] sm:$0xf0] }
 0x83b   :  { %v18988_v29 = vld [vmem:[#allocation3 + $0x82c] sm:$0xf0]  ;;  %v18832_v57 = vld [vmem:[#allocation3 + $0x354] sm:$0xf] }
 0x83c   :  { %v16815_v25 = vld [vmem:[#allocation3 + $0xa10] sm:$0xf]  ;;  %v16560_v60 = vor.u32 %v18988_v29, %v16559_v35  ;;  %10866 = vmatpush.bf16.msrb.mxu3 %v17360_v41  ;;  %v15953_v35 = vld [vmem:[#allocation3 + $0x370] sm:$0xf0] }
 0x83d   :  { %v19052_v8 = vld [vmem:[#allocation3 + $0xa2c] sm:$0xf0]  ;;  %v18896_v29 = vld [vmem:[#allocation3 + $0x554] sm:$0xf] }
 0x83e   :  { %v17071_v22 = vld [vmem:[#allocation3 + $0xc10] sm:$0xf]  ;;  %v16816_v63 = vor.u32 %v19052_v8, %v16815_v25  ;;  %10825 = vmatpush.bf16.msrb.mxu0 %v16560_v60  ;;  %v18960_v20 = vld [vmem:[#allocation3 + $0x754] sm:$0xf]  ;;  %v15700_v8 = vor.u32 %v18768_v44, %v15697_v7  ;;  %v16212_v41 = vor.u32 %v18896_v29, %v16209_v61 }
 0x83f   :  { %v19116_v13 = vld [vmem:[#allocation3 + $0xc2c] sm:$0xf0]  ;;  %v16465_v25 = vld [vmem:[#allocation3 + $0x770] sm:$0xf0] }
 0x840   :  { %v17327_v26 = vld [vmem:[#allocation3 + $0xe10] sm:$0xf]  ;;  %v17072_v58 = vor.u32 %v19116_v13, %v17071_v22  ;;  %10839 = vmatpush.bf16.msrb.mxu1 %v16816_v63  ;;  %v15956_v22 = vor.u32 %v18832_v57, %v15953_v35  ;;  %v18760_v13 = vld [vmem:[#allocation3 + $0x114] sm:$0xf]  ;;  %v16468_v12 = vor.u32 %v18960_v20, %v16465_v25  ;;  %v10645_v35 = vpop.f32.mrf.mxu3 }
 0x841   :  { %v19180_v47 = vld [vmem:[#allocation3 + $0xe2c] sm:$0xf0]  ;;  %10826 = vmatmul.bf16.vlgmr.msrb.gmra.mxu0 %v20063_v24  ;;  %v18952_v60 = vld [vmem:[#allocation3 + $0x714] sm:$0xf] }
 0x842   :  { %v17328_v4 = vor.u32 %v19180_v47, %v17327_v26  ;;  %10853 = vmatpush.bf16.msrb.mxu2 %v17072_v58  ;;  %10874 = vmatpush.bf16.msra.mxu0 %v15764_v36  ;;  %v15665_v26 = vld [vmem:[#allocation3 + $0x130] sm:$0xf0]  ;;  %v16180_v58 = vor.u32 %v18888_v51, %v16177_v56 }
 0x843   :  { %10840 = vmatmul.bf16.vlgmr.msrb.gmra.mxu1 %v20075_v11  ;;  %v18824_v47 = vld [vmem:[#allocation3 + $0x314] sm:$0xf]  ;;  %v15668_v0 = vor.u32 %v18760_v13, %v15665_v26 }
 0x844   :  { %10867 = vmatpush.bf16.msrb.mxu3 %v17328_v4  ;;  %10888 = vmatpush.bf16.msra.mxu1 %v16020_v38  ;;  %v16433_v50 = vld [vmem:[#allocation3 + $0x730] sm:$0xf0]  ;;  %v15924_v63 = vor.u32 %v18824_v47, %v15921_v21  ;;  %v10618_v38 = vadd.f32 %v10617_v2, %v10604_v49 }
 0x845   :  { %10854 = vmatmul.bf16.vlgmr.msrb.gmra.mxu2 %v20069_v52  ;;  %v18752_v53 = vld [vmem:[#allocation3 + $0xd4] sm:$0xf]  ;;  %v16436_v36 = vor.u32 %v18952_v60, %v16433_v50 }
 0x846   :  { %10902 = vmatpush.bf16.msra.mxu2 %v16276_v3  ;;  %10875 = vmatpush.bf16.msra.mxu0 %v15732_v32  ;;  %v15633_v33 = vld [vmem:[#allocation3 + $0xf0] sm:$0xf0] }
 0x847   :  { %10868 = vmatmul.bf16.vlgmr.msrb.gmra.mxu3 %v20081_v54  ;;  %v18816_v4 = vld [vmem:[#allocation3 + $0x2d4] sm:$0xf]  ;;  %v15636_v10 = vor.u32 %v18752_v53, %v15633_v33 }
 0x848   :  { %10916 = vmatpush.bf16.msra.mxu3 %v16532_v9  ;;  %10889 = vmatpush.bf16.msra.mxu1 %v15988_v18  ;;  %v15889_v3 = vld [vmem:[#allocation3 + $0x2f0] sm:$0xf0]  ;;  %v10631_v18 = vpop.f32.mrf.mxu2 }
 0x849   :  { %v18880_v39 = vld [vmem:[#allocation3 + $0x4d4] sm:$0xf]  ;;  %v15892_v23 = vor.u32 %v18816_v4, %v15889_v3  ;;  %v10632_v57 = vadd.f32 %v10631_v18, %v10618_v38 }
 0x84a   :  { %10903 = vmatpush.bf16.msra.mxu2 %v16244_v27  ;;  %10876 = vmatpush.bf16.msra.mxu0 %v15700_v8  ;;  %v16145_v48 = vld [vmem:[#allocation3 + $0x4f0] sm:$0xf0]  ;;  %v10619_v8 = vpop.f32.mrf.mxu1 }
 0x84b   :  { %v18944_v43 = vld [vmem:[#allocation3 + $0x6d4] sm:$0xf]  ;;  %v16148_v55 = vor.u32 %v18880_v39, %v16145_v48 }
 0x84c   :  { %10917 = vmatpush.bf16.msra.mxu3 %v16500_v19  ;;  %10890 = vmatpush.bf16.msra.mxu1 %v15956_v22  ;;  %v16401_v9 = vld [vmem:[#allocation3 + $0x6f0] sm:$0xf0]  ;;  %v10605_v19 = vpop.f32.mrf.mxu0  ;;  %v20158_v22 = vadd.f32 %v10645_v35, %v10632_v57 }
 0x84d   :  { %v18744_v34 = vld [vmem:[#allocation3 + $0x94] sm:$0xf]  ;;  %v16404_v32 = vor.u32 %v18944_v43, %v16401_v9  ;;  %v10606_v20 = vadd.f32 %v10605_v19, %v20150_v59 }
 0x84e   :  { %10904 = vmatpush.bf16.msra.mxu2 %v16212_v41  ;;  %10877 = vmatpush.bf16.msra.mxu0 %v15668_v0  ;;  %v15601_v28 = vld [vmem:[#allocation3 + $0xb0] sm:$0xf0]  ;;  %v11212_v50 = vmax.f32 %v20158_v22, 0.0 }
 0x84f   :  { %v18808_v40 = vld [vmem:[#allocation3 + $0x294] sm:$0xf]  ;;  %v15604_v25 = vor.u32 %v18744_v34, %v15601_v28  ;;  %v10620_v51 = vadd.f32 %v10619_v8, %v10606_v20 }
 0x850   :  { %10918 = vmatpush.bf16.msra.mxu3 %v16468_v12  ;;  %10891 = vmatpush.bf16.msra.mxu1 %v15924_v63  ;;  %v15857_v27 = vld [vmem:[#allocation3 + $0x2b0] sm:$0xf0]  ;;  %v10633_v3 = vpop.f32.mrf.mxu2 }
 0x851   :  { %v18872_v44 = vld [vmem:[#allocation3 + $0x494] sm:$0xf]  ;;  %v15860_v41 = vor.u32 %v18808_v40, %v15857_v27  ;;  %v10634_v9 = vadd.f32 %v10633_v3, %v10620_v51  ;;  %v7741_v3 = vperm.slane %v20145_v14, 3 }
 0x852   :  { %10905 = vmatpush.bf16.msra.mxu2 %v16180_v58  ;;  %v16113_v7 = vld [vmem:[#allocation3 + $0x4b0] sm:$0xf0]  ;;  %10878 = vmatpush.bf16.msra.mxu0 %v15636_v10  ;;  %v10647_v10 = vpop.f32.mrf.mxu3 }
 0x853   :  { %v18936_v29 = vld [vmem:[#allocation3 + $0x694] sm:$0xf]  ;;  %v16116_v13 = vor.u32 %v18872_v44, %v16113_v7  ;;  %v20161_v27 = vadd.f32 %v10647_v10, %v10634_v9 }
 0x854   :  { %10919 = vmatpush.bf16.msra.mxu3 %v16436_v36  ;;  %v16369_v61 = vld [vmem:[#allocation3 + $0x6b0] sm:$0xf0]  ;;  %10892 = vmatpush.bf16.msra.mxu1 %v15892_v23 }
 0x855   :  { %v18736_v26 = vld [vmem:[#allocation3 + $0x54] sm:$0xf]  ;;  %v16372_v21 = vor.u32 %v18936_v29, %v16369_v61  ;;  %v11220_v20 = vmax.f32 %v20161_v27, 0.0 }
 0x856   :  { %10906 = vmatpush.bf16.msra.mxu2 %v16148_v55  ;;  %v15569_v47 = vld [vmem:[#allocation3 + $0x70] sm:$0xf0]  ;;  %10879 = vmatpush.bf16.msra.mxu0 %v15604_v25 }
 0x857   :  { %v18800_v12 = vld [vmem:[#allocation3 + $0x254] sm:$0xf]  ;;  %v15572_v0 = vor.u32 %v18736_v26, %v15569_v47 }
 0x858   :  { %10920 = vmatpush.bf16.msra.mxu3 %v16404_v32  ;;  %v15825_v56 = vld [vmem:[#allocation3 + $0x270] sm:$0xf0]  ;;  %10893 = vmatpush.bf16.msra.mxu1 %v15860_v41 }
 0x859   :  { %v18864_v16 = vld [vmem:[#allocation3 + $0x454] sm:$0xf]  ;;  %v15828_v58 = vor.u32 %v18800_v12, %v15825_v56 }
 0x85a   :  { %v16081_v60 = vld [vmem:[#allocation3 + $0x470] sm:$0xf0]  ;;  %10907 = vmatpush.bf16.msra.mxu2 %v16116_v13  ;;  %10880 = vmatpush.bf16.msra.mxu0 %v15572_v0 }
 0x85b   :  { %v18928_v59 = vld [vmem:[#allocation3 + $0x654] sm:$0xf]  ;;  %v16084_v53 = vor.u32 %v18864_v16, %v16081_v60 }
 0x85c   :  { %v16337_v49 = vld [vmem:[#allocation3 + $0x670] sm:$0xf0]  ;;  %10921 = vmatpush.bf16.msra.mxu3 %v16372_v21  ;;  %10894 = vmatpush.bf16.msra.mxu1 %v15828_v58 }
 0x85d   :  { %v18728_v2 = vld [vmem:[#allocation3 + $0x14] sm:$0xf]  ;;  %v16340_v38 = vor.u32 %v18928_v59, %v16337_v49 }
 0x85e   :  { %v15537_v63 = vld [vmem:[#allocation3 + $0x30] sm:$0xf0]  ;;  %10908 = vmatpush.bf16.msra.mxu2 %v16084_v53 }
 0x85f   :  { %v18792_v33 = vld [vmem:[#allocation3 + $0x214] sm:$0xf]  ;;  %v15540_v28 = vor.u32 %v18728_v2, %v15537_v63 }
 0x860   :  { %v15793_v4 = vld [vmem:[#allocation3 + $0x230] sm:$0xf0]  ;;  %10922 = vmatpush.bf16.msra.mxu3 %v16340_v38 }
 0x861   :  { %v18856_v36 = vld [vmem:[#allocation3 + $0x414] sm:$0xf]  ;;  %v15796_v44 = vor.u32 %v18792_v33, %v15793_v4  ;;  %10881 = vmatpush.bf16.msra.mxu0 %v15540_v28 }
 0x862   :  { %v16049_v39 = vld [vmem:[#allocation3 + $0x430] sm:$0xf0] }
 0x863   :  { %v18920_v48 = vld [vmem:[#allocation3 + $0x614] sm:$0xf]  ;;  %v16052_v7 = vor.u32 %v18856_v36, %v16049_v39  ;;  %10895 = vmatpush.bf16.msra.mxu1 %v15796_v44 }
 0x864   :  { %v16305_v43 = vld [vmem:[#allocation3 + $0x630] sm:$0xf0]  ;;  %10882 = vmatmul.bf16.vlgmr.msra.gmra.mxu0 %v20035_v37 }
 0x865   :  { %v19040_v23 = vld [vmem:[#allocation3 + $0x9d4] sm:$0xf]  ;;  %v16308_v35 = vor.u32 %v18920_v48, %v16305_v43  ;;  %10909 = vmatpush.bf16.msra.mxu2 %v16052_v7 }
 0x866   :  { %v16785_v55 = vld [vmem:[#allocation3 + $0x9f0] sm:$0xf0]  ;;  %10896 = vmatmul.bf16.vlgmr.msra.gmra.mxu1 %v20047_v5 }
 0x867   :  { %v19104_v34 = vld [vmem:[#allocation3 + $0xbd4] sm:$0xf]  ;;  %v16788_v29 = vor.u32 %v19040_v23, %v16785_v55  ;;  %10923 = vmatpush.bf16.msra.mxu3 %v16308_v35 }
 0x868   :  { %v17041_v40 = vld [vmem:[#allocation3 + $0xbf0] sm:$0xf0]  ;;  %10910 = vmatmul.bf16.vlgmr.msra.gmra.mxu2 %v20041_v46 }
 0x869   :  { %v19168_v32 = vld [vmem:[#allocation3 + $0xdd4] sm:$0xf]  ;;  %v17044_v25 = vor.u32 %v19104_v34, %v17041_v40  ;;  %10930 = vmatpush.bf16.msrb.mxu0 %v16788_v29 }
 0x86a   :  { %v17297_v18 = vld [vmem:[#allocation3 + $0xdf0] sm:$0xf0]  ;;  %10924 = vmatmul.bf16.vlgmr.msra.gmra.mxu3 %v20053_v30 }
 0x86b   :  { %v19232_v57 = vld [vmem:[#allocation3 + $0xfd4] sm:$0xf]  ;;  %v17300_v8 = vor.u32 %v19168_v32, %v17297_v18  ;;  %10944 = vmatpush.bf16.msrb.mxu1 %v17044_v25  ;;  %v10659_v18 = vpop.f32.mrf.mxu0 }
 0x86c   :  { %v17553_v19 = vld [vmem:[#allocation3 + $0xff0] sm:$0xf0]  ;;  %v10660_v7 = vadd.f32 %v10659_v18, %v7741_v3 }
 0x86d   :  { %v19032_v61 = vld [vmem:[#allocation3 + $0x994] sm:$0xf]  ;;  %v17556_v26 = vor.u32 %v19232_v57, %v17553_v19  ;;  %10958 = vmatpush.bf16.msrb.mxu2 %v17300_v8  ;;  %v10673_v57 = vpop.f32.mrf.mxu1 }
 0x86e   :  { %v16753_v41 = vld [vmem:[#allocation3 + $0x9b0] sm:$0xf0] }
 0x86f   :  { %v19096_v13 = vld [vmem:[#allocation3 + $0xb94] sm:$0xf]  ;;  %v16756_v16 = vor.u32 %v19032_v61, %v16753_v41  ;;  %10972 = vmatpush.bf16.msrb.mxu3 %v17556_v26  ;;  %v10674_v26 = vadd.f32 %v10673_v57, %v10660_v7 }
 0x870   :  { %v17009_v47 = vld [vmem:[#allocation3 + $0xbb0] sm:$0xf0] }
 0x871   :  { %v19160_v12 = vld [vmem:[#allocation3 + $0xd94] sm:$0xf]  ;;  %v17012_v60 = vor.u32 %v19096_v13, %v17009_v47  ;;  %10931 = vmatpush.bf16.msrb.mxu0 %v16756_v16 }
 0x872   :  { %v17265_v21 = vld [vmem:[#allocation3 + $0xdb0] sm:$0xf0] }
 0x873   :  { %v19224_v51 = vld [vmem:[#allocation3 + $0xf94] sm:$0xf]  ;;  %v17268_v59 = vor.u32 %v19160_v12, %v17265_v21  ;;  %10945 = vmatpush.bf16.msrb.mxu1 %v17012_v60 }
 0x874   :  { %v17521_v56 = vld [vmem:[#allocation3 + $0xfb0] sm:$0xf0] }
 0x875   :  { %v19024_v49 = vld [vmem:[#allocation3 + $0x954] sm:$0xf]  ;;  %v17524_v63 = vor.u32 %v19224_v51, %v17521_v56  ;;  %10959 = vmatpush.bf16.msrb.mxu2 %v17268_v59 }
 0x876   :  { %v16721_v0 = vld [vmem:[#allocation3 + $0x970] sm:$0xf0] }
 0x877   :  { %v19088_v2 = vld [vmem:[#allocation3 + $0xb54] sm:$0xf]  ;;  %v16724_v38 = vor.u32 %v19024_v49, %v16721_v0  ;;  %10973 = vmatpush.bf16.msrb.mxu3 %v17524_v63 }
 0x878   :  { %v16977_v58 = vld [vmem:[#allocation3 + $0xb70] sm:$0xf0] }
 0x879   :  { %v19152_v53 = vld [vmem:[#allocation3 + $0xd54] sm:$0xf]  ;;  %v16980_v39 = vor.u32 %v19088_v2, %v16977_v58  ;;  %10932 = vmatpush.bf16.msrb.mxu0 %v16724_v38  ;;  %v10687_v58 = vpop.f32.mrf.mxu2  ;;  %v10701_v38 = vpop.f32.mrf.mxu3 }
 0x87a   :  { %v17233_v33 = vld [vmem:[#allocation3 + $0xd70] sm:$0xf0] }
 0x87b   :  { %v19216_v4 = vld [vmem:[#allocation3 + $0xf54] sm:$0xf]  ;;  %v17236_v48 = vor.u32 %v19152_v53, %v17233_v33  ;;  %10946 = vmatpush.bf16.msrb.mxu1 %v16980_v39 }
 0x87c   :  { %v17489_v36 = vld [vmem:[#allocation3 + $0xf70] sm:$0xf0] }
 0x87d   :  { %v19016_v43 = vld [vmem:[#allocation3 + $0x914] sm:$0xf]  ;;  %v17492_v23 = vor.u32 %v19216_v4, %v17489_v36  ;;  %10960 = vmatpush.bf16.msrb.mxu2 %v17236_v48  ;;  %v10688_v4 = vadd.f32 %v10687_v58, %v10674_v26  ;;  %v10661_v36 = vpop.f32.mrf.mxu0 }
 0x87e   :  { %v16689_v9 = vld [vmem:[#allocation3 + $0x930] sm:$0xf0]  ;;  %v10662_v48 = vadd.f32 %v10661_v36, %v7741_v3 }
 0x87f   :  { %v19080_v10 = vld [vmem:[#allocation3 + $0xb14] sm:$0xf]  ;;  %v16692_v44 = vor.u32 %v19016_v43, %v16689_v9  ;;  %10974 = vmatpush.bf16.msrb.mxu3 %v17492_v23 }
 0x880   :  { %v16945_v55 = vld [vmem:[#allocation3 + $0xb30] sm:$0xf0] }
 0x881   :  { %v19144_v34 = vld [vmem:[#allocation3 + $0xd14] sm:$0xf]  ;;  %v16948_v14 = vor.u32 %v19080_v10, %v16945_v55  ;;  %10933 = vmatpush.bf16.msrb.mxu0 %v16692_v44 }
 0x882   :  { %v17201_v28 = vld [vmem:[#allocation3 + $0xd30] sm:$0xf0] }
 0x883   :  { %v19208_v40 = vld [vmem:[#allocation3 + $0xf14] sm:$0xf]  ;;  %v17204_v19 = vor.u32 %v19144_v34, %v17201_v28  ;;  %10947 = vmatpush.bf16.msrb.mxu1 %v16948_v14  ;;  %v20169_v34 = vadd.f32 %v10701_v38, %v10688_v4  ;;  %v10675_v28 = vpop.f32.mrf.mxu1  ;;  %v18981_v4 = vld [vmem:[#allocation3 + $0x7f4] sm:$0xf0] }
 0x884   :  { %v17457_v32 = vld [vmem:[#allocation3 + $0xf30] sm:$0xf0]  ;;  %v10676_v7 = vadd.f32 %v10675_v28, %v10662_v48  ;;  %v18845_v28 = vld [vmem:[#allocation3 + $0x3b4] sm:$0xf0] }
 0x885   :  { %v19008_v35 = vld [vmem:[#allocation3 + $0x8d4] sm:$0xf]  ;;  %v17460_v25 = vor.u32 %v19208_v40, %v17457_v32  ;;  %10961 = vmatpush.bf16.msrb.mxu2 %v17204_v19 }
 0x886   :  { %v16657_v29 = vld [vmem:[#allocation3 + $0x8f0] sm:$0xf0] }
 0x887   :  { %v19072_v61 = vld [vmem:[#allocation3 + $0xad4] sm:$0xf]  ;;  %v16660_v21 = vor.u32 %v19008_v35, %v16657_v29  ;;  %10975 = vmatpush.bf16.msrb.mxu3 %v17460_v25 }
 0x888   :  { %v16913_v8 = vld [vmem:[#allocation3 + $0xaf0] sm:$0xf0] }
 0x889   :  { %v19136_v41 = vld [vmem:[#allocation3 + $0xcd4] sm:$0xf]  ;;  %v16916_v51 = vor.u32 %v19072_v61, %v16913_v8  ;;  %10934 = vmatpush.bf16.msrb.mxu0 %v16660_v21  ;;  %v10689_v21 = vpop.f32.mrf.mxu2 }
 0x88a   :  { %v17169_v13 = vld [vmem:[#allocation3 + $0xcf0] sm:$0xf0] }
 0x88b   :  { %v19200_v47 = vld [vmem:[#allocation3 + $0xed4] sm:$0xf]  ;;  %v17172_v56 = vor.u32 %v19136_v41, %v17169_v13  ;;  %10948 = vmatpush.bf16.msrb.mxu1 %v16916_v51  ;;  %v15767_v51 = vld [vmem:[#allocation3 + $0x1d8] sm:$0xf] }
 0x88c   :  { %v17425_v12 = vld [vmem:[#allocation3 + $0xef0] sm:$0xf0] }
 0x88d   :  { %v19000_v16 = vld [vmem:[#allocation3 + $0x894] sm:$0xf]  ;;  %v17428_v49 = vor.u32 %v19200_v47, %v17425_v12  ;;  %10962 = vmatpush.bf16.msrb.mxu2 %v17172_v56  ;;  %v18789_v56 = vld [vmem:[#allocation3 + $0x1f4] sm:$0xf0] }
 0x88e   :  { %v16625_v60 = vld [vmem:[#allocation3 + $0x8b0] sm:$0xf0] }
 0x88f   :  { %v19064_v59 = vld [vmem:[#allocation3 + $0xa94] sm:$0xf]  ;;  %v16628_v39 = vor.u32 %v19000_v16, %v16625_v60  ;;  %10976 = vmatpush.bf16.msrb.mxu3 %v17428_v49  ;;  %v16023_v16 = vld [vmem:[#allocation3 + $0x3d8] sm:$0xf]  ;;  %v10690_v60 = vadd.f32 %v10689_v21, %v10676_v7 }
 0x890   :  { %v16881_v0 = vld [vmem:[#allocation3 + $0xab0] sm:$0xf0]  ;;  %v18853_v49 = vld [vmem:[#allocation3 + $0x3f4] sm:$0xf0] }
 0x891   :  { %v19128_v2 = vld [vmem:[#allocation3 + $0xc94] sm:$0xf]  ;;  %v16884_v43 = vor.u32 %v19064_v59, %v16881_v0  ;;  %10935 = vmatpush.bf16.msrb.mxu0 %v16628_v39  ;;  %v16279_v0 = vld [vmem:[#allocation3 + $0x5d8] sm:$0xf]  ;;  %v15768_v39 = vor.u32 %v18789_v56, %v15767_v51  ;;  %v16024_v48 = vor.u32 %v18853_v49, %v16023_v16 }
 0x892   :  { %v17137_v63 = vld [vmem:[#allocation3 + $0xcb0] sm:$0xf0]  ;;  %v15671_v21 = vld [vmem:[#allocation3 + $0x118] sm:$0xf] }
 0x893   :  { %v19192_v53 = vld [vmem:[#allocation3 + $0xe94] sm:$0xf]  ;;  %v17140_v9 = vor.u32 %v19128_v2, %v17137_v63  ;;  %10949 = vmatpush.bf16.msrb.mxu1 %v16884_v43  ;;  %v18917_v2 = vld [vmem:[#allocation3 + $0x5f4] sm:$0xf0]  ;;  %v10703_v63 = vpop.f32.mrf.mxu3 }
 0x894   :  { %v17393_v33 = vld [vmem:[#allocation3 + $0xeb0] sm:$0xf0]  ;;  %v20171_v36 = vadd.f32 %v10703_v63, %v10690_v60  ;;  %v16280_v43 = vor.u32 %v18917_v2, %v16279_v0  ;;  %v18765_v51 = vld [vmem:[#allocation3 + $0x134] sm:$0xf0]  ;;  %v10715_v0 = vpop.f32.mrf.mxu0 }
 0x895   :  { %v18992_v10 = vld [vmem:[#allocation3 + $0x854] sm:$0xf]  ;;  %v17396_v40 = vor.u32 %v19192_v53, %v17393_v33  ;;  %10963 = vmatpush.bf16.msrb.mxu2 %v17140_v9  ;;  %v16535_v33 = vld [vmem:[#allocation3 + $0x7d8] sm:$0xf] }
 0x896   :  { %v16593_v23 = vld [vmem:[#allocation3 + $0x870] sm:$0xf0]  ;;  %v15735_v9 = vld [vmem:[#allocation3 + $0x198] sm:$0xf] }
 0x897   :  { %v19056_v55 = vld [vmem:[#allocation3 + $0xa54] sm:$0xf]  ;;  %v16596_v3 = vor.u32 %v18992_v10, %v16593_v23  ;;  %10977 = vmatpush.bf16.msrb.mxu3 %v17396_v40  ;;  %v18781_v10 = vld [vmem:[#allocation3 + $0x1b4] sm:$0xf0] }
 0x898   :  { %v16849_v32 = vld [vmem:[#allocation3 + $0xa70] sm:$0xf0]  ;;  %v15991_v23 = vld [vmem:[#allocation3 + $0x398] sm:$0xf]  ;;  %v15736_v7 = vor.u32 %v18781_v10, %v15735_v9 }
 0x899   :  { %v19120_v18 = vld [vmem:[#allocation3 + $0xc54] sm:$0xf]  ;;  %v16852_v29 = vor.u32 %v19056_v55, %v16849_v32  ;;  %10936 = vmatpush.bf16.msrb.mxu0 %v16596_v3  ;;  %v16536_v55 = vor.u32 %v18981_v4, %v16535_v33  ;;  %v16247_v40 = vld [vmem:[#allocation3 + $0x598] sm:$0xf]  ;;  %v10729_v33 = vpop.f32.mrf.mxu1 }
 0x89a   :  { %v17105_v44 = vld [vmem:[#allocation3 + $0xc70] sm:$0xf0]  ;;  %v18909_v32 = vld [vmem:[#allocation3 + $0x5b4] sm:$0xf0] }
 0x89b   :  { %v19184_v57 = vld [vmem:[#allocation3 + $0xe54] sm:$0xf]  ;;  %v17108_v61 = vor.u32 %v19120_v18, %v17105_v44  ;;  %10950 = vmatpush.bf16.msrb.mxu1 %v16852_v29  ;;  %v16503_v18 = vld [vmem:[#allocation3 + $0x798] sm:$0xf] }
 0x89c   :  { %v17361_v14 = vld [vmem:[#allocation3 + $0xe70] sm:$0xf0]  ;;  %v18973_v44 = vld [vmem:[#allocation3 + $0x7b4] sm:$0xf0] }
 0x89d   :  { %v18984_v19 = vld [vmem:[#allocation3 + $0x814] sm:$0xf]  ;;  %v17364_v13 = vor.u32 %v19184_v57, %v17361_v14  ;;  %10964 = vmatpush.bf16.msrb.mxu2 %v17108_v61  ;;  %v15992_v57 = vor.u32 %v18845_v28, %v15991_v23  ;;  %v16248_v14 = vor.u32 %v18909_v32, %v16247_v40  ;;  %v15703_v3 = vld [vmem:[#allocation3 + $0x158] sm:$0xf]  ;;  %v16504_v29 = vor.u32 %v18973_v44, %v16503_v18 }
 0x89e   :  { %v16561_v35 = vld [vmem:[#allocation3 + $0x830] sm:$0xf0]  ;;  %v18837_v61 = vld [vmem:[#allocation3 + $0x374] sm:$0xf0] }
 0x89f   :  { %v19048_v25 = vld [vmem:[#allocation3 + $0xa14] sm:$0xf]  ;;  %v16564_v59 = vor.u32 %v18984_v19, %v16561_v35  ;;  %10978 = vmatpush.bf16.msrb.mxu3 %v17364_v13  ;;  %v18773_v19 = vld [vmem:[#allocation3 + $0x174] sm:$0xf0] }
 0x8a0   :  { %v16817_v8 = vld [vmem:[#allocation3 + $0xa30] sm:$0xf0]  ;;  %v15959_v35 = vld [vmem:[#allocation3 + $0x358] sm:$0xf] }
 0x8a1   :  { %v19112_v41 = vld [vmem:[#allocation3 + $0xc14] sm:$0xf]  ;;  %v16820_v58 = vor.u32 %v19048_v25, %v16817_v8  ;;  %10937 = vmatpush.bf16.msrb.mxu0 %v16564_v59  ;;  %v16215_v25 = vld [vmem:[#allocation3 + $0x558] sm:$0xf] }
 0x8a2   :  { %v17073_v26 = vld [vmem:[#allocation3 + $0xc30] sm:$0xf0]  ;;  %v18901_v8 = vld [vmem:[#allocation3 + $0x574] sm:$0xf0] }
 0x8a3   :  { %v19176_v47 = vld [vmem:[#allocation3 + $0xe14] sm:$0xf]  ;;  %v17076_v53 = vor.u32 %v19112_v41, %v17073_v26  ;;  %10951 = vmatpush.bf16.msrb.mxu1 %v16820_v58  ;;  %v16471_v41 = vld [vmem:[#allocation3 + $0x758] sm:$0xf]  ;;  %v15704_v26 = vor.u32 %v18773_v19, %v15703_v3  ;;  %v10716_v58 = vadd.f32 %v10715_v0, %v20169_v34  ;;  %v10743_v19 = vpop.f32.mrf.mxu2 }
 0x8a4   :  { %v17329_v12 = vld [vmem:[#allocation3 + $0xe30] sm:$0xf0]  ;;  %10938 = vmatmul.bf16.vlgmr.msrb.gmra.mxu0 %v20063_v24  ;;  %v18965_v13 = vld [vmem:[#allocation3 + $0x774] sm:$0xf0] }
 0x8a5   :  { %v17332_v38 = vor.u32 %v19176_v47, %v17329_v12  ;;  %10965 = vmatpush.bf16.msrb.mxu2 %v17076_v53  ;;  %10986 = vmatpush.bf16.msra.mxu0 %v15768_v39  ;;  %v15960_v47 = vor.u32 %v18837_v61, %v15959_v35  ;;  %v16216_v12 = vor.u32 %v18901_v8, %v16215_v25  ;;  %v15927_v56 = vld [vmem:[#allocation3 + $0x318] sm:$0xf]  ;;  %v10717_v8 = vpop.f32.mrf.mxu0 }
 0x8a6   :  { %10952 = vmatmul.bf16.vlgmr.msrb.gmra.mxu1 %v20075_v11  ;;  %v16472_v16 = vor.u32 %v18965_v13, %v16471_v41  ;;  %v18829_v60 = vld [vmem:[#allocation3 + $0x334] sm:$0xf0]  ;;  %v15672_v53 = vor.u32 %v18765_v51, %v15671_v21  ;;  %v10730_v10 = vadd.f32 %v10729_v33, %v10716_v58  ;;  %v10757_v41 = vpop.f32.mrf.mxu3  ;;  %v10731_v21 = vpop.f32.mrf.mxu1 }
 0x8a7   :  { %10979 = vmatpush.bf16.msrb.mxu3 %v17332_v38  ;;  %11000 = vmatpush.bf16.msra.mxu1 %v16024_v48  ;;  %v16183_v59 = vld [vmem:[#allocation3 + $0x518] sm:$0xf]  ;;  %v15928_v4 = vor.u32 %v18829_v60, %v15927_v56 }
 0x8a8   :  { %10966 = vmatmul.bf16.vlgmr.msrb.gmra.mxu2 %v20069_v52  ;;  %v18893_v49 = vld [vmem:[#allocation3 + $0x534] sm:$0xf0]  ;;  %v10744_v25 = vadd.f32 %v10743_v19, %v10730_v10 }
 0x8a9   :  { %11014 = vmatpush.bf16.msra.mxu2 %v16280_v43  ;;  %10987 = vmatpush.bf16.msra.mxu0 %v15736_v7  ;;  %v16439_v2 = vld [vmem:[#allocation3 + $0x718] sm:$0xf]  ;;  %v16184_v38 = vor.u32 %v18893_v49, %v16183_v59 }
 0x8aa   :  { %10980 = vmatmul.bf16.vlgmr.msrb.gmra.mxu3 %v20081_v54  ;;  %v18957_v63 = vld [vmem:[#allocation3 + $0x734] sm:$0xf0]  ;;  %v20179_v51 = vadd.f32 %v10757_v41, %v10744_v25 }
 0x8ab   :  { %11028 = vmatpush.bf16.msra.mxu3 %v16536_v55  ;;  %11001 = vmatpush.bf16.msra.mxu1 %v15992_v57  ;;  %v15639_v39 = vld [vmem:[#allocation3 + $0xd8] sm:$0xf]  ;;  %v16440_v9 = vor.u32 %v18957_v63, %v16439_v2 }
 0x8ac   :  { %v18757_v48 = vld [vmem:[#allocation3 + $0xf4] sm:$0xf0]  ;;  %v11213_v33 = vmax.f32 %v20179_v51, 0.0 }
 0x8ad   :  { %11015 = vmatpush.bf16.msra.mxu2 %v16248_v14  ;;  %10988 = vmatpush.bf16.msra.mxu0 %v15704_v26  ;;  %v15895_v43 = vld [vmem:[#allocation3 + $0x2d8] sm:$0xf]  ;;  %v15640_v18 = vor.u32 %v18757_v48, %v15639_v39 }
 0x8ae   :  { %v18821_v23 = vld [vmem:[#allocation3 + $0x2f4] sm:$0xf0] }
 0x8af   :  { %11029 = vmatpush.bf16.msra.mxu3 %v16504_v29  ;;  %11002 = vmatpush.bf16.msra.mxu1 %v15960_v47  ;;  %v16151_v55 = vld [vmem:[#allocation3 + $0x4d8] sm:$0xf]  ;;  %v15896_v34 = vor.u32 %v18821_v23, %v15895_v43  ;;  %v10718_v47 = vadd.f32 %v10717_v8, %v20171_v36 }
 0x8b0   :  { %v18885_v28 = vld [vmem:[#allocation3 + $0x4f4] sm:$0xf0] }
 0x8b1   :  { %11016 = vmatpush.bf16.msra.mxu2 %v16216_v12  ;;  %v16407_v40 = vld [vmem:[#allocation3 + $0x6d8] sm:$0xf]  ;;  %10989 = vmatpush.bf16.msra.mxu0 %v15672_v53  ;;  %v16152_v44 = vor.u32 %v18885_v28, %v16151_v55  ;;  %v10732_v2 = vadd.f32 %v10731_v21, %v10718_v47 }
 0x8b2   :  { %v18949_v32 = vld [vmem:[#allocation3 + $0x6f4] sm:$0xf0] }
 0x8b3   :  { %11030 = vmatpush.bf16.msra.mxu3 %v16472_v16  ;;  %11003 = vmatpush.bf16.msra.mxu1 %v15928_v4  ;;  %v15607_v7 = vld [vmem:[#allocation3 + $0x98] sm:$0xf]  ;;  %v16408_v3 = vor.u32 %v18949_v32, %v16407_v40  ;;  %v10745_v40 = vpop.f32.mrf.mxu2 }
 0x8b4   :  { %v18749_v57 = vld [vmem:[#allocation3 + $0xb4] sm:$0xf0] }
 0x8b5   :  { %11017 = vmatpush.bf16.msra.mxu2 %v16184_v38  ;;  %v15863_v14 = vld [vmem:[#allocation3 + $0x298] sm:$0xf]  ;;  %10990 = vmatpush.bf16.msra.mxu0 %v15640_v18  ;;  %v15608_v12 = vor.u32 %v18749_v57, %v15607_v7  ;;  %v10759_v7 = vpop.f32.mrf.mxu3 }
 0x8b6   :  { %v18813_v35 = vld [vmem:[#allocation3 + $0x2b4] sm:$0xf0] }
 0x8b7   :  { %11031 = vmatpush.bf16.msra.mxu3 %v16440_v9  ;;  %v16119_v29 = vld [vmem:[#allocation3 + $0x498] sm:$0xf]  ;;  %11004 = vmatpush.bf16.msra.mxu1 %v15896_v34  ;;  %v15864_v56 = vor.u32 %v18813_v35, %v15863_v14 }
 0x8b8   :  { %v18877_v61 = vld [vmem:[#allocation3 + $0x4b4] sm:$0xf0] }
 0x8b9   :  { %v16375_v13 = vld [vmem:[#allocation3 + $0x698] sm:$0xf]  ;;  %11018 = vmatpush.bf16.msra.mxu2 %v16152_v44  ;;  %v16120_v16 = vor.u32 %v18877_v61, %v16119_v29  ;;  %10991 = vmatpush.bf16.msra.mxu0 %v15608_v12  ;;  %v10746_v44 = vadd.f32 %v10745_v40, %v10732_v2 }
 0x8ba   :  { %v18941_v26 = vld [vmem:[#allocation3 + $0x6b4] sm:$0xf0] }
 0x8bb   :  { %v15575_v60 = vld [vmem:[#allocation3 + $0x58] sm:$0xf]  ;;  %11032 = vmatpush.bf16.msra.mxu3 %v16408_v3  ;;  %v16376_v0 = vor.u32 %v18941_v26, %v16375_v13  ;;  %11005 = vmatpush.bf16.msra.mxu1 %v15864_v56  ;;  %v20182_v25 = vadd.f32 %v10759_v7, %v10746_v44 }
 0x8bc   :  { %v18741_v59 = vld [vmem:[#allocation3 + $0x74] sm:$0xf0] }
 0x8bd   :  { %v15831_v49 = vld [vmem:[#allocation3 + $0x258] sm:$0xf]  ;;  %v15576_v38 = vor.u32 %v18741_v59, %v15575_v60  ;;  %11019 = vmatpush.bf16.msra.mxu2 %v16120_v16  ;;  %v11221_v56 = vmax.f32 %v20182_v25, 0.0 }
 0x8be   :  { %v18805_v63 = vld [vmem:[#allocation3 + $0x274] sm:$0xf0] }
 0x8bf   :  { %v16087_v58 = vld [vmem:[#allocation3 + $0x458] sm:$0xf]  ;;  %v15832_v43 = vor.u32 %v18805_v63, %v15831_v49  ;;  %11033 = vmatpush.bf16.msra.mxu3 %v16376_v0  ;;  %10992 = vmatpush.bf16.msra.mxu0 %v15576_v38 }
 0x8c0   :  { %v18869_v53 = vld [vmem:[#allocation3 + $0x474] sm:$0xf0] }
 0x8c1   :  { %v16343_v36 = vld [vmem:[#allocation3 + $0x658] sm:$0xf]  ;;  %v16088_v9 = vor.u32 %v18869_v53, %v16087_v58  ;;  %11006 = vmatpush.bf16.msra.mxu1 %v15832_v43 }
 0x8c2   :  { %v18933_v4 = vld [vmem:[#allocation3 + $0x674] sm:$0xf0] }
 0x8c3   :  { %v15543_v39 = vld [vmem:[#allocation3 + $0x18] sm:$0xf]  ;;  %v16344_v28 = vor.u32 %v18933_v4, %v16343_v36  ;;  %11020 = vmatpush.bf16.msra.mxu2 %v16088_v9 }
 0x8c4   :  { %v18733_v48 = vld [vmem:[#allocation3 + $0x34] sm:$0xf0] }
 0x8c5   :  { %v15799_v10 = vld [vmem:[#allocation3 + $0x218] sm:$0xf]  ;;  %v15544_v19 = vor.u32 %v18733_v48, %v15543_v39  ;;  %11034 = vmatpush.bf16.msra.mxu3 %v16344_v28 }
 0x8c6   :  { %v18797_v23 = vld [vmem:[#allocation3 + $0x234] sm:$0xf0] }
 0x8c7   :  { %v16055_v55 = vld [vmem:[#allocation3 + $0x418] sm:$0xf]  ;;  %v15800_v8 = vor.u32 %v18797_v23, %v15799_v10  ;;  %10993 = vmatpush.bf16.msra.mxu0 %v15544_v19 }
 0x8c8   :  { %v18861_v32 = vld [vmem:[#allocation3 + $0x434] sm:$0xf0] }
 0x8c9   :  { %v16311_v18 = vld [vmem:[#allocation3 + $0x618] sm:$0xf]  ;;  %v16056_v41 = vor.u32 %v18861_v32, %v16055_v55  ;;  %11007 = vmatpush.bf16.msra.mxu1 %v15800_v8 }
 0x8ca   :  { %v18925_v34 = vld [vmem:[#allocation3 + $0x634] sm:$0xf0]  ;;  %10994 = vmatmul.bf16.vlgmr.msra.gmra.mxu0 %v20035_v37 }
 0x8cb   :  { %v16791_v57 = vld [vmem:[#allocation3 + $0x9d8] sm:$0xf]  ;;  %v16312_v47 = vor.u32 %v18925_v34, %v16311_v18  ;;  %11021 = vmatpush.bf16.msra.mxu2 %v16056_v41  ;;  %v20189_v34 = vld [vmem:[#allocation14] sm:$0xff] }
 0x8cc   :  { %v19045_v14 = vld [vmem:[#allocation3 + $0x9f4] sm:$0xf0]  ;;  %11008 = vmatmul.bf16.vlgmr.msra.gmra.mxu1 %v20047_v5  ;;  %v7742_v44 = vperm.slane %v20189_v34, 4 }
 0x8cd   :  { %v17047_v3 = vld [vmem:[#allocation3 + $0xbd8] sm:$0xf]  ;;  %v16792_v12 = vor.u32 %v19045_v14, %v16791_v57  ;;  %11035 = vmatpush.bf16.msra.mxu3 %v16312_v47 }
 0x8ce   :  { %v19109_v35 = vld [vmem:[#allocation3 + $0xbf4] sm:$0xf0]  ;;  %11022 = vmatmul.bf16.vlgmr.msra.gmra.mxu2 %v20041_v46 }
 0x8cf   :  { %v17303_v29 = vld [vmem:[#allocation3 + $0xdd8] sm:$0xf]  ;;  %v17048_v16 = vor.u32 %v19109_v35, %v17047_v3  ;;  %11042 = vmatpush.bf16.msrb.mxu0 %v16792_v12 }
 0x8d0   :  { %v19173_v61 = vld [vmem:[#allocation3 + $0xdf4] sm:$0xf0]  ;;  %11036 = vmatmul.bf16.vlgmr.msra.gmra.mxu3 %v20053_v30 }
 0x8d1   :  { %v17559_v13 = vld [vmem:[#allocation3 + $0xfd8] sm:$0xf]  ;;  %v17304_v60 = vor.u32 %v19173_v61, %v17303_v29  ;;  %11056 = vmatpush.bf16.msrb.mxu1 %v17048_v16 }
 0x8d2   :  { %v19237_v26 = vld [vmem:[#allocation3 + $0xff4] sm:$0xf0] }
 0x8d3   :  { %v16759_v21 = vld [vmem:[#allocation3 + $0x998] sm:$0xf]  ;;  %v17560_v0 = vor.u32 %v19237_v26, %v17559_v13  ;;  %11070 = vmatpush.bf16.msrb.mxu2 %v17304_v60  ;;  %v10771_v26 = vpop.f32.mrf.mxu0 }
 0x8d4   :  { %v19037_v59 = vld [vmem:[#allocation3 + $0x9b4] sm:$0xf0]  ;;  %v10772_v12 = vadd.f32 %v10771_v26, %v7742_v44 }
 0x8d5   :  { %v17015_v49 = vld [vmem:[#allocation3 + $0xb98] sm:$0xf]  ;;  %v16760_v4 = vor.u32 %v19037_v59, %v16759_v21  ;;  %11084 = vmatpush.bf16.msrb.mxu3 %v17560_v0  ;;  %v10785_v21 = vpop.f32.mrf.mxu1 }
 0x8d6   :  { %v19101_v2 = vld [vmem:[#allocation3 + $0xbb4] sm:$0xf0] }
 0x8d7   :  { %v17271_v63 = vld [vmem:[#allocation3 + $0xd98] sm:$0xf]  ;;  %v17016_v38 = vor.u32 %v19101_v2, %v17015_v49  ;;  %11043 = vmatpush.bf16.msrb.mxu0 %v16760_v4 }
 0x8d8   :  { %v19165_v58 = vld [vmem:[#allocation3 + $0xdb4] sm:$0xf0] }
 0x8d9   :  { %v17527_v53 = vld [vmem:[#allocation3 + $0xf98] sm:$0xf]  ;;  %v17272_v39 = vor.u32 %v19165_v58, %v17271_v63  ;;  %11057 = vmatpush.bf16.msrb.mxu1 %v17016_v38 }
 0x8da   :  { %v19229_v36 = vld [vmem:[#allocation3 + $0xfb4] sm:$0xf0] }
 0x8db   :  { %v16727_v48 = vld [vmem:[#allocation3 + $0x958] sm:$0xf]  ;;  %v17528_v10 = vor.u32 %v19229_v36, %v17527_v53  ;;  %11071 = vmatpush.bf16.msrb.mxu2 %v17272_v39  ;;  %v10786_v36 = vadd.f32 %v10785_v21, %v10772_v12 }
 0x8dc   :  { %v19029_v43 = vld [vmem:[#allocation3 + $0x974] sm:$0xf0] }
 0x8dd   :  { %v16983_v9 = vld [vmem:[#allocation3 + $0xb58] sm:$0xf]  ;;  %v16728_v18 = vor.u32 %v19029_v43, %v16727_v48  ;;  %11085 = vmatpush.bf16.msrb.mxu3 %v17528_v10  ;;  %v10787_v12 = vpop.f32.mrf.mxu1 }
 0x8de   :  { %v19093_v23 = vld [vmem:[#allocation3 + $0xb74] sm:$0xf0] }
 0x8df   :  { %v17239_v55 = vld [vmem:[#allocation3 + $0xd58] sm:$0xf]  ;;  %v16984_v7 = vor.u32 %v19093_v23, %v16983_v9  ;;  %11044 = vmatpush.bf16.msrb.mxu0 %v16728_v18  ;;  %v10799_v18 = vpop.f32.mrf.mxu2 }
 0x8e0   :  { %v19157_v28 = vld [vmem:[#allocation3 + $0xd74] sm:$0xf0] }
 0x8e1   :  { %v17495_v40 = vld [vmem:[#allocation3 + $0xf58] sm:$0xf]  ;;  %v17240_v57 = vor.u32 %v19157_v28, %v17239_v55  ;;  %11058 = vmatpush.bf16.msrb.mxu1 %v16984_v7 }
 0x8e2   :  { %v19221_v32 = vld [vmem:[#allocation3 + $0xf74] sm:$0xf0] }
 0x8e3   :  { %v16695_v14 = vld [vmem:[#allocation3 + $0x918] sm:$0xf]  ;;  %v17496_v35 = vor.u32 %v19221_v32, %v17495_v40  ;;  %11072 = vmatpush.bf16.msrb.mxu2 %v17240_v57 }
 0x8e4   :  { %v19021_v3 = vld [vmem:[#allocation3 + $0x934] sm:$0xf0] }
 0x8e5   :  { %v16951_v19 = vld [vmem:[#allocation3 + $0xb18] sm:$0xf]  ;;  %v16696_v47 = vor.u32 %v19021_v3, %v16695_v14  ;;  %11086 = vmatpush.bf16.msrb.mxu3 %v17496_v35  ;;  %v10800_v14 = vadd.f32 %v10799_v18, %v10786_v36  ;;  %v10773_v3 = vpop.f32.mrf.mxu0 }
 0x8e6   :  { %v19085_v29 = vld [vmem:[#allocation3 + $0xb34] sm:$0xf0] }
 0x8e7   :  { %v17207_v61 = vld [vmem:[#allocation3 + $0xd18] sm:$0xf]  ;;  %v16952_v16 = vor.u32 %v19085_v29, %v16951_v19  ;;  %11045 = vmatpush.bf16.msrb.mxu0 %v16696_v47  ;;  %v10813_v19 = vpop.f32.mrf.mxu3  ;;  %v10774_v29 = vadd.f32 %v10773_v3, %v7742_v44 }
 0x8e8   :  { %v19149_v8 = vld [vmem:[#allocation3 + $0xd34] sm:$0xf0]  ;;  %v20192_v47 = vadd.f32 %v10813_v19, %v10800_v14  ;;  %v16281_v14 = vld [vmem:[#allocation3 + $0x5f8] sm:$0xf0] }
 0x8e9   :  { %v17463_v41 = vld [vmem:[#allocation3 + $0xf18] sm:$0xf]  ;;  %v17208_v60 = vor.u32 %v19149_v8, %v17207_v61  ;;  %11059 = vmatpush.bf16.msrb.mxu1 %v16952_v16 }
 0x8ea   :  { %v19213_v13 = vld [vmem:[#allocation3 + $0xf34] sm:$0xf0] }
 0x8eb   :  { %v16663_v59 = vld [vmem:[#allocation3 + $0x8d8] sm:$0xf]  ;;  %v17464_v2 = vor.u32 %v19213_v13, %v17463_v41  ;;  %11073 = vmatpush.bf16.msrb.mxu2 %v17208_v60 }
 0x8ec   :  { %v19013_v49 = vld [vmem:[#allocation3 + $0x8f4] sm:$0xf0] }
 0x8ed   :  { %v16919_v0 = vld [vmem:[#allocation3 + $0xad8] sm:$0xf]  ;;  %v16664_v39 = vor.u32 %v19013_v49, %v16663_v59  ;;  %11087 = vmatpush.bf16.msrb.mxu3 %v17464_v2  ;;  %v10788_v49 = vadd.f32 %v10787_v12, %v10774_v29  ;;  %v18977_v29 = vld [vmem:[#allocation3 + $0x7dc] sm:$0xf] }
 0x8ee   :  { %v19077_v63 = vld [vmem:[#allocation3 + $0xaf4] sm:$0xf0] }
 0x8ef   :  { %v17175_v58 = vld [vmem:[#allocation3 + $0xcd8] sm:$0xf]  ;;  %v16920_v48 = vor.u32 %v19077_v63, %v16919_v0  ;;  %11046 = vmatpush.bf16.msrb.mxu0 %v16664_v39  ;;  %v10815_v3 = vpop.f32.mrf.mxu3 }
 0x8f0   :  { %v19141_v53 = vld [vmem:[#allocation3 + $0xcf4] sm:$0xf0] }
 0x8f1   :  { %v17431_v4 = vld [vmem:[#allocation3 + $0xed8] sm:$0xf]  ;;  %v17176_v43 = vor.u32 %v19141_v53, %v17175_v58  ;;  %11060 = vmatpush.bf16.msrb.mxu1 %v16920_v48 }
 0x8f2   :  { %v19205_v38 = vld [vmem:[#allocation3 + $0xef4] sm:$0xf0] }
 0x8f3   :  { %v16631_v9 = vld [vmem:[#allocation3 + $0x898] sm:$0xf]  ;;  %v17432_v55 = vor.u32 %v19205_v38, %v17431_v4  ;;  %11074 = vmatpush.bf16.msrb.mxu2 %v17176_v43 }
 0x8f4   :  { %v19005_v10 = vld [vmem:[#allocation3 + $0x8b4] sm:$0xf0] }
 0x8f5   :  { %v16887_v23 = vld [vmem:[#allocation3 + $0xa98] sm:$0xf]  ;;  %v16632_v35 = vor.u32 %v19005_v10, %v16631_v9  ;;  %11088 = vmatpush.bf16.msrb.mxu3 %v17432_v55  ;;  %v18785_v55 = vld [vmem:[#allocation3 + $0x1dc] sm:$0xf] }
 0x8f6   :  { %v19069_v28 = vld [vmem:[#allocation3 + $0xab4] sm:$0xf0] }
 0x8f7   :  { %v17143_v40 = vld [vmem:[#allocation3 + $0xc98] sm:$0xf]  ;;  %v16888_v61 = vor.u32 %v19069_v28, %v16887_v23  ;;  %11047 = vmatpush.bf16.msrb.mxu0 %v16632_v35  ;;  %v10801_v23 = vpop.f32.mrf.mxu2  ;;  %v15769_v28 = vld [vmem:[#allocation3 + $0x1f8] sm:$0xf0] }
 0x8f8   :  { %v19133_v32 = vld [vmem:[#allocation3 + $0xcb4] sm:$0xf0] }
 0x8f9   :  { %v17399_v7 = vld [vmem:[#allocation3 + $0xe98] sm:$0xf]  ;;  %v17144_v8 = vor.u32 %v19133_v32, %v17143_v40  ;;  %11061 = vmatpush.bf16.msrb.mxu1 %v16888_v61  ;;  %v18849_v40 = vld [vmem:[#allocation3 + $0x3dc] sm:$0xf]  ;;  %v10802_v32 = vadd.f32 %v10801_v23, %v10788_v49 }
 0x8fa   :  { %v19197_v57 = vld [vmem:[#allocation3 + $0xeb4] sm:$0xf0]  ;;  %v16537_v61 = vld [vmem:[#allocation3 + $0x7f8] sm:$0xf0] }
 0x8fb   :  { %v16599_v41 = vld [vmem:[#allocation3 + $0x858] sm:$0xf]  ;;  %v17400_v21 = vor.u32 %v19197_v57, %v17399_v7  ;;  %11075 = vmatpush.bf16.msrb.mxu2 %v17144_v8  ;;  %v16025_v7 = vld [vmem:[#allocation3 + $0x3f8] sm:$0xf0]  ;;  %v20194_v8 = vadd.f32 %v10815_v3, %v10802_v32 }
 0x8fc   :  { %v18997_v13 = vld [vmem:[#allocation3 + $0x874] sm:$0xf0]  ;;  %v18913_v57 = vld [vmem:[#allocation3 + $0x5dc] sm:$0xf] }
 0x8fd   :  { %v16855_v26 = vld [vmem:[#allocation3 + $0xa58] sm:$0xf]  ;;  %v16600_v44 = vor.u32 %v18997_v13, %v16599_v41  ;;  %11089 = vmatpush.bf16.msrb.mxu3 %v17400_v21  ;;  %v15772_v13 = vor.u32 %v18785_v55, %v15769_v28  ;;  %v16284_v12 = vor.u32 %v18913_v57, %v16281_v14  ;;  %v18777_v21 = vld [vmem:[#allocation3 + $0x19c] sm:$0xf] }
 0x8fe   :  { %v19061_v16 = vld [vmem:[#allocation3 + $0xa74] sm:$0xf0]  ;;  %v15993_v49 = vld [vmem:[#allocation3 + $0x3b8] sm:$0xf0] }
 0x8ff   :  { %v17111_v60 = vld [vmem:[#allocation3 + $0xc58] sm:$0xf]  ;;  %v16856_v53 = vor.u32 %v19061_v16, %v16855_v26  ;;  %11048 = vmatpush.bf16.msrb.mxu0 %v16600_v44  ;;  %v16028_v26 = vor.u32 %v18849_v40, %v16025_v7  ;;  %v15737_v16 = vld [vmem:[#allocation3 + $0x1b8] sm:$0xf0] }
 0x900   :  { %v19125_v59 = vld [vmem:[#allocation3 + $0xc74] sm:$0xf0]  ;;  %v18969_v44 = vld [vmem:[#allocation3 + $0x79c] sm:$0xf] }
 0x901   :  { %v17367_v0 = vld [vmem:[#allocation3 + $0xe58] sm:$0xf]  ;;  %v17112_v36 = vor.u32 %v19125_v59, %v17111_v60  ;;  %11062 = vmatpush.bf16.msrb.mxu1 %v16856_v53  ;;  %v18841_v60 = vld [vmem:[#allocation3 + $0x39c] sm:$0xf]  ;;  %v16540_v59 = vor.u32 %v18977_v29, %v16537_v61  ;;  %v10827_v29 = vpop.f32.mrf.mxu0 }
 0x902   :  { %v19189_v2 = vld [vmem:[#allocation3 + $0xe74] sm:$0xf0]  ;;  %v15996_v53 = vor.u32 %v18841_v60, %v15993_v49  ;;  %v18961_v23 = vld [vmem:[#allocation3 + $0x75c] sm:$0xf] }
 0x903   :  { %v16567_v63 = vld [vmem:[#allocation3 + $0x818] sm:$0xf]  ;;  %v17368_v48 = vor.u32 %v19189_v2, %v17367_v0  ;;  %11076 = vmatpush.bf16.msrb.mxu2 %v17112_v36  ;;  %v18905_v0 = vld [vmem:[#allocation3 + $0x59c] sm:$0xf] }
 0x904   :  { %v18989_v58 = vld [vmem:[#allocation3 + $0x834] sm:$0xf0]  ;;  %v16249_v2 = vld [vmem:[#allocation3 + $0x5b8] sm:$0xf0] }
 0x905   :  { %v16823_v4 = vld [vmem:[#allocation3 + $0xa18] sm:$0xf]  ;;  %v16568_v18 = vor.u32 %v18989_v58, %v16567_v63  ;;  %11090 = vmatpush.bf16.msrb.mxu3 %v17368_v48  ;;  %v16505_v63 = vld [vmem:[#allocation3 + $0x7b8] sm:$0xf0]  ;;  %v15740_v58 = vor.u32 %v18777_v21, %v15737_v16  ;;  %v16252_v36 = vor.u32 %v18905_v0, %v16249_v2 }
 0x906   :  { %v19053_v38 = vld [vmem:[#allocation3 + $0xa34] sm:$0xf0]  ;;  %v16508_v48 = vor.u32 %v18969_v44, %v16505_v63  ;;  %v16473_v55 = vld [vmem:[#allocation3 + $0x778] sm:$0xf0] }
 0x907   :  { %v17079_v39 = vld [vmem:[#allocation3 + $0xc18] sm:$0xf]  ;;  %v16824_v19 = vor.u32 %v19053_v38, %v16823_v4  ;;  %11049 = vmatpush.bf16.msrb.mxu0 %v16568_v18  ;;  %v18769_v4 = vld [vmem:[#allocation3 + $0x15c] sm:$0xf]  ;;  %v16476_v14 = vor.u32 %v18961_v23, %v16473_v55 }
 0x908   :  { %v19117_v43 = vld [vmem:[#allocation3 + $0xc34] sm:$0xf0]  ;;  %v15705_v38 = vld [vmem:[#allocation3 + $0x178] sm:$0xf0] }
 0x909   :  { %v17335_v9 = vld [vmem:[#allocation3 + $0xe18] sm:$0xf]  ;;  %v17080_v35 = vor.u32 %v19117_v43, %v17079_v39  ;;  %11063 = vmatpush.bf16.msrb.mxu1 %v16824_v19  ;;  %v18833_v39 = vld [vmem:[#allocation3 + $0x35c] sm:$0xf]  ;;  %v15708_v28 = vor.u32 %v18769_v4, %v15705_v38 }
 0x90a   :  { %v19181_v10 = vld [vmem:[#allocation3 + $0xe34] sm:$0xf0]  ;;  %11050 = vmatmul.bf16.vlgmr.msrb.gmra.mxu0 %v20063_v24  ;;  %v15961_v43 = vld [vmem:[#allocation3 + $0x378] sm:$0xf0] }
 0x90b   :  { %v17336_v41 = vor.u32 %v19181_v10, %v17335_v9  ;;  %11077 = vmatpush.bf16.msrb.mxu2 %v17080_v35  ;;  %11098 = vmatpush.bf16.msra.mxu0 %v15772_v13  ;;  %v18897_v9 = vld [vmem:[#allocation3 + $0x55c] sm:$0xf]  ;;  %v15964_v40 = vor.u32 %v18833_v39, %v15961_v43  ;;  %v10828_v13 = vadd.f32 %v10827_v29, %v20192_v47 }
 0x90c   :  { %v16217_v10 = vld [vmem:[#allocation3 + $0x578] sm:$0xf0]  ;;  %11064 = vmatmul.bf16.vlgmr.msrb.gmra.mxu1 %v20075_v11 }
 0x90d   :  { %11091 = vmatpush.bf16.msrb.mxu3 %v17336_v41  ;;  %11112 = vmatpush.bf16.msra.mxu1 %v16028_v26  ;;  %v16220_v32 = vor.u32 %v18897_v9, %v16217_v10  ;;  %v18761_v18 = vld [vmem:[#allocation3 + $0x11c] sm:$0xf]  ;;  %v10855_v10 = vpop.f32.mrf.mxu2 }
 0x90e   :  { %11078 = vmatmul.bf16.vlgmr.msrb.gmra.mxu2 %v20069_v52  ;;  %v15673_v7 = vld [vmem:[#allocation3 + $0x138] sm:$0xf0] }
 0x90f   :  { %11126 = vmatpush.bf16.msra.mxu2 %v16284_v12  ;;  %11099 = vmatpush.bf16.msra.mxu0 %v15740_v58  ;;  %v18825_v57 = vld [vmem:[#allocation3 + $0x31c] sm:$0xf]  ;;  %v15676_v26 = vor.u32 %v18761_v18, %v15673_v7  ;;  %v10841_v12 = vpop.f32.mrf.mxu1  ;;  %v10869_v18 = vpop.f32.mrf.mxu3 }
 0x910   :  { %11092 = vmatmul.bf16.vlgmr.msrb.gmra.mxu3 %v20081_v54  ;;  %v15929_v3 = vld [vmem:[#allocation3 + $0x338] sm:$0xf0]  ;;  %v10842_v2 = vadd.f32 %v10841_v12, %v10828_v13 }
 0x911   :  { %11140 = vmatpush.bf16.msra.mxu3 %v16540_v59  ;;  %11113 = vmatpush.bf16.msra.mxu1 %v15996_v53  ;;  %v18889_v19 = vld [vmem:[#allocation3 + $0x51c] sm:$0xf]  ;;  %v15932_v21 = vor.u32 %v18825_v57, %v15929_v3 }
 0x912   :  { %v16185_v35 = vld [vmem:[#allocation3 + $0x538] sm:$0xf0] }
 0x913   :  { %11127 = vmatpush.bf16.msra.mxu2 %v16252_v36  ;;  %v18953_v61 = vld [vmem:[#allocation3 + $0x71c] sm:$0xf]  ;;  %11100 = vmatpush.bf16.msra.mxu0 %v15708_v28  ;;  %v16188_v16 = vor.u32 %v18889_v19, %v16185_v35 }
 0x914   :  { %v16441_v41 = vld [vmem:[#allocation3 + $0x738] sm:$0xf0] }
 0x915   :  { %11141 = vmatpush.bf16.msra.mxu3 %v16508_v48  ;;  %11114 = vmatpush.bf16.msra.mxu1 %v15964_v40  ;;  %v18753_v60 = vld [vmem:[#allocation3 + $0xdc] sm:$0xf]  ;;  %v16444_v0 = vor.u32 %v18953_v61, %v16441_v41  ;;  %v10856_v40 = vadd.f32 %v10855_v10, %v10842_v2 }
 0x916   :  { %v15641_v59 = vld [vmem:[#allocation3 + $0xf8] sm:$0xf0] }
 0x917   :  { %11128 = vmatpush.bf16.msra.mxu2 %v16220_v32  ;;  %v18817_v49 = vld [vmem:[#allocation3 + $0x2dc] sm:$0xf]  ;;  %11101 = vmatpush.bf16.msra.mxu0 %v15676_v26  ;;  %v15644_v4 = vor.u32 %v18753_v60, %v15641_v59  ;;  %v10829_v32 = vpop.f32.mrf.mxu0  ;;  %v10843_v19 = vpop.f32.mrf.mxu1  ;;  %v20202_v35 = vadd.f32 %v10869_v18, %v10856_v40 }
 0x918   :  { %v15897_v44 = vld [vmem:[#allocation3 + $0x2f8] sm:$0xf0] }
 0x919   :  { %11142 = vmatpush.bf16.msra.mxu3 %v16476_v14  ;;  %v18881_v63 = vld [vmem:[#allocation3 + $0x4dc] sm:$0xf]  ;;  %11115 = vmatpush.bf16.msra.mxu1 %v15932_v21  ;;  %v15900_v47 = vor.u32 %v18817_v49, %v15897_v44  ;;  %v10830_v14 = vadd.f32 %v10829_v32, %v20194_v8  ;;  %v11214_v49 = vmax.f32 %v20202_v35, 0.0 }
 0x91a   :  { %v16153_v58 = vld [vmem:[#allocation3 + $0x4f8] sm:$0xf0] }
 0x91b   :  { %v18945_v53 = vld [vmem:[#allocation3 + $0x6dc] sm:$0xf]  ;;  %11129 = vmatpush.bf16.msra.mxu2 %v16188_v16  ;;  %v16156_v38 = vor.u32 %v18881_v63, %v16153_v58  ;;  %11102 = vmatpush.bf16.msra.mxu0 %v15644_v4  ;;  %v10844_v21 = vadd.f32 %v10843_v19, %v10830_v14 }
 0x91c   :  { %v16409_v36 = vld [vmem:[#allocation3 + $0x6f8] sm:$0xf0] }
 0x91d   :  { %v18745_v39 = vld [vmem:[#allocation3 + $0x9c] sm:$0xf]  ;;  %11143 = vmatpush.bf16.msra.mxu3 %v16444_v0  ;;  %v16412_v9 = vor.u32 %v18945_v53, %v16409_v36  ;;  %11116 = vmatpush.bf16.msra.mxu1 %v15900_v47 }
 0x91e   :  { %v15609_v48 = vld [vmem:[#allocation3 + $0xb8] sm:$0xf0] }
 0x91f   :  { %v18809_v43 = vld [vmem:[#allocation3 + $0x29c] sm:$0xf]  ;;  %v15612_v3 = vor.u32 %v18745_v39, %v15609_v48  ;;  %11130 = vmatpush.bf16.msra.mxu2 %v16156_v38  ;;  %v10857_v39 = vpop.f32.mrf.mxu2 }
 0x920   :  { %v15865_v23 = vld [vmem:[#allocation3 + $0x2b8] sm:$0xf0]  ;;  %v10858_v10 = vadd.f32 %v10857_v39, %v10844_v21 }
 0x921   :  { %v18873_v55 = vld [vmem:[#allocation3 + $0x49c] sm:$0xf]  ;;  %v15868_v29 = vor.u32 %v18809_v43, %v15865_v23  ;;  %11144 = vmatpush.bf16.msra.mxu3 %v16412_v9  ;;  %11103 = vmatpush.bf16.msra.mxu0 %v15612_v3  ;;  %v10871_v23 = vpop.f32.mrf.mxu3 }
 0x922   :  { %v16121_v28 = vld [vmem:[#allocation3 + $0x4b8] sm:$0xf0]  ;;  %v20205_v14 = vadd.f32 %v10871_v23, %v10858_v10 }
 0x923   :  { %v18937_v7 = vld [vmem:[#allocation3 + $0x69c] sm:$0xf]  ;;  %v16124_v61 = vor.u32 %v18873_v55, %v16121_v28  ;;  %11117 = vmatpush.bf16.msra.mxu1 %v15868_v29 }
 0x924   :  { %v16377_v57 = vld [vmem:[#allocation3 + $0x6b8] sm:$0xf0] }
 0x925   :  { %v18737_v41 = vld [vmem:[#allocation3 + $0x5c] sm:$0xf]  ;;  %v16380_v12 = vor.u32 %v18937_v7, %v16377_v57  ;;  %11131 = vmatpush.bf16.msra.mxu2 %v16124_v61 }
 0x926   :  { %v15577_v13 = vld [vmem:[#allocation3 + $0x78] sm:$0xf0] }
 0x927   :  { %v18801_v26 = vld [vmem:[#allocation3 + $0x25c] sm:$0xf]  ;;  %v15580_v2 = vor.u32 %v18737_v41, %v15577_v13  ;;  %11145 = vmatpush.bf16.msra.mxu3 %v16380_v12  ;;  %v11222_v12 = vmax.f32 %v20205_v14, 0.0 }
 0x928   :  { %v15833_v16 = vld [vmem:[#allocation3 + $0x278] sm:$0xf0] }
 0x929   :  { %v18865_v60 = vld [vmem:[#allocation3 + $0x45c] sm:$0xf]  ;;  %v15836_v58 = vor.u32 %v18801_v26, %v15833_v16  ;;  %11104 = vmatpush.bf16.msra.mxu0 %v15580_v2 }
 0x92a   :  { %v16089_v59 = vld [vmem:[#allocation3 + $0x478] sm:$0xf0] }
 0x92b   :  { %v18929_v8 = vld [vmem:[#allocation3 + $0x65c] sm:$0xf]  ;;  %v16092_v53 = vor.u32 %v18865_v60, %v16089_v59  ;;  %11118 = vmatpush.bf16.msra.mxu1 %v15836_v58 }
 0x92c   :  { %v16345_v0 = vld [vmem:[#allocation3 + $0x678] sm:$0xf0] }
 0x92d   :  { %v18729_v44 = vld [vmem:[#allocation3 + $0x1c] sm:$0xf]  ;;  %v16348_v38 = vor.u32 %v18929_v8, %v16345_v0  ;;  %11132 = vmatpush.bf16.msra.mxu2 %v16092_v53 }
 0x92e   :  { %v15545_v63 = vld [vmem:[#allocation3 + $0x38] sm:$0xf0] }
 0x92f   :  { %v18793_v36 = vld [vmem:[#allocation3 + $0x21c] sm:$0xf]  ;;  %v15548_v32 = vor.u32 %v18729_v44, %v15545_v63  ;;  %11146 = vmatpush.bf16.msra.mxu3 %v16348_v38 }
 0x930   :  { %v15801_v4 = vld [vmem:[#allocation3 + $0x238] sm:$0xf0] }
 0x931   :  { %v18857_v47 = vld [vmem:[#allocation3 + $0x41c] sm:$0xf]  ;;  %v15804_v3 = vor.u32 %v18793_v36, %v15801_v4  ;;  %11105 = vmatpush.bf16.msra.mxu0 %v15548_v32 }
 0x932   :  { %v16057_v48 = vld [vmem:[#allocation3 + $0x438] sm:$0xf0] }
 0x933   :  { %v18921_v43 = vld [vmem:[#allocation3 + $0x61c] sm:$0xf]  ;;  %v16060_v19 = vor.u32 %v18857_v47, %v16057_v48  ;;  %11119 = vmatpush.bf16.msra.mxu1 %v15804_v3 }
 0x934   :  { %v16313_v9 = vld [vmem:[#allocation3 + $0x638] sm:$0xf0]  ;;  %11106 = vmatmul.bf16.vlgmr.msra.gmra.mxu0 %v20035_v37 }
 0x935   :  { %v19041_v55 = vld [vmem:[#allocation3 + $0x9dc] sm:$0xf]  ;;  %v16316_v41 = vor.u32 %v18921_v43, %v16313_v9  ;;  %11133 = vmatpush.bf16.msra.mxu2 %v16060_v19 }
 0x936   :  { %v16793_v28 = vld [vmem:[#allocation3 + $0x9f8] sm:$0xf0]  ;;  %11120 = vmatmul.bf16.vlgmr.msra.gmra.mxu1 %v20047_v5 }
 0x937   :  { %v19105_v40 = vld [vmem:[#allocation3 + $0xbdc] sm:$0xf]  ;;  %v16796_v13 = vor.u32 %v19041_v55, %v16793_v28  ;;  %11147 = vmatpush.bf16.msra.mxu3 %v16316_v41  ;;  %v10883_v41 = vpop.f32.mrf.mxu0 }
 0x938   :  { %v17049_v18 = vld [vmem:[#allocation3 + $0xbf8] sm:$0xf0]  ;;  %11134 = vmatmul.bf16.vlgmr.msra.gmra.mxu2 %v20041_v46 }
 0x939   :  { %v19169_v7 = vld [vmem:[#allocation3 + $0xddc] sm:$0xf]  ;;  %v17052_v21 = vor.u32 %v19105_v40, %v17049_v18  ;;  %11154 = vmatpush.bf16.msrb.mxu0 %v16796_v13  ;;  %v7743_v40 = vperm.slane %v20189_v34, 5 }
 0x93a   :  { %v17305_v57 = vld [vmem:[#allocation3 + $0xdf8] sm:$0xf0]  ;;  %11148 = vmatmul.bf16.vlgmr.msra.gmra.mxu3 %v20053_v30 }
 0x93b   :  { %v19233_v29 = vld [vmem:[#allocation3 + $0xfdc] sm:$0xf]  ;;  %v17308_v16 = vor.u32 %v19169_v7, %v17305_v57  ;;  %11168 = vmatpush.bf16.msrb.mxu1 %v17052_v21  ;;  %v10884_v5 = vadd.f32 %v10883_v41, %v7743_v40 }
 0x93c   :  { %v17561_v61 = vld [vmem:[#allocation3 + $0xff8] sm:$0xf0] }
 0x93d   :  { %v19033_v26 = vld [vmem:[#allocation3 + $0x99c] sm:$0xf]  ;;  %v17564_v8 = vor.u32 %v19233_v29, %v17561_v61  ;;  %11182 = vmatpush.bf16.msrb.mxu2 %v17308_v16 }
 0x93e   :  { %v16761_v60 = vld [vmem:[#allocation3 + $0x9b8] sm:$0xf0] }
 0x93f   :  { %v19097_v59 = vld [vmem:[#allocation3 + $0xb9c] sm:$0xf]  ;;  %v16764_v53 = vor.u32 %v19033_v26, %v16761_v60  ;;  %11196 = vmatpush.bf16.msrb.mxu3 %v17564_v8  ;;  %v10897_v26 = vpop.f32.mrf.mxu1 }
 0x940   :  { %v17017_v0 = vld [vmem:[#allocation3 + $0xbb8] sm:$0xf0] }
 0x941   :  { %v19161_v2 = vld [vmem:[#allocation3 + $0xd9c] sm:$0xf]  ;;  %v17020_v36 = vor.u32 %v19097_v59, %v17017_v0  ;;  %11155 = vmatpush.bf16.msrb.mxu0 %v16764_v53 }
 0x942   :  { %v17273_v44 = vld [vmem:[#allocation3 + $0xdb8] sm:$0xf0] }
 0x943   :  { %v19225_v63 = vld [vmem:[#allocation3 + $0xf9c] sm:$0xf]  ;;  %v17276_v4 = vor.u32 %v19161_v2, %v17273_v44  ;;  %11169 = vmatpush.bf16.msrb.mxu1 %v17020_v36 }
 0x944   :  { %v17529_v58 = vld [vmem:[#allocation3 + $0xfb8] sm:$0xf0] }
 0x945   :  { %v19025_v47 = vld [vmem:[#allocation3 + $0x95c] sm:$0xf]  ;;  %v17532_v48 = vor.u32 %v19225_v63, %v17529_v58  ;;  %11183 = vmatpush.bf16.msrb.mxu2 %v17276_v4  ;;  %v10898_v58 = vadd.f32 %v10897_v26, %v10884_v5 }
 0x946   :  { %v16729_v38 = vld [vmem:[#allocation3 + $0x978] sm:$0xf0] }
 0x947   :  { %v19089_v39 = vld [vmem:[#allocation3 + $0xb5c] sm:$0xf]  ;;  %v16732_v28 = vor.u32 %v19025_v47, %v16729_v38  ;;  %11197 = vmatpush.bf16.msrb.mxu3 %v17532_v48  ;;  %v10899_v5 = vpop.f32.mrf.mxu1 }
 0x948   :  { %v16985_v43 = vld [vmem:[#allocation3 + $0xb78] sm:$0xf0] }
 0x949   :  { %v19153_v9 = vld [vmem:[#allocation3 + $0xd5c] sm:$0xf]  ;;  %v16988_v32 = vor.u32 %v19089_v39, %v16985_v43  ;;  %11156 = vmatpush.bf16.msrb.mxu0 %v16732_v28  ;;  %v10911_v28 = vpop.f32.mrf.mxu2 }
 0x94a   :  { %v17241_v10 = vld [vmem:[#allocation3 + $0xd78] sm:$0xf0] }
 0x94b   :  { %v19217_v23 = vld [vmem:[#allocation3 + $0xf5c] sm:$0xf]  ;;  %v17244_v18 = vor.u32 %v19153_v9, %v17241_v10  ;;  %11170 = vmatpush.bf16.msrb.mxu1 %v16988_v32 }
 0x94c   :  { %v17497_v55 = vld [vmem:[#allocation3 + $0xf78] sm:$0xf0] }
 0x94d   :  { %v19017_v46 = vld [vmem:[#allocation3 + $0x91c] sm:$0xf]  ;;  %v17500_v3 = vor.u32 %v19217_v23, %v17497_v55  ;;  %11184 = vmatpush.bf16.msrb.mxu2 %v17244_v18 }
 0x94e   :  { %v16697_v7 = vld [vmem:[#allocation3 + $0x938] sm:$0xf0] }
 0x94f   :  { %v19081_v57 = vld [vmem:[#allocation3 + $0xb1c] sm:$0xf]  ;;  %v16700_v13 = vor.u32 %v19017_v46, %v16697_v7  ;;  %11198 = vmatpush.bf16.msrb.mxu3 %v17500_v3  ;;  %v10912_v46 = vadd.f32 %v10911_v28, %v10898_v58  ;;  %v10885_v7 = vpop.f32.mrf.mxu0 }
 0x950   :  { %v16953_v19 = vld [vmem:[#allocation3 + $0xb38] sm:$0xf0] }
 0x951   :  { %v19145_v29 = vld [vmem:[#allocation3 + $0xd1c] sm:$0xf]  ;;  %v16956_v21 = vor.u32 %v19081_v57, %v16953_v19  ;;  %11157 = vmatpush.bf16.msrb.mxu0 %v16700_v13  ;;  %v10925_v57 = vpop.f32.mrf.mxu3  ;;  %v10886_v19 = vadd.f32 %v10885_v7, %v7743_v40 }
 0x952   :  { %v17209_v37 = vld [vmem:[#allocation3 + $0xd38] sm:$0xf0]  ;;  %v10926_v13 = vadd.f32 %v10925_v57, %v10912_v46  ;;  %v10953_v57 = vpop.f32.mrf.mxu1 }
 0x953   :  { %v19209_v61 = vld [vmem:[#allocation3 + $0xf1c] sm:$0xf]  ;;  %v17212_v16 = vor.u32 %v19145_v29, %v17209_v37  ;;  %11171 = vmatpush.bf16.msrb.mxu1 %v16956_v21 }
 0x954   :  { %v17465_v30 = vld [vmem:[#allocation3 + $0xf38] sm:$0xf0] }
 0x955   :  { %v19009_v60 = vld [vmem:[#allocation3 + $0x8dc] sm:$0xf]  ;;  %v17468_v0 = vor.u32 %v19209_v61, %v17465_v30  ;;  %11185 = vmatpush.bf16.msrb.mxu2 %v17212_v16 }
 0x956   :  { %v16665_v59 = vld [vmem:[#allocation3 + $0x8f8] sm:$0xf0] }
 0x957   :  { %v19073_v8 = vld [vmem:[#allocation3 + $0xadc] sm:$0xf]  ;;  %v16668_v4 = vor.u32 %v19009_v60, %v16665_v59  ;;  %11199 = vmatpush.bf16.msrb.mxu3 %v17468_v0  ;;  %v10900_v59 = vadd.f32 %v10899_v5, %v10886_v19  ;;  %v10939_v46 = vpop.f32.mrf.mxu0 }
 0x958   :  { %v16921_v2 = vld [vmem:[#allocation3 + $0xaf8] sm:$0xf0]  ;;  %v10940_v7 = vadd.f32 %v10939_v46, %v10926_v13 }
 0x959   :  { %v19137_v44 = vld [vmem:[#allocation3 + $0xcdc] sm:$0xf]  ;;  %v16924_v47 = vor.u32 %v19073_v8, %v16921_v2  ;;  %11158 = vmatpush.bf16.msrb.mxu0 %v16668_v4 }
 0x95a   :  { %v17177_v63 = vld [vmem:[#allocation3 + $0xcf8] sm:$0xf0] }
 0x95b   :  { %v19201_v53 = vld [vmem:[#allocation3 + $0xedc] sm:$0xf]  ;;  %v17180_v38 = vor.u32 %v19137_v44, %v17177_v63  ;;  %11172 = vmatpush.bf16.msrb.mxu1 %v16924_v47 }
 0x95c   :  { %v17433_v36 = vld [vmem:[#allocation3 + $0xef8] sm:$0xf0] }
 0x95d   :  { %v19001_v39 = vld [vmem:[#allocation3 + $0x89c] sm:$0xf]  ;;  %v17436_v9 = vor.u32 %v19201_v53, %v17433_v36  ;;  %11186 = vmatpush.bf16.msrb.mxu2 %v17180_v38 }
 0x95e   :  { %v16633_v48 = vld [vmem:[#allocation3 + $0x8b8] sm:$0xf0] }
 0x95f   :  { %v19065_v43 = vld [vmem:[#allocation3 + $0xa9c] sm:$0xf]  ;;  %v16636_v3 = vor.u32 %v19001_v39, %v16633_v48  ;;  %11200 = vmatpush.bf16.msrb.mxu3 %v17436_v9  ;;  %v10913_v39 = vpop.f32.mrf.mxu2 }
 0x960   :  { %v16889_v10 = vld [vmem:[#allocation3 + $0xab8] sm:$0xf0]  ;;  %v10914_v9 = vadd.f32 %v10913_v39, %v10900_v59 }
 0x961   :  { %v19129_v23 = vld [vmem:[#allocation3 + $0xc9c] sm:$0xf]  ;;  %v16892_v29 = vor.u32 %v19065_v43, %v16889_v10  ;;  %11159 = vmatpush.bf16.msrb.mxu0 %v16636_v3  ;;  %v10954_v3 = vadd.f32 %v10953_v57, %v10940_v7 }
 0x962   :  { %v17145_v55 = vld [vmem:[#allocation3 + $0xcb8] sm:$0xf0] }
 0x963   :  { %v19193_v32 = vld [vmem:[#allocation3 + $0xe9c] sm:$0xf]  ;;  %v17148_v37 = vor.u32 %v19129_v23, %v17145_v55  ;;  %11173 = vmatpush.bf16.msrb.mxu1 %v16892_v29  ;;  %v10927_v23 = vpop.f32.mrf.mxu3 }
 0x964   :  { %v17401_v18 = vld [vmem:[#allocation3 + $0xeb8] sm:$0xf0] }
 0x965   :  { %v18993_v61 = vld [vmem:[#allocation3 + $0x85c] sm:$0xf]  ;;  %v17404_v26 = vor.u32 %v19193_v32, %v17401_v18  ;;  %11187 = vmatpush.bf16.msrb.mxu2 %v17148_v37  ;;  %v10928_v32 = vadd.f32 %v10927_v23, %v10914_v9  ;;  %v10941_v37 = vpop.f32.mrf.mxu0 }
 0x966   :  { %v16601_v30 = vld [vmem:[#allocation3 + $0x878] sm:$0xf0] }
 0x967   :  { %v19057_v41 = vld [vmem:[#allocation3 + $0xa5c] sm:$0xf]  ;;  %v16604_v2 = vor.u32 %v18993_v61, %v16601_v30  ;;  %11201 = vmatpush.bf16.msrb.mxu3 %v17404_v26  ;;  %v10967_v19 = vpop.f32.mrf.mxu2  ;;  %v10942_v30 = vadd.f32 %v10941_v37, %v10928_v32 }
 0x968   :  { %v16857_v21 = vld [vmem:[#allocation3 + $0xa78] sm:$0xf0]  ;;  %v10968_v29 = vadd.f32 %v10967_v19, %v10954_v3 }
 0x969   :  { %v19121_v16 = vld [vmem:[#allocation3 + $0xc5c] sm:$0xf]  ;;  %v16860_v40 = vor.u32 %v19057_v41, %v16857_v21  ;;  %11160 = vmatpush.bf16.msrb.mxu0 %v16604_v2  ;;  %v10955_v41 = vpop.f32.mrf.mxu1 }
 0x96a   :  { %v17113_v60 = vld [vmem:[#allocation3 + $0xc78] sm:$0xf0]  ;;  %v10956_v26 = vadd.f32 %v10955_v41, %v10942_v30 }
 0x96b   :  { %v19185_v8 = vld [vmem:[#allocation3 + $0xe5c] sm:$0xf]  ;;  %v17116_v44 = vor.u32 %v19121_v16, %v17113_v60  ;;  %11174 = vmatpush.bf16.msrb.mxu1 %v16860_v40  ;;  %v10981_v61 = vpop.f32.mrf.mxu3  ;;  %v7744_v60 = vperm.slane %v20189_v34, 6 }
 0x96c   :  { %v17369_v0 = vld [vmem:[#allocation3 + $0xe78] sm:$0xf0]  ;;  %v20217_v5 = vadd.f32 %v10981_v61, %v10968_v29 }
 0x96d   :  { %v18985_v63 = vld [vmem:[#allocation3 + $0x81c] sm:$0xf]  ;;  %v17372_v36 = vor.u32 %v19185_v8, %v17369_v0  ;;  %11188 = vmatpush.bf16.msrb.mxu2 %v17116_v44  ;;  %v10995_v13 = vpop.f32.mrf.mxu0 }
 0x96e   :  { %v16569_v58 = vld [vmem:[#allocation3 + $0x838] sm:$0xf0]  ;;  %v10996_v8 = vadd.f32 %v10995_v13, %v7744_v60 }
 0x96f   :  { %v19049_v53 = vld [vmem:[#allocation3 + $0xa1c] sm:$0xf]  ;;  %v16572_v10 = vor.u32 %v18985_v63, %v16569_v58  ;;  %11202 = vmatpush.bf16.msrb.mxu3 %v17372_v36 }
 0x970   :  { %v16825_v4 = vld [vmem:[#allocation3 + $0xa38] sm:$0xf0] }
 0x971   :  { %v19113_v47 = vld [vmem:[#allocation3 + $0xc1c] sm:$0xf]  ;;  %v16828_v55 = vor.u32 %v19049_v53, %v16825_v4  ;;  %11161 = vmatpush.bf16.msrb.mxu0 %v16572_v10  ;;  %v11009_v59 = vpop.f32.mrf.mxu1 }
 0x972   :  { %v17081_v38 = vld [vmem:[#allocation3 + $0xc38] sm:$0xf0]  ;;  %v11010_v40 = vadd.f32 %v11009_v59, %v10996_v8 }
 0x973   :  { %v19177_v48 = vld [vmem:[#allocation3 + $0xe1c] sm:$0xf]  ;;  %v17084_v28 = vor.u32 %v19113_v47, %v17081_v38  ;;  %11175 = vmatpush.bf16.msrb.mxu1 %v16828_v55 }
 0x974   :  { %v17337_v43 = vld [vmem:[#allocation3 + $0xe38] sm:$0xf0]  ;;  %11162 = vmatmul.bf16.vlgmr.msrb.gmra.mxu0 %v20063_v24  ;;  %v11215_v24 = vmax.f32 %v20217_v5, 0.0 }
 0x975   :  { %v17340_v18 = vor.u32 %v19177_v48, %v17337_v43  ;;  %11189 = vmatpush.bf16.msrb.mxu2 %v17084_v28  ;;  %v10997_v44 = vpop.f32.mrf.mxu0 }
 0x976   :  { %11176 = vmatmul.bf16.vlgmr.msrb.gmra.mxu1 %v20075_v11  ;;  %v10969_v11 = vpop.f32.mrf.mxu2  ;;  %v10998_v53 = vadd.f32 %v10997_v44, %v7744_v60 }
 0x977   :  { %11203 = vmatpush.bf16.msrb.mxu3 %v17340_v18  ;;  %v10970_v21 = vadd.f32 %v10969_v11, %v10956_v26  ;;  %v7745_v11 = vperm.slane %v20189_v34, 7 }
 0x978   :  { %11190 = vmatmul.bf16.vlgmr.msrb.gmra.mxu2 %v20069_v52  ;;  %v10983_v52 = vpop.f32.mrf.mxu3 }
 0x979   :  { %v20220_v16 = vadd.f32 %v10983_v52, %v10970_v21  ;;  %v11011_v63 = vpop.f32.mrf.mxu1 }
 0x97a   :  { %11204 = vmatmul.bf16.vlgmr.msrb.gmra.mxu3 %v20081_v54  ;;  %v11012_v47 = vadd.f32 %v11011_v63, %v10998_v53 }
 0x97b   :  { %v11223_v54 = vmax.f32 %v20220_v16, 0.0 }
 0x97e   :  { %v11023_v0 = vpop.f32.mrf.mxu2 }
 0x97f   :  { %v11024_v58 = vadd.f32 %v11023_v0, %v11010_v40 }
 0x980   :  { %v11037_v2 = vpop.f32.mrf.mxu3 }
 0x981   :  { %v11038_v36 = vadd.f32 %v11037_v2, %v11024_v58 }
 0x986   :  { %v11025_v4 = vpop.f32.mrf.mxu2 }
 0x987   :  { %v11051_v39 = vpop.f32.mrf.mxu0  ;;  %v11026_v9 = vadd.f32 %v11025_v4, %v11012_v47 }
 0x988   :  { %v11039_v38 = vpop.f32.mrf.mxu3  ;;  %v11052_v48 = vadd.f32 %v11051_v39, %v11038_v36 }
 0x989   :  { %v11065_v43 = vpop.f32.mrf.mxu1  ;;  %v11040_v23 = vadd.f32 %v11039_v38, %v11026_v9 }
 0x98a   :  { %v11066_v10 = vadd.f32 %v11065_v43, %v11052_v48 }
 0x98f   :  { %v11053_v32 = vpop.f32.mrf.mxu0 }
 0x990   :  { %v11054_v46 = vadd.f32 %v11053_v32, %v11040_v23 }
 0x991   :  { %v11079_v55 = vpop.f32.mrf.mxu2  ;;  %v11067_v57 = vpop.f32.mrf.mxu1 }
 0x992   :  { %v11080_v28 = vadd.f32 %v11079_v55, %v11066_v10  ;;  %v11068_v19 = vadd.f32 %v11067_v57, %v11054_v46 }
 0x993   :  { %v11093_v18 = vpop.f32.mrf.mxu3 }
 0x994   :  { %v20224_v7 = vadd.f32 %v11093_v18, %v11080_v28 }
 0x996   :  { %v11216_v3 = vmax.f32 %v20224_v7, 0.0 }
 0x999   :  { %v11081_v29 = vpop.f32.mrf.mxu2 }
 0x99a   :  { %v11082_v37 = vadd.f32 %v11081_v29, %v11068_v19 }
 0x99b   :  { %v11095_v61 = vpop.f32.mrf.mxu3 }
 0x99c   :  { %v20227_v30 = vadd.f32 %v11095_v61, %v11082_v37 }
 0x99e   :  { %v11224_v41 = vmax.f32 %v20227_v30, 0.0 }
 0x9b1   :  { %v11107_v26 = vpop.f32.mrf.mxu0 }
 0x9b2   :  { %v11108_v52 = vadd.f32 %v11107_v26, %v7745_v11 }
 0x9b3   :  { %v11121_v21 = vpop.f32.mrf.mxu1 }
 0x9b4   :  { %v11122_v59 = vadd.f32 %v11121_v21, %v11108_v52 }
 0x9b9   :  { %v11109_v8 = vpop.f32.mrf.mxu0 }
 0x9ba   :  { %v11110_v40 = vadd.f32 %v11109_v8, %v7745_v11 }
 0x9bb   :  { %v11135_v13 = vpop.f32.mrf.mxu2  ;;  %v11123_v0 = vpop.f32.mrf.mxu1 }
 0x9bc   :  { %v11136_v2 = vadd.f32 %v11135_v13, %v11122_v59  ;;  %v11124_v58 = vadd.f32 %v11123_v0, %v11110_v40 }
 0x9bd   :  { %v11149_v60 = vpop.f32.mrf.mxu3 }
 0x9be   :  { %v11150_v63 = vadd.f32 %v11149_v60, %v11136_v2 }
 0x9c3   :  { %v11137_v44 = vpop.f32.mrf.mxu2 }
 0x9c4   :  { %v11138_v38 = vadd.f32 %v11137_v44, %v11124_v58 }
 0x9c5   :  { %v11151_v53 = vpop.f32.mrf.mxu3 }
 0x9c6   :  { %v11152_v34 = vadd.f32 %v11151_v53, %v11138_v38 }
 0x9f1   :  { %v11163_v36 = vpop.f32.mrf.mxu0 }
 0x9f2   :  { %v11164_v4 = vadd.f32 %v11163_v36, %v11150_v63 }
 0x9f3   :  { %v11177_v47 = vpop.f32.mrf.mxu1 }
 0x9f4   :  { %v11178_v39 = vadd.f32 %v11177_v47, %v11164_v4 }
 0x9f9   :  { %v11165_v10 = vpop.f32.mrf.mxu0 }
 0x9fa   :  { %v11166_v55 = vadd.f32 %v11165_v10, %v11152_v34 }
 0x9fb   :  { %v11191_v48 = vpop.f32.mrf.mxu2  ;;  %v11179_v32 = vpop.f32.mrf.mxu1 }
 0x9fc   :  { %v11192_v43 = vadd.f32 %v11191_v48, %v11178_v39  ;;  %v11180_v18 = vadd.f32 %v11179_v32, %v11166_v55 }
 0x9fd   :  { %v11205_v9 = vpop.f32.mrf.mxu3 }
 0x9fe   :  { %v20231_v23 = vadd.f32 %v11205_v9, %v11192_v43 }
 0xa00   :  { %v11217_v28 = vmax.f32 %v20231_v23, 0.0 }
 0xa03   :  { %v11193_v46 = vpop.f32.mrf.mxu2 }
 0xa04   :  { %v11194_v57 = vadd.f32 %v11193_v46, %v11180_v18 }
 0xa05   :  { %v11207_v19 = vpop.f32.mrf.mxu3 }
 0xa06   :  { %v20234_v29 = vadd.f32 %v11207_v19, %v11194_v57 }
 0xa08   :  { %v11225_v37 = vmax.f32 %v20234_v29, 0.0 }
 0xa09   :  { %19576 = dma.done.wait [#allocation5 + $0x2], 8192 }
 0xa0a   :  { %19577 = vsyncadd [#allocation5 + $0x2], 4294959104  ;;  %v19245_v61 = vld [vmem:[#allocation4 + $0x38] sm:$0xff]  ;;  %v19244_v52 = vld [vmem:[#allocation4 + $0x30] sm:$0xff]  ;;  %v11230_v22 = vpack.c.bf16 %v11219_v1, %v11211_v31  ;;  %v11236_v35 = vpack.c.bf16 %v11225_v37, %v11217_v28  ;;  %s19593_s5 = smov [#allocation17]   ;;  %s11873_s30 = sshll.u32 %s20281_s9, 4  ;;  %s11874_s30 = int_to_ptr.hbm [resolvable:$true] %s11873_s30 }
 0xa0b   :  { %v19253_v26 = vld [vmem:[#allocation4 + $0x78] sm:$0xff]  ;;  %11753 = vmatpush.bf16.msra.mxu0 %v19245_v61  ;;  %v19252_v13 = vld [vmem:[#allocation4 + $0x70] sm:$0xff]  ;;  %v19243_v8 = vld [vmem:[#allocation4 + $0x28] sm:$0xff]  ;;  %s11871_s7 = sshll.u32 %s19593_s5, 4  ;;  %s19594_s10 = smov 128   ;;  %s11872_s7 = int_to_ptr.vmem [resolvable:$true] %s11871_s7 }
 0xa0c   :  { %v19261_v11 = vld [vmem:[#allocation4 + $0xb8] sm:$0xff]  ;;  %11767 = vmatpush.bf16.msra.mxu1 %v19253_v26  ;;  %v19260_v60 = vld [vmem:[#allocation4 + $0xb0] sm:$0xff]  ;;  %v19251_v0 = vld [vmem:[#allocation4 + $0x68] sm:$0xff]  ;;  %s19595_s11 = smov 8  }
 0xa0d   :  { %v19269_v21 = vld [vmem:[#allocation4 + $0xf8] sm:$0xff]  ;;  %11781 = vmatpush.bf16.msra.mxu2 %v19261_v11  ;;  %v19268_v59 = vld [vmem:[#allocation4 + $0xf0] sm:$0xff]  ;;  %v19259_v2 = vld [vmem:[#allocation4 + $0xa8] sm:$0xff] }
 0xa0e   :  { %11795 = vmatpush.bf16.msra.mxu3 %v19269_v21  ;;  %v19267_v40 = vld [vmem:[#allocation4 + $0xe8] sm:$0xff]  ;;  %v19242_v44 = vld [vmem:[#allocation4 + $0x20] sm:$0xff]  ;;  %v19241_v36 = vld [vmem:[#allocation4 + $0x18] sm:$0xff] }
 0xa0f   :  { %11754 = vmatpush.bf16.msra.mxu0 %v19244_v52  ;;  %v19250_v63 = vld [vmem:[#allocation4 + $0x60] sm:$0xff]  ;;  %v19249_v4 = vld [vmem:[#allocation4 + $0x58] sm:$0xff]  ;;  %v19240_v39 = vld [vmem:[#allocation4 + $0x10] sm:$0xff]  ;;  %v11231_v52 = vpack.c.bf16 %v11220_v20, %v11212_v50 }
 0xa10   :  { %11768 = vmatpush.bf16.msra.mxu1 %v19252_v13  ;;  %v19258_v58 = vld [vmem:[#allocation4 + $0xa0] sm:$0xff]  ;;  %v19257_v47 = vld [vmem:[#allocation4 + $0x98] sm:$0xff]  ;;  %v19248_v48 = vld [vmem:[#allocation4 + $0x50] sm:$0xff]  ;;  %v11229_v13 = vpack.c.bf16 %v11218_v6, %v11210_v17 }
 0xa11   :  { %11782 = vmatpush.bf16.msra.mxu2 %v19260_v60  ;;  %v19266_v53 = vld [vmem:[#allocation4 + $0xe0] sm:$0xff]  ;;  %v19265_v38 = vld [vmem:[#allocation4 + $0xd8] sm:$0xff]  ;;  %v19256_v34 = vld [vmem:[#allocation4 + $0x90] sm:$0xff]  ;;  %v11232_v60 = vpack.c.bf16 %v11221_v56, %v11213_v33 }
 0xa12   :  { %11796 = vmatpush.bf16.msra.mxu3 %v19268_v59  ;;  %v19264_v43 = vld [vmem:[#allocation4 + $0xd0] sm:$0xff]  ;;  %v19239_v9 = vld [vmem:[#allocation4 + $0x8] sm:$0xff]  ;;  %v19238_v18 = vld [vmem:[#allocation4] sm:$0xff] }
 0xa13   :  { %11755 = vmatpush.bf16.msra.mxu0 %v19243_v8  ;;  %v19247_v10 = vld [vmem:[#allocation4 + $0x48] sm:$0xff]  ;;  %v19246_v46 = vld [vmem:[#allocation4 + $0x40] sm:$0xff]  ;;  %v19277_v61 = vld [vmem:[#allocation4 + $0x138] sm:$0xff] }
 0xa14   :  { %11769 = vmatpush.bf16.msra.mxu1 %v19251_v0  ;;  %v19255_v55 = vld [vmem:[#allocation4 + $0x88] sm:$0xff]  ;;  %v19254_v57 = vld [vmem:[#allocation4 + $0x80] sm:$0xff]  ;;  %v19285_v26 = vld [vmem:[#allocation4 + $0x178] sm:$0xff] }
 0xa15   :  { %11783 = vmatpush.bf16.msra.mxu2 %v19259_v2  ;;  %v19263_v32 = vld [vmem:[#allocation4 + $0xc8] sm:$0xff]  ;;  %v19262_v19 = vld [vmem:[#allocation4 + $0xc0] sm:$0xff]  ;;  %v19293_v11 = vld [vmem:[#allocation4 + $0x1b8] sm:$0xff] }
 0xa16   :  { %11797 = vmatpush.bf16.msra.mxu3 %v19267_v40  ;;  %v19301_v21 = vld [vmem:[#allocation4 + $0x1f8] sm:$0xff]  ;;  %v19276_v50 = vld [vmem:[#allocation4 + $0x130] sm:$0xff]  ;;  %v19275_v15 = vld [vmem:[#allocation4 + $0x128] sm:$0xff] }
 0xa17   :  { %11756 = vmatpush.bf16.msra.mxu0 %v19242_v44  ;;  %v19284_v27 = vld [vmem:[#allocation4 + $0x170] sm:$0xff]  ;;  %v19283_v6 = vld [vmem:[#allocation4 + $0x168] sm:$0xff]  ;;  %v19274_v42 = vld [vmem:[#allocation4 + $0x120] sm:$0xff] }
 0xa18   :  { %11770 = vmatpush.bf16.msra.mxu1 %v19250_v63  ;;  %v19292_v45 = vld [vmem:[#allocation4 + $0x1b0] sm:$0xff]  ;;  %v19291_v62 = vld [vmem:[#allocation4 + $0x1a8] sm:$0xff]  ;;  %v19282_v1 = vld [vmem:[#allocation4 + $0x160] sm:$0xff] }
 0xa19   :  { %11784 = vmatpush.bf16.msra.mxu2 %v19258_v58  ;;  %v19300_v17 = vld [vmem:[#allocation4 + $0x1f0] sm:$0xff]  ;;  %v19299_v31 = vld [vmem:[#allocation4 + $0x1e8] sm:$0xff]  ;;  %v19290_v20 = vld [vmem:[#allocation4 + $0x1a0] sm:$0xff] }
 0xa1a   :  { %11798 = vmatpush.bf16.msra.mxu3 %v19266_v53  ;;  %v19298_v51 = vld [vmem:[#allocation4 + $0x1e0] sm:$0xff]  ;;  %v19273_v33 = vld [vmem:[#allocation4 + $0x118] sm:$0xff]  ;;  %v19272_v8 = vld [vmem:[#allocation4 + $0x110] sm:$0xff] }
 0xa1b   :  { %11757 = vmatpush.bf16.msra.mxu0 %v19241_v36  ;;  %v19281_v25 = vld [vmem:[#allocation4 + $0x158] sm:$0xff]  ;;  %v19280_v0 = vld [vmem:[#allocation4 + $0x150] sm:$0xff]  ;;  %v19271_v44 = vld [vmem:[#allocation4 + $0x108] sm:$0xff] }
 0xa1c   :  { %11771 = vmatpush.bf16.msra.mxu1 %v19249_v4  ;;  %v19289_v56 = vld [vmem:[#allocation4 + $0x198] sm:$0xff]  ;;  %v19288_v2 = vld [vmem:[#allocation4 + $0x190] sm:$0xff]  ;;  %v19279_v63 = vld [vmem:[#allocation4 + $0x148] sm:$0xff] }
 0xa1d   :  { %11785 = vmatpush.bf16.msra.mxu2 %v19257_v47  ;;  %v19297_v59 = vld [vmem:[#allocation4 + $0x1d8] sm:$0xff]  ;;  %v19296_v40 = vld [vmem:[#allocation4 + $0x1d0] sm:$0xff]  ;;  %v19287_v58 = vld [vmem:[#allocation4 + $0x188] sm:$0xff] }
 0xa1e   :  { %11799 = vmatpush.bf16.msra.mxu3 %v19265_v38  ;;  %v19295_v53 = vld [vmem:[#allocation4 + $0x1c8] sm:$0xff]  ;;  %v19270_v36 = vld [vmem:[#allocation4 + $0x100] sm:$0xff] }
 0xa1f   :  { %11758 = vmatpush.bf16.msra.mxu0 %v19240_v39  ;;  %v19278_v4 = vld [vmem:[#allocation4 + $0x140] sm:$0xff]  ;;  %v11233_v39 = vpack.c.bf16 %v11222_v12, %v11214_v49  ;;  %v19323_v14 = vld [vmem:[#allocation15] ss:$0 sm:$0xff] }
 0xa20   :  { %11772 = vmatpush.bf16.msra.mxu1 %v19248_v48  ;;  %v19286_v47 = vld [vmem:[#allocation4 + $0x180] sm:$0xff]  ;;  %v11234_v48 = vpack.c.bf16 %v11223_v54, %v11215_v24 }
 0xa21   :  { %11786 = vmatpush.bf16.msra.mxu2 %v19256_v34  ;;  %v19294_v38 = vld [vmem:[#allocation4 + $0x1c0] sm:$0xff]  ;;  %v11235_v34 = vpack.c.bf16 %v11224_v41, %v11216_v3 }
 0xa22   :  { %11800 = vmatpush.bf16.msra.mxu3 %v19264_v43 }
 0xa23   :  { %11759 = vmatpush.bf16.msra.mxu0 %v19239_v9 }
 0xa24   :  { %11773 = vmatpush.bf16.msra.mxu1 %v19247_v10 }
 0xa25   :  { %11787 = vmatpush.bf16.msra.mxu2 %v19255_v55 }
 0xa26   :  { %11801 = vmatpush.bf16.msra.mxu3 %v19263_v32 }
 0xa27   :  { %11760 = vmatpush.bf16.msra.mxu0 %v19238_v18 }
 0xa28   :  { %11774 = vmatpush.bf16.msra.mxu1 %v19246_v46 }
 0xa29   :  { %11788 = vmatpush.bf16.msra.mxu2 %v19254_v57 }
 0xa2a   :  { %11802 = vmatpush.bf16.msra.mxu3 %v19262_v19  ;;  %11761 = vmatmul.bf16.vlgmr.msra.gmra.mxu0 %v11229_v13 }
 0xa2b   :  { %11809 = vmatpush.bf16.msrb.mxu0 %v19277_v61  ;;  %11775 = vmatmul.bf16.vlgmr.msra.gmra.mxu1 %v11230_v22 }
 0xa2c   :  { %11823 = vmatpush.bf16.msrb.mxu1 %v19285_v26  ;;  %11789 = vmatmul.bf16.vlgmr.msra.gmra.mxu2 %v11231_v52 }
 0xa2d   :  { %11837 = vmatpush.bf16.msrb.mxu2 %v19293_v11  ;;  %11803 = vmatmul.bf16.vlgmr.msra.gmra.mxu3 %v11232_v60 }
 0xa2e   :  { %11851 = vmatpush.bf16.msrb.mxu3 %v19301_v21 }
 0xa2f   :  { %11810 = vmatpush.bf16.msrb.mxu0 %v19276_v50 }
 0xa30   :  { %11824 = vmatpush.bf16.msrb.mxu1 %v19284_v27 }
 0xa31   :  { %11838 = vmatpush.bf16.msrb.mxu2 %v19292_v45 }
 0xa32   :  { %11852 = vmatpush.bf16.msrb.mxu3 %v19300_v17 }
 0xa33   :  { %11811 = vmatpush.bf16.msrb.mxu0 %v19275_v15 }
 0xa34   :  { %11825 = vmatpush.bf16.msrb.mxu1 %v19283_v6 }
 0xa35   :  { %11839 = vmatpush.bf16.msrb.mxu2 %v19291_v62 }
 0xa36   :  { %11853 = vmatpush.bf16.msrb.mxu3 %v19299_v31 }
 0xa37   :  { %11812 = vmatpush.bf16.msrb.mxu0 %v19274_v42 }
 0xa38   :  { %11826 = vmatpush.bf16.msrb.mxu1 %v19282_v1 }
 0xa39   :  { %11840 = vmatpush.bf16.msrb.mxu2 %v19290_v20 }
 0xa3a   :  { %11854 = vmatpush.bf16.msrb.mxu3 %v19298_v51 }
 0xa3b   :  { %11813 = vmatpush.bf16.msrb.mxu0 %v19273_v33 }
 0xa3c   :  { %11827 = vmatpush.bf16.msrb.mxu1 %v19281_v25 }
 0xa3d   :  { %11841 = vmatpush.bf16.msrb.mxu2 %v19289_v56 }
 0xa3e   :  { %11855 = vmatpush.bf16.msrb.mxu3 %v19297_v59 }
 0xa3f   :  { %11814 = vmatpush.bf16.msrb.mxu0 %v19272_v8 }
 0xa40   :  { %11828 = vmatpush.bf16.msrb.mxu1 %v19280_v0 }
 0xa41   :  { %11842 = vmatpush.bf16.msrb.mxu2 %v19288_v2 }
 0xa42   :  { %11856 = vmatpush.bf16.msrb.mxu3 %v19296_v40 }
 0xa43   :  { %11815 = vmatpush.bf16.msrb.mxu0 %v19271_v44 }
 0xa44   :  { %11829 = vmatpush.bf16.msrb.mxu1 %v19279_v63 }
 0xa45   :  { %11843 = vmatpush.bf16.msrb.mxu2 %v19287_v58 }
 0xa46   :  { %11857 = vmatpush.bf16.msrb.mxu3 %v19295_v53 }
 0xa47   :  { %11816 = vmatpush.bf16.msrb.mxu0 %v19270_v36 }
 0xa48   :  { %11830 = vmatpush.bf16.msrb.mxu1 %v19278_v4 }
 0xa49   :  { %11844 = vmatpush.bf16.msrb.mxu2 %v19286_v47 }
 0xa4a   :  { %11858 = vmatpush.bf16.msrb.mxu3 %v19294_v38  ;;  %11817 = vmatmul.bf16.vlgmr.msrb.gmra.mxu0 %v11233_v39 }
 0xa4b   :  { %11831 = vmatmul.bf16.vlgmr.msrb.gmra.mxu1 %v11234_v48 }
 0xa4c   :  { %11845 = vmatmul.bf16.vlgmr.msrb.gmra.mxu2 %v11235_v34 }
 0xa4d   :  { %11859 = vmatmul.bf16.vlgmr.msrb.gmra.mxu3 %v11236_v35 }
 0xaa7   :  { %v11762_v49 = vpop.f32.mrf.mxu0 }
 0xaa8   :  { %v11776_v12 = vpop.f32.mrf.mxu1  ;;  %v11763_v5 = vadd.f32 %v19323_v14, %v11762_v49 }
 0xaaa   :  { %v11777_v54 = vadd.f32 %v11776_v12, %v11763_v5 }
 0xaaf   :  { %v11790_v24 = vpop.f32.mrf.mxu2  ;;  %v11764_v7 = vpop.f32.mrf.mxu0 }
 0xab0   :  { %v11804_v16 = vpop.f32.mrf.mxu3  ;;  %v11778_v3 = vpop.f32.mrf.mxu1  ;;  %v11791_v30 = vadd.f32 %v11790_v24, %v11777_v54  ;;  %v11765_v41 = vadd.f32 %v19323_v14, %v11764_v7 }
 0xab2   :  { %v11805_v28 = vadd.f32 %v11804_v16, %v11791_v30  ;;  %v11779_v37 = vadd.f32 %v11778_v3, %v11765_v41 }
 0xab7   :  { %v11792_v23 = vpop.f32.mrf.mxu2 }
 0xab8   :  { %v11806_v29 = vpop.f32.mrf.mxu3  ;;  %v11793_v55 = vadd.f32 %v11792_v23, %v11779_v37 }
 0xaba   :  { %v11807_v57 = vadd.f32 %v11806_v29, %v11793_v55 }
 0xac7   :  { %v11818_v43 = vpop.f32.mrf.mxu0 }
 0xac8   :  { %v11819_v9 = vadd.f32 %v11818_v43, %v11805_v28  ;;  %v11832_v10 = vpop.f32.mrf.mxu1 }
 0xaca   :  { %v11833_v32 = vadd.f32 %v11832_v10, %v11819_v9 }
 0xacf   :  { %v11846_v18 = vpop.f32.mrf.mxu2  ;;  %v11820_v61 = vpop.f32.mrf.mxu0 }
 0xad0   :  { %v11860_v46 = vpop.f32.mrf.mxu3  ;;  %v11847_v19 = vadd.f32 %v11846_v18, %v11833_v32  ;;  %v11821_v11 = vadd.f32 %v11820_v61, %v11807_v57  ;;  %v11834_v21 = vpop.f32.mrf.mxu1 }
 0xad2   :  { %v11861_v26 = vadd.f32 %v11860_v46, %v11847_v19  ;;  %v11835_v52 = vadd.f32 %v11834_v21, %v11821_v11 }
 0xad4   :  { %11865 = vst [vmem:[#allocation17] sm:$0xff] %v11861_v26 }
 0xad7   :  { %v11848_v13 = vpop.f32.mrf.mxu2 }
 0xad8   :  { %v11849_v60 = vadd.f32 %v11848_v13, %v11835_v52  ;;  %v11862_v22 = vpop.f32.mrf.mxu3 }
 0xada   :  { %v11863_v50 = vadd.f32 %v11862_v22, %v11849_v60 }
 0xadc   :  { %11866 = vst [vmem:[#allocation17 + $0x8] sm:$0xff] %v11863_v50 }
 0xadd   :  { %11879 = dma.vmem_to_hbm [thread:$0]  %s11872_s7, 256, %s11874_s30, [#allocation8], %s19594_s10, %s19594_s10, %s19595_s11  }
 0xade   :  { %19578 = dma.done.wait [#allocation8], 256  }
 0xadf   :  { %19579 = vsyncadd [#allocation8], 4294967040 }
 0xae0   :  { %11884 = vsyncpa [#allocation7], 1 }
 0xae1   :  { %11885 = vsyncpa [#allocation10], 1 }
 0xae2   :  { %11886 = vsyncpa [#allocation13], 1 }
 0xae3   :  { %11887 = vsyncpa [#allocation16], 1 }
 0xae4   :  { %11888 = vsyncpa [#allocation8], 1 }
 0xae5   :  { %11889 = vsyncmov [#allocation5] }
 0xae8   :  { %s11890_s0 = vpop.sfrf %11889 }
 0xae9   :  { %p17821_p0 = scmp.ne.s32.totalorder %s11890_s0, 0 }
 0xaeb   :  { %11894 = shalt.err (%p17821_p0)  }
 0xaec   :  { %11896 = vsyncmov [#allocation5 + $0x1] }
 0xaef   :  { %s11897_s9 = vpop.sfrf %11896 }
 0xaf0   :  { %p17822_p1 = scmp.ne.s32.totalorder %s11897_s9, 0 }
 0xaf2   :  { %11901 = shalt.err (%p17822_p1)  }
 0xaf3   :  { %11903 = vsyncmov [#allocation5 + $0x2] }
 0xaf6   :  { %s11904_s12 = vpop.sfrf %11903 }
 0xaf7   :  { %p17823_p2 = scmp.ne.s32.totalorder %s11904_s12, 0 }
 0xaf9   :  { %11908 = shalt.err (%p17823_p2)  }

</bundles_post_ra>
